<compile_context>
chip_gen: v7x
topology: tpu7x:2x2x1
jax: 0.10.0
libtpu: 0.0.40
codegen_flags: <defaults>
</compile_context>

<pallas_src>
import functools
import math

import jax
import jax.numpy as jnp
from jax.experimental import pallas as pl
from jax.experimental.pallas import tpu as pltpu


# ------------------------------ helpers --------------------------------------

def _lane_pack(n_rows, cout, max_lanes=128):
    """How many pixels to pack into lanes so the matmul output width is lane-dense."""
    p = 1
    while (p * 2) * cout <= max_lanes and n_rows % (p * 2) == 0:
        p *= 2
    return p


# ------------------------------ 1x1 conv (pointwise) -------------------------

def _pointwise_kernel(x_ref, w_ref, b_ref, o_ref):
    # per-pixel matmul: (tile, Cin_p) @ (Cin_p, Cout_p) + (1, Cout_p)
    o_ref[...] = (
        jnp.dot(x_ref[...], w_ref[...], preferred_element_type=jnp.float32)
        + b_ref[...]
    )


def pointwise_conv(x2d, w, b, *, tile_rows=1024):
    n, cin = x2d.shape
    cout = w.shape[1]

    # lane packing: fold p pixels into the lane dim with a block-diagonal weight so
    # K and N reach 128 and the output store is unmasked (lane-dense).
    p = _lane_pack(n, cout)
    if p > 1:
        x2d = x2d.reshape(n // p, p * cin)                # contiguous reshape (free)
        w = jnp.kron(jnp.eye(p, dtype=w.dtype), w)        # (p*cin, p*cout) block-diag
        b = jnp.tile(b, p)

    rows, cin_p = x2d.shape
    cout_p = w.shape[1]
    tile = min(tile_rows, rows)
    rows_pad = pl.cdiv(rows, tile) * tile
    if rows_pad != rows:
        x2d = jnp.pad(x2d, ((0, rows_pad - rows), (0, 0)))

    out = pl.pallas_call(
        _pointwise_kernel,
        out_shape=jax.ShapeDtypeStruct((rows_pad, cout_p), jnp.float32),
        grid=(rows_pad // tile,),
        in_specs=[
            pl.BlockSpec((tile, cin_p), lambda i: (i, 0)),
            pl.BlockSpec((cin_p, cout_p), lambda i: (0, 0)),
            pl.BlockSpec((1, cout_p), lambda i: (0, 0)),
        ],
        out_specs=pl.BlockSpec((tile, cout_p), lambda i: (i, 0)),
        compiler_params=pltpu.CompilerParams(dimension_semantics=("parallel",)),
    )(x2d, w, b.reshape(1, cout_p))

    if rows_pad != rows:
        out = out[:rows]
    if p > 1:
        out = out.reshape(n, cout)
    return out


# ------------------------------ depthwise convs -------------------------------

def _dwconv_s1_kernel(x_ref, w_ref, b_ref, o_ref, *, ks, H, W):
    # x_ref: (1, H+2p, W+2p, C) padded image; w_ref: (ks*ks, C); b_ref: (1, C)
    C = o_ref.shape[-1]
    w_taps = w_ref[...].reshape(ks * ks, 1, 1, C)      # hoisted: single load + reshape
    acc = jnp.zeros((H, W, C), jnp.float32)
    for kh in range(ks):
        for kw in range(ks):
            acc = acc + x_ref[0, kh:kh + H, kw:kw + W, :] * w_taps[kh * ks + kw]
    o_ref[0] = acc + b_ref[...].reshape(1, 1, C)


def depthwise_conv_s1(x_nhwc, w, b, ks):
    """'same'-padded stride-1 depthwise conv, one batch image per grid step."""
    pad = ks // 2
    B, H, W, C = x_nhwc.shape
    Hp, Wp = H + 2 * pad, W + 2 * pad
    xp = jnp.pad(x_nhwc, ((0, 0), (pad, pad), (pad, pad), (0, 0)))
    kern = functools.partial(_dwconv_s1_kernel, ks=ks, H=H, W=W)
    return pl.pallas_call(
        kern,
        out_shape=jax.ShapeDtypeStruct((B, H, W, C), jnp.float32),
        grid=(B,),
        in_specs=[
            pl.BlockSpec((1, Hp, Wp, C), lambda bi: (bi, 0, 0, 0)),
            pl.BlockSpec((ks * ks, C), lambda bi: (0, 0)),
            pl.BlockSpec((1, C), lambda bi: (0, 0)),
        ],
        out_specs=pl.BlockSpec((1, H, W, C), lambda bi: (bi, 0, 0, 0)),
        compiler_params=pltpu.CompilerParams(dimension_semantics=("parallel",)),
    )(xp, w.reshape(ks * ks, C), b.reshape(1, C))


def _dwconv_s2_kernel(ph_ref, w_ref, b_ref, o_ref, *, ks, Hout, Wout):
    # ph_ref: (1, 4, Hout+2, Wout+2, C) phase planes: ph[(kh%2)*2+(kw%2)][i,j] =
    #         xpad[2i+kh%2, 2j+kw%2].  Output computed at stride-2 resolution directly.
    C = o_ref.shape[-1]
    w_taps = w_ref[...].reshape(ks * ks, 1, 1, C)      # hoisted: single load + reshape
    acc = jnp.zeros((Hout, Wout, C), jnp.float32)
    for kh in range(ks):
        for kw in range(ks):
            phase = (kh % 2) * 2 + (kw % 2)
            patch = ph_ref[0, phase,
                           kh // 2: kh // 2 + Hout,
                           kw // 2: kw // 2 + Wout, :]
            acc = acc + patch * w_taps[kh * ks + kw]
    o_ref[0] = acc + b_ref[...].reshape(1, 1, C)


def depthwise_conv_s2(x_nhwc, w, b, ks=5):
    """'same'-padded stride-2 depthwise conv via space-to-depth phase decomposition.

    Matches nn.Conv2d(C, C, ks, stride=2, padding=ks//2, groups=C); only the strided
    output is ever computed (no full-resolution pass + subsample)."""
    assert ks == 5
    pad = ks // 2
    B, H, W, C = x_nhwc.shape
    Hout, Wout = -(-H // 2), -(-W // 2)
    Hp2, Wp2 = Hout + pad, Wout + pad
    Hp, Wp = 2 * Hp2, 2 * Wp2
    xp = jnp.pad(x_nhwc, ((0, 0), (pad, Hp - H - pad), (pad, Wp - W - pad), (0, 0)))
    # phases[b, (r*2+s), i, j, c] = xp[b, 2i+r, 2j+s, c]
    phases = (xp.reshape(B, Hp2, 2, Wp2, 2, C)
                .transpose(0, 2, 4, 1, 3, 5)
                .reshape(B, 4, Hp2, Wp2, C))
    kern = functools.partial(_dwconv_s2_kernel, ks=ks, Hout=Hout, Wout=Wout)
    return pl.pallas_call(
        kern,
        out_shape=jax.ShapeDtypeStruct((B, Hout, Wout, C), jnp.float32),
        grid=(B,),
        in_specs=[
            pl.BlockSpec((1, 4, Hp2, Wp2, C), lambda bi: (bi, 0, 0, 0, 0)),
            pl.BlockSpec((ks * ks, C), lambda bi: (0, 0)),
            pl.BlockSpec((1, C), lambda bi: (0, 0)),
        ],
        out_specs=pl.BlockSpec((1, Hout, Wout, C), lambda bi: (bi, 0, 0, 0)),
        compiler_params=pltpu.CompilerParams(dimension_semantics=("parallel",)),
    )(phases, w.reshape(ks * ks, C), b.reshape(1, C))


# ------------------------------ attention -------------------------------------

def _attn_kernel(q_ref, kv_ref, o_ref, *, num_heads, dim_head, scale):
    # q_ref: (1, N, C) with C = num_heads*dim_head, head-major channels.
    # kv_ref: (1, M, 2C): first C channels = k, last C channels = v (head-major).
    C = num_heads * dim_head
    q = q_ref[0] * scale              # fold softmax scale into q (N x C, not N x M)
    kv = kv_ref[0]
    outs = []
    for hh in range(num_heads):
        lo = hh * dim_head
        hi = lo + dim_head
        qh = q[:, lo:hi]              # (N, dh)
        kh = kv[:, lo:hi]             # (M, dh)
        vh = kv[:, C + lo:C + hi]     # (M, dh)
        s = jax.lax.dot_general(qh, kh, (((1,), (1,)), ((), ())),
                                preferred_element_type=jnp.float32)      # (N, M)
        s = s - jnp.max(s, axis=-1, keepdims=True)
        p = jnp.exp(s)
        l = jnp.sum(p, axis=-1, keepdims=True)
        # NOTE: pl.reciprocal(l, approx=True) would move the divide to the idle EUP
        # slot, but its ~1e-3 relative error would break the 1e-4 check below.
        outs.append(jnp.dot(p, vh, preferred_element_type=jnp.float32) / l)
    # single lane-dense (N, C) store instead of num_heads masked partial stores
    o_ref[0] = jnp.concatenate(outs, axis=-1)


def attention(q_bnc, kv_bnc, *, num_heads, dim_head, scale):
    b, N, C = q_bnc.shape
    M, C2 = kv_bnc.shape[1], kv_bnc.shape[2]
    kern = functools.partial(_attn_kernel, num_heads=num_heads,
                             dim_head=dim_head, scale=scale)
    return pl.pallas_call(
        kern,
        out_shape=jax.ShapeDtypeStruct((b, N, C), jnp.float32),
        grid=(b,),
        in_specs=[
            pl.BlockSpec((1, N, C), lambda bi: (bi, 0, 0)),
            pl.BlockSpec((1, M, C2), lambda bi: (bi, 0, 0)),
        ],
        out_specs=pl.BlockSpec((1, N, C), lambda bi: (bi, 0, 0)),
        compiler_params=pltpu.CompilerParams(dimension_semantics=("parallel",)),
    )(q_bnc, kv_bnc)


# ------------------------------ fused gating + mixer ---------------------------

def _fused_mixer_kernel(l_ref, g_ref, w_ref, b_ref, o_ref):
    L = l_ref[...]                       # local_mixer(q_local)   (tile, Cin_p)
    G = g_ref[...]                       # global_feat            (tile, Cin_p)
    lf = L * jax.nn.sigmoid(L)           # local_feat * local_weight
    pre = lf * jax.nn.sigmoid(G) * G     # * local2global * global_feat
    o_ref[...] = (
        jnp.dot(pre, w_ref[...], preferred_element_type=jnp.float32)
        + b_ref[...]
    )


def fused_mixer(l2d, g2d, w, b, *, tile_rows=1024):
    n, cin = l2d.shape
    cout = w.shape[1]

    p = _lane_pack(n, cout)
    if p > 1:
        l2d = l2d.reshape(n // p, p * cin)
        g2d = g2d.reshape(n // p, p * cin)
        w = jnp.kron(jnp.eye(p, dtype=w.dtype), w)
        b = jnp.tile(b, p)

    rows, cin_p = l2d.shape
    cout_p = w.shape[1]
    tile = min(tile_rows, rows)
    rows_pad = pl.cdiv(rows, tile) * tile
    if rows_pad != rows:
        l2d = jnp.pad(l2d, ((0, rows_pad - rows), (0, 0)))
        g2d = jnp.pad(g2d, ((0, rows_pad - rows), (0, 0)))

    out = pl.pallas_call(
        _fused_mixer_kernel,
        out_shape=jax.ShapeDtypeStruct((rows_pad, cout_p), jnp.float32),
        grid=(rows_pad // tile,),
        in_specs=[
            pl.BlockSpec((tile, cin_p), lambda i: (i, 0)),
            pl.BlockSpec((tile, cin_p), lambda i: (i, 0)),
            pl.BlockSpec((cin_p, cout_p), lambda i: (0, 0)),
            pl.BlockSpec((1, cout_p), lambda i: (0, 0)),
        ],
        out_specs=pl.BlockSpec((tile, cout_p), lambda i: (i, 0)),
        compiler_params=pltpu.CompilerParams(dimension_semantics=("parallel",)),
    )(l2d, g2d, w, b.reshape(1, cout_p))

    if rows_pad != rows:
        out = out[:rows]
    if p > 1:
        out = out.reshape(n, cout)
    return out


# ---------------------------- parameters & forward ---------------------------

def init_params(key, dim, kernel_size, num_heads, window_size):
    del num_heads
    n_stage = 0 if window_size == 1 else int(round(math.log2(window_size)))
    keys = jax.random.split(key, 9)

    def normal(k, shape, scale=0.05):
        return scale * jax.random.normal(k, shape, jnp.float32)

    params = {
        'wq':  normal(keys[0], (dim, dim)),
        'bq':  normal(keys[1], (dim,)),
        'wkv': normal(keys[2], (dim, 2 * dim)),
        'bkv': normal(keys[3], (2 * dim,)),
        'w_lm': normal(keys[4], (kernel_size, kernel_size, dim), 0.1),
        'b_lm': normal(keys[5], (dim,)),
        'wm':  normal(keys[6], (dim, dim)),
        'bm':  normal(keys[7], (dim,)),
        'pool': [],
    }
    pk = jax.random.split(keys[8], max(n_stage, 1) * 8)
    eps = 1e-5
    for s in range(n_stage):
        k0 = pk[s * 8:(s + 1) * 8]
        dw_w = normal(k0[0], (5, 5, dim), 0.1)
        dw_b = normal(k0[1], (dim,))
        gamma = 1.0 + 0.1 * jax.random.normal(k0[2], (dim,), jnp.float32)
        beta = 0.05 * jax.random.normal(k0[3], (dim,), jnp.float32)
        rmean = 0.05 * jax.random.normal(k0[4], (dim,), jnp.float32)
        rvar = 1.0 + 0.1 * jnp.abs(jax.random.normal(k0[5], (dim,), jnp.float32))
        scale = gamma / jnp.sqrt(rvar + eps)
        shift = beta - rmean * scale
        stage = {                       # eval-mode BN folded into the conv
            'dw_w': dw_w * scale[None, None, :],
            'dw_b': dw_b * scale + shift,
        }
        if s != n_stage - 1:
            stage['lin_w'] = normal(k0[6], (dim, dim))
            stage['lin_b'] = normal(k0[7], (dim,))
        params['pool'].append(stage)
    return params


def fasa_forward(x_nchw, params, *, num_heads, window_size, kernel_size):
    del window_size
    b, c, h, w = x_nchw.shape
    dh = c // num_heads
    scale = dh ** (-0.5)
    N = h * w
    xh = jnp.transpose(x_nchw, (0, 2, 3, 1)).astype(jnp.float32)         # NHWC

    # q = 1x1 conv (lane-packed, row-tiled)
    q2d = pointwise_conv(xh.reshape(-1, c), params['wq'], params['bq'])  # (b*N, c)

    # pool (refined_downsample): per stage dwconv5/s2 (+folded eval BN) (+1x1 linear)
    pooled = xh
    for stage in params['pool']:
        pooled = depthwise_conv_s2(pooled, stage['dw_w'], stage['dw_b'], 5)
        if 'lin_w' in stage:
            B_, H_, W_, C_ = pooled.shape
            pooled = pointwise_conv(pooled.reshape(-1, C_), stage['lin_w'],
                                    stage['lin_b']).reshape(B_, H_, W_, C_)
    Hs, Ws = pooled.shape[1], pooled.shape[2]
    M = Hs * Ws

    # kv = 1x1 conv on pooled (first c channels = k, last c = v; head-major within)
    kv2d = pointwise_conv(pooled.reshape(-1, c), params['wkv'], params['bkv'])

    # attention over all heads, channels-last layout -> no q/k/v/g transposes in XLA
    g = attention(q2d.reshape(b, N, c), kv2d.reshape(b, M, 2 * c),
                  num_heads=num_heads, dim_head=dh, scale=scale)         # (b, N, c)

    # local path: depthwise kxk conv on q_local
    local_pre = depthwise_conv_s1(q2d.reshape(b, h, w, c), params['w_lm'],
                                  params['b_lm'], kernel_size)

    out2d = fused_mixer(local_pre.reshape(-1, c), g.reshape(-1, c),
                        params['wm'], params['bm'])
    return out2d.reshape(b, h, w, c).transpose(0, 3, 1, 2)               # NCHW


# ---------------------------- pure-JAX reference ------------------------------

def fasa_reference(x_nchw, params, *, num_heads, window_size, kernel_size):
    del window_size
    b, c, h, w = x_nchw.shape
    dh = c // num_heads
    scale = dh ** (-0.5)
    xh = jnp.transpose(x_nchw, (0, 2, 3, 1)).astype(jnp.float32)

    def pw(x4, w_, b_):
        return jnp.einsum('bhwc,cd->bhwd', x4, w_) + b_

    def dw(x4, w_, b_, ks, stride):
        pad = ks // 2
        B, H, W, C = x4.shape
        xp = jnp.pad(x4, ((0, 0), (pad, pad), (pad, pad), (0, 0)))
        acc = jnp.zeros((B, H, W, C), jnp.float32)
        for kh in range(ks):
            for kw in range(ks):
                acc = acc + xp[:, kh:kh + H, kw:kw + W, :] * w_[kh, kw][None, None, None, :]
        acc = acc + b_
        if stride > 1:
            acc = acc[:, ::stride, ::stride, :]
        return acc

    q_local = pw(xh, params['wq'], params['bq'])
    pooled = xh
    for stage in params['pool']:
        pooled = dw(pooled, stage['dw_w'], stage['dw_b'], 5, 2)
        if 'lin_w' in stage:
            pooled = pw(pooled, stage['lin_w'], stage['lin_b'])
    Hs, Ws = pooled.shape[1], pooled.shape[2]
    kv = pw(pooled, params['wkv'], params['bkv']).reshape(b, Hs * Ws, 2, num_heads, dh)
    q = q_local.reshape(b, h * w, num_heads, dh).transpose(0, 2, 1, 3)
    k = kv[:, :, 0].transpose(0, 2, 1, 3)
    v = kv[:, :, 1].transpose(0, 2, 1, 3)
    s = scale * jnp.einsum('bhnd,bhmd->bhnm', q, k)
    p = jax.nn.softmax(s, axis=-1)
    g = jnp.einsum('bhnm,bhmd->bhnd', p, v)
    g_nhwc = g.transpose(0, 2, 1, 3).reshape(b, h, w, c)
    local_pre = dw(q_local, params['w_lm'], params['b_lm'], kernel_size, 1)
    lf = local_pre * jax.nn.sigmoid(local_pre)
    pre = lf * jax.nn.sigmoid(g_nhwc) * g_nhwc
    out = pw(pre, params['wm'], params['bm'])
    return out.transpose(0, 3, 1, 2)


# ---------------------------- main -------------------------------------------

if __name__ == "__main__":
    b, dim, h, w = 2, 32, 16, 16
    num_heads, window_size, kernel_size = 4, 2, 3

    x = jax.random.normal(jax.random.PRNGKey(0), (b, dim, h, w), jnp.float32)
    params = init_params(jax.random.PRNGKey(1), dim, kernel_size, num_heads,
                         window_size)

    fwd = jax.jit(functools.partial(fasa_forward, num_heads=num_heads,
                                    window_size=window_size,
                                    kernel_size=kernel_size))
    out = fwd(x, params)
    out = jax.block_until_ready(out)

    ref = fasa_reference(x, params, num_heads=num_heads,
                         window_size=window_size, kernel_size=kernel_size)
    assert out.shape == (b, dim, h, w)
    err = float(jnp.max(jnp.abs(out - ref)))
    assert jnp.allclose(out, ref, rtol=1e-4, atol=1e-4), f"max abs err {err}"
    print("KERNEL_OK")
</pallas_src>

<mosaic_0001>
module attributes {stable_mosaic.version = 11 : i64} {
  func.func @_dwconv_s2_kernel(%arg0: i32, %arg1: memref<1x4x10x10x32xf32, #tpu.memory_space<vmem>>, %arg2: memref<25x32xf32, #tpu.memory_space<vmem>>, %arg3: memref<1x32xf32, #tpu.memory_space<vmem>>, %arg4: memref<1x8x8x32xf32, #tpu.memory_space<vmem>>) attributes {dimension_semantics = [#tpu.dimension_semantics<parallel>], iteration_bounds = array<i64: 2>, scalar_prefetch = 0 : i64, scratch_operands = 0 : i64, tpu.core_type = #tpu.core_type<tc>, window_params = [{transform_indices = @transform_0, window_bounds = array<i64: 1, 4, 10, 10, 32>}, {pipeline_mode = #tpu.pipeline_mode<synchronous>, transform_indices = @transform_1, window_bounds = array<i64: 25, 32>}, {pipeline_mode = #tpu.pipeline_mode<synchronous>, transform_indices = @transform_2, window_bounds = array<i64: 1, 32>}, {transform_indices = @transform_3, window_bounds = array<i64: 1, 8, 8, 32>}]} {
    %c0 = arith.constant 0 : index
    %c0_0 = arith.constant 0 : index
    %0 = vector.load %arg2[%c0, %c0_0] : memref<25x32xf32, #tpu.memory_space<vmem>>, vector<25x32xf32>
    %1 = vector.shape_cast %0 : vector<25x32xf32> to vector<25x1x1x32xf32>
    %cst = arith.constant 0.000000e+00 : f32
    %2 = vector.broadcast %cst : f32 to vector<8x8x32xf32>
    %c0_1 = arith.constant 0 : index
    %c0_2 = arith.constant 0 : index
    %c0_3 = arith.constant 0 : index
    %c0_4 = arith.constant 0 : index
    %c0_5 = arith.constant 0 : index
    %3 = vector.load %arg1[%c0_1, %c0_2, %c0_3, %c0_4, %c0_5] : memref<1x4x10x10x32xf32, #tpu.memory_space<vmem>>, vector<1x1x8x8x32xf32>
    %4 = vector.shape_cast %3 : vector<1x1x8x8x32xf32> to vector<8x8x32xf32>
    %5 = vector.extract_strided_slice %1 {offsets = [0, 0, 0, 0], sizes = [1, 1, 1, 32], strides = [1, 1, 1, 1]} : vector<25x1x1x32xf32> to vector<1x1x1x32xf32>
    %6 = vector.shape_cast %5 : vector<1x1x1x32xf32> to vector<1x1x32xf32>
    %7 = vector.broadcast %6 : vector<1x1x32xf32> to vector<8x8x32xf32>
    %8 = arith.mulf %4, %7 : vector<8x8x32xf32>
    %9 = arith.addf %2, %8 : vector<8x8x32xf32>
    %c0_6 = arith.constant 0 : index
    %c1 = arith.constant 1 : index
    %c0_7 = arith.constant 0 : index
    %c0_8 = arith.constant 0 : index
    %c0_9 = arith.constant 0 : index
    %10 = vector.load %arg1[%c0_6, %c1, %c0_7, %c0_8, %c0_9] : memref<1x4x10x10x32xf32, #tpu.memory_space<vmem>>, vector<1x1x8x8x32xf32>
    %11 = vector.shape_cast %10 : vector<1x1x8x8x32xf32> to vector<8x8x32xf32>
    %12 = vector.extract_strided_slice %1 {offsets = [1, 0, 0, 0], sizes = [1, 1, 1, 32], strides = [1, 1, 1, 1]} : vector<25x1x1x32xf32> to vector<1x1x1x32xf32>
    %13 = vector.shape_cast %12 : vector<1x1x1x32xf32> to vector<1x1x32xf32>
    %14 = vector.broadcast %13 : vector<1x1x32xf32> to vector<8x8x32xf32>
    %15 = arith.mulf %11, %14 : vector<8x8x32xf32>
    %16 = arith.addf %9, %15 : vector<8x8x32xf32>
    %c0_10 = arith.constant 0 : index
    %c0_11 = arith.constant 0 : index
    %c0_12 = arith.constant 0 : index
    %c1_13 = arith.constant 1 : index
    %c0_14 = arith.constant 0 : index
    %17 = vector.load %arg1[%c0_10, %c0_11, %c0_12, %c1_13, %c0_14] : memref<1x4x10x10x32xf32, #tpu.memory_space<vmem>>, vector<1x1x8x8x32xf32>
    %18 = vector.shape_cast %17 : vector<1x1x8x8x32xf32> to vector<8x8x32xf32>
    %19 = vector.extract_strided_slice %1 {offsets = [2, 0, 0, 0], sizes = [1, 1, 1, 32], strides = [1, 1, 1, 1]} : vector<25x1x1x32xf32> to vector<1x1x1x32xf32>
    %20 = vector.shape_cast %19 : vector<1x1x1x32xf32> to vector<1x1x32xf32>
    %21 = vector.broadcast %20 : vector<1x1x32xf32> to vector<8x8x32xf32>
    %22 = arith.mulf %18, %21 : vector<8x8x32xf32>
    %23 = arith.addf %16, %22 : vector<8x8x32xf32>
    %c0_15 = arith.constant 0 : index
    %c1_16 = arith.constant 1 : index
    %c0_17 = arith.constant 0 : index
    %c1_18 = arith.constant 1 : index
    %c0_19 = arith.constant 0 : index
    %24 = vector.load %arg1[%c0_15, %c1_16, %c0_17, %c1_18, %c0_19] : memref<1x4x10x10x32xf32, #tpu.memory_space<vmem>>, vector<1x1x8x8x32xf32>
    %25 = vector.shape_cast %24 : vector<1x1x8x8x32xf32> to vector<8x8x32xf32>
    %26 = vector.extract_strided_slice %1 {offsets = [3, 0, 0, 0], sizes = [1, 1, 1, 32], strides = [1, 1, 1, 1]} : vector<25x1x1x32xf32> to vector<1x1x1x32xf32>
    %27 = vector.shape_cast %26 : vector<1x1x1x32xf32> to vector<1x1x32xf32>
    %28 = vector.broadcast %27 : vector<1x1x32xf32> to vector<8x8x32xf32>
    %29 = arith.mulf %25, %28 : vector<8x8x32xf32>
    %30 = arith.addf %23, %29 : vector<8x8x32xf32>
    %c0_20 = arith.constant 0 : index
    %c0_21 = arith.constant 0 : index
    %c0_22 = arith.constant 0 : index
    %c2 = arith.constant 2 : index
    %c0_23 = arith.constant 0 : index
    %31 = vector.load %arg1[%c0_20, %c0_21, %c0_22, %c2, %c0_23] : memref<1x4x10x10x32xf32, #tpu.memory_space<vmem>>, vector<1x1x8x8x32xf32>
    %32 = vector.shape_cast %31 : vector<1x1x8x8x32xf32> to vector<8x8x32xf32>
    %33 = vector.extract_strided_slice %1 {offsets = [4, 0, 0, 0], sizes = [1, 1, 1, 32], strides = [1, 1, 1, 1]} : vector<25x1x1x32xf32> to vector<1x1x1x32xf32>
    %34 = vector.shape_cast %33 : vector<1x1x1x32xf32> to vector<1x1x32xf32>
    %35 = vector.broadcast %34 : vector<1x1x32xf32> to vector<8x8x32xf32>
    %36 = arith.mulf %32, %35 : vector<8x8x32xf32>
    %37 = arith.addf %30, %36 : vector<8x8x32xf32>
    %c0_24 = arith.constant 0 : index
    %c2_25 = arith.constant 2 : index
    %c0_26 = arith.constant 0 : index
    %c0_27 = arith.constant 0 : index
    %c0_28 = arith.constant 0 : index
    %38 = vector.load %arg1[%c0_24, %c2_25, %c0_26, %c0_27, %c0_28] : memref<1x4x10x10x32xf32, #tpu.memory_space<vmem>>, vector<1x1x8x8x32xf32>
    %39 = vector.shape_cast %38 : vector<1x1x8x8x32xf32> to vector<8x8x32xf32>
    %40 = vector.extract_strided_slice %1 {offsets = [5, 0, 0, 0], sizes = [1, 1, 1, 32], strides = [1, 1, 1, 1]} : vector<25x1x1x32xf32> to vector<1x1x1x32xf32>
    %41 = vector.shape_cast %40 : vector<1x1x1x32xf32> to vector<1x1x32xf32>
    %42 = vector.broadcast %41 : vector<1x1x32xf32> to vector<8x8x32xf32>
    %43 = arith.mulf %39, %42 : vector<8x8x32xf32>
    %44 = arith.addf %37, %43 : vector<8x8x32xf32>
    %c0_29 = arith.constant 0 : index
    %c3 = arith.constant 3 : index
    %c0_30 = arith.constant 0 : index
    %c0_31 = arith.constant 0 : index
    %c0_32 = arith.constant 0 : index
    %45 = vector.load %arg1[%c0_29, %c3, %c0_30, %c0_31, %c0_32] : memref<1x4x10x10x32xf32, #tpu.memory_space<vmem>>, vector<1x1x8x8x32xf32>
    %46 = vector.shape_cast %45 : vector<1x1x8x8x32xf32> to vector<8x8x32xf32>
    %47 = vector.extract_strided_slice %1 {offsets = [6, 0, 0, 0], sizes = [1, 1, 1, 32], strides = [1, 1, 1, 1]} : vector<25x1x1x32xf32> to vector<1x1x1x32xf32>
    %48 = vector.shape_cast %47 : vector<1x1x1x32xf32> to vector<1x1x32xf32>
    %49 = vector.broadcast %48 : vector<1x1x32xf32> to vector<8x8x32xf32>
    %50 = arith.mulf %46, %49 : vector<8x8x32xf32>
    %51 = arith.addf %44, %50 : vector<8x8x32xf32>
    %c0_33 = arith.constant 0 : index
    %c2_34 = arith.constant 2 : index
    %c0_35 = arith.constant 0 : index
    %c1_36 = arith.constant 1 : index
    %c0_37 = arith.constant 0 : index
    %52 = vector.load %arg1[%c0_33, %c2_34, %c0_35, %c1_36, %c0_37] : memref<1x4x10x10x32xf32, #tpu.memory_space<vmem>>, vector<1x1x8x8x32xf32>
    %53 = vector.shape_cast %52 : vector<1x1x8x8x32xf32> to vector<8x8x32xf32>
    %54 = vector.extract_strided_slice %1 {offsets = [7, 0, 0, 0], sizes = [1, 1, 1, 32], strides = [1, 1, 1, 1]} : vector<25x1x1x32xf32> to vector<1x1x1x32xf32>
    %55 = vector.shape_cast %54 : vector<1x1x1x32xf32> to vector<1x1x32xf32>
    %56 = vector.broadcast %55 : vector<1x1x32xf32> to vector<8x8x32xf32>
    %57 = arith.mulf %53, %56 : vector<8x8x32xf32>
    %58 = arith.addf %51, %57 : vector<8x8x32xf32>
    %c0_38 = arith.constant 0 : index
    %c3_39 = arith.constant 3 : index
    %c0_40 = arith.constant 0 : index
    %c1_41 = arith.constant 1 : index
    %c0_42 = arith.constant 0 : index
    %59 = vector.load %arg1[%c0_38, %c3_39, %c0_40, %c1_41, %c0_42] : memref<1x4x10x10x32xf32, #tpu.memory_space<vmem>>, vector<1x1x8x8x32xf32>
    %60 = vector.shape_cast %59 : vector<1x1x8x8x32xf32> to vector<8x8x32xf32>
    %61 = vector.extract_strided_slice %1 {offsets = [8, 0, 0, 0], sizes = [1, 1, 1, 32], strides = [1, 1, 1, 1]} : vector<25x1x1x32xf32> to vector<1x1x1x32xf32>
    %62 = vector.shape_cast %61 : vector<1x1x1x32xf32> to vector<1x1x32xf32>
    %63 = vector.broadcast %62 : vector<1x1x32xf32> to vector<8x8x32xf32>
    %64 = arith.mulf %60, %63 : vector<8x8x32xf32>
    %65 = arith.addf %58, %64 : vector<8x8x32xf32>
    %c0_43 = arith.constant 0 : index
    %c2_44 = arith.constant 2 : index
    %c0_45 = arith.constant 0 : index
    %c2_46 = arith.constant 2 : index
    %c0_47 = arith.constant 0 : index
    %66 = vector.load %arg1[%c0_43, %c2_44, %c0_45, %c2_46, %c0_47] : memref<1x4x10x10x32xf32, #tpu.memory_space<vmem>>, vector<1x1x8x8x32xf32>
    %67 = vector.shape_cast %66 : vector<1x1x8x8x32xf32> to vector<8x8x32xf32>
    %68 = vector.extract_strided_slice %1 {offsets = [9, 0, 0, 0], sizes = [1, 1, 1, 32], strides = [1, 1, 1, 1]} : vector<25x1x1x32xf32> to vector<1x1x1x32xf32>
    %69 = vector.shape_cast %68 : vector<1x1x1x32xf32> to vector<1x1x32xf32>
    %70 = vector.broadcast %69 : vector<1x1x32xf32> to vector<8x8x32xf32>
    %71 = arith.mulf %67, %70 : vector<8x8x32xf32>
    %72 = arith.addf %65, %71 : vector<8x8x32xf32>
    %c0_48 = arith.constant 0 : index
    %c0_49 = arith.constant 0 : index
    %c1_50 = arith.constant 1 : index
    %c0_51 = arith.constant 0 : index
    %c0_52 = arith.constant 0 : index
    %73 = vector.load %arg1[%c0_48, %c0_49, %c1_50, %c0_51, %c0_52] : memref<1x4x10x10x32xf32, #tpu.memory_space<vmem>>, vector<1x1x8x8x32xf32>
    %74 = vector.shape_cast %73 : vector<1x1x8x8x32xf32> to vector<8x8x32xf32>
    %75 = vector.extract_strided_slice %1 {offsets = [10, 0, 0, 0], sizes = [1, 1, 1, 32], strides = [1, 1, 1, 1]} : vector<25x1x1x32xf32> to vector<1x1x1x32xf32>
    %76 = vector.shape_cast %75 : vector<1x1x1x32xf32> to vector<1x1x32xf32>
    %77 = vector.broadcast %76 : vector<1x1x32xf32> to vector<8x8x32xf32>
    %78 = arith.mulf %74, %77 : vector<8x8x32xf32>
    %79 = arith.addf %72, %78 : vector<8x8x32xf32>
    %c0_53 = arith.constant 0 : index
    %c1_54 = arith.constant 1 : index
    %c1_55 = arith.constant 1 : index
    %c0_56 = arith.constant 0 : index
    %c0_57 = arith.constant 0 : index
    %80 = vector.load %arg1[%c0_53, %c1_54, %c1_55, %c0_56, %c0_57] : memref<1x4x10x10x32xf32, #tpu.memory_space<vmem>>, vector<1x1x8x8x32xf32>
    %81 = vector.shape_cast %80 : vector<1x1x8x8x32xf32> to vector<8x8x32xf32>
    %82 = vector.extract_strided_slice %1 {offsets = [11, 0, 0, 0], sizes = [1, 1, 1, 32], strides = [1, 1, 1, 1]} : vector<25x1x1x32xf32> to vector<1x1x1x32xf32>
    %83 = vector.shape_cast %82 : vector<1x1x1x32xf32> to vector<1x1x32xf32>
    %84 = vector.broadcast %83 : vector<1x1x32xf32> to vector<8x8x32xf32>
    %85 = arith.mulf %81, %84 : vector<8x8x32xf32>
    %86 = arith.addf %79, %85 : vector<8x8x32xf32>
    %c0_58 = arith.constant 0 : index
    %c0_59 = arith.constant 0 : index
    %c1_60 = arith.constant 1 : index
    %c1_61 = arith.constant 1 : index
    %c0_62 = arith.constant 0 : index
    %87 = vector.load %arg1[%c0_58, %c0_59, %c1_60, %c1_61, %c0_62] : memref<1x4x10x10x32xf32, #tpu.memory_space<vmem>>, vector<1x1x8x8x32xf32>
    %88 = vector.shape_cast %87 : vector<1x1x8x8x32xf32> to vector<8x8x32xf32>
    %89 = vector.extract_strided_slice %1 {offsets = [12, 0, 0, 0], sizes = [1, 1, 1, 32], strides = [1, 1, 1, 1]} : vector<25x1x1x32xf32> to vector<1x1x1x32xf32>
    %90 = vector.shape_cast %89 : vector<1x1x1x32xf32> to vector<1x1x32xf32>
    %91 = vector.broadcast %90 : vector<1x1x32xf32> to vector<8x8x32xf32>
    %92 = arith.mulf %88, %91 : vector<8x8x32xf32>
    %93 = arith.addf %86, %92 : vector<8x8x32xf32>
    %c0_63 = arith.constant 0 : index
    %c1_64 = arith.constant 1 : index
    %c1_65 = arith.constant 1 : index
    %c1_66 = arith.constant 1 : index
    %c0_67 = arith.constant 0 : index
    %94 = vector.load %arg1[%c0_63, %c1_64, %c1_65, %c1_66, %c0_67] : memref<1x4x10x10x32xf32, #tpu.memory_space<vmem>>, vector<1x1x8x8x32xf32>
    %95 = vector.shape_cast %94 : vector<1x1x8x8x32xf32> to vector<8x8x32xf32>
    %96 = vector.extract_strided_slice %1 {offsets = [13, 0, 0, 0], sizes = [1, 1, 1, 32], strides = [1, 1, 1, 1]} : vector<25x1x1x32xf32> to vector<1x1x1x32xf32>
    %97 = vector.shape_cast %96 : vector<1x1x1x32xf32> to vector<1x1x32xf32>
    %98 = vector.broadcast %97 : vector<1x1x32xf32> to vector<8x8x32xf32>
    %99 = arith.mulf %95, %98 : vector<8x8x32xf32>
    %100 = arith.addf %93, %99 : vector<8x8x32xf32>
    %c0_68 = arith.constant 0 : index
    %c0_69 = arith.constant 0 : index
    %c1_70 = arith.constant 1 : index
    %c2_71 = arith.constant 2 : index
    %c0_72 = arith.constant 0 : index
    %101 = vector.load %arg1[%c0_68, %c0_69, %c1_70, %c2_71, %c0_72] : memref<1x4x10x10x32xf32, #tpu.memory_space<vmem>>, vector<1x1x8x8x32xf32>
    %102 = vector.shape_cast %101 : vector<1x1x8x8x32xf32> to vector<8x8x32xf32>
    %103 = vector.extract_strided_slice %1 {offsets = [14, 0, 0, 0], sizes = [1, 1, 1, 32], strides = [1, 1, 1, 1]} : vector<25x1x1x32xf32> to vector<1x1x1x32xf32>
    %104 = vector.shape_cast %103 : vector<1x1x1x32xf32> to vector<1x1x32xf32>
    %105 = vector.broadcast %104 : vector<1x1x32xf32> to vector<8x8x32xf32>
    %106 = arith.mulf %102, %105 : vector<8x8x32xf32>
    %107 = arith.addf %100, %106 : vector<8x8x32xf32>
    %c0_73 = arith.constant 0 : index
    %c2_74 = arith.constant 2 : index
    %c1_75 = arith.constant 1 : index
    %c0_76 = arith.constant 0 : index
    %c0_77 = arith.constant 0 : index
    %108 = vector.load %arg1[%c0_73, %c2_74, %c1_75, %c0_76, %c0_77] : memref<1x4x10x10x32xf32, #tpu.memory_space<vmem>>, vector<1x1x8x8x32xf32>
    %109 = vector.shape_cast %108 : vector<1x1x8x8x32xf32> to vector<8x8x32xf32>
    %110 = vector.extract_strided_slice %1 {offsets = [15, 0, 0, 0], sizes = [1, 1, 1, 32], strides = [1, 1, 1, 1]} : vector<25x1x1x32xf32> to vector<1x1x1x32xf32>
    %111 = vector.shape_cast %110 : vector<1x1x1x32xf32> to vector<1x1x32xf32>
    %112 = vector.broadcast %111 : vector<1x1x32xf32> to vector<8x8x32xf32>
    %113 = arith.mulf %109, %112 : vector<8x8x32xf32>
    %114 = arith.addf %107, %113 : vector<8x8x32xf32>
    %c0_78 = arith.constant 0 : index
    %c3_79 = arith.constant 3 : index
    %c1_80 = arith.constant 1 : index
    %c0_81 = arith.constant 0 : index
    %c0_82 = arith.constant 0 : index
    %115 = vector.load %arg1[%c0_78, %c3_79, %c1_80, %c0_81, %c0_82] : memref<1x4x10x10x32xf32, #tpu.memory_space<vmem>>, vector<1x1x8x8x32xf32>
    %116 = vector.shape_cast %115 : vector<1x1x8x8x32xf32> to vector<8x8x32xf32>
    %117 = vector.extract_strided_slice %1 {offsets = [16, 0, 0, 0], sizes = [1, 1, 1, 32], strides = [1, 1, 1, 1]} : vector<25x1x1x32xf32> to vector<1x1x1x32xf32>
    %118 = vector.shape_cast %117 : vector<1x1x1x32xf32> to vector<1x1x32xf32>
    %119 = vector.broadcast %118 : vector<1x1x32xf32> to vector<8x8x32xf32>
    %120 = arith.mulf %116, %119 : vector<8x8x32xf32>
    %121 = arith.addf %114, %120 : vector<8x8x32xf32>
    %c0_83 = arith.constant 0 : index
    %c2_84 = arith.constant 2 : index
    %c1_85 = arith.constant 1 : index
    %c1_86 = arith.constant 1 : index
    %c0_87 = arith.constant 0 : index
    %122 = vector.load %arg1[%c0_83, %c2_84, %c1_85, %c1_86, %c0_87] : memref<1x4x10x10x32xf32, #tpu.memory_space<vmem>>, vector<1x1x8x8x32xf32>
    %123 = vector.shape_cast %122 : vector<1x1x8x8x32xf32> to vector<8x8x32xf32>
    %124 = vector.extract_strided_slice %1 {offsets = [17, 0, 0, 0], sizes = [1, 1, 1, 32], strides = [1, 1, 1, 1]} : vector<25x1x1x32xf32> to vector<1x1x1x32xf32>
    %125 = vector.shape_cast %124 : vector<1x1x1x32xf32> to vector<1x1x32xf32>
    %126 = vector.broadcast %125 : vector<1x1x32xf32> to vector<8x8x32xf32>
    %127 = arith.mulf %123, %126 : vector<8x8x32xf32>
    %128 = arith.addf %121, %127 : vector<8x8x32xf32>
    %c0_88 = arith.constant 0 : index
    %c3_89 = arith.constant 3 : index
    %c1_90 = arith.constant 1 : index
    %c1_91 = arith.constant 1 : index
    %c0_92 = arith.constant 0 : index
    %129 = vector.load %arg1[%c0_88, %c3_89, %c1_90, %c1_91, %c0_92] : memref<1x4x10x10x32xf32, #tpu.memory_space<vmem>>, vector<1x1x8x8x32xf32>
    %130 = vector.shape_cast %129 : vector<1x1x8x8x32xf32> to vector<8x8x32xf32>
    %131 = vector.extract_strided_slice %1 {offsets = [18, 0, 0, 0], sizes = [1, 1, 1, 32], strides = [1, 1, 1, 1]} : vector<25x1x1x32xf32> to vector<1x1x1x32xf32>
    %132 = vector.shape_cast %131 : vector<1x1x1x32xf32> to vector<1x1x32xf32>
    %133 = vector.broadcast %132 : vector<1x1x32xf32> to vector<8x8x32xf32>
    %134 = arith.mulf %130, %133 : vector<8x8x32xf32>
    %135 = arith.addf %128, %134 : vector<8x8x32xf32>
    %c0_93 = arith.constant 0 : index
    %c2_94 = arith.constant 2 : index
    %c1_95 = arith.constant 1 : index
    %c2_96 = arith.constant 2 : index
    %c0_97 = arith.constant 0 : index
    %136 = vector.load %arg1[%c0_93, %c2_94, %c1_95, %c2_96, %c0_97] : memref<1x4x10x10x32xf32, #tpu.memory_space<vmem>>, vector<1x1x8x8x32xf32>
    %137 = vector.shape_cast %136 : vector<1x1x8x8x32xf32> to vector<8x8x32xf32>
    %138 = vector.extract_strided_slice %1 {offsets = [19, 0, 0, 0], sizes = [1, 1, 1, 32], strides = [1, 1, 1, 1]} : vector<25x1x1x32xf32> to vector<1x1x1x32xf32>
    %139 = vector.shape_cast %138 : vector<1x1x1x32xf32> to vector<1x1x32xf32>
    %140 = vector.broadcast %139 : vector<1x1x32xf32> to vector<8x8x32xf32>
    %141 = arith.mulf %137, %140 : vector<8x8x32xf32>
    %142 = arith.addf %135, %141 : vector<8x8x32xf32>
    %c0_98 = arith.constant 0 : index
    %c0_99 = arith.constant 0 : index
    %c2_100 = arith.constant 2 : index
    %c0_101 = arith.constant 0 : index
    %c0_102 = arith.constant 0 : index
    %143 = vector.load %arg1[%c0_98, %c0_99, %c2_100, %c0_101, %c0_102] : memref<1x4x10x10x32xf32, #tpu.memory_space<vmem>>, vector<1x1x8x8x32xf32>
    %144 = vector.shape_cast %143 : vector<1x1x8x8x32xf32> to vector<8x8x32xf32>
    %145 = vector.extract_strided_slice %1 {offsets = [20, 0, 0, 0], sizes = [1, 1, 1, 32], strides = [1, 1, 1, 1]} : vector<25x1x1x32xf32> to vector<1x1x1x32xf32>
    %146 = vector.shape_cast %145 : vector<1x1x1x32xf32> to vector<1x1x32xf32>
    %147 = vector.broadcast %146 : vector<1x1x32xf32> to vector<8x8x32xf32>
    %148 = arith.mulf %144, %147 : vector<8x8x32xf32>
    %149 = arith.addf %142, %148 : vector<8x8x32xf32>
    %c0_103 = arith.constant 0 : index
    %c1_104 = arith.constant 1 : index
    %c2_105 = arith.constant 2 : index
    %c0_106 = arith.constant 0 : index
    %c0_107 = arith.constant 0 : index
    %150 = vector.load %arg1[%c0_103, %c1_104, %c2_105, %c0_106, %c0_107] : memref<1x4x10x10x32xf32, #tpu.memory_space<vmem>>, vector<1x1x8x8x32xf32>
    %151 = vector.shape_cast %150 : vector<1x1x8x8x32xf32> to vector<8x8x32xf32>
    %152 = vector.extract_strided_slice %1 {offsets = [21, 0, 0, 0], sizes = [1, 1, 1, 32], strides = [1, 1, 1, 1]} : vector<25x1x1x32xf32> to vector<1x1x1x32xf32>
    %153 = vector.shape_cast %152 : vector<1x1x1x32xf32> to vector<1x1x32xf32>
    %154 = vector.broadcast %153 : vector<1x1x32xf32> to vector<8x8x32xf32>
    %155 = arith.mulf %151, %154 : vector<8x8x32xf32>
    %156 = arith.addf %149, %155 : vector<8x8x32xf32>
    %c0_108 = arith.constant 0 : index
    %c0_109 = arith.constant 0 : index
    %c2_110 = arith.constant 2 : index
    %c1_111 = arith.constant 1 : index
    %c0_112 = arith.constant 0 : index
    %157 = vector.load %arg1[%c0_108, %c0_109, %c2_110, %c1_111, %c0_112] : memref<1x4x10x10x32xf32, #tpu.memory_space<vmem>>, vector<1x1x8x8x32xf32>
    %158 = vector.shape_cast %157 : vector<1x1x8x8x32xf32> to vector<8x8x32xf32>
    %159 = vector.extract_strided_slice %1 {offsets = [22, 0, 0, 0], sizes = [1, 1, 1, 32], strides = [1, 1, 1, 1]} : vector<25x1x1x32xf32> to vector<1x1x1x32xf32>
    %160 = vector.shape_cast %159 : vector<1x1x1x32xf32> to vector<1x1x32xf32>
    %161 = vector.broadcast %160 : vector<1x1x32xf32> to vector<8x8x32xf32>
    %162 = arith.mulf %158, %161 : vector<8x8x32xf32>
    %163 = arith.addf %156, %162 : vector<8x8x32xf32>
    %c0_113 = arith.constant 0 : index
    %c1_114 = arith.constant 1 : index
    %c2_115 = arith.constant 2 : index
    %c1_116 = arith.constant 1 : index
    %c0_117 = arith.constant 0 : index
    %164 = vector.load %arg1[%c0_113, %c1_114, %c2_115, %c1_116, %c0_117] : memref<1x4x10x10x32xf32, #tpu.memory_space<vmem>>, vector<1x1x8x8x32xf32>
    %165 = vector.shape_cast %164 : vector<1x1x8x8x32xf32> to vector<8x8x32xf32>
    %166 = vector.extract_strided_slice %1 {offsets = [23, 0, 0, 0], sizes = [1, 1, 1, 32], strides = [1, 1, 1, 1]} : vector<25x1x1x32xf32> to vector<1x1x1x32xf32>
    %167 = vector.shape_cast %166 : vector<1x1x1x32xf32> to vector<1x1x32xf32>
    %168 = vector.broadcast %167 : vector<1x1x32xf32> to vector<8x8x32xf32>
    %169 = arith.mulf %165, %168 : vector<8x8x32xf32>
    %170 = arith.addf %163, %169 : vector<8x8x32xf32>
    %c0_118 = arith.constant 0 : index
    %c0_119 = arith.constant 0 : index
    %c2_120 = arith.constant 2 : index
    %c2_121 = arith.constant 2 : index
    %c0_122 = arith.constant 0 : index
    %171 = vector.load %arg1[%c0_118, %c0_119, %c2_120, %c2_121, %c0_122] : memref<1x4x10x10x32xf32, #tpu.memory_space<vmem>>, vector<1x1x8x8x32xf32>
    %172 = vector.shape_cast %171 : vector<1x1x8x8x32xf32> to vector<8x8x32xf32>
    %173 = vector.extract_strided_slice %1 {offsets = [24, 0, 0, 0], sizes = [1, 1, 1, 32], strides = [1, 1, 1, 1]} : vector<25x1x1x32xf32> to vector<1x1x1x32xf32>
    %174 = vector.shape_cast %173 : vector<1x1x1x32xf32> to vector<1x1x32xf32>
    %175 = vector.broadcast %174 : vector<1x1x32xf32> to vector<8x8x32xf32>
    %176 = arith.mulf %172, %175 : vector<8x8x32xf32>
    %177 = arith.addf %170, %176 : vector<8x8x32xf32>
    %c0_123 = arith.constant 0 : index
    %c0_124 = arith.constant 0 : index
    %178 = vector.load %arg3[%c0_123, %c0_124] : memref<1x32xf32, #tpu.memory_space<vmem>>, vector<1x32xf32>
    %179 = vector.shape_cast %178 : vector<1x32xf32> to vector<1x1x32xf32>
    %180 = vector.broadcast %179 : vector<1x1x32xf32> to vector<8x8x32xf32>
    %181 = arith.addf %177, %180 : vector<8x8x32xf32>
    %c0_125 = arith.constant 0 : index
    %c0_126 = arith.constant 0 : index
    %c0_127 = arith.constant 0 : index
    %c0_128 = arith.constant 0 : index
    %182 = vector.load %arg4[%c0_125, %c0_126, %c0_127, %c0_128] : memref<1x8x8x32xf32, #tpu.memory_space<vmem>>, vector<1x8x8x32xf32>
    %183 = vector.shape_cast %182 : vector<1x8x8x32xf32> to vector<8x8x32xf32>
    %184 = vector.shape_cast %181 : vector<8x8x32xf32> to vector<1x8x8x32xf32>
    tpu.vector_store %arg4[%c0_125, %c0_126, %c0_127, %c0_128], %184 {strides = array<i32>} : memref<1x8x8x32xf32, #tpu.memory_space<vmem>>, vector<1x8x8x32xf32>,
    return
  }
  func.func @transform_0(%arg0: i32) -> (i32, i32, i32, i32, i32) {
    %c0_i32 = arith.constant 0 : i32
    %c0_i32_0 = arith.constant 0 : i32
    %c0_i32_1 = arith.constant 0 : i32
    %c0_i32_2 = arith.constant 0 : i32
    %c0_i32_3 = arith.constant 0 : i32
    return %arg0, %c0_i32, %c0_i32_0, %c0_i32_1, %c0_i32_2 : i32, i32, i32, i32, i32
  }
  func.func @transform_1(%arg0: i32) -> (i32, i32) {
    %c0_i32 = arith.constant 0 : i32
    %c0_i32_0 = arith.constant 0 : i32
    %c0_i32_1 = arith.constant 0 : i32
    return %c0_i32, %c0_i32_0 : i32, i32
  }
  func.func @transform_2(%arg0: i32) -> (i32, i32) {
    %c0_i32 = arith.constant 0 : i32
    %c0_i32_0 = arith.constant 0 : i32
    %c0_i32_1 = arith.constant 0 : i32
    return %c0_i32, %c0_i32_0 : i32, i32
  }
  func.func @transform_3(%arg0: i32) -> (i32, i32, i32, i32) {
    %c0_i32 = arith.constant 0 : i32
    %c0_i32_0 = arith.constant 0 : i32
    %c0_i32_1 = arith.constant 0 : i32
    %c0_i32_2 = arith.constant 0 : i32
    return %arg0, %c0_i32, %c0_i32_0, %c0_i32_1 : i32, i32, i32, i32
  }
}

module attributes {stable_mosaic.version = 11 : i64} {
  func.func @_pointwise_kernel(%arg0: i32, %arg1: memref<64x64xf32, #tpu.memory_space<vmem>>, %arg2: memref<64x128xf32, #tpu.memory_space<vmem>>, %arg3: memref<1x128xf32, #tpu.memory_space<vmem>>, %arg4: memref<64x128xf32, #tpu.memory_space<vmem>>) attributes {dimension_semantics = [#tpu.dimension_semantics<parallel>], iteration_bounds = array<i64: 1>, scalar_prefetch = 0 : i64, scratch_operands = 0 : i64, tpu.core_type = #tpu.core_type<tc>, window_params = [{transform_indices = @transform_0, window_bounds = array<i64: 64, 64>}, {pipeline_mode = #tpu.pipeline_mode<synchronous>, transform_indices = @transform_1, window_bounds = array<i64: 64, 128>}, {pipeline_mode = #tpu.pipeline_mode<synchronous>, transform_indices = @transform_2, window_bounds = array<i64: 1, 128>}, {transform_indices = @transform_3, window_bounds = array<i64: 64, 128>}]} {
    %c0 = arith.constant 0 : index
    %c0_0 = arith.constant 0 : index
    %0 = vector.load %arg1[%c0, %c0_0] : memref<64x64xf32, #tpu.memory_space<vmem>>, vector<64x64xf32>
    %c0_1 = arith.constant 0 : index
    %c0_2 = arith.constant 0 : index
    %1 = vector.load %arg2[%c0_1, %c0_2] : memref<64x128xf32, #tpu.memory_space<vmem>>, vector<64x128xf32>
    %cst = arith.constant dense<0.000000e+00> : vector<64x128xf32>
    %2 = tpu.matmul %0, %1, %cst {dimension_numbers = #tpu.dot_dimension_numbers<[1], [0], [0], [1], [0, 0, 1, 1], [], []>} : vector<64x64xf32>, vector<64x128xf32>, vector<64x128xf32> -> vector<64x128xf32>
    %c0_3 = arith.constant 0 : index
    %c0_4 = arith.constant 0 : index
    %3 = vector.load %arg3[%c0_3, %c0_4] : memref<1x128xf32, #tpu.memory_space<vmem>>, vector<1x128xf32>
    %4 = vector.broadcast %3 : vector<1x128xf32> to vector<64x128xf32>
    %5 = arith.addf %2, %4 : vector<64x128xf32>
    %c0_5 = arith.constant 0 : index
    %c0_6 = arith.constant 0 : index
    %6 = vector.load %arg4[%c0_5, %c0_6] : memref<64x128xf32, #tpu.memory_space<vmem>>, vector<64x128xf32>
    tpu.vector_store %arg4[%c0_5, %c0_6], %5 {strides = array<i32>} : memref<64x128xf32, #tpu.memory_space<vmem>>, vector<64x128xf32>,
    return
  }
  func.func @transform_0(%arg0: i32) -> (i32, i32) {
    %c0_i32 = arith.constant 0 : i32
    %c0_i32_0 = arith.constant 0 : i32
    return %arg0, %c0_i32 : i32, i32
  }
  func.func @transform_1(%arg0: i32) -> (i32, i32) {
    %c0_i32 = arith.constant 0 : i32
    %c0_i32_0 = arith.constant 0 : i32
    %c0_i32_1 = arith.constant 0 : i32
    return %c0_i32, %c0_i32_0 : i32, i32
  }
  func.func @transform_2(%arg0: i32) -> (i32, i32) {
    %c0_i32 = arith.constant 0 : i32
    %c0_i32_0 = arith.constant 0 : i32
    %c0_i32_1 = arith.constant 0 : i32
    return %c0_i32, %c0_i32_0 : i32, i32
  }
  func.func @transform_3(%arg0: i32) -> (i32, i32) {
    %c0_i32 = arith.constant 0 : i32
    %c0_i32_0 = arith.constant 0 : i32
    return %arg0, %c0_i32 : i32, i32
  }
}

module attributes {stable_mosaic.version = 11 : i64} {
  func.func @_pointwise_kernel(%arg0: i32, %arg1: memref<128x128xf32, #tpu.memory_space<vmem>>, %arg2: memref<128x128xf32, #tpu.memory_space<vmem>>, %arg3: memref<1x128xf32, #tpu.memory_space<vmem>>, %arg4: memref<128x128xf32, #tpu.memory_space<vmem>>) attributes {dimension_semantics = [#tpu.dimension_semantics<parallel>], iteration_bounds = array<i64: 1>, scalar_prefetch = 0 : i64, scratch_operands = 0 : i64, tpu.core_type = #tpu.core_type<tc>, window_params = [{transform_indices = @transform_0, window_bounds = array<i64: 128, 128>}, {pipeline_mode = #tpu.pipeline_mode<synchronous>, transform_indices = @transform_1, window_bounds = array<i64: 128, 128>}, {pipeline_mode = #tpu.pipeline_mode<synchronous>, transform_indices = @transform_2, window_bounds = array<i64: 1, 128>}, {transform_indices = @transform_3, window_bounds = array<i64: 128, 128>}]} {
    %c0 = arith.constant 0 : index
    %c0_0 = arith.constant 0 : index
    %0 = vector.load %arg1[%c0, %c0_0] : memref<128x128xf32, #tpu.memory_space<vmem>>, vector<128x128xf32>
    %c0_1 = arith.constant 0 : index
    %c0_2 = arith.constant 0 : index
    %1 = vector.load %arg2[%c0_1, %c0_2] : memref<128x128xf32, #tpu.memory_space<vmem>>, vector<128x128xf32>
    %cst = arith.constant dense<0.000000e+00> : vector<128x128xf32>
    %2 = tpu.matmul %0, %1, %cst {dimension_numbers = #tpu.dot_dimension_numbers<[1], [0], [0], [1], [0, 0, 1, 1], [], []>} : vector<128x128xf32>, vector<128x128xf32>, vector<128x128xf32> -> vector<128x128xf32>
    %c0_3 = arith.constant 0 : index
    %c0_4 = arith.constant 0 : index
    %3 = vector.load %arg3[%c0_3, %c0_4] : memref<1x128xf32, #tpu.memory_space<vmem>>, vector<1x128xf32>
    %4 = vector.broadcast %3 : vector<1x128xf32> to vector<128x128xf32>
    %5 = arith.addf %2, %4 : vector<128x128xf32>
    %c0_5 = arith.constant 0 : index
    %c0_6 = arith.constant 0 : index
    %6 = vector.load %arg4[%c0_5, %c0_6] : memref<128x128xf32, #tpu.memory_space<vmem>>, vector<128x128xf32>
    tpu.vector_store %arg4[%c0_5, %c0_6], %5 {strides = array<i32>} : memref<128x128xf32, #tpu.memory_space<vmem>>, vector<128x128xf32>,
    return
  }
  func.func @transform_0(%arg0: i32) -> (i32, i32) {
    %c0_i32 = arith.constant 0 : i32
    %c0_i32_0 = arith.constant 0 : i32
    return %arg0, %c0_i32 : i32, i32
  }
  func.func @transform_1(%arg0: i32) -> (i32, i32) {
    %c0_i32 = arith.constant 0 : i32
    %c0_i32_0 = arith.constant 0 : i32
    %c0_i32_1 = arith.constant 0 : i32
    return %c0_i32, %c0_i32_0 : i32, i32
  }
  func.func @transform_2(%arg0: i32) -> (i32, i32) {
    %c0_i32 = arith.constant 0 : i32
    %c0_i32_0 = arith.constant 0 : i32
    %c0_i32_1 = arith.constant 0 : i32
    return %c0_i32, %c0_i32_0 : i32, i32
  }
  func.func @transform_3(%arg0: i32) -> (i32, i32) {
    %c0_i32 = arith.constant 0 : i32
    %c0_i32_0 = arith.constant 0 : i32
    return %arg0, %c0_i32 : i32, i32
  }
}

module attributes {stable_mosaic.version = 11 : i64} {
  func.func @_attn_kernel(%arg0: i32, %arg1: memref<1x256x32xf32, #tpu.memory_space<vmem>>, %arg2: memref<1x64x64xf32, #tpu.memory_space<vmem>>, %arg3: memref<1x256x32xf32, #tpu.memory_space<vmem>>) attributes {dimension_semantics = [#tpu.dimension_semantics<parallel>], iteration_bounds = array<i64: 2>, scalar_prefetch = 0 : i64, scratch_operands = 0 : i64, tpu.core_type = #tpu.core_type<tc>, window_params = [{transform_indices = @transform_0, window_bounds = array<i64: 1, 256, 32>}, {transform_indices = @transform_1, window_bounds = array<i64: 1, 64, 64>}, {transform_indices = @transform_2, window_bounds = array<i64: 1, 256, 32>}]} {
    %c0 = arith.constant 0 : index
    %c0_0 = arith.constant 0 : index
    %c0_1 = arith.constant 0 : index
    %0 = vector.load %arg1[%c0, %c0_0, %c0_1] : memref<1x256x32xf32, #tpu.memory_space<vmem>>, vector<1x256x32xf32>
    %1 = vector.shape_cast %0 : vector<1x256x32xf32> to vector<256x32xf32>
    %cst = arith.constant 0.353553385 : f32
    %2 = vector.broadcast %cst : f32 to vector<256x32xf32>
    %3 = arith.mulf %1, %2 : vector<256x32xf32>
    %c0_2 = arith.constant 0 : index
    %c0_3 = arith.constant 0 : index
    %c0_4 = arith.constant 0 : index
    %4 = vector.load %arg2[%c0_2, %c0_3, %c0_4] : memref<1x64x64xf32, #tpu.memory_space<vmem>>, vector<1x64x64xf32>
    %5 = vector.shape_cast %4 : vector<1x64x64xf32> to vector<64x64xf32>
    %6 = vector.extract_strided_slice %3 {offsets = [0, 0], sizes = [256, 8], strides = [1, 1]} : vector<256x32xf32> to vector<256x8xf32>
    %7 = vector.extract_strided_slice %5 {offsets = [0, 0], sizes = [64, 8], strides = [1, 1]} : vector<64x64xf32> to vector<64x8xf32>
    %8 = vector.extract_strided_slice %5 {offsets = [0, 32], sizes = [64, 8], strides = [1, 1]} : vector<64x64xf32> to vector<64x8xf32>
    %cst_5 = arith.constant dense<0.000000e+00> : vector<256x64xf32>
    %9 = tpu.matmul %6, %7, %cst_5 {dimension_numbers = #tpu.dot_dimension_numbers<[1], [1], [0], [0], [0, 0, 1, 0], [], []>} : vector<256x8xf32>, vector<64x8xf32>, vector<256x64xf32> -> vector<256x64xf32>
    %cst_6 = arith.constant dense<0xFF800000> : vector<256xf32>
    %10 = vector.multi_reduction <maximumf>, %9, %cst_6 [1] : vector<256x64xf32> to vector<256xf32>
    %11 = vector.shape_cast %10 : vector<256xf32> to vector<256x1xf32>
    %12 = vector.broadcast %11 : vector<256x1xf32> to vector<256x64xf32>
    %13 = arith.subf %9, %12 : vector<256x64xf32>
    %14 = math.exp %13 : vector<256x64xf32>
    %cst_7 = arith.constant dense<0.000000e+00> : vector<256xf32>
    %15 = vector.multi_reduction <add>, %14, %cst_7 [1] : vector<256x64xf32> to vector<256xf32>
    %16 = vector.shape_cast %15 : vector<256xf32> to vector<256x1xf32>
    %cst_8 = arith.constant dense<0.000000e+00> : vector<256x8xf32>
    %17 = tpu.matmul %14, %8, %cst_8 {dimension_numbers = #tpu.dot_dimension_numbers<[1], [0], [0], [1], [0, 0, 1, 1], [], []>} : vector<256x64xf32>, vector<64x8xf32>, vector<256x8xf32> -> vector<256x8xf32>
    %18 = vector.broadcast %16 : vector<256x1xf32> to vector<256x8xf32>
    %19 = arith.divf %17, %18 : vector<256x8xf32>
    %20 = vector.extract_strided_slice %3 {offsets = [0, 8], sizes = [256, 8], strides = [1, 1]} : vector<256x32xf32> to vector<256x8xf32>
    %21 = vector.extract_strided_slice %5 {offsets = [0, 8], sizes = [64, 8], strides = [1, 1]} : vector<64x64xf32> to vector<64x8xf32>
    %22 = vector.extract_strided_slice %5 {offsets = [0, 40], sizes = [64, 8], strides = [1, 1]} : vector<64x64xf32> to vector<64x8xf32>
    %cst_9 = arith.constant dense<0.000000e+00> : vector<256x64xf32>
    %23 = tpu.matmul %20, %21, %cst_9 {dimension_numbers = #tpu.dot_dimension_numbers<[1], [1], [0], [0], [0, 0, 1, 0], [], []>} : vector<256x8xf32>, vector<64x8xf32>, vector<256x64xf32> -> vector<256x64xf32>
    %cst_10 = arith.constant dense<0xFF800000> : vector<256xf32>
    %24 = vector.multi_reduction <maximumf>, %23, %cst_10 [1] : vector<256x64xf32> to vector<256xf32>
    %25 = vector.shape_cast %24 : vector<256xf32> to vector<256x1xf32>
    %26 = vector.broadcast %25 : vector<256x1xf32> to vector<256x64xf32>
    %27 = arith.subf %23, %26 : vector<256x64xf32>
    %28 = math.exp %27 : vector<256x64xf32>
    %cst_11 = arith.constant dense<0.000000e+00> : vector<256xf32>
    %29 = vector.multi_reduction <add>, %28, %cst_11 [1] : vector<256x64xf32> to vector<256xf32>
    %30 = vector.shape_cast %29 : vector<256xf32> to vector<256x1xf32>
    %cst_12 = arith.constant dense<0.000000e+00> : vector<256x8xf32>
    %31 = tpu.matmul %28, %22, %cst_12 {dimension_numbers = #tpu.dot_dimension_numbers<[1], [0], [0], [1], [0, 0, 1, 1], [], []>} : vector<256x64xf32>, vector<64x8xf32>, vector<256x8xf32> -> vector<256x8xf32>
    %32 = vector.broadcast %30 : vector<256x1xf32> to vector<256x8xf32>
    %33 = arith.divf %31, %32 : vector<256x8xf32>
    %34 = vector.extract_strided_slice %3 {offsets = [0, 16], sizes = [256, 8], strides = [1, 1]} : vector<256x32xf32> to vector<256x8xf32>
    %35 = vector.extract_strided_slice %5 {offsets = [0, 16], sizes = [64, 8], strides = [1, 1]} : vector<64x64xf32> to vector<64x8xf32>
    %36 = vector.extract_strided_slice %5 {offsets = [0, 48], sizes = [64, 8], strides = [1, 1]} : vector<64x64xf32> to vector<64x8xf32>
    %cst_13 = arith.constant dense<0.000000e+00> : vector<256x64xf32>
    %37 = tpu.matmul %34, %35, %cst_13 {dimension_numbers = #tpu.dot_dimension_numbers<[1], [1], [0], [0], [0, 0, 1, 0], [], []>} : vector<256x8xf32>, vector<64x8xf32>, vector<256x64xf32> -> vector<256x64xf32>
    %cst_14 = arith.constant dense<0xFF800000> : vector<256xf32>
    %38 = vector.multi_reduction <maximumf>, %37, %cst_14 [1] : vector<256x64xf32> to vector<256xf32>
    %39 = vector.shape_cast %38 : vector<256xf32> to vector<256x1xf32>
    %40 = vector.broadcast %39 : vector<256x1xf32> to vector<256x64xf32>
    %41 = arith.subf %37, %40 : vector<256x64xf32>
    %42 = math.exp %41 : vector<256x64xf32>
    %cst_15 = arith.constant dense<0.000000e+00> : vector<256xf32>
    %43 = vector.multi_reduction <add>, %42, %cst_15 [1] : vector<256x64xf32> to vector<256xf32>
    %44 = vector.shape_cast %43 : vector<256xf32> to vector<256x1xf32>
    %cst_16 = arith.constant dense<0.000000e+00> : vector<256x8xf32>
    %45 = tpu.matmul %42, %36, %cst_16 {dimension_numbers = #tpu.dot_dimension_numbers<[1], [0], [0], [1], [0, 0, 1, 1], [], []>} : vector<256x64xf32>, vector<64x8xf32>, vector<256x8xf32> -> vector<256x8xf32>
    %46 = vector.broadcast %44 : vector<256x1xf32> to vector<256x8xf32>
    %47 = arith.divf %45, %46 : vector<256x8xf32>
    %48 = vector.extract_strided_slice %3 {offsets = [0, 24], sizes = [256, 8], strides = [1, 1]} : vector<256x32xf32> to vector<256x8xf32>
    %49 = vector.extract_strided_slice %5 {offsets = [0, 24], sizes = [64, 8], strides = [1, 1]} : vector<64x64xf32> to vector<64x8xf32>
    %50 = vector.extract_strided_slice %5 {offsets = [0, 56], sizes = [64, 8], strides = [1, 1]} : vector<64x64xf32> to vector<64x8xf32>
    %cst_17 = arith.constant dense<0.000000e+00> : vector<256x64xf32>
    %51 = tpu.matmul %48, %49, %cst_17 {dimension_numbers = #tpu.dot_dimension_numbers<[1], [1], [0], [0], [0, 0, 1, 0], [], []>} : vector<256x8xf32>, vector<64x8xf32>, vector<256x64xf32> -> vector<256x64xf32>
    %cst_18 = arith.constant dense<0xFF800000> : vector<256xf32>
    %52 = vector.multi_reduction <maximumf>, %51, %cst_18 [1] : vector<256x64xf32> to vector<256xf32>
    %53 = vector.shape_cast %52 : vector<256xf32> to vector<256x1xf32>
    %54 = vector.broadcast %53 : vector<256x1xf32> to vector<256x64xf32>
    %55 = arith.subf %51, %54 : vector<256x64xf32>
    %56 = math.exp %55 : vector<256x64xf32>
    %cst_19 = arith.constant dense<0.000000e+00> : vector<256xf32>
    %57 = vector.multi_reduction <add>, %56, %cst_19 [1] : vector<256x64xf32> to vector<256xf32>
    %58 = vector.shape_cast %57 : vector<256xf32> to vector<256x1xf32>
    %cst_20 = arith.constant dense<0.000000e+00> : vector<256x8xf32>
    %59 = tpu.matmul %56, %50, %cst_20 {dimension_numbers = #tpu.dot_dimension_numbers<[1], [0], [0], [1], [0, 0, 1, 1], [], []>} : vector<256x64xf32>, vector<64x8xf32>, vector<256x8xf32> -> vector<256x8xf32>
    %60 = vector.broadcast %58 : vector<256x1xf32> to vector<256x8xf32>
    %61 = arith.divf %59, %60 : vector<256x8xf32>
    %62 = tpu.concatenate %19, %33, %47, %61 in 1 : vector<256x8xf32>, vector<256x8xf32>, vector<256x8xf32>, vector<256x8xf32> -> vector<256x32xf32>
    %c0_21 = arith.constant 0 : index
    %c0_22 = arith.constant 0 : index
    %c0_23 = arith.constant 0 : index
    %63 = vector.load %arg3[%c0_21, %c0_22, %c0_23] : memref<1x256x32xf32, #tpu.memory_space<vmem>>, vector<1x256x32xf32>
    %64 = vector.shape_cast %63 : vector<1x256x32xf32> to vector<256x32xf32>
    %65 = vector.shape_cast %62 : vector<256x32xf32> to vector<1x256x32xf32>
    tpu.vector_store %arg3[%c0_21, %c0_22, %c0_23], %65 {strides = array<i32>} : memref<1x256x32xf32, #tpu.memory_space<vmem>>, vector<1x256x32xf32>,
    return
  }
  func.func @transform_0(%arg0: i32) -> (i32, i32, i32) {
    %c0_i32 = arith.constant 0 : i32
    %c0_i32_0 = arith.constant 0 : i32
    %c0_i32_1 = arith.constant 0 : i32
    return %arg0, %c0_i32, %c0_i32_0 : i32, i32, i32
  }
  func.func @transform_1(%arg0: i32) -> (i32, i32, i32) {
    %c0_i32 = arith.constant 0 : i32
    %c0_i32_0 = arith.constant 0 : i32
    %c0_i32_1 = arith.constant 0 : i32
    return %arg0, %c0_i32, %c0_i32_0 : i32, i32, i32
  }
  func.func @transform_2(%arg0: i32) -> (i32, i32, i32) {
    %c0_i32 = arith.constant 0 : i32
    %c0_i32_0 = arith.constant 0 : i32
    %c0_i32_1 = arith.constant 0 : i32
    return %arg0, %c0_i32, %c0_i32_0 : i32, i32, i32
  }
}

module attributes {stable_mosaic.version = 11 : i64} {
  func.func @_dwconv_s1_kernel(%arg0: i32, %arg1: memref<1x18x18x32xf32, #tpu.memory_space<vmem>>, %arg2: memref<9x32xf32, #tpu.memory_space<vmem>>, %arg3: memref<1x32xf32, #tpu.memory_space<vmem>>, %arg4: memref<1x16x16x32xf32, #tpu.memory_space<vmem>>) attributes {dimension_semantics = [#tpu.dimension_semantics<parallel>], iteration_bounds = array<i64: 2>, scalar_prefetch = 0 : i64, scratch_operands = 0 : i64, tpu.core_type = #tpu.core_type<tc>, window_params = [{transform_indices = @transform_0, window_bounds = array<i64: 1, 18, 18, 32>}, {pipeline_mode = #tpu.pipeline_mode<synchronous>, transform_indices = @transform_1, window_bounds = array<i64: 9, 32>}, {pipeline_mode = #tpu.pipeline_mode<synchronous>, transform_indices = @transform_2, window_bounds = array<i64: 1, 32>}, {transform_indices = @transform_3, window_bounds = array<i64: 1, 16, 16, 32>}]} {
    %c0 = arith.constant 0 : index
    %c0_0 = arith.constant 0 : index
    %0 = vector.load %arg2[%c0, %c0_0] : memref<9x32xf32, #tpu.memory_space<vmem>>, vector<9x32xf32>
    %1 = vector.shape_cast %0 : vector<9x32xf32> to vector<9x1x1x32xf32>
    %cst = arith.constant 0.000000e+00 : f32
    %2 = vector.broadcast %cst : f32 to vector<16x16x32xf32>
    %c0_1 = arith.constant 0 : index
    %c0_2 = arith.constant 0 : index
    %c0_3 = arith.constant 0 : index
    %c0_4 = arith.constant 0 : index
    %3 = vector.load %arg1[%c0_1, %c0_2, %c0_3, %c0_4] : memref<1x18x18x32xf32, #tpu.memory_space<vmem>>, vector<1x16x16x32xf32>
    %4 = vector.shape_cast %3 : vector<1x16x16x32xf32> to vector<16x16x32xf32>
    %5 = vector.extract_strided_slice %1 {offsets = [0, 0, 0, 0], sizes = [1, 1, 1, 32], strides = [1, 1, 1, 1]} : vector<9x1x1x32xf32> to vector<1x1x1x32xf32>
    %6 = vector.shape_cast %5 : vector<1x1x1x32xf32> to vector<1x1x32xf32>
    %7 = vector.broadcast %6 : vector<1x1x32xf32> to vector<16x16x32xf32>
    %8 = arith.mulf %4, %7 : vector<16x16x32xf32>
    %9 = arith.addf %2, %8 : vector<16x16x32xf32>
    %c0_5 = arith.constant 0 : index
    %c0_6 = arith.constant 0 : index
    %c1 = arith.constant 1 : index
    %c0_7 = arith.constant 0 : index
    %10 = vector.load %arg1[%c0_5, %c0_6, %c1, %c0_7] : memref<1x18x18x32xf32, #tpu.memory_space<vmem>>, vector<1x16x16x32xf32>
    %11 = vector.shape_cast %10 : vector<1x16x16x32xf32> to vector<16x16x32xf32>
    %12 = vector.extract_strided_slice %1 {offsets = [1, 0, 0, 0], sizes = [1, 1, 1, 32], strides = [1, 1, 1, 1]} : vector<9x1x1x32xf32> to vector<1x1x1x32xf32>
    %13 = vector.shape_cast %12 : vector<1x1x1x32xf32> to vector<1x1x32xf32>
    %14 = vector.broadcast %13 : vector<1x1x32xf32> to vector<16x16x32xf32>
    %15 = arith.mulf %11, %14 : vector<16x16x32xf32>
    %16 = arith.addf %9, %15 : vector<16x16x32xf32>
    %c0_8 = arith.constant 0 : index
    %c0_9 = arith.constant 0 : index
    %c2 = arith.constant 2 : index
    %c0_10 = arith.constant 0 : index
    %17 = vector.load %arg1[%c0_8, %c0_9, %c2, %c0_10] : memref<1x18x18x32xf32, #tpu.memory_space<vmem>>, vector<1x16x16x32xf32>
    %18 = vector.shape_cast %17 : vector<1x16x16x32xf32> to vector<16x16x32xf32>
    %19 = vector.extract_strided_slice %1 {offsets = [2, 0, 0, 0], sizes = [1, 1, 1, 32], strides = [1, 1, 1, 1]} : vector<9x1x1x32xf32> to vector<1x1x1x32xf32>
    %20 = vector.shape_cast %19 : vector<1x1x1x32xf32> to vector<1x1x32xf32>
    %21 = vector.broadcast %20 : vector<1x1x32xf32> to vector<16x16x32xf32>
    %22 = arith.mulf %18, %21 : vector<16x16x32xf32>
    %23 = arith.addf %16, %22 : vector<16x16x32xf32>
    %c0_11 = arith.constant 0 : index
    %c1_12 = arith.constant 1 : index
    %c0_13 = arith.constant 0 : index
    %c0_14 = arith.constant 0 : index
    %24 = vector.load %arg1[%c0_11, %c1_12, %c0_13, %c0_14] : memref<1x18x18x32xf32, #tpu.memory_space<vmem>>, vector<1x16x16x32xf32>
    %25 = vector.shape_cast %24 : vector<1x16x16x32xf32> to vector<16x16x32xf32>
    %26 = vector.extract_strided_slice %1 {offsets = [3, 0, 0, 0], sizes = [1, 1, 1, 32], strides = [1, 1, 1, 1]} : vector<9x1x1x32xf32> to vector<1x1x1x32xf32>
    %27 = vector.shape_cast %26 : vector<1x1x1x32xf32> to vector<1x1x32xf32>
    %28 = vector.broadcast %27 : vector<1x1x32xf32> to vector<16x16x32xf32>
    %29 = arith.mulf %25, %28 : vector<16x16x32xf32>
    %30 = arith.addf %23, %29 : vector<16x16x32xf32>
    %c0_15 = arith.constant 0 : index
    %c1_16 = arith.constant 1 : index
    %c1_17 = arith.constant 1 : index
    %c0_18 = arith.constant 0 : index
    %31 = vector.load %arg1[%c0_15, %c1_16, %c1_17, %c0_18] : memref<1x18x18x32xf32, #tpu.memory_space<vmem>>, vector<1x16x16x32xf32>
    %32 = vector.shape_cast %31 : vector<1x16x16x32xf32> to vector<16x16x32xf32>
    %33 = vector.extract_strided_slice %1 {offsets = [4, 0, 0, 0], sizes = [1, 1, 1, 32], strides = [1, 1, 1, 1]} : vector<9x1x1x32xf32> to vector<1x1x1x32xf32>
    %34 = vector.shape_cast %33 : vector<1x1x1x32xf32> to vector<1x1x32xf32>
    %35 = vector.broadcast %34 : vector<1x1x32xf32> to vector<16x16x32xf32>
    %36 = arith.mulf %32, %35 : vector<16x16x32xf32>
    %37 = arith.addf %30, %36 : vector<16x16x32xf32>
    %c0_19 = arith.constant 0 : index
    %c1_20 = arith.constant 1 : index
    %c2_21 = arith.constant 2 : index
    %c0_22 = arith.constant 0 : index
    %38 = vector.load %arg1[%c0_19, %c1_20, %c2_21, %c0_22] : memref<1x18x18x32xf32, #tpu.memory_space<vmem>>, vector<1x16x16x32xf32>
    %39 = vector.shape_cast %38 : vector<1x16x16x32xf32> to vector<16x16x32xf32>
    %40 = vector.extract_strided_slice %1 {offsets = [5, 0, 0, 0], sizes = [1, 1, 1, 32], strides = [1, 1, 1, 1]} : vector<9x1x1x32xf32> to vector<1x1x1x32xf32>
    %41 = vector.shape_cast %40 : vector<1x1x1x32xf32> to vector<1x1x32xf32>
    %42 = vector.broadcast %41 : vector<1x1x32xf32> to vector<16x16x32xf32>
    %43 = arith.mulf %39, %42 : vector<16x16x32xf32>
    %44 = arith.addf %37, %43 : vector<16x16x32xf32>
    %c0_23 = arith.constant 0 : index
    %c2_24 = arith.constant 2 : index
    %c0_25 = arith.constant 0 : index
    %c0_26 = arith.constant 0 : index
    %45 = vector.load %arg1[%c0_23, %c2_24, %c0_25, %c0_26] : memref<1x18x18x32xf32, #tpu.memory_space<vmem>>, vector<1x16x16x32xf32>
    %46 = vector.shape_cast %45 : vector<1x16x16x32xf32> to vector<16x16x32xf32>
    %47 = vector.extract_strided_slice %1 {offsets = [6, 0, 0, 0], sizes = [1, 1, 1, 32], strides = [1, 1, 1, 1]} : vector<9x1x1x32xf32> to vector<1x1x1x32xf32>
    %48 = vector.shape_cast %47 : vector<1x1x1x32xf32> to vector<1x1x32xf32>
    %49 = vector.broadcast %48 : vector<1x1x32xf32> to vector<16x16x32xf32>
    %50 = arith.mulf %46, %49 : vector<16x16x32xf32>
    %51 = arith.addf %44, %50 : vector<16x16x32xf32>
    %c0_27 = arith.constant 0 : index
    %c2_28 = arith.constant 2 : index
    %c1_29 = arith.constant 1 : index
    %c0_30 = arith.constant 0 : index
    %52 = vector.load %arg1[%c0_27, %c2_28, %c1_29, %c0_30] : memref<1x18x18x32xf32, #tpu.memory_space<vmem>>, vector<1x16x16x32xf32>
    %53 = vector.shape_cast %52 : vector<1x16x16x32xf32> to vector<16x16x32xf32>
    %54 = vector.extract_strided_slice %1 {offsets = [7, 0, 0, 0], sizes = [1, 1, 1, 32], strides = [1, 1, 1, 1]} : vector<9x1x1x32xf32> to vector<1x1x1x32xf32>
    %55 = vector.shape_cast %54 : vector<1x1x1x32xf32> to vector<1x1x32xf32>
    %56 = vector.broadcast %55 : vector<1x1x32xf32> to vector<16x16x32xf32>
    %57 = arith.mulf %53, %56 : vector<16x16x32xf32>
    %58 = arith.addf %51, %57 : vector<16x16x32xf32>
    %c0_31 = arith.constant 0 : index
    %c2_32 = arith.constant 2 : index
    %c2_33 = arith.constant 2 : index
    %c0_34 = arith.constant 0 : index
    %59 = vector.load %arg1[%c0_31, %c2_32, %c2_33, %c0_34] : memref<1x18x18x32xf32, #tpu.memory_space<vmem>>, vector<1x16x16x32xf32>
    %60 = vector.shape_cast %59 : vector<1x16x16x32xf32> to vector<16x16x32xf32>
    %61 = vector.extract_strided_slice %1 {offsets = [8, 0, 0, 0], sizes = [1, 1, 1, 32], strides = [1, 1, 1, 1]} : vector<9x1x1x32xf32> to vector<1x1x1x32xf32>
    %62 = vector.shape_cast %61 : vector<1x1x1x32xf32> to vector<1x1x32xf32>
    %63 = vector.broadcast %62 : vector<1x1x32xf32> to vector<16x16x32xf32>
    %64 = arith.mulf %60, %63 : vector<16x16x32xf32>
    %65 = arith.addf %58, %64 : vector<16x16x32xf32>
    %c0_35 = arith.constant 0 : index
    %c0_36 = arith.constant 0 : index
    %66 = vector.load %arg3[%c0_35, %c0_36] : memref<1x32xf32, #tpu.memory_space<vmem>>, vector<1x32xf32>
    %67 = vector.shape_cast %66 : vector<1x32xf32> to vector<1x1x32xf32>
    %68 = vector.broadcast %67 : vector<1x1x32xf32> to vector<16x16x32xf32>
    %69 = arith.addf %65, %68 : vector<16x16x32xf32>
    %c0_37 = arith.constant 0 : index
    %c0_38 = arith.constant 0 : index
    %c0_39 = arith.constant 0 : index
    %c0_40 = arith.constant 0 : index
    %70 = vector.load %arg4[%c0_37, %c0_38, %c0_39, %c0_40] : memref<1x16x16x32xf32, #tpu.memory_space<vmem>>, vector<1x16x16x32xf32>
    %71 = vector.shape_cast %70 : vector<1x16x16x32xf32> to vector<16x16x32xf32>
    %72 = vector.shape_cast %69 : vector<16x16x32xf32> to vector<1x16x16x32xf32>
    tpu.vector_store %arg4[%c0_37, %c0_38, %c0_39, %c0_40], %72 {strides = array<i32>} : memref<1x16x16x32xf32, #tpu.memory_space<vmem>>, vector<1x16x16x32xf32>,
    return
  }
  func.func @transform_0(%arg0: i32) -> (i32, i32, i32, i32) {
    %c0_i32 = arith.constant 0 : i32
    %c0_i32_0 = arith.constant 0 : i32
    %c0_i32_1 = arith.constant 0 : i32
    %c0_i32_2 = arith.constant 0 : i32
    return %arg0, %c0_i32, %c0_i32_0, %c0_i32_1 : i32, i32, i32, i32
  }
  func.func @transform_1(%arg0: i32) -> (i32, i32) {
    %c0_i32 = arith.constant 0 : i32
    %c0_i32_0 = arith.constant 0 : i32
    %c0_i32_1 = arith.constant 0 : i32
    return %c0_i32, %c0_i32_0 : i32, i32
  }
  func.func @transform_2(%arg0: i32) -> (i32, i32) {
    %c0_i32 = arith.constant 0 : i32
    %c0_i32_0 = arith.constant 0 : i32
    %c0_i32_1 = arith.constant 0 : i32
    return %c0_i32, %c0_i32_0 : i32, i32
  }
  func.func @transform_3(%arg0: i32) -> (i32, i32, i32, i32) {
    %c0_i32 = arith.constant 0 : i32
    %c0_i32_0 = arith.constant 0 : i32
    %c0_i32_1 = arith.constant 0 : i32
    %c0_i32_2 = arith.constant 0 : i32
    return %arg0, %c0_i32, %c0_i32_0, %c0_i32_1 : i32, i32, i32, i32
  }
}

module attributes {stable_mosaic.version = 11 : i64} {
  func.func @_fused_mixer_kernel(%arg0: i32, %arg1: memref<128x128xf32, #tpu.memory_space<vmem>>, %arg2: memref<128x128xf32, #tpu.memory_space<vmem>>, %arg3: memref<128x128xf32, #tpu.memory_space<vmem>>, %arg4: memref<1x128xf32, #tpu.memory_space<vmem>>, %arg5: memref<128x128xf32, #tpu.memory_space<vmem>>) attributes {dimension_semantics = [#tpu.dimension_semantics<parallel>], iteration_bounds = array<i64: 1>, scalar_prefetch = 0 : i64, scratch_operands = 0 : i64, tpu.core_type = #tpu.core_type<tc>, window_params = [{transform_indices = @transform_0, window_bounds = array<i64: 128, 128>}, {transform_indices = @transform_1, window_bounds = array<i64: 128, 128>}, {pipeline_mode = #tpu.pipeline_mode<synchronous>, transform_indices = @transform_2, window_bounds = array<i64: 128, 128>}, {pipeline_mode = #tpu.pipeline_mode<synchronous>, transform_indices = @transform_3, window_bounds = array<i64: 1, 128>}, {transform_indices = @transform_4, window_bounds = array<i64: 128, 128>}]} {
    %c0 = arith.constant 0 : index
    %c0_0 = arith.constant 0 : index
    %0 = vector.load %arg1[%c0, %c0_0] : memref<128x128xf32, #tpu.memory_space<vmem>>, vector<128x128xf32>
    %c0_1 = arith.constant 0 : index
    %c0_2 = arith.constant 0 : index
    %1 = vector.load %arg2[%c0_1, %c0_2] : memref<128x128xf32, #tpu.memory_space<vmem>>, vector<128x128xf32>
    %2 = arith.negf %0 : vector<128x128xf32>
    %3 = math.exp %2 : vector<128x128xf32>
    %cst = arith.constant 1.000000e+00 : f32
    %4 = vector.broadcast %cst : f32 to vector<128x128xf32>
    %5 = arith.addf %4, %3 : vector<128x128xf32>
    %6 = arith.divf %4, %5 : vector<128x128xf32>
    %7 = arith.mulf %0, %6 : vector<128x128xf32>
    %8 = arith.negf %1 : vector<128x128xf32>
    %9 = math.exp %8 : vector<128x128xf32>
    %cst_3 = arith.constant 1.000000e+00 : f32
    %10 = vector.broadcast %cst_3 : f32 to vector<128x128xf32>
    %11 = arith.addf %10, %9 : vector<128x128xf32>
    %12 = arith.divf %10, %11 : vector<128x128xf32>
    %13 = arith.mulf %7, %12 : vector<128x128xf32>
    %14 = arith.mulf %13, %1 : vector<128x128xf32>
    %c0_4 = arith.constant 0 : index
    %c0_5 = arith.constant 0 : index
    %15 = vector.load %arg3[%c0_4, %c0_5] : memref<128x128xf32, #tpu.memory_space<vmem>>, vector<128x128xf32>
    %cst_6 = arith.constant dense<0.000000e+00> : vector<128x128xf32>
    %16 = tpu.matmul %14, %15, %cst_6 {dimension_numbers = #tpu.dot_dimension_numbers<[1], [0], [0], [1], [0, 0, 1, 1], [], []>} : vector<128x128xf32>, vector<128x128xf32>, vector<128x128xf32> -> vector<128x128xf32>
    %c0_7 = arith.constant 0 : index
    %c0_8 = arith.constant 0 : index
    %17 = vector.load %arg4[%c0_7, %c0_8] : memref<1x128xf32, #tpu.memory_space<vmem>>, vector<1x128xf32>
    %18 = vector.broadcast %17 : vector<1x128xf32> to vector<128x128xf32>
    %19 = arith.addf %16, %18 : vector<128x128xf32>
    %c0_9 = arith.constant 0 : index
    %c0_10 = arith.constant 0 : index
    %20 = vector.load %arg5[%c0_9, %c0_10] : memref<128x128xf32, #tpu.memory_space<vmem>>, vector<128x128xf32>
    tpu.vector_store %arg5[%c0_9, %c0_10], %19 {strides = array<i32>} : memref<128x128xf32, #tpu.memory_space<vmem>>, vector<128x128xf32>,
    return
  }
  func.func @transform_0(%arg0: i32) -> (i32, i32) {
    %c0_i32 = arith.constant 0 : i32
    %c0_i32_0 = arith.constant 0 : i32
    return %arg0, %c0_i32 : i32, i32
  }
  func.func @transform_1(%arg0: i32) -> (i32, i32) {
    %c0_i32 = arith.constant 0 : i32
    %c0_i32_0 = arith.constant 0 : i32
    return %arg0, %c0_i32 : i32, i32
  }
  func.func @transform_2(%arg0: i32) -> (i32, i32) {
    %c0_i32 = arith.constant 0 : i32
    %c0_i32_0 = arith.constant 0 : i32
    %c0_i32_1 = arith.constant 0 : i32
    return %c0_i32, %c0_i32_0 : i32, i32
  }
  func.func @transform_3(%arg0: i32) -> (i32, i32) {
    %c0_i32 = arith.constant 0 : i32
    %c0_i32_0 = arith.constant 0 : i32
    %c0_i32_1 = arith.constant 0 : i32
    return %c0_i32, %c0_i32_0 : i32, i32
  }
  func.func @transform_4(%arg0: i32) -> (i32, i32) {
    %c0_i32 = arith.constant 0 : i32
    %c0_i32_0 = arith.constant 0 : i32
    return %arg0, %c0_i32 : i32, i32
  }
}

</mosaic_0001>

<bundles_post_ra>
// kernel: tile.28
= control target key start
LH: loop header
LB: loop body
LE: loop exit
PB: predicated region body
PF: predicated region fallthrough
CT: control target
= control target key end

     0   :  { %s22_s0 = inlined_call_operand.vmem [shape: f32[32], index: 0, kind: input, shape index: {}]   ;;  %s23_s1 = inlined_call_operand.vmem [shape: f32[4,32], index: 1, kind: output, shape index: {}]  }
   0x1   :  { %v4_v0 = vld [vmem:[%s22_s0] ss:$0 sm:$0xff] }
   0x2   :  { %5 = vst [vmem:[%s23_s1] sm:$0xf] %v4_v0 }

// kernel: tile.24
= control target key start
LH: loop header
LB: loop body
LE: loop exit
PB: predicated region body
PF: predicated region fallthrough
CT: control target
= control target key end

     0   :  { %vm7_vm0 = vcmask 523264   ;;  %vm13_vm1 = vcmask 1048064   ;;  %s39_s0 = inlined_call_operand.vmem [shape: f32[2,64], index: 0, kind: input, shape index: {}]   ;;  %s40_s1 = inlined_call_operand.vmem [shape: f32[1,128], index: 1, kind: output, shape index: {}]  }
   0x1   :  { %v4_v0 = vld [vmem:[%s39_s0] sm:$0x3]  ;;  %s22_s0 = smov 64  }
   0x2   :  { %5 = vst [vmem:[#allocation1] sm:$0x3] %v4_v0 }
   0x9   :  { %v10_v1 = vld [vmem:[#allocation1 + $0x1] sm:$0x1]   ;;  %v6_v2 = vld [vmem:[#allocation1] sm:$0x1]  }
   0xa   :  { %11 = vrot.lane.b32.xlu0 %v10_v1, %s22_s0  ;;  %8 = vst.msk [vmem:[#allocation0] sm:$0x1] %vm7_vm0, %v6_v2  }
  0x7c   :  { %v12_v3 = vpop.permute.xlu0 %11  }
  0x7d   :  { %14 = vst.msk [vmem:[#allocation0] sm:$0x1] %vm13_vm1, %v12_v3  }
  0x84   :  { %v18_v4 = vld [vmem:[#allocation0] sm:$0x1] }
  0x85   :  { %20 = vst [vmem:[%s40_s1] sm:$0x1] %v18_v4 }

// kernel: tile.23
= control target key start
LH: loop header
LB: loop body
LE: loop exit
PB: predicated region body
PF: predicated region fallthrough
CT: control target
= control target key end

     0   :  { %s22_s0 = inlined_call_operand.vmem [shape: f32[64], index: 0, kind: input, shape index: {}]   ;;  %s23_s1 = inlined_call_operand.vmem [shape: f32[2,64], index: 1, kind: output, shape index: {}]  }
   0x1   :  { %v4_v0 = vld [vmem:[%s22_s0] ss:$0 sm:$0xff] }
   0x2   :  { %5 = vst [vmem:[%s23_s1] sm:$0x3] %v4_v0 }

// kernel: tile.29
= control target key start
LH: loop header
LB: loop body
LE: loop exit
PB: predicated region body
PF: predicated region fallthrough
CT: control target
= control target key end

     0   :  { %vm7_vm0 = vcmask 261120   ;;  %s37_s8 = smov 32   ;;  %s38_s9 = smov 64   ;;  %vm13_vm1 = vcmask 1048320   ;;  %vm19_vm2 = vcmask 785920   ;;  %vm25_vm3 = vcmask 523520   ;;  %s55_s0 = inlined_call_operand.vmem [shape: f32[4,32], index: 0, kind: input, shape index: {}]   ;;  %s56_s1 = inlined_call_operand.vmem [shape: f32[1,128], index: 1, kind: output, shape index: {}]  }
   0x1   :  { %v4_v0 = vld [vmem:[%s55_s0] sm:$0xf]  ;;  %s36_s0 = smov 96  }
   0x2   :  { %5 = vst [vmem:[#allocation1] sm:$0xf] %v4_v0 }
   0x9   :  { %v10_v1 = vld [vmem:[#allocation1 + $0x3] sm:$0x1]   ;;  %v22_v2 = vld [vmem:[#allocation1 + $0x1] sm:$0x1]   ;;  %v6_v3 = vld [vmem:[#allocation1] sm:$0x1]  }
   0xa   :  { %11 = vrot.lane.b32.xlu0 %v10_v1, %s36_s0  ;;  %23 = vrot.lane.b32.xlu1 %v22_v2, %s37_s8  ;;  %v16_v4 = vld [vmem:[#allocation1 + $0x2] sm:$0x1]   ;;  %8 = vst.msk [vmem:[#allocation0] sm:$0x1] %vm7_vm0, %v6_v3  }
   0xe   :  { %17 = vrot.lane.b32.xlu0 %v16_v4, %s38_s9 }
  0x7c   :  { %v12_v5 = vpop.permute.xlu0 %11   ;;  %v24_v6 = vpop.permute.xlu1 %23  }
  0x7d   :  { %14 = vst.msk [vmem:[#allocation0] sm:$0x1] %vm13_vm1, %v12_v5  }
  0x80   :  { %v18_v7 = vpop.permute.xlu0 %17  }
  0x81   :  { %20 = vst.msk [vmem:[#allocation0] sm:$0x1] %vm19_vm2, %v18_v7  }
  0x82   :  { %26 = vst.msk [vmem:[#allocation0] sm:$0x1] %vm25_vm3, %v24_v6  }
  0x89   :  { %v30_v8 = vld [vmem:[#allocation0] sm:$0x1] }
  0x8a   :  { %32 = vst [vmem:[%s56_s1] sm:$0x1] %v30_v8 }

// kernel: fasa_forward.8
= control target key start
LH: loop header
LB: loop body
LE: loop exit
PB: predicated region body
PF: predicated region fallthrough
CT: control target
= control target key end

     0   :  { %vm37_vm0 = vcmask 523264   ;;  %s359_s1 = inlined_call_operand.vmem [shape: f32[64,128], index: 1, kind: input, shape index: {}]   ;;  %s360_s0 = inlined_call_operand.vmem [shape: f32[64,64], index: 0, kind: input, shape index: {}]   ;;  %s361_s2 = inlined_call_operand.vmem [shape: f32[1,128], index: 2, kind: input, shape index: {}]   ;;  %s362_s3 = inlined_call_operand.vmem [shape: f32[64,128], index: 3, kind: output, shape index: {}]  }
   0x1   :  { %v22_v0 = vld [vmem:[%s359_s1] sm:$0xff]  ;;  %v23_v1 = vld [vmem:[%s359_s1 + $0x8] sm:$0xff]  ;;  %v24_v2 = vld [vmem:[%s359_s1 + $0x10] sm:$0xff] }
   0x2   :  { %v232_v3 = vpack.c.bf16 %v23_v1, %v22_v0  ;;  %v25_v4 = vld [vmem:[%s359_s1 + $0x18] sm:$0xff]  ;;  %v26_v6 = vld [vmem:[%s359_s1 + $0x20] sm:$0xff]  ;;  %v27_v7 = vld [vmem:[%s359_s1 + $0x28] sm:$0xff] }
   0x3   :  { %v236_v5 = vpack.c.bf16 %v25_v4, %v24_v2  ;;  %v14_v8 = vld [vmem:[%s360_s0] sm:$0xff]  ;;  %v240_v10 = vpack.c.bf16 %v27_v7, %v26_v6  ;;  %v28_v11 = vld [vmem:[%s359_s1 + $0x30] sm:$0xff]  ;;  %v29_v12 = vld [vmem:[%s359_s1 + $0x38] sm:$0xff] }
   0x4   :  { %233 = vmatprep.subr.bf16.mxu0 %v232_v3  ;;  %248 = vmatprep.subr.bf16.mxu1 %v232_v3  ;;  %v18_v9 = vld [vmem:[%s360_s0 + $0x20] sm:$0xff]  ;;  %v244_v13 = vpack.c.bf16 %v29_v12, %v28_v11  ;;  %v15_v14 = vld [vmem:[%s360_s0 + $0x8] sm:$0xff]  ;;  %v16_v16 = vld [vmem:[%s360_s0 + $0x10] sm:$0xff] }
   0x5   :  { %235 = vmatpush3.bf16.msra.mxu0 %v232_v3  ;;  %252 = vmatpush3.bf16.msra.mxu1 %v232_v3  ;;  %v19_v15 = vld [vmem:[%s360_s0 + $0x28] sm:$0xff]  ;;  %v20_v17 = vld [vmem:[%s360_s0 + $0x30] sm:$0xff]  ;;  %v17_v18 = vld [vmem:[%s360_s0 + $0x18] sm:$0xff] }
   0x6   :  { %237 = vmatprep.subr.bf16.mxu0 %v236_v5  ;;  %249 = vmatprep.subr.bf16.mxu1 %v236_v5  ;;  %v21_v19 = vld [vmem:[%s360_s0 + $0x38] sm:$0xff]  ;;  %v179_v20 = vld [vmem:[%s361_s2] ss:$0 sm:$0xff] }
   0x7   :  { %220 = vmatprep.mubr.msk.f32.mxu0 %vm37_vm0, %v14_v8  ;;  %226 = vmatprep.mubr.msk.f32.mxu1 %vm37_vm0, %v18_v9 }
   0x9   :  { %239 = vmatpush3.bf16.msra.mxu0 %v236_v5  ;;  %253 = vmatpush3.bf16.msra.mxu1 %v236_v5 }
   0xa   :  { %241 = vmatprep.subr.bf16.mxu0 %v240_v10  ;;  %250 = vmatprep.subr.bf16.mxu1 %v240_v10 }
   0xd   :  { %243 = vmatpush3.bf16.msra.mxu0 %v240_v10  ;;  %254 = vmatpush3.bf16.msra.mxu1 %v240_v10 }
   0xe   :  { %245 = vmatprep.subr.bf16.mxu0 %v244_v13  ;;  %251 = vmatprep.subr.bf16.mxu1 %v244_v13 }
  0x11   :  { %247 = vmatpush3.bf16.msra.mxu0 %v244_v13  ;;  %255 = vmatpush3.bf16.msra.mxu1 %v244_v13 }
  0x14   :  { %221 = vmatmul.mubr.msk.f32.vlgmr.msra.gmra.mrb[0].mxu0 %vm37_vm0, %v15_v14  ;;  %227 = vmatmul.mubr.msk.f32.vlgmr.msra.gmra.mrb[0].mxu1 %vm37_vm0, %v19_v15 }
  0x15   :  { %223 = vmatprep.mubr.msk.f32.mxu0 %vm37_vm0, %v16_v16  ;;  %229 = vmatprep.mubr.msk.f32.mxu1 %vm37_vm0, %v20_v17 }
  0x18   :  { %224 = vmatmul.mubr.msk.f32.gmra.mrb[2].mxu0 %vm37_vm0, %v17_v18  ;;  %230 = vmatmul.mubr.msk.f32.gmra.mrb[2].mxu1 %vm37_vm0, %v21_v19 }
  0xe7   :  { %v222_v21 = vpop.f32.mrb[0].mxu0  ;;  %v228_v22 = vpop.f32.mrb[0].mxu1 }
  0xe8   :  { %v134_v23 = vadd.f32 %v222_v21, %v179_v20  ;;  %v154_v24 = vadd.f32 %v228_v22, %v179_v20  ;;  %v128_v25 = vpop.f32.mrb[1].mxu0  ;;  %v148_v26 = vpop.f32.mrb[1].mxu1 }
  0xe9   :  { %v129_v27 = vadd.f32 %v179_v20, %v128_v25  ;;  %v149_v28 = vadd.f32 %v179_v20, %v148_v26 }
  0xea   :  { %168 = vst [vmem:[%s362_s3 + $0x8] sm:$0xff] %v134_v23  ;;  %172 = vst [vmem:[%s362_s3 + $0x28] sm:$0xff] %v154_v24 }
  0xeb   :  { %167 = vst [vmem:[%s362_s3] sm:$0xff] %v129_v27  ;;  %171 = vst [vmem:[%s362_s3 + $0x20] sm:$0xff] %v149_v28  ;;  %v225_v29 = vpop.f32.mrb[2].mxu0  ;;  %v231_v30 = vpop.f32.mrb[2].mxu1 }
  0xec   :  { %v144_v31 = vadd.f32 %v225_v29, %v179_v20  ;;  %v164_v32 = vadd.f32 %v231_v30, %v179_v20  ;;  %v138_v33 = vpop.f32.mrb[3].mxu0  ;;  %v158_v34 = vpop.f32.mrb[3].mxu1 }
  0xed   :  { %v139_v35 = vadd.f32 %v179_v20, %v138_v33  ;;  %v159_v36 = vadd.f32 %v179_v20, %v158_v34 }
  0xee   :  { %170 = vst [vmem:[%s362_s3 + $0x18] sm:$0xff] %v144_v31  ;;  %174 = vst [vmem:[%s362_s3 + $0x38] sm:$0xff] %v164_v32 }
  0xef   :  { %169 = vst [vmem:[%s362_s3 + $0x10] sm:$0xff] %v139_v35  ;;  %173 = vst [vmem:[%s362_s3 + $0x30] sm:$0xff] %v159_v36 }

// kernel: fasa_forward.7
= control target key start
LH: loop header
LB: loop body
LE: loop exit
PB: predicated region body
PF: predicated region fallthrough
CT: control target
= control target key end

     0   :  { %s1189_s12 = smov 0   ;;  %s1902_s0 = inlined_call_operand.vmem [shape: f32[2,4,10,10,32], index: 0, kind: input, shape index: {}]   ;;  %s1903_s1 = inlined_call_operand.vmem [shape: f32[25,32], index: 1, kind: input, shape index: {}]   ;;  %s1904_s2 = inlined_call_operand.vmem [shape: f32[1,32], index: 2, kind: input, shape index: {}]   ;;  %s1905_s3 = inlined_call_operand.vmem [shape: f32[2,8,8,32], index: 3, kind: output, shape index: {}]  }
   0x1 LB: > { %s963_s13 = sadd.s32 4294967295, %s1167_s12   ;;  %p967_p0 = scmp.ge.s32.totalorder %s1167_s12, 1  ;;  %s1167_s12 = sphi %s1189_s12, %s13_s12  }
   0x2   : > { %p137_p1 = scmp.lt.s32.totalorder %s1167_s12, 3 }
   0x4   : > { %p138_p2 = pnand %p967_p0, %p137_p1 }
   0x6   : > { %141 = sbr.rel (%p138_p2) target bundleno = 135 (0x87), region = 32 }
   0xd   : > { %p161_p3 = scmp.lt.s32.totalorder %s963_s13, 1  ;;  %v183_v0 = vlaneseq  ;;  %v171_v2 = vld [vmem:[%s1903_s1] sm:$0xff]  ;;  %v1214_v7 = vld [vmem:[%s1903_s1 + $0x8] sm:$0xff]  ;;  %vm899_vm0 = vcmask 261120  }
   0xf   : > { %s2100_s13 = smov (!%p161_p3, %s963_s13), 1  ;;  %v184_v1 = vshrl.u32 %v183_v0, 7 }
  0x10   : > { %s1152_s16 = smul.u32 640, %s2100_s13  ;;  %s1151_s26 = sshll.u32 %s2100_s13, 6 }
  0x11   : > { %v1203_v3 = vsub.s32 0, %v184_v1  ;;  %v1205_v4 = vsub.s32 1, %v184_v1  ;;  %v1207_v5 = vsub.s32 2, %v184_v1  ;;  %v1209_v6 = vsub.s32 3, %v184_v1  ;;  %s170_s4 = scalar_lea.vmem %s1905_s3, %s1151_s26 }
  0x12   : > { %v1216_v8 = vsub.s32 4, %v184_v1  ;;  %v1218_v9 = vsub.s32 5, %v184_v1  ;;  %v1220_v10 = vsub.s32 6, %v184_v1  ;;  %v1222_v11 = vsub.s32 7, %v184_v1  ;;  %s1227_s21 = scalar_lea.vmem %s1902_s0, %s1152_s16 }
  0x13   : > { %1978 = vst [vmem:[#allocation2_spill] sm:$0xff] %v1209_v6  ;;  %v186_v12 = vrot.slane %v171_v2, %v1203_v3  ;;  %v215_v13 = vrot.slane %v171_v2, %v1205_v4  ;;  %v1232_v14 = vrot.slane %v171_v2, %v1207_v5  ;;  %v1235_v15 = vrot.slane %v171_v2, %v1209_v6  ;;  %v175_v16 = vld [vmem:[%s1227_s21] sm:$0xff]  ;;  %v1239_v17 = vld [vmem:[%s1227_s21 + $0x10] sm:$0xff] }
  0x14   : > { %v1242_v18 = vld [vmem:[%s1227_s21 + $0x20] sm:$0xff]  ;;  %v1245_v19 = vrot.slane %v171_v2, %v1216_v8  ;;  %v1248_v20 = vrot.slane %v171_v2, %v1218_v9  ;;  %v1251_v21 = vrot.slane %v171_v2, %v1220_v10  ;;  %v1254_v22 = vrot.slane %v171_v2, %v1222_v11  ;;  %v1257_v23 = vld [vmem:[%s1227_s21 + $0x30] sm:$0xff] }
  0x15   : > { %v1260_v24 = vld [vmem:[%s1227_s21 + $0x40] sm:$0xff]  ;;  %v1263_v25 = vld [vmem:[%s1227_s21 + $0x50] sm:$0xff]  ;;  %v187_v26 = vmul.f32 %v186_v12, %v175_v16  ;;  %v188_v27 = vmul.f32 %v186_v12, %v1239_v17  ;;  %v189_v28 = vmul.f32 %v186_v12, %v1242_v18  ;;  %v1269_v29 = vrot.slane %v1214_v7, %v1203_v3 }
  0x16   : > { %v1272_v30 = vld [vmem:[%s1227_s21 + $0x60] sm:$0xff]  ;;  %v1275_v31 = vld [vmem:[%s1227_s21 + $0x70] sm:$0xff]  ;;  %v190_v32 = vmul.f32 %v186_v12, %v1257_v23  ;;  %v191_v33 = vmul.f32 %v186_v12, %v1260_v24  ;;  %v192_v34 = vmul.f32 %v186_v12, %v1263_v25  ;;  %v1283_v36 = vrot.slane %v1214_v7, %v1205_v4 }
  0x17   : > { %v971_v35 = vld [vmem:[%s1227_s21 + $0xa0] sm:$0xff]  ;;  %v193_v37 = vmul.f32 %v186_v12, %v1272_v30  ;;  %v194_v38 = vmul.f32 %v186_v12, %v1275_v31  ;;  %v1288_v39 = vld [vmem:[%s1227_s21 + $0xb0] sm:$0xff]  ;;  %v1298_v43 = vrot.slane %v1214_v7, %v1207_v5  ;;  %v1314_v50 = vrot.slane %v1214_v7, %v1209_v6 }
  0x18   : > { %v1291_v40 = vld [vmem:[%s1227_s21 + $0xc0] sm:$0xff]  ;;  %v1294_v41 = vld [vmem:[%s1227_s21 + $0xd0] sm:$0xff]  ;;  %v216_v42 = vmul.f32 %v971_v35, %v215_v13  ;;  %v217_v47 = vmul.f32 %v1288_v39, %v215_v13 }
  0x19   : > { %1979 = vst [vmem:[#allocation3_spill] sm:$0xff] %v1291_v40  ;;  %1980 = vst [vmem:[#allocation4_spill] sm:$0xff] %v1294_v41  ;;  %v1301_v44 = vld [vmem:[%s1227_s21 + $0xe0] sm:$0xff]  ;;  %v1304_v45 = vld [vmem:[%s1227_s21 + $0xf0] sm:$0xff]  ;;  %v218_v48 = vmul.f32 %v1291_v40, %v215_v13  ;;  %v219_v49 = vmul.f32 %v1294_v41, %v215_v13 }
  0x1a   : > { %1981 = vst [vmem:[#allocation5_spill] sm:$0xff] %v1301_v44  ;;  %1982 = vst [vmem:[#allocation6_spill] sm:$0xff] %v1304_v45  ;;  %v1307_v46 = vld [vmem:[%s1227_s21 + $0x100] sm:$0xff]  ;;  %v1317_v51 = vld [vmem:[%s1227_s21 + $0x110] sm:$0xff]  ;;  %v220_v52 = vmul.f32 %v1301_v44, %v215_v13  ;;  %v221_v53 = vmul.f32 %v1304_v45, %v215_v13  ;;  %v224_v55 = vadd.f32 %v216_v42, %v187_v26 }
  0x1b   : > { %1983 = vst [vmem:[#allocation7_spill] sm:$0xff] %v1307_v46  ;;  %1984 = vst [vmem:[#allocation8_spill] sm:$0xff] %v1317_v51  ;;  %v222_v54 = vmul.f32 %v1307_v46, %v215_v13  ;;  %v232_v56 = vld [vmem:[%s1227_s21 + $0x1] sm:$0xff]  ;;  %v1324_v57 = vld [vmem:[%s1227_s21 + $0x11] sm:$0xff]  ;;  %v223_v58 = vmul.f32 %v1317_v51, %v215_v13  ;;  %v225_v59 = vadd.f32 %v217_v47, %v188_v27 }
  0x1c   : > { %1985 = vst [vmem:[#allocation9_spill] sm:$0xff] %v1324_v57  ;;  %v226_v60 = vadd.f32 %v218_v48, %v189_v28  ;;  %v227_v61 = vadd.f32 %v219_v49, %v190_v32  ;;  %v1328_v62 = vld [vmem:[%s1227_s21 + $0x21] sm:$0xff]  ;;  %v1331_v63 = vld [vmem:[%s1227_s21 + $0x31] sm:$0xff]  ;;  %v228_v1 = vadd.f32 %v220_v52, %v191_v33  ;;  %v229_v2 = vadd.f32 %v221_v53, %v192_v34 }
  0x1d   : > { %1986 = vst [vmem:[#allocation10_spill] sm:$0xff] %v1328_v62  ;;  %1987 = vst [vmem:[#allocation11_spill] sm:$0xff] %v1331_v63  ;;  %v1334_v0 = vld [vmem:[%s1227_s21 + $0x41] sm:$0xff]  ;;  %v230_v12 = vadd.f32 %v222_v54, %v193_v37  ;;  %v1337_v16 = vld [vmem:[%s1227_s21 + $0x51] sm:$0xff]  ;;  %v244_v27 = vmul.f32 %v1232_v14, %v232_v56  ;;  %v231_v28 = vadd.f32 %v223_v58, %v194_v38 }
  0x1e   : > { %1988 = vst [vmem:[#allocation12_spill] sm:$0xff] %v1334_v0  ;;  %1989 = vst [vmem:[#allocation13_spill] sm:$0xff] %v1337_v16  ;;  %v1340_v13 = vld [vmem:[%s1227_s21 + $0x61] sm:$0xff]  ;;  %v1343_v26 = vld [vmem:[%s1227_s21 + $0x71] sm:$0xff]  ;;  %v245_v32 = vmul.f32 %v1232_v14, %v1324_v57  ;;  %v246_v33 = vmul.f32 %v1232_v14, %v1328_v62  ;;  %v247_v34 = vmul.f32 %v1232_v14, %v1331_v63 }
  0x1f   : > { %1990 = vst [vmem:[#allocation14_spill] sm:$0xff] %v1340_v13  ;;  %1991 = vst [vmem:[#allocation15_spill] sm:$0xff] %v1343_v26  ;;  %v979_v35 = vld [vmem:[%s1227_s21 + $0xa1] sm:$0xff]  ;;  %v1354_v37 = vld [vmem:[%s1227_s21 + $0xb1] sm:$0xff]  ;;  %v248_v42 = vmul.f32 %v1232_v14, %v1334_v0  ;;  %v249_v38 = vmul.f32 %v1232_v14, %v1337_v16  ;;  %v250_v47 = vmul.f32 %v1232_v14, %v1340_v13 }
  0x20   : > { %v251_v48 = vmul.f32 %v1232_v14, %v1343_v26  ;;  %v1365_v49 = vld [vmem:[%s1227_s21 + $0xc1] sm:$0xff]  ;;  %v1368_v52 = vld [vmem:[%s1227_s21 + $0xd1] sm:$0xff]  ;;  %v252_v54 = vadd.f32 %v244_v27, %v224_v55  ;;  %v253_v56 = vadd.f32 %v245_v32, %v225_v59  ;;  %v254_v58 = vadd.f32 %v246_v33, %v226_v60 }
  0x21   : > { %1992 = vst [vmem:[#allocation16_spill] sm:$0xff] %v1365_v49  ;;  %1993 = vst [vmem:[#allocation17_spill] sm:$0xff] %v1368_v52  ;;  %v1371_v53 = vld [vmem:[%s1227_s21 + $0xe1] sm:$0xff]  ;;  %v255_v0 = vadd.f32 %v247_v34, %v227_v61  ;;  %v1374_v63 = vld [vmem:[%s1227_s21 + $0xf1] sm:$0xff]  ;;  %v256_v14 = vadd.f32 %v248_v42, %v228_v1  ;;  %v257_v26 = vadd.f32 %v249_v38, %v229_v2 }
  0x22   : > { %1994 = vst [vmem:[#allocation18_spill] sm:$0xff] %v1371_v53  ;;  %1995 = vst [vmem:[#allocation19_spill] sm:$0xff] %v1374_v63  ;;  %v1377_v16 = vld [vmem:[%s1227_s21 + $0x101] sm:$0xff]  ;;  %v1380_v13 = vld [vmem:[%s1227_s21 + $0x111] sm:$0xff]  ;;  %v258_v62 = vadd.f32 %v250_v47, %v230_v12  ;;  %v259_v57 = vadd.f32 %v251_v48, %v231_v28  ;;  %v272_v6 = vmul.f32 %v979_v35, %v1235_v15 }
  0x23   : > { %1996 = vst [vmem:[#allocation20_spill] sm:$0xff] %v1377_v16  ;;  %1997 = vst [vmem:[#allocation21_spill] sm:$0xff] %v1380_v13  ;;  %v273_v55 = vmul.f32 %v1354_v37, %v1235_v15  ;;  %v274_v59 = vmul.f32 %v1365_v49, %v1235_v15  ;;  %v275_v60 = vmul.f32 %v1368_v52, %v1235_v15  ;;  %v288_v61 = vld [vmem:[%s1227_s21 + $0x2] sm:$0xff]  ;;  %v1391_v1 = vld [vmem:[%s1227_s21 + $0x12] sm:$0xff] }
  0x24   : > { %v276_v2 = vmul.f32 %v1371_v53, %v1235_v15  ;;  %v277_v12 = vmul.f32 %v1374_v63, %v1235_v15  ;;  %v278_v27 = vmul.f32 %v1377_v16, %v1235_v15  ;;  %v279_v28 = vmul.f32 %v1380_v13, %v1235_v15  ;;  %v1402_v32 = vld [vmem:[%s1227_s21 + $0x22] sm:$0xff]  ;;  %v1405_v33 = vld [vmem:[%s1227_s21 + $0x32] sm:$0xff] }
  0x25   : > { %1998 = vst [vmem:[#allocation22_spill] sm:$0xff] %v1402_v32  ;;  %1999 = vst [vmem:[#allocation23_spill] sm:$0xff] %v1405_v33  ;;  %v1408_v34 = vld [vmem:[%s1227_s21 + $0x42] sm:$0xff]  ;;  %v280_v35 = vadd.f32 %v272_v6, %v252_v54  ;;  %v281_v42 = vadd.f32 %v273_v55, %v253_v56  ;;  %v282_v38 = vadd.f32 %v274_v59, %v254_v58  ;;  %v1411_v48 = vld [vmem:[%s1227_s21 + $0x52] sm:$0xff] }
  0x26   : > { %2000 = vst [vmem:[#allocation24_spill] sm:$0xff] %v1408_v34  ;;  %v283_v47 = vadd.f32 %v275_v60, %v255_v0  ;;  %2001 = vst [vmem:[#allocation25_spill] sm:$0xff] %v1411_v48  ;;  %v1414_v63 = vld [vmem:[%s1227_s21 + $0x62] sm:$0xff]  ;;  %v1417_v16 = vld [vmem:[%s1227_s21 + $0x72] sm:$0xff]  ;;  %v284_v15 = vadd.f32 %v276_v2, %v256_v14  ;;  %v285_v13 = vadd.f32 %v277_v12, %v257_v26 }
  0x27   : > { %2002 = vst [vmem:[#allocation26_spill] sm:$0xff] %v1414_v63  ;;  %2003 = vst [vmem:[#allocation27_spill] sm:$0xff] %v1417_v16  ;;  %v286_v53 = vadd.f32 %v278_v27, %v258_v62  ;;  %v287_v52 = vadd.f32 %v279_v28, %v259_v57  ;;  %v300_v49 = vmul.f32 %v1245_v19, %v288_v61  ;;  %v987_v56 = vld [vmem:[%s1227_s21 + $0x140] sm:$0xff]  ;;  %v1428_v58 = vld [vmem:[%s1227_s21 + $0x150] sm:$0xff] }
  0x28   : > { %v301_v6 = vmul.f32 %v1245_v19, %v1391_v1  ;;  %v302_v0 = vmul.f32 %v1245_v19, %v1402_v32  ;;  %v303_v54 = vmul.f32 %v1245_v19, %v1405_v33  ;;  %v304_v57 = vmul.f32 %v1245_v19, %v1408_v34  ;;  %v1439_v55 = vld [vmem:[%s1227_s21 + $0x160] sm:$0xff]  ;;  %v1442_v59 = vld [vmem:[%s1227_s21 + $0x170] sm:$0xff] }
  0x29   : > { %v305_v62 = vmul.f32 %v1245_v19, %v1411_v48  ;;  %v306_v26 = vmul.f32 %v1245_v19, %v1414_v63  ;;  %v307_v14 = vmul.f32 %v1245_v19, %v1417_v16  ;;  %2004 = vst [vmem:[#allocation28_spill] sm:$0xff] %v1439_v55  ;;  %2005 = vst [vmem:[#allocation29_spill] sm:$0xff] %v1442_v59  ;;  %v1445_v60 = vld [vmem:[%s1227_s21 + $0x180] sm:$0xff]  ;;  %v1448_v28 = vld [vmem:[%s1227_s21 + $0x190] sm:$0xff] }
  0x2a   : > { %2006 = vst [vmem:[#allocation30_spill] sm:$0xff] %v1445_v60  ;;  %v308_v61 = vadd.f32 %v300_v49, %v280_v35  ;;  %v309_v2 = vadd.f32 %v301_v6, %v281_v42  ;;  %v310_v12 = vadd.f32 %v302_v0, %v282_v38  ;;  %v311_v27 = vadd.f32 %v303_v54, %v283_v47  ;;  %v1451_v48 = vld [vmem:[%s1227_s21 + $0x1a0] sm:$0xff]  ;;  %v1454_v63 = vld [vmem:[%s1227_s21 + $0x1b0] sm:$0xff] }
  0x2b   : > { %2007 = vst [vmem:[#allocation31_spill] sm:$0xff] %v1448_v28  ;;  %2008 = vst [vmem:[#allocation32_spill] sm:$0xff] %v1451_v48  ;;  %v312_v19 = vadd.f32 %v304_v57, %v284_v15  ;;  %v313_v16 = vadd.f32 %v305_v62, %v285_v13  ;;  %v314_v34 = vadd.f32 %v306_v26, %v286_v53  ;;  %v995_v38 = vld [vmem:[%s1227_s21 + $0x1e0] sm:$0xff]  ;;  %v1465_v47 = vld [vmem:[%s1227_s21 + $0x1f0] sm:$0xff] }
  0x2c   : > { %2009 = vst [vmem:[#allocation33_spill] sm:$0xff] %v1454_v63  ;;  %v315_v33 = vadd.f32 %v307_v14, %v287_v52  ;;  %v329_v32 = vmul.f32 %v987_v56, %v1248_v20  ;;  %v330_v49 = vmul.f32 %v1428_v58, %v1248_v20  ;;  %v331_v35 = vmul.f32 %v1439_v55, %v1248_v20  ;;  %v1476_v6 = vld [vmem:[%s1227_s21 + $0x200] sm:$0xff]  ;;  %v1479_v0 = vld [vmem:[%s1227_s21 + $0x210] sm:$0xff] }
  0x2d   : > { %v332_v42 = vmul.f32 %v1442_v59, %v1248_v20  ;;  %v333_v13 = vmul.f32 %v1445_v60, %v1248_v20  ;;  %v334_v52 = vmul.f32 %v1448_v28, %v1248_v20  ;;  %v335_v53 = vmul.f32 %v1451_v48, %v1248_v20  ;;  %2010 = vst [vmem:[#allocation34_spill] sm:$0xff] %v1476_v6  ;;  %v1482_v54 = vld [vmem:[%s1227_s21 + $0x220] sm:$0xff]  ;;  %v1485_v14 = vld [vmem:[%s1227_s21 + $0x230] sm:$0xff] }
  0x2e   : > { %v336_v15 = vmul.f32 %v1454_v63, %v1248_v20  ;;  %2011 = vst [vmem:[#allocation35_spill] sm:$0xff] %v1479_v0  ;;  %2012 = vst [vmem:[#allocation36_spill] sm:$0xff] %v1482_v54  ;;  %v337_v56 = vadd.f32 %v329_v32, %v308_v61  ;;  %v338_v57 = vadd.f32 %v330_v49, %v309_v2  ;;  %v1488_v28 = vld [vmem:[%s1227_s21 + $0x240] sm:$0xff]  ;;  %v1491_v48 = vld [vmem:[%s1227_s21 + $0x250] sm:$0xff] }
  0x2f   : > { %v339_v62 = vadd.f32 %v331_v35, %v310_v12  ;;  %v340_v26 = vadd.f32 %v332_v42, %v311_v27  ;;  %2013 = vst [vmem:[#allocation37_spill] sm:$0xff] %v1485_v14  ;;  %2014 = vst [vmem:[#allocation38_spill] sm:$0xff] %v1488_v28  ;;  %v341_v20 = vadd.f32 %v333_v13, %v312_v19  ;;  %v1003_v12 = vld [vmem:[%s1227_s21 + $0x141] sm:$0xff]  ;;  %v1502_v27 = vld [vmem:[%s1227_s21 + $0x151] sm:$0xff] }
  0x30   : > { %2015 = vst [vmem:[#allocation39_spill] sm:$0xff] %v1491_v48  ;;  %v342_v63 = vadd.f32 %v334_v52, %v313_v16  ;;  %v343_v60 = vadd.f32 %v335_v53, %v314_v34  ;;  %v344_v59 = vadd.f32 %v336_v15, %v315_v33  ;;  %v358_v55 = vmul.f32 %v995_v38, %v1251_v21  ;;  %v1513_v49 = vld [vmem:[%s1227_s21 + $0x161] sm:$0xff]  ;;  %v1516_v35 = vld [vmem:[%s1227_s21 + $0x171] sm:$0xff] }
  0x31   : > { %v359_v32 = vmul.f32 %v1465_v47, %v1251_v21  ;;  %v360_v61 = vmul.f32 %v1476_v6, %v1251_v21  ;;  %v361_v2 = vmul.f32 %v1479_v0, %v1251_v21  ;;  %v362_v16 = vmul.f32 %v1482_v54, %v1251_v21  ;;  %2016 = vst [vmem:[#allocation40_spill] sm:$0xff] %v1513_v49  ;;  %v1519_v42 = vld [vmem:[%s1227_s21 + $0x181] sm:$0xff]  ;;  %v1522_v15 = vld [vmem:[%s1227_s21 + $0x191] sm:$0xff] }
  0x32   : > { %v363_v33 = vmul.f32 %v1485_v14, %v1251_v21  ;;  %v364_v34 = vmul.f32 %v1488_v28, %v1251_v21  ;;  %v365_v19 = vmul.f32 %v1491_v48, %v1251_v21  ;;  %2017 = vst [vmem:[#allocation41_spill] sm:$0xff] %v1516_v35  ;;  %2018 = vst [vmem:[#allocation42_spill] sm:$0xff] %v1519_v42  ;;  %v1525_v14 = vld [vmem:[%s1227_s21 + $0x1a1] sm:$0xff]  ;;  %v1528_v28 = vld [vmem:[%s1227_s21 + $0x1b1] sm:$0xff] }
  0x33   : > { %v366_v38 = vadd.f32 %v358_v55, %v337_v56  ;;  %v367_v13 = vadd.f32 %v359_v32, %v338_v57  ;;  %v368_v52 = vadd.f32 %v360_v61, %v339_v62  ;;  %v369_v53 = vadd.f32 %v361_v2, %v340_v26  ;;  %2019 = vst [vmem:[#allocation43_spill] sm:$0xff] %v1522_v15  ;;  %v1011_v62 = vld [vmem:[%s1227_s21 + $0x1e1] sm:$0xff]  ;;  %v1539_v26 = vld [vmem:[%s1227_s21 + $0x1f1] sm:$0xff] }
  0x34   : > { %2020 = vst [vmem:[#allocation44_spill] sm:$0xff] %v1525_v14  ;;  %2021 = vst [vmem:[#allocation45_spill] sm:$0xff] %v1528_v28  ;;  %v370_v21 = vadd.f32 %v362_v16, %v341_v20  ;;  %v371_v48 = vadd.f32 %v363_v33, %v342_v63  ;;  %v372_v54 = vadd.f32 %v364_v34, %v343_v60  ;;  %v1550_v32 = vld [vmem:[%s1227_s21 + $0x201] sm:$0xff]  ;;  %v1553_v61 = vld [vmem:[%s1227_s21 + $0x211] sm:$0xff] }
  0x35   : > { %v373_v0 = vadd.f32 %v365_v19, %v344_v59  ;;  %v386_v6 = vmul.f32 %v1003_v12, %v1254_v22  ;;  %v387_v55 = vmul.f32 %v1502_v27, %v1254_v22  ;;  %v388_v56 = vmul.f32 %v1513_v49, %v1254_v22  ;;  %2022 = vst [vmem:[#allocation46_spill] sm:$0xff] %v1539_v26  ;;  %v1556_v2 = vld [vmem:[%s1227_s21 + $0x221] sm:$0xff]  ;;  %v1559_v19 = vld [vmem:[%s1227_s21 + $0x231] sm:$0xff] }
  0x36   : > { %v389_v57 = vmul.f32 %v1516_v35, %v1254_v22  ;;  %v390_v63 = vmul.f32 %v1519_v42, %v1254_v22  ;;  %v391_v59 = vmul.f32 %v1522_v15, %v1254_v22  ;;  %v392_v60 = vmul.f32 %v1525_v14, %v1254_v22  ;;  %2023 = vst [vmem:[#allocation47_spill] sm:$0xff] %v1550_v32  ;;  %v1562_v15 = vld [vmem:[%s1227_s21 + $0x241] sm:$0xff]  ;;  %v1565_v14 = vld [vmem:[%s1227_s21 + $0x251] sm:$0xff] }
  0x37   : > { %v393_v20 = vmul.f32 %v1528_v28, %v1254_v22  ;;  %2024 = vst [vmem:[#allocation48_spill] sm:$0xff] %v1553_v61  ;;  %2025 = vst [vmem:[#allocation49_spill] sm:$0xff] %v1556_v2  ;;  %v394_v12 = vadd.f32 %v386_v6, %v366_v38  ;;  %v395_v16 = vadd.f32 %v387_v55, %v367_v13  ;;  %v1587_v55 = vld [vmem:[%s1227_s21 + $0x162] sm:$0xff] }
  0x38   : > { %v396_v33 = vadd.f32 %v388_v56, %v368_v52  ;;  %v397_v34 = vadd.f32 %v389_v57, %v369_v53  ;;  %2026 = vst [vmem:[#allocation50_spill] sm:$0xff] %v1559_v19  ;;  %2027 = vst [vmem:[#allocation51_spill] sm:$0xff] %v1562_v15  ;;  %v398_v22 = vadd.f32 %v390_v63, %v370_v21  ;;  %v1019_v52 = vld [vmem:[%s1227_s21 + $0x142] sm:$0xff]  ;;  %v1576_v53 = vld [vmem:[%s1227_s21 + $0x152] sm:$0xff] }
  0x39   : > { %2028 = vst [vmem:[#allocation52_spill] sm:$0xff] %v1565_v14  ;;  %v399_v28 = vadd.f32 %v391_v59, %v371_v48  ;;  %v400_v42 = vadd.f32 %v392_v60, %v372_v54  ;;  %v401_v35 = vadd.f32 %v393_v20, %v373_v0  ;;  %v414_v49 = vmul.f32 %v1011_v62, %v1269_v29  ;;  %v1590_v56 = vld [vmem:[%s1227_s21 + $0x172] sm:$0xff]  ;;  %v1593_v57 = vld [vmem:[%s1227_s21 + $0x182] sm:$0xff] }
  0x3a   : > { %v415_v6 = vmul.f32 %v1539_v26, %v1269_v29  ;;  %v416_v38 = vmul.f32 %v1550_v32, %v1269_v29  ;;  %v417_v13 = vmul.f32 %v1553_v61, %v1269_v29  ;;  %v418_v48 = vmul.f32 %v1556_v2, %v1269_v29  ;;  %v1596_v20 = vld [vmem:[%s1227_s21 + $0x192] sm:$0xff]  ;;  %v1599_v2 = vld [vmem:[%s1227_s21 + $0x1a2] sm:$0xff] }
  0x3b   : > { %v419_v0 = vmul.f32 %v1559_v19, %v1269_v29  ;;  %v420_v54 = vmul.f32 %v1562_v15, %v1269_v29  ;;  %v421_v21 = vmul.f32 %v1565_v14, %v1269_v29  ;;  %v422_v62 = vadd.f32 %v414_v49, %v394_v12  ;;  %v1602_v19 = vld [vmem:[%s1227_s21 + $0x1b2] sm:$0xff] }
  0x3c   : > { %v423_v63 = vadd.f32 %v415_v6, %v395_v16  ;;  %v424_v59 = vadd.f32 %v416_v38, %v396_v33  ;;  %v425_v60 = vadd.f32 %v417_v13, %v397_v34  ;;  %v426_v15 = vadd.f32 %v418_v48, %v398_v22  ;;  %v1620_v38 = vld [vmem:[%s1227_s21 + $0x80] sm:$0xff] }
  0x3d   : > { %v427_v61 = vadd.f32 %v419_v0, %v399_v28  ;;  %v428_v29 = vadd.f32 %v420_v54, %v400_v42  ;;  %v429_v14 = vadd.f32 %v421_v21, %v401_v35  ;;  %v442_v32 = vmul.f32 %v1019_v52, %v1283_v36  ;;  %2029 = vst [vmem:[#allocation53_spill] sm:$0xff] %v1620_v38 }
  0x3e   : > { %v443_v26 = vmul.f32 %v1576_v53, %v1283_v36  ;;  %v444_v49 = vmul.f32 %v1587_v55, %v1283_v36  ;;  %v445_v12 = vmul.f32 %v1590_v56, %v1283_v36  ;;  %v446_v16 = vmul.f32 %v1593_v57, %v1283_v36 }
  0x3f   : > { %v447_v33 = vmul.f32 %v1596_v20, %v1283_v36  ;;  %v448_v28 = vmul.f32 %v1599_v2, %v1283_v36  ;;  %v449_v35 = vmul.f32 %v1602_v19, %v1283_v36  ;;  %v450_v42 = vadd.f32 %v442_v32, %v422_v62 }
  0x40   : > { %v451_v34 = vadd.f32 %v443_v26, %v423_v63  ;;  %v452_v22 = vadd.f32 %v444_v49, %v424_v59  ;;  %v453_v6 = vadd.f32 %v445_v12, %v425_v60  ;;  %v454_v13 = vadd.f32 %v446_v16, %v426_v15  ;;  %v1639_v60 = vld [vmem:[%s1227_s21 + $0x120] sm:$0xff] }
  0x41   : > { %v455_v52 = vadd.f32 %v447_v33, %v427_v61  ;;  %v456_v48 = vadd.f32 %v448_v28, %v428_v29  ;;  %v457_v0 = vadd.f32 %v449_v35, %v429_v14  ;;  %v471_v54 = vmul.f32 %v1298_v43, %v1239_v17  ;;  %2030 = vst [vmem:[#allocation54_spill] sm:$0xff] %v1639_v60 }
  0x42   : > { %v472_v21 = vmul.f32 %v1298_v43, %v1242_v18  ;;  %v473_v36 = vmul.f32 %v1298_v43, %v1257_v23  ;;  %v474_v26 = vmul.f32 %v1298_v43, %v1260_v24  ;;  %v475_v32 = vmul.f32 %v1298_v43, %v1263_v25 }
  0x43   : > { %v476_v15 = vmul.f32 %v1298_v43, %v1272_v30  ;;  %v477_v14 = vmul.f32 %v1298_v43, %v1275_v31  ;;  %v478_v17 = vmul.f32 %v1620_v38, %v1298_v43  ;;  %v479_v61 = vadd.f32 %v471_v54, %v450_v42 }
  0x44   : > { %v480_v62 = vadd.f32 %v472_v21, %v451_v34  ;;  %v481_v63 = vadd.f32 %v473_v36, %v452_v22  ;;  %v482_v59 = vadd.f32 %v474_v26, %v453_v6  ;;  %v483_v29 = vadd.f32 %v475_v32, %v454_v13  ;;  %v1660_v6 = vld [vmem:[%s1903_s1 + $0x10] sm:$0xff]  ;;  %v1663_v32 = vld [vmem:[%s1227_s21 + $0x81] sm:$0xff] }
  0x45   : > { %v484_v49 = vadd.f32 %v476_v15, %v455_v52  ;;  %v485_v12 = vadd.f32 %v477_v14, %v456_v48  ;;  %v486_v16 = vadd.f32 %v478_v17, %v457_v0  ;;  %v500_v33 = vmul.f32 %v1288_v39, %v1314_v50 }
  0x46   : > { %v501_v28 = vmul.f32 %v1291_v40, %v1314_v50  ;;  %v502_v43 = vmul.f32 %v1294_v41, %v1314_v50  ;;  %v503_v35 = vmul.f32 %v1301_v44, %v1314_v50  ;;  %v504_v42 = vmul.f32 %v1304_v45, %v1314_v50  ;;  %v1700_v45 = vld [vmem:[%s1227_s21 + $0x121] sm:$0xff] }
  0x47   : > { %v505_v34 = vmul.f32 %v1307_v46, %v1314_v50  ;;  %v506_v22 = vmul.f32 %v1317_v51, %v1314_v50  ;;  %v507_v39 = vmul.f32 %v1639_v60, %v1314_v50  ;;  %v508_v13 = vadd.f32 %v500_v33, %v479_v61  ;;  %v2034_v33 = vld [vmem:[#allocation11_spill] sm:$0xff] }
  0x48   : > { %v509_v52 = vadd.f32 %v501_v28, %v480_v62  ;;  %v510_v48 = vadd.f32 %v502_v43, %v481_v63  ;;  %v511_v0 = vadd.f32 %v503_v35, %v482_v59  ;;  %v512_v54 = vadd.f32 %v504_v42, %v483_v29  ;;  %v2031_v59 = vld [vmem:[#allocation2_spill] sm:$0xff]  ;;  %v2035_v28 = vld [vmem:[#allocation12_spill] sm:$0xff]  ;;  %v2036_v35 = vld [vmem:[#allocation13_spill] sm:$0xff] }
  0x49   : > { %v513_v21 = vadd.f32 %v505_v34, %v484_v49  ;;  %v514_v36 = vadd.f32 %v506_v22, %v485_v12  ;;  %v515_v26 = vadd.f32 %v507_v39, %v486_v16  ;;  %v527_v15 = vrot.slane %v1214_v7, %v1216_v8  ;;  %v2032_v49 = vld [vmem:[#allocation9_spill] sm:$0xff]  ;;  %v2033_v12 = vld [vmem:[#allocation10_spill] sm:$0xff]  ;;  %v2038_v22 = vld [vmem:[#allocation15_spill] sm:$0xff]  ;;  %2039 = vst [vmem:[#allocation2_spill] sm:$0xff] %v1700_v45 }
  0x4a   : > { %v555_v50 = vrot.slane %v1214_v7, %v1218_v9  ;;  %v583_v14 = vrot.slane %v1214_v7, %v1220_v10  ;;  %v1673_v17 = vrot.slane %v1214_v7, %v1222_v11  ;;  %v1677_v61 = vrot.slane %v1660_v6, %v1203_v3 }
  0x4b   : > { %v1681_v62 = vrot.slane %v1660_v6, %v1205_v4  ;;  %v1685_v63 = vrot.slane %v1660_v6, %v1207_v5  ;;  %v1689_v29 = vrot.slane %v1660_v6, %v2031_v59  ;;  %v528_v7 = vmul.f32 %v527_v15, %v2032_v49  ;;  %v2037_v4 = vld [vmem:[#allocation14_spill] sm:$0xff] }
  0x4c   : > { %v529_v16 = vmul.f32 %v527_v15, %v2033_v12  ;;  %v530_v3 = vmul.f32 %v527_v15, %v2034_v33  ;;  %v531_v43 = vmul.f32 %v527_v15, %v2035_v28  ;;  %v532_v42 = vmul.f32 %v527_v15, %v2036_v35  ;;  %v2040_v35 = vld [vmem:[#allocation16_spill] sm:$0xff] }
  0x4d   : > { %v533_v34 = vmul.f32 %v527_v15, %v2037_v4  ;;  %v534_v39 = vmul.f32 %v527_v15, %v2038_v22  ;;  %v535_v5 = vmul.f32 %v1663_v32, %v527_v15  ;;  %v536_v60 = vadd.f32 %v528_v7, %v508_v13  ;;  %v2041_v4 = vld [vmem:[#allocation17_spill] sm:$0xff]  ;;  %v2042_v22 = vld [vmem:[#allocation18_spill] sm:$0xff]  ;;  %v2043_v15 = vld [vmem:[#allocation19_spill] sm:$0xff] }
  0x4e   : > { %v537_v51 = vadd.f32 %v529_v16, %v509_v52  ;;  %v538_v59 = vadd.f32 %v530_v3, %v510_v48  ;;  %v539_v46 = vadd.f32 %v531_v43, %v511_v0  ;;  %v540_v49 = vadd.f32 %v532_v42, %v512_v54  ;;  %v2044_v52 = vld [vmem:[#allocation20_spill] sm:$0xff]  ;;  %v2045_v0 = vld [vmem:[#allocation21_spill] sm:$0xff]  ;;  %v1711_v3 = vld [vmem:[%s1227_s21 + $0x82] sm:$0xff] }
  0x4f   : > { %v541_v12 = vadd.f32 %v533_v34, %v513_v21  ;;  %v542_v33 = vadd.f32 %v534_v39, %v514_v36  ;;  %v543_v44 = vadd.f32 %v535_v5, %v515_v26  ;;  %v556_v28 = vmul.f32 %v1354_v37, %v555_v50  ;;  %v2046_v5 = vld [vmem:[#allocation22_spill] sm:$0xff] }
  0x50   : > { %v557_v41 = vmul.f32 %v2040_v35, %v555_v50  ;;  %v558_v40 = vmul.f32 %v2041_v4, %v555_v50  ;;  %v559_v38 = vmul.f32 %v2042_v22, %v555_v50  ;;  %v560_v13 = vmul.f32 %v2043_v15, %v555_v50 }
  0x51   : > { %v561_v48 = vmul.f32 %v2044_v52, %v555_v50  ;;  %v562_v7 = vmul.f32 %v2045_v0, %v555_v50  ;;  %v563_v54 = vmul.f32 %v1700_v45, %v555_v50  ;;  %v564_v16 = vadd.f32 %v556_v28, %v536_v60  ;;  %v2047_v52 = vld [vmem:[#allocation23_spill] sm:$0xff]  ;;  %v2048_v0 = vld [vmem:[#allocation24_spill] sm:$0xff]  ;;  %v2049_v50 = vld [vmem:[#allocation25_spill] sm:$0xff] }
  0x52   : > { %v565_v21 = vadd.f32 %v557_v41, %v537_v51  ;;  %v566_v36 = vadd.f32 %v558_v40, %v538_v59  ;;  %v567_v26 = vadd.f32 %v559_v38, %v539_v46  ;;  %v568_v37 = vadd.f32 %v560_v13, %v540_v49  ;;  %v2050_v41 = vld [vmem:[#allocation26_spill] sm:$0xff]  ;;  %v2051_v46 = vld [vmem:[#allocation27_spill] sm:$0xff] }
  0x53   : > { %v569_v43 = vadd.f32 %v561_v48, %v541_v12  ;;  %v570_v42 = vadd.f32 %v562_v7, %v542_v33  ;;  %v571_v34 = vadd.f32 %v563_v54, %v543_v44  ;;  %v584_v39 = vmul.f32 %v583_v14, %v1391_v1  ;;  %v1074_v59 = vld [vmem:[%s1227_s21 + $0x1c0] sm:$0xff]  ;;  %v2052_v54 = vld [vmem:[#allocation28_spill] sm:$0xff] }
  0x54   : > { %v585_v15 = vmul.f32 %v583_v14, %v2046_v5  ;;  %v586_v22 = vmul.f32 %v583_v14, %v2047_v52  ;;  %v587_v4 = vmul.f32 %v583_v14, %v2048_v0  ;;  %v588_v60 = vmul.f32 %v583_v14, %v2049_v50 }
  0x55   : > { %v589_v40 = vmul.f32 %v583_v14, %v2050_v41  ;;  %v590_v51 = vmul.f32 %v583_v14, %v2051_v46  ;;  %v591_v38 = vmul.f32 %v1711_v3, %v583_v14  ;;  %v592_v28 = vadd.f32 %v584_v39, %v564_v16  ;;  %v2053_v46 = vld [vmem:[#allocation29_spill] sm:$0xff]  ;;  %v2054_v14 = vld [vmem:[#allocation30_spill] sm:$0xff]  ;;  %v2056_v16 = vld [vmem:[#allocation32_spill] sm:$0xff] }
  0x56   : > { %v593_v12 = vadd.f32 %v585_v15, %v565_v21  ;;  %v594_v33 = vadd.f32 %v586_v22, %v566_v36  ;;  %v595_v44 = vadd.f32 %v587_v4, %v567_v26  ;;  %v596_v1 = vadd.f32 %v588_v60, %v568_v37  ;;  %v2055_v4 = vld [vmem:[#allocation31_spill] sm:$0xff]  ;;  %v2057_v36 = vld [vmem:[#allocation33_spill] sm:$0xff]  ;;  %v1082_v39 = vld [vmem:[%s1227_s21 + $0x260] sm:$0xff] }
  0x57   : > { %v597_v49 = vadd.f32 %v589_v40, %v569_v43  ;;  %v598_v13 = vadd.f32 %v590_v51, %v570_v42  ;;  %v599_v48 = vadd.f32 %v591_v38, %v571_v34  ;;  %v613_v7 = vmul.f32 %v1428_v58, %v1673_v17 }
  0x58   : > { %v614_v41 = vmul.f32 %v2052_v54, %v1673_v17  ;;  %v615_v45 = vmul.f32 %v2053_v46, %v1673_v17  ;;  %v616_v15 = vmul.f32 %v2054_v14, %v1673_v17  ;;  %v617_v22 = vmul.f32 %v2055_v4, %v1673_v17  ;;  %v2058_v54 = vld [vmem:[#allocation34_spill] sm:$0xff]  ;;  %v2059_v4 = vld [vmem:[#allocation35_spill] sm:$0xff] }
  0x59   : > { %v618_v21 = vmul.f32 %v2056_v16, %v1673_v17  ;;  %v619_v26 = vmul.f32 %v2057_v36, %v1673_v17  ;;  %v620_v58 = vmul.f32 %v1074_v59, %v1673_v17  ;;  %v621_v37 = vadd.f32 %v613_v7, %v592_v28  ;;  %v2060_v17 = vld [vmem:[#allocation36_spill] sm:$0xff]  ;;  %v1090_v7 = vld [vmem:[%s1227_s21 + $0x1c1] sm:$0xff] }
  0x5a   : > { %v622_v43 = vadd.f32 %v614_v41, %v593_v12  ;;  %v623_v42 = vadd.f32 %v615_v45, %v594_v33  ;;  %v624_v34 = vadd.f32 %v616_v15, %v595_v44  ;;  %v625_v60 = vadd.f32 %v617_v22, %v596_v1  ;;  %v2061_v45 = vld [vmem:[#allocation37_spill] sm:$0xff]  ;;  %v2062_v12 = vld [vmem:[#allocation38_spill] sm:$0xff]  ;;  %v2063_v44 = vld [vmem:[#allocation39_spill] sm:$0xff] }
  0x5b   : > { %v626_v40 = vadd.f32 %v618_v21, %v597_v49  ;;  %v627_v46 = vadd.f32 %v619_v26, %v598_v13  ;;  %v628_v51 = vadd.f32 %v620_v58, %v599_v48  ;;  %v642_v38 = vmul.f32 %v1465_v47, %v1677_v61  ;;  %v2064_v58 = vld [vmem:[#allocation40_spill] sm:$0xff] }
  0x5c   : > { %v643_v14 = vmul.f32 %v2058_v54, %v1677_v61  ;;  %v644_v16 = vmul.f32 %v2059_v4, %v1677_v61  ;;  %v645_v41 = vmul.f32 %v2060_v17, %v1677_v61  ;;  %v646_v28 = vmul.f32 %v2061_v45, %v1677_v61  ;;  %v2065_v4 = vld [vmem:[#allocation41_spill] sm:$0xff] }
  0x5d   : > { %v647_v33 = vmul.f32 %v2062_v12, %v1677_v61  ;;  %v648_v59 = vmul.f32 %v2063_v44, %v1677_v61  ;;  %v649_v47 = vmul.f32 %v1082_v39, %v1677_v61  ;;  %v650_v1 = vadd.f32 %v642_v38, %v621_v37  ;;  %v2066_v61 = vld [vmem:[#allocation42_spill] sm:$0xff] }
  0x5e   : > { %v651_v49 = vadd.f32 %v643_v14, %v622_v43  ;;  %v652_v13 = vadd.f32 %v644_v16, %v623_v42  ;;  %v653_v48 = vadd.f32 %v645_v41, %v624_v34  ;;  %v654_v15 = vadd.f32 %v646_v28, %v625_v60  ;;  %v2067_v43 = vld [vmem:[#allocation43_spill] sm:$0xff]  ;;  %v2068_v34 = vld [vmem:[#allocation44_spill] sm:$0xff]  ;;  %v2069_v60 = vld [vmem:[#allocation45_spill] sm:$0xff] }
  0x5f   : > { %v655_v22 = vadd.f32 %v647_v33, %v626_v40  ;;  %v656_v21 = vadd.f32 %v648_v59, %v627_v46  ;;  %v657_v36 = vadd.f32 %v649_v47, %v628_v51  ;;  %v670_v26 = vmul.f32 %v1502_v27, %v1681_v62  ;;  %v1098_v16 = vld [vmem:[%s1227_s21 + $0x261] sm:$0xff] }
  0x60   : > { %v671_v54 = vmul.f32 %v2064_v58, %v1681_v62  ;;  %v672_v17 = vmul.f32 %v2065_v4, %v1681_v62  ;;  %v673_v37 = vmul.f32 %v2066_v61, %v1681_v62  ;;  %v674_v42 = vmul.f32 %v2067_v43, %v1681_v62  ;;  %v2070_v33 = vld [vmem:[#allocation46_spill] sm:$0xff]  ;;  %v2071_v59 = vld [vmem:[#allocation47_spill] sm:$0xff]  ;;  %v2072_v58 = vld [vmem:[#allocation48_spill] sm:$0xff] }
  0x61   : > { %v675_v39 = vmul.f32 %v2068_v34, %v1681_v62  ;;  %v676_v40 = vmul.f32 %v2069_v60, %v1681_v62  ;;  %v677_v27 = vmul.f32 %v1090_v7, %v1681_v62  ;;  %v678_v46 = vadd.f32 %v670_v26, %v650_v1  ;;  %v2073_v62 = vld [vmem:[#allocation49_spill] sm:$0xff]  ;;  %v1106_v61 = vld [vmem:[%s1227_s21 + $0x1c2] sm:$0xff] }
  0x62   : > { %v679_v51 = vadd.f32 %v671_v54, %v651_v49  ;;  %v680_v38 = vadd.f32 %v672_v17, %v652_v13  ;;  %v681_v14 = vadd.f32 %v673_v37, %v653_v48  ;;  %v682_v41 = vadd.f32 %v674_v42, %v654_v15  ;;  %v2074_v49 = vld [vmem:[#allocation50_spill] sm:$0xff]  ;;  %v2075_v48 = vld [vmem:[#allocation51_spill] sm:$0xff]  ;;  %v2076_v15 = vld [vmem:[#allocation52_spill] sm:$0xff] }
  0x63   : > { %v683_v45 = vadd.f32 %v675_v39, %v655_v22  ;;  %v684_v28 = vadd.f32 %v676_v40, %v656_v21  ;;  %v685_v12 = vadd.f32 %v677_v27, %v657_v36  ;;  %v698_v44 = vmul.f32 %v2070_v33, %v1685_v63 }
  0x64   : > { %v699_v47 = vmul.f32 %v2071_v59, %v1685_v63  ;;  %v700_v4 = vmul.f32 %v2072_v58, %v1685_v63  ;;  %v701_v1 = vmul.f32 %v2073_v62, %v1685_v63  ;;  %v702_v13 = vmul.f32 %v2074_v49, %v1685_v63  ;;  %v1122_v49 = vld [vmem:[%s1227_s21 + $0x130] sm:$0xff] }
  0x65   : > { %v703_v7 = vmul.f32 %v2075_v48, %v1685_v63  ;;  %v704_v22 = vmul.f32 %v2076_v15, %v1685_v63  ;;  %v705_v21 = vmul.f32 %v1098_v16, %v1685_v63  ;;  %v706_v36 = vadd.f32 %v698_v44, %v678_v46 }
  0x66   : > { %v707_v26 = vadd.f32 %v699_v47, %v679_v51  ;;  %v708_v54 = vadd.f32 %v700_v4, %v680_v38  ;;  %v709_v17 = vadd.f32 %v701_v1, %v681_v14  ;;  %v710_v37 = vadd.f32 %v702_v13, %v682_v41  ;;  %v2077_v47 = vld [vmem:[#allocation53_spill] sm:$0xff] }
  0x67   : > { %v711_v43 = vadd.f32 %v703_v7, %v683_v45  ;;  %v712_v42 = vadd.f32 %v704_v22, %v684_v28  ;;  %v713_v34 = vadd.f32 %v705_v21, %v685_v12  ;;  %v726_v39 = vmul.f32 %v1576_v53, %v1689_v29  ;;  %v1114_v28 = vld [vmem:[%s1227_s21 + $0x90] sm:$0xff] }
  0x68   : > { %v727_v60 = vmul.f32 %v1587_v55, %v1689_v29  ;;  %v728_v40 = vmul.f32 %v1590_v56, %v1689_v29  ;;  %v729_v63 = vmul.f32 %v1593_v57, %v1689_v29  ;;  %v730_v27 = vmul.f32 %v1596_v20, %v1689_v29  ;;  %v1804_v55 = vld [vmem:[%s1903_s1 + $0x18] ss:$0 sm:$0xff] }
  0x69   : > { %v731_v46 = vmul.f32 %v1599_v2, %v1689_v29  ;;  %v732_v51 = vmul.f32 %v1602_v19, %v1689_v29  ;;  %v733_v53 = vmul.f32 %v1106_v61, %v1689_v29  ;;  %v734_v56 = vadd.f32 %v726_v39, %v706_v36  ;;  %v2082_v36 = vld [vmem:[#allocation7_spill] sm:$0xff]  ;;  %v2084_v61 = vld [vmem:[#allocation54_spill] sm:$0xff] }
  0x6a   : > { %v735_v38 = vadd.f32 %v727_v60, %v707_v26  ;;  %v736_v14 = vadd.f32 %v728_v40, %v708_v54  ;;  %v737_v57 = vadd.f32 %v729_v63, %v709_v17  ;;  %v738_v16 = vadd.f32 %v730_v27, %v710_v37  ;;  %v2083_v54 = vld [vmem:[#allocation8_spill] sm:$0xff] }
  0x6b   : > { %v739_v41 = vadd.f32 %v731_v46, %v711_v43  ;;  %v740_v20 = vadd.f32 %v732_v51, %v712_v42  ;;  %v741_v45 = vadd.f32 %v733_v53, %v713_v34  ;;  %v754_v2 = vrot.slane %v1660_v6, %v1216_v8  ;;  %v1130_v40 = vld [vmem:[%s1227_s21 + $0x91] sm:$0xff]  ;;  %v2085_v53 = vld [vmem:[#allocation10_spill] sm:$0xff] }
  0x6c   : > { %v783_v19 = vrot.slane %v1660_v6, %v1218_v9  ;;  %v811_v29 = vrot.slane %v1660_v6, %v1220_v10  ;;  %v1815_v12 = vrot.slane %v1660_v6, %v1222_v11  ;;  %v1819_v33 = vmul.f32 %v1804_v55, %v2046_v5 }
  0x6d   : > { %v1823_v44 = vmul.f32 %v1804_v55, %v2047_v52  ;;  %v1827_v8 = vmul.f32 %v1804_v55, %v2048_v0  ;;  %v1831_v9 = vmul.f32 %v1804_v55, %v2049_v50  ;;  %v755_v10 = vmul.f32 %v754_v2, %v1242_v18 }
  0x6e   : > { %v756_v11 = vmul.f32 %v754_v2, %v1257_v23  ;;  %v757_v6 = vmul.f32 %v754_v2, %v1260_v24  ;;  %v758_v5 = vmul.f32 %v754_v2, %v1263_v25  ;;  %v759_v59 = vmul.f32 %v754_v2, %v1272_v30  ;;  %v2078_v24 = vld [vmem:[#allocation3_spill] sm:$0xff]  ;;  %v2079_v25 = vld [vmem:[#allocation4_spill] sm:$0xff]  ;;  %v2080_v30 = vld [vmem:[#allocation5_spill] sm:$0xff] }
  0x6f   : > { %v760_v52 = vmul.f32 %v754_v2, %v1275_v31  ;;  %v761_v58 = vmul.f32 %v2077_v47, %v754_v2  ;;  %v762_v0 = vmul.f32 %v1114_v28, %v754_v2  ;;  %v763_v4 = vadd.f32 %v755_v10, %v734_v56  ;;  %v2081_v31 = vld [vmem:[#allocation6_spill] sm:$0xff]  ;;  %v2090_v2 = vld [vmem:[#allocation15_spill] sm:$0xff]  ;;  %v1138_v47 = vld [vmem:[%s1227_s21 + $0x131] sm:$0xff] }
  0x70   : > { %v764_v62 = vadd.f32 %v756_v11, %v735_v38  ;;  %v765_v1 = vadd.f32 %v757_v6, %v736_v14  ;;  %v766_v50 = vadd.f32 %v758_v5, %v737_v57  ;;  %v767_v13 = vadd.f32 %v759_v59, %v738_v16  ;;  %v2086_v38 = vld [vmem:[#allocation11_spill] sm:$0xff]  ;;  %v2087_v57 = vld [vmem:[#allocation12_spill] sm:$0xff] }
  0x71   : > { %v768_v18 = vadd.f32 %v760_v52, %v739_v41  ;;  %v769_v23 = vadd.f32 %v761_v58, %v740_v20  ;;  %v770_v48 = vadd.f32 %v762_v0, %v741_v45  ;;  %v784_v7 = vmul.f32 %v2078_v24, %v783_v19  ;;  %v2088_v41 = vld [vmem:[#allocation13_spill] sm:$0xff]  ;;  %v2089_v45 = vld [vmem:[#allocation14_spill] sm:$0xff] }
  0x72   : > { %v785_v15 = vmul.f32 %v2079_v25, %v783_v19  ;;  %v786_v22 = vmul.f32 %v2080_v30, %v783_v19  ;;  %v787_v21 = vmul.f32 %v2081_v31, %v783_v19  ;;  %v788_v26 = vmul.f32 %v2082_v36, %v783_v19  ;;  %v2095_v24 = vld [vmem:[#allocation21_spill] sm:$0xff]  ;;  %v2096_v25 = vld [vmem:[#allocation2_spill] sm:$0xff] }
  0x73   : > { %v789_v17 = vmul.f32 %v2083_v54, %v783_v19  ;;  %v790_v37 = vmul.f32 %v2084_v61, %v783_v19  ;;  %v791_v43 = vmul.f32 %v1122_v49, %v783_v19  ;;  %v792_v42 = vadd.f32 %v784_v7, %v763_v4  ;;  %v1146_v30 = vld [vmem:[%s1227_s21 + $0x92] sm:$0xff] }
  0x74   : > { %v793_v34 = vadd.f32 %v785_v15, %v764_v62  ;;  %v794_v39 = vadd.f32 %v786_v22, %v765_v1  ;;  %v795_v60 = vadd.f32 %v787_v21, %v766_v50  ;;  %v796_v63 = vadd.f32 %v788_v26, %v767_v13  ;;  %v2091_v50 = vld [vmem:[#allocation17_spill] sm:$0xff]  ;;  %v2093_v13 = vld [vmem:[#allocation19_spill] sm:$0xff] }
  0x75   : > { %v797_v27 = vadd.f32 %v789_v17, %v768_v18  ;;  %v798_v46 = vadd.f32 %v790_v37, %v769_v23  ;;  %v799_v51 = vadd.f32 %v791_v43, %v770_v48  ;;  %v812_v56 = vmul.f32 %v811_v29, %v2085_v53  ;;  %v2094_v23 = vld [vmem:[#allocation20_spill] sm:$0xff]  ;;  %v2097_v37 = vld [vmem:[#allocation26_spill] sm:$0xff] }
  0x76   : > { %v813_v14 = vmul.f32 %v811_v29, %v2086_v38  ;;  %v814_v16 = vmul.f32 %v811_v29, %v2087_v57  ;;  %v815_v20 = vmul.f32 %v811_v29, %v2088_v41  ;;  %v816_v28 = vmul.f32 %v811_v29, %v2089_v45 }
  0x77   : > { %v817_v19 = vmul.f32 %v811_v29, %v2090_v2  ;;  %v818_v10 = vmul.f32 %v1663_v32, %v811_v29  ;;  %v819_v11 = vmul.f32 %v1130_v40, %v811_v29  ;;  %v820_v6 = vadd.f32 %v812_v56, %v792_v42  ;;  %v2092_v32 = vld [vmem:[#allocation18_spill] sm:$0xff]  ;;  %v2098_v42 = vld [vmem:[#allocation27_spill] sm:$0xff] }
  0x78   : > { %v821_v5 = vadd.f32 %v813_v14, %v793_v34  ;;  %v822_v59 = vadd.f32 %v814_v16, %v794_v39  ;;  %v823_v52 = vadd.f32 %v815_v20, %v795_v60  ;;  %v824_v58 = vadd.f32 %v816_v28, %v796_v63  ;;  %v1148_v60 = vld [vmem:[%s1904_s2] ss:$0 sm:$0xff] }
  0x79   : > { %v825_v0 = vadd.f32 %v817_v19, %v797_v27  ;;  %v826_v4 = vadd.f32 %v818_v10, %v798_v46  ;;  %v827_v62 = vadd.f32 %v819_v11, %v799_v51  ;;  %v840_v1 = vmul.f32 %v2040_v35, %v1815_v12 }
  0x7a   : > { %v841_v49 = vmul.f32 %v2091_v50, %v1815_v12  ;;  %v842_v29 = vmul.f32 %v2092_v32, %v1815_v12  ;;  %v843_v18 = vmul.f32 %v2093_v13, %v1815_v12  ;;  %v844_v48 = vmul.f32 %v2094_v23, %v1815_v12 }
  0x7b   : > { %v845_v7 = vmul.f32 %v2095_v24, %v1815_v12  ;;  %v846_v15 = vmul.f32 %v2096_v25, %v1815_v12  ;;  %v847_v35 = vmul.f32 %v1138_v47, %v1815_v12  ;;  %v848_v22 = vadd.f32 %v840_v1, %v820_v6 }
  0x7c   : > { %v849_v31 = vadd.f32 %v841_v49, %v821_v5  ;;  %v850_v21 = vadd.f32 %v842_v29, %v822_v59  ;;  %v851_v36 = vadd.f32 %v843_v18, %v823_v52  ;;  %v852_v26 = vadd.f32 %v844_v48, %v824_v58 }
  0x7d   : > { %v853_v54 = vadd.f32 %v845_v7, %v825_v0  ;;  %v854_v17 = vadd.f32 %v846_v15, %v826_v4  ;;  %v855_v61 = vadd.f32 %v847_v35, %v827_v62  ;;  %v872_v43 = vmul.f32 %v1804_v55, %v2097_v37 }
  0x7e   : > { %v873_v34 = vmul.f32 %v1804_v55, %v2098_v42  ;;  %v874_v39 = vmul.f32 %v1804_v55, %v1711_v3  ;;  %v875_v12 = vmul.f32 %v1804_v55, %v1146_v30  ;;  %v876_v40 = vadd.f32 %v1819_v33, %v848_v22 }
  0x7f   : > { %v877_v63 = vadd.f32 %v1823_v44, %v849_v31  ;;  %v878_v27 = vadd.f32 %v1827_v8, %v850_v21  ;;  %v879_v46 = vadd.f32 %v1831_v9, %v851_v36  ;;  %v880_v51 = vadd.f32 %v872_v43, %v852_v26 }
  0x80   : > { %v881_v3 = vadd.f32 %v873_v34, %v853_v54  ;;  %v882_v53 = vadd.f32 %v874_v39, %v854_v17  ;;  %v883_v55 = vadd.f32 %v875_v12, %v855_v61  ;;  %v891_v56 = vadd.f32 %v1148_v60, %v876_v40 }
  0x81   : > { %v892_v38 = vadd.f32 %v1148_v60, %v877_v63  ;;  %v893_v14 = vadd.f32 %v1148_v60, %v878_v27  ;;  %v894_v57 = vadd.f32 %v1148_v60, %v879_v46  ;;  %v895_v16 = vadd.f32 %v1148_v60, %v880_v51 }
  0x82   : > { %v896_v33 = vadd.f32 %v1148_v60, %v881_v3  ;;  %v897_v41 = vadd.f32 %v1148_v60, %v882_v53  ;;  %v898_v44 = vadd.f32 %v1148_v60, %v883_v55  ;;  %900 = vst.msk [vmem:[%s170_s4] sm:$0xff] %vm899_vm0, %v891_v56 }
  0x83   : > { %901 = vst.msk [vmem:[%s170_s4 + $0x8] sm:$0xff] %vm899_vm0, %v892_v38  ;;  %902 = vst.msk [vmem:[%s170_s4 + $0x10] sm:$0xff] %vm899_vm0, %v893_v14 }
  0x84   : > { %903 = vst.msk [vmem:[%s170_s4 + $0x18] sm:$0xff] %vm899_vm0, %v894_v57  ;;  %904 = vst.msk [vmem:[%s170_s4 + $0x20] sm:$0xff] %vm899_vm0, %v895_v16 }
  0x85   : > { %905 = vst.msk [vmem:[%s170_s4 + $0x28] sm:$0xff] %vm899_vm0, %v896_v33  ;;  %906 = vst.msk [vmem:[%s170_s4 + $0x30] sm:$0xff] %vm899_vm0, %v897_v41 }
  0x86   : > { %907 = vst.msk [vmem:[%s170_s4 + $0x38] sm:$0xff] %vm899_vm0, %v898_v44 }
  0x87 PF: > { %s13_s12 = sadd.s32 1, %s1167_s12  }
  0x88   : > { %p10_p4 = scmp.ge.s32.totalorder %s13_s12, 4  }
  0x8a   :  { %12 = sbr.rel (!%p10_p4) target bundleno = 1 (0x1), region = 71 }

// kernel: fasa_forward.6
= control target key start
LH: loop header
LB: loop body
LE: loop exit
PB: predicated region body
PF: predicated region fallthrough
CT: control target
= control target key end

     0   :  { %s522_s1 = inlined_call_operand.vmem [shape: f32[128,128], index: 1, kind: input, shape index: {}]   ;;  %s523_s0 = inlined_call_operand.vmem [shape: f32[128,128], index: 0, kind: input, shape index: {}]   ;;  %s524_s2 = inlined_call_operand.vmem [shape: f32[1,128], index: 2, kind: input, shape index: {}]   ;;  %s525_s3 = inlined_call_operand.vmem [shape: f32[128,128], index: 3, kind: output, shape index: {}]  }
   0x1   :  { %v30_v0 = vld [vmem:[%s522_s1] sm:$0xff]  ;;  %v31_v1 = vld [vmem:[%s522_s1 + $0x8] sm:$0xff]  ;;  %v32_v2 = vld [vmem:[%s522_s1 + $0x10] sm:$0xff] }
   0x2   :  { %v307_v3 = vpack.c.bf16 %v31_v1, %v30_v0  ;;  %v33_v4 = vld [vmem:[%s522_s1 + $0x18] sm:$0xff]  ;;  %v34_v6 = vld [vmem:[%s522_s1 + $0x20] sm:$0xff]  ;;  %v35_v7 = vld [vmem:[%s522_s1 + $0x28] sm:$0xff] }
   0x3   :  { %v311_v5 = vpack.c.bf16 %v33_v4, %v32_v2  ;;  %v315_v8 = vpack.c.bf16 %v35_v7, %v34_v6  ;;  %v14_v9 = vld [vmem:[%s523_s0] sm:$0xff]  ;;  %v36_v11 = vld [vmem:[%s522_s1 + $0x30] sm:$0xff]  ;;  %v37_v12 = vld [vmem:[%s522_s1 + $0x38] sm:$0xff] }
   0x4   :  { %308 = vmatprep.subr.bf16.mxu0 %v307_v3  ;;  %339 = vmatprep.subr.bf16.mxu1 %v307_v3  ;;  %v22_v10 = vld [vmem:[%s523_s0 + $0x40] sm:$0xff]  ;;  %v319_v13 = vpack.c.bf16 %v37_v12, %v36_v11  ;;  %v39_v15 = vld [vmem:[%s522_s1 + $0x48] sm:$0xff]  ;;  %v40_v17 = vld [vmem:[%s522_s1 + $0x50] sm:$0xff] }
   0x5   :  { %310 = vmatpush3.bf16.msra.mxu0 %v307_v3  ;;  %347 = vmatpush3.bf16.msra.mxu1 %v307_v3  ;;  %v38_v14 = vld [vmem:[%s522_s1 + $0x40] sm:$0xff]  ;;  %v41_v18 = vld [vmem:[%s522_s1 + $0x58] sm:$0xff]  ;;  %v43_v21 = vld [vmem:[%s522_s1 + $0x68] sm:$0xff] }
   0x6   :  { %312 = vmatprep.subr.bf16.mxu0 %v311_v5  ;;  %340 = vmatprep.subr.bf16.mxu1 %v311_v5  ;;  %v323_v16 = vpack.c.bf16 %v39_v15, %v38_v14  ;;  %v327_v19 = vpack.c.bf16 %v41_v18, %v40_v17  ;;  %v42_v20 = vld [vmem:[%s522_s1 + $0x60] sm:$0xff]  ;;  %v44_v23 = vld [vmem:[%s522_s1 + $0x70] sm:$0xff]  ;;  %v45_v24 = vld [vmem:[%s522_s1 + $0x78] sm:$0xff] }
   0x7   :  { %283 = vmatprep.mubr.f32.mxu0 %v14_v9  ;;  %295 = vmatprep.mubr.f32.mxu1 %v22_v10  ;;  %v331_v22 = vpack.c.bf16 %v43_v21, %v42_v20  ;;  %v335_v25 = vpack.c.bf16 %v45_v24, %v44_v23  ;;  %v15_v26 = vld [vmem:[%s523_s0 + $0x8] sm:$0xff]  ;;  %v16_v28 = vld [vmem:[%s523_s0 + $0x10] sm:$0xff]  ;;  %v17_v30 = vld [vmem:[%s523_s0 + $0x18] sm:$0xff] }
   0x8   :  { %v23_v27 = vld [vmem:[%s523_s0 + $0x48] sm:$0xff]  ;;  %v24_v29 = vld [vmem:[%s523_s0 + $0x50] sm:$0xff]  ;;  %v25_v31 = vld [vmem:[%s523_s0 + $0x58] sm:$0xff] }
   0x9   :  { %314 = vmatpush3.bf16.msra.mxu0 %v311_v5  ;;  %348 = vmatpush3.bf16.msra.mxu1 %v311_v5  ;;  %v18_v32 = vld [vmem:[%s523_s0 + $0x20] sm:$0xff]  ;;  %v19_v34 = vld [vmem:[%s523_s0 + $0x28] sm:$0xff]  ;;  %v20_v36 = vld [vmem:[%s523_s0 + $0x30] sm:$0xff] }
   0xa   :  { %316 = vmatprep.subr.bf16.mxu0 %v315_v8  ;;  %341 = vmatprep.subr.bf16.mxu1 %v315_v8  ;;  %v26_v33 = vld [vmem:[%s523_s0 + $0x60] sm:$0xff]  ;;  %v27_v35 = vld [vmem:[%s523_s0 + $0x68] sm:$0xff]  ;;  %v28_v37 = vld [vmem:[%s523_s0 + $0x70] sm:$0xff] }
   0xb   :  { %v21_v38 = vld [vmem:[%s523_s0 + $0x38] sm:$0xff]  ;;  %v218_v40 = vld [vmem:[%s524_s2] ss:$0 sm:$0xff] }
   0xc   :  { %v29_v39 = vld [vmem:[%s523_s0 + $0x78] sm:$0xff] }
   0xd   :  { %318 = vmatpush3.bf16.msra.mxu0 %v315_v8  ;;  %349 = vmatpush3.bf16.msra.mxu1 %v315_v8 }
   0xe   :  { %320 = vmatprep.subr.bf16.mxu0 %v319_v13  ;;  %342 = vmatprep.subr.bf16.mxu1 %v319_v13 }
  0x11   :  { %322 = vmatpush3.bf16.msra.mxu0 %v319_v13  ;;  %350 = vmatpush3.bf16.msra.mxu1 %v319_v13 }
  0x12   :  { %324 = vmatprep.subr.bf16.mxu0 %v323_v16  ;;  %343 = vmatprep.subr.bf16.mxu1 %v323_v16 }
  0x15   :  { %326 = vmatpush3.bf16.msra.mxu0 %v323_v16  ;;  %351 = vmatpush3.bf16.msra.mxu1 %v323_v16 }
  0x16   :  { %328 = vmatprep.subr.bf16.mxu0 %v327_v19  ;;  %344 = vmatprep.subr.bf16.mxu1 %v327_v19 }
  0x19   :  { %330 = vmatpush3.bf16.msra.mxu0 %v327_v19  ;;  %352 = vmatpush3.bf16.msra.mxu1 %v327_v19 }
  0x1a   :  { %332 = vmatprep.subr.bf16.mxu0 %v331_v22  ;;  %345 = vmatprep.subr.bf16.mxu1 %v331_v22 }
  0x1d   :  { %334 = vmatpush3.bf16.msra.mxu0 %v331_v22  ;;  %353 = vmatpush3.bf16.msra.mxu1 %v331_v22 }
  0x1e   :  { %336 = vmatprep.subr.bf16.mxu0 %v335_v25  ;;  %346 = vmatprep.subr.bf16.mxu1 %v335_v25 }
  0x21   :  { %338 = vmatpush3.bf16.msra.mxu0 %v335_v25  ;;  %354 = vmatpush3.bf16.msra.mxu1 %v335_v25 }
  0x24   :  { %284 = vmatmul.mubr.f32.vlgmr.msra.gmra.mrb[0].mxu0 %v15_v26  ;;  %296 = vmatmul.mubr.f32.vlgmr.msra.gmra.mrb[0].mxu1 %v23_v27 }
  0x25   :  { %286 = vmatprep.mubr.f32.mxu0 %v16_v28  ;;  %298 = vmatprep.mubr.f32.mxu1 %v24_v29 }
  0x28   :  { %287 = vmatmul.mubr.f32.gmra.mrb[2].mxu0 %v17_v30  ;;  %299 = vmatmul.mubr.f32.gmra.mrb[2].mxu1 %v25_v31 }
  0x29   :  { %289 = vmatprep.mubr.f32.mxu0 %v18_v32  ;;  %301 = vmatprep.mubr.f32.mxu1 %v26_v33 }
  0x2c   :  { %290 = vmatmul.mubr.f32.gmra.mrb[4].mxu0 %v19_v34  ;;  %302 = vmatmul.mubr.f32.gmra.mrb[4].mxu1 %v27_v35 }
  0x2d   :  { %292 = vmatprep.mubr.f32.mxu0 %v20_v36  ;;  %304 = vmatprep.mubr.f32.mxu1 %v28_v37 }
  0x30   :  { %293 = vmatmul.mubr.f32.gmra.mrb[6].mxu0 %v21_v38  ;;  %305 = vmatmul.mubr.f32.gmra.mrb[6].mxu1 %v29_v39 }
  0xf7   :  { %v285_v41 = vpop.f32.mrb[0].mxu0  ;;  %v297_v42 = vpop.f32.mrb[0].mxu1 }
  0xf8   :  { %v125_v43 = vadd.f32 %v285_v41, %v218_v40  ;;  %v165_v44 = vadd.f32 %v297_v42, %v218_v40  ;;  %v119_v45 = vpop.f32.mrb[1].mxu0  ;;  %v159_v46 = vpop.f32.mrb[1].mxu1 }
  0xf9   :  { %v120_v47 = vadd.f32 %v218_v40, %v119_v45  ;;  %v160_v48 = vadd.f32 %v218_v40, %v159_v46 }
  0xfa   :  { %199 = vst [vmem:[%s525_s3 + $0x8] sm:$0xff] %v125_v43  ;;  %207 = vst [vmem:[%s525_s3 + $0x48] sm:$0xff] %v165_v44 }
  0xfb   :  { %198 = vst [vmem:[%s525_s3] sm:$0xff] %v120_v47  ;;  %206 = vst [vmem:[%s525_s3 + $0x40] sm:$0xff] %v160_v48  ;;  %v288_v49 = vpop.f32.mrb[2].mxu0  ;;  %v300_v50 = vpop.f32.mrb[2].mxu1 }
  0xfc   :  { %v135_v51 = vadd.f32 %v288_v49, %v218_v40  ;;  %v175_v52 = vadd.f32 %v300_v50, %v218_v40  ;;  %v129_v53 = vpop.f32.mrb[3].mxu0  ;;  %v169_v54 = vpop.f32.mrb[3].mxu1 }
  0xfd   :  { %v130_v55 = vadd.f32 %v218_v40, %v129_v53  ;;  %v170_v56 = vadd.f32 %v218_v40, %v169_v54 }
  0xfe   :  { %201 = vst [vmem:[%s525_s3 + $0x18] sm:$0xff] %v135_v51  ;;  %209 = vst [vmem:[%s525_s3 + $0x58] sm:$0xff] %v175_v52 }
  0xff   :  { %200 = vst [vmem:[%s525_s3 + $0x10] sm:$0xff] %v130_v55  ;;  %208 = vst [vmem:[%s525_s3 + $0x50] sm:$0xff] %v170_v56  ;;  %v291_v57 = vpop.f32.mrb[4].mxu0  ;;  %v303_v58 = vpop.f32.mrb[4].mxu1 }
 0x100   :  { %v145_v59 = vadd.f32 %v291_v57, %v218_v40  ;;  %v185_v60 = vadd.f32 %v303_v58, %v218_v40  ;;  %v139_v61 = vpop.f32.mrb[5].mxu0  ;;  %v179_v62 = vpop.f32.mrb[5].mxu1 }
 0x101   :  { %v140_v63 = vadd.f32 %v218_v40, %v139_v61  ;;  %v180_v0 = vadd.f32 %v218_v40, %v179_v62 }
 0x102   :  { %203 = vst [vmem:[%s525_s3 + $0x28] sm:$0xff] %v145_v59  ;;  %211 = vst [vmem:[%s525_s3 + $0x68] sm:$0xff] %v185_v60 }
 0x103   :  { %202 = vst [vmem:[%s525_s3 + $0x20] sm:$0xff] %v140_v63  ;;  %210 = vst [vmem:[%s525_s3 + $0x60] sm:$0xff] %v180_v0  ;;  %v294_v1 = vpop.f32.mrb[6].mxu0  ;;  %v306_v2 = vpop.f32.mrb[6].mxu1 }
 0x104   :  { %v155_v3 = vadd.f32 %v294_v1, %v218_v40  ;;  %v195_v4 = vadd.f32 %v306_v2, %v218_v40  ;;  %v149_v5 = vpop.f32.mrb[7].mxu0  ;;  %v189_v6 = vpop.f32.mrb[7].mxu1 }
 0x105   :  { %v150_v7 = vadd.f32 %v218_v40, %v149_v5  ;;  %v190_v8 = vadd.f32 %v218_v40, %v189_v6 }
 0x106   :  { %205 = vst [vmem:[%s525_s3 + $0x38] sm:$0xff] %v155_v3  ;;  %213 = vst [vmem:[%s525_s3 + $0x78] sm:$0xff] %v195_v4 }
 0x107   :  { %204 = vst [vmem:[%s525_s3 + $0x30] sm:$0xff] %v150_v7  ;;  %212 = vst [vmem:[%s525_s3 + $0x70] sm:$0xff] %v190_v8 }

// kernel: fasa_forward.11
= control target key start
LH: loop header
LB: loop body
LE: loop exit
PB: predicated region body
PF: predicated region fallthrough
CT: control target
= control target key end

     0   :  { %s1122_s2 = inlined_call_operand.vmem [shape: f32[128,128], index: 2, kind: input, shape index: {}]   ;;  %s1123_s0 = inlined_call_operand.vmem [shape: f32[128,128], index: 0, kind: input, shape index: {}]   ;;  %s1124_s1 = inlined_call_operand.vmem [shape: f32[128,128], index: 1, kind: input, shape index: {}]   ;;  %s1125_s3 = inlined_call_operand.vmem [shape: f32[1,128], index: 3, kind: input, shape index: {}]   ;;  %s1126_s4 = inlined_call_operand.vmem [shape: f32[128,128], index: 4, kind: output, shape index: {}]  }
   0x1   :  { %v289_v0 = vld [vmem:[%s1122_s2] sm:$0xff]  ;;  %v290_v1 = vld [vmem:[%s1122_s2 + $0x8] sm:$0xff]  ;;  %v291_v2 = vld [vmem:[%s1122_s2 + $0x10] sm:$0xff] }
   0x2   :  { %v598_v3 = vpack.c.bf16 %v290_v1, %v289_v0  ;;  %v292_v4 = vld [vmem:[%s1122_s2 + $0x18] sm:$0xff]  ;;  %v293_v6 = vld [vmem:[%s1122_s2 + $0x20] sm:$0xff]  ;;  %v294_v7 = vld [vmem:[%s1122_s2 + $0x28] sm:$0xff] }
   0x3   :  { %v602_v5 = vpack.c.bf16 %v292_v4, %v291_v2  ;;  %v295_v8 = vld [vmem:[%s1122_s2 + $0x30] sm:$0xff]  ;;  %v606_v9 = vpack.c.bf16 %v294_v7, %v293_v6  ;;  %v296_v10 = vld [vmem:[%s1122_s2 + $0x38] sm:$0xff]  ;;  %v826_v11 = vld [vmem:[%s1123_s0] sm:$0xff] }
   0x4   :  { %599 = vmatprep.subr.bf16.mxu0 %v598_v3  ;;  %630 = vmatprep.subr.bf16.mxu1 %v598_v3  ;;  %v831_v12 = vld [vmem:[%s1124_s1] sm:$0xff]  ;;  %v477_v13 = vmul.f32 -1.442695, %v826_v11  ;;  %v850_v19 = vld [vmem:[%s1123_s0 + $0x8] sm:$0xff]  ;;  %v610_v24 = vpack.c.bf16 %v296_v10, %v295_v8  ;;  %v872_v26 = vld [vmem:[%s1123_s0 + $0x10] sm:$0xff] }
   0x5   :  { %601 = vmatpush3.bf16.msra.mxu0 %v598_v3  ;;  %638 = vmatpush3.bf16.msra.mxu1 %v598_v3  ;;  %v493_v14 = vmul.f32 -1.442695, %v831_v12  ;;  %v838_v15 = vld [vmem:[%s1123_s0 + $0x40] sm:$0xff]  ;;  %v855_v20 = vld [vmem:[%s1124_s1 + $0x8] sm:$0xff]  ;;  %v478_v21 = vmul.f32 -1.442695, %v850_v19 }
   0x6   :  { %603 = vmatprep.subr.bf16.mxu0 %v602_v5  ;;  %631 = vmatprep.subr.bf16.mxu1 %v602_v5  ;;  %v843_v16 = vld [vmem:[%s1124_s1 + $0x40] sm:$0xff]  ;;  %v485_v17 = vmul.f32 -1.442695, %v838_v15  ;;  %646 = vpow2.f32 %v477_v13  ;;  %v861_v22 = vld [vmem:[%s1123_s0 + $0x48] sm:$0xff]  ;;  %v494_v25 = vmul.f32 -1.442695, %v855_v20 }
   0x7   :  { %v501_v18 = vmul.f32 -1.442695, %v843_v16  ;;  %v866_v23 = vld [vmem:[%s1124_s1 + $0x48] sm:$0xff]  ;;  %648 = vpow2.f32 %v493_v14  ;;  %v297_v27 = vld [vmem:[%s1122_s2 + $0x40] sm:$0xff]  ;;  %v486_v29 = vmul.f32 -1.442695, %v861_v22 }
   0x8   :  { %v298_v28 = vld [vmem:[%s1122_s2 + $0x48] sm:$0xff]  ;;  %650 = vpow2.f32 %v485_v17  ;;  %v884_v30 = vld [vmem:[%s1124_s1 + $0x10] sm:$0xff]  ;;  %v502_v31 = vmul.f32 -1.442695, %v866_v23  ;;  %v479_v33 = vmul.f32 -1.442695, %v872_v26 }
   0x9   :  { %605 = vmatpush3.bf16.msra.mxu0 %v602_v5  ;;  %639 = vmatpush3.bf16.msra.mxu1 %v602_v5  ;;  %652 = vpow2.f32 %v501_v18  ;;  %v890_v32 = vld [vmem:[%s1123_s0 + $0x50] sm:$0xff]  ;;  %v614_v35 = vpack.c.bf16 %v298_v28, %v297_v27  ;;  %v495_v36 = vmul.f32 -1.442695, %v884_v30  ;;  %v902_v37 = vld [vmem:[%s1123_s0 + $0x18] sm:$0xff]  ;;  %v301_v45 = vld [vmem:[%s1122_s2 + $0x60] sm:$0xff] }
   0xa   :  { %607 = vmatprep.subr.bf16.mxu0 %v606_v9  ;;  %632 = vmatprep.subr.bf16.mxu1 %v606_v9  ;;  %654 = vpow2.f32 %v478_v21  ;;  %v896_v34 = vld [vmem:[%s1124_s1 + $0x50] sm:$0xff]  ;;  %v300_v39 = vld [vmem:[%s1122_s2 + $0x58] sm:$0xff]  ;;  %v487_v40 = vmul.f32 -1.442695, %v890_v32  ;;  %v480_v42 = vmul.f32 -1.442695, %v902_v37 }
   0xb   :  { %656 = vpow2.f32 %v494_v25  ;;  %v299_v38 = vld [vmem:[%s1122_s2 + $0x50] sm:$0xff]  ;;  %v503_v41 = vmul.f32 -1.442695, %v896_v34  ;;  %v302_v46 = vld [vmem:[%s1122_s2 + $0x68] sm:$0xff]  ;;  %v304_v56 = vld [vmem:[%s1122_s2 + $0x78] sm:$0xff] }
   0xc   :  { %658 = vpow2.f32 %v486_v29  ;;  %v618_v43 = vpack.c.bf16 %v300_v39, %v299_v38  ;;  %v622_v52 = vpack.c.bf16 %v302_v46, %v301_v45  ;;  %v303_v55 = vld [vmem:[%s1122_s2 + $0x70] sm:$0xff]  ;;  %v928_v5 = vld [vmem:[%s1124_s1 + $0x18] sm:$0xff]  ;;  %v944_v21 = vld [vmem:[%s1123_s0 + $0x20] sm:$0xff] }
   0xd   :  { %609 = vmatpush3.bf16.msra.mxu0 %v606_v9  ;;  %640 = vmatpush3.bf16.msra.mxu1 %v606_v9  ;;  %660 = vpow2.f32 %v502_v31  ;;  %v626_v63 = vpack.c.bf16 %v304_v56, %v303_v55  ;;  %v933_v8 = vld [vmem:[%s1123_s0 + $0x58] sm:$0xff]  ;;  %v496_v18 = vmul.f32 -1.442695, %v928_v5  ;;  %v950_v28 = vld [vmem:[%s1124_s1 + $0x20] sm:$0xff]  ;;  %v481_v39 = vmul.f32 -1.442695, %v944_v21 }
   0xe   :  { %611 = vmatprep.subr.bf16.mxu0 %v610_v24  ;;  %633 = vmatprep.subr.bf16.mxu1 %v610_v24  ;;  %662 = vpow2.f32 %v479_v33  ;;  %v938_v13 = vld [vmem:[%s1124_s1 + $0x58] sm:$0xff]  ;;  %v488_v27 = vmul.f32 -1.442695, %v933_v8 }
   0xf   :  { %664 = vpow2.f32 %v495_v36  ;;  %v504_v33 = vmul.f32 -1.442695, %v938_v13  ;;  %v962_v36 = vld [vmem:[%s1124_s1 + $0x60] sm:$0xff] }
  0x10   :  { %v647_v44 = vpop.eup %646  ;;  %666 = vpow2.f32 %v487_v40 }
  0x11   :  { %613 = vmatpush3.bf16.msra.mxu0 %v610_v24  ;;  %641 = vmatpush3.bf16.msra.mxu1 %v610_v24  ;;  %v649_v47 = vpop.eup %648  ;;  %v97_v48 = vadd.f32 1.0, %v647_v44  ;;  %668 = vpow2.f32 %v503_v41  ;;  %v975_v44 = vld [vmem:[%s1124_s1 + $0x28] sm:$0xff] }
  0x12   :  { %615 = vmatprep.subr.bf16.mxu0 %v614_v35  ;;  %634 = vmatprep.subr.bf16.mxu1 %v614_v35  ;;  %v651_v49 = vpop.eup %650  ;;  %v209_v50 = vadd.f32 1.0, %v649_v47  ;;  %670 = vpow2.f32 %v480_v42  ;;  %v497_v42 = vmul.f32 -1.442695, %v950_v28  ;;  %v505_v47 = vmul.f32 -1.442695, %v962_v36 }
  0x13   :  { %v653_v51 = vpop.eup %652  ;;  %672 = vrcp.f32 %v97_v48  ;;  %v105_v53 = vadd.f32 1.0, %v651_v49 }
  0x14   :  { %v655_v54 = vpop.eup %654  ;;  %674 = vrcp.f32 %v209_v50  ;;  %v217_v57 = vadd.f32 1.0, %v653_v51  ;;  %v984_v51 = vld [vmem:[%s1123_s0 + $0x68] sm:$0xff] }
  0x15   :  { %617 = vmatpush3.bf16.msra.mxu0 %v614_v35  ;;  %642 = vmatpush3.bf16.msra.mxu1 %v614_v35  ;;  %v657_v58 = vpop.eup %656  ;;  %676 = vrcp.f32 %v105_v53  ;;  %v98_v59 = vadd.f32 1.0, %v655_v54  ;;  %v957_v35 = vld [vmem:[%s1123_s0 + $0x60] sm:$0xff] }
  0x16   :  { %619 = vmatprep.subr.bf16.mxu0 %v618_v43  ;;  %635 = vmatprep.subr.bf16.mxu1 %v618_v43  ;;  %v659_v60 = vpop.eup %658  ;;  %678 = vrcp.f32 %v217_v57  ;;  %v210_v61 = vadd.f32 1.0, %v657_v58  ;;  %v489_v46 = vmul.f32 -1.442695, %v957_v35  ;;  %v998_v58 = vld [vmem:[%s1123_s0 + $0x30] sm:$0xff] }
  0x17   :  { %v661_v62 = vpop.eup %660  ;;  %680 = vrcp.f32 %v98_v59  ;;  %v106_v0 = vadd.f32 1.0, %v659_v60  ;;  %v1003_v59 = vld [vmem:[%s1124_s1 + $0x30] sm:$0xff] }
  0x18   :  { %v663_v1 = vpop.eup %662  ;;  %682 = vrcp.f32 %v210_v61  ;;  %v218_v2 = vadd.f32 1.0, %v661_v62  ;;  %v490_v61 = vmul.f32 -1.442695, %v984_v51 }
  0x19   :  { %621 = vmatpush3.bf16.msra.mxu0 %v618_v43  ;;  %643 = vmatpush3.bf16.msra.mxu1 %v618_v43  ;;  %v665_v3 = vpop.eup %664  ;;  %684 = vrcp.f32 %v106_v0  ;;  %v99_v4 = vadd.f32 1.0, %v663_v1  ;;  %v970_v43 = vld [vmem:[%s1123_s0 + $0x28] sm:$0xff] }
  0x1a   :  { %623 = vmatprep.subr.bf16.mxu0 %v622_v52  ;;  %636 = vmatprep.subr.bf16.mxu1 %v622_v52  ;;  %v667_v6 = vpop.eup %666  ;;  %686 = vrcp.f32 %v218_v2  ;;  %v211_v7 = vadd.f32 1.0, %v665_v3  ;;  %v482_v54 = vmul.f32 -1.442695, %v970_v43  ;;  %v483_v2 = vmul.f32 -1.442695, %v998_v58 }
  0x1b   :  { %v669_v9 = vpop.eup %668  ;;  %688 = vrcp.f32 %v99_v4  ;;  %v107_v10 = vadd.f32 1.0, %v667_v6  ;;  %v499_v3 = vmul.f32 -1.442695, %v1003_v59 }
  0x1c   :  { %v671_v14 = vpop.eup %670  ;;  %690 = vrcp.f32 %v211_v7  ;;  %v219_v17 = vadd.f32 1.0, %v669_v9 }
  0x1d   :  { %625 = vmatpush3.bf16.msra.mxu0 %v622_v52  ;;  %644 = vmatpush3.bf16.msra.mxu1 %v622_v52  ;;  %v673_v24 = vpop.eup %672  ;;  %692 = vrcp.f32 %v107_v10  ;;  %v100_v25 = vadd.f32 1.0, %v671_v14  ;;  %v989_v52 = vld [vmem:[%s1124_s1 + $0x68] sm:$0xff] }
  0x1e   :  { %627 = vmatprep.subr.bf16.mxu0 %v626_v63  ;;  %637 = vmatprep.subr.bf16.mxu1 %v626_v63  ;;  %v675_v29 = vpop.eup %674  ;;  %v145_v31 = vmul.f32 %v673_v24, %v826_v11  ;;  %694 = vrcp.f32 %v219_v17 }
  0x1f   :  { %v677_v38 = vpop.eup %676  ;;  %696 = vrcp.f32 %v100_v25 }
  0x20   :  { %v679_v40 = vpop.eup %678  ;;  %v257_v41 = vmul.f32 %v675_v29, %v145_v31  ;;  %v153_v11 = vmul.f32 %v677_v38, %v838_v15  ;;  %698 = vpow2.f32 %v496_v18 }
  0x21   :  { %629 = vmatpush3.bf16.msra.mxu0 %v626_v63  ;;  %645 = vmatpush3.bf16.msra.mxu1 %v626_v63  ;;  %v681_v45 = vpop.eup %680  ;;  %700 = vpow2.f32 %v488_v27 }
  0x22   :  { %v683_v15 = vpop.eup %682  ;;  %v273_v48 = vmul.f32 %v257_v41, %v831_v12  ;;  %v265_v49 = vmul.f32 %v679_v40, %v153_v11  ;;  %v146_v50 = vmul.f32 %v681_v45, %v850_v19  ;;  %702 = vpow2.f32 %v504_v33 }
  0x23   :  { %v685_v53 = vpop.eup %684  ;;  %704 = vpow2.f32 %v481_v39  ;;  %v498_v12 = vmul.f32 -1.442695, %v975_v44 }
  0x24   :  { %v687_v55 = vpop.eup %686  ;;  %574 = vmatprep.mubr.f32.mxu0 %v273_v48  ;;  %v281_v19 = vmul.f32 %v265_v49, %v843_v16  ;;  %v258_v56 = vmul.f32 %v683_v15, %v146_v50  ;;  %v154_v57 = vmul.f32 %v685_v53, %v861_v22  ;;  %706 = vpow2.f32 %v497_v42  ;;  %v1024_v49 = vld [vmem:[%s1124_s1 + $0x70] sm:$0xff] }
  0x25   :  { %v689_v60 = vpop.eup %688  ;;  %708 = vpow2.f32 %v489_v46  ;;  %v506_v16 = vmul.f32 -1.442695, %v989_v52  ;;  %v1018_v46 = vld [vmem:[%s1123_s0 + $0x70] sm:$0xff] }
  0x26   :  { %v691_v62 = vpop.eup %690  ;;  %586 = vmatprep.mubr.f32.mxu1 %v281_v19  ;;  %v274_v22 = vmul.f32 %v258_v56, %v855_v20  ;;  %v266_v63 = vmul.f32 %v687_v55, %v154_v57  ;;  %v147_v0 = vmul.f32 %v689_v60, %v872_v26  ;;  %710 = vpow2.f32 %v505_v47  ;;  %v1035_v19 = vld [vmem:[%s1124_s1 + $0x38] sm:$0xff] }
  0x27   :  { %v693_v1 = vpop.eup %692  ;;  %712 = vpow2.f32 %v482_v54  ;;  %v1029_v54 = vld [vmem:[%s1123_s0 + $0x38] sm:$0xff]  ;;  %v507_v60 = vmul.f32 -1.442695, %v1024_v49 }
  0x28   :  { %v695_v4 = vpop.eup %694  ;;  %575 = vmatmul.mubr.f32.vlgmr.msra.gmra.mrb[0].mxu0 %v274_v22  ;;  %v282_v6 = vmul.f32 %v266_v63, %v866_v23  ;;  %v259_v7 = vmul.f32 %v691_v62, %v147_v0  ;;  %v155_v9 = vmul.f32 %v693_v1, %v890_v32  ;;  %714 = vpow2.f32 %v498_v12  ;;  %v1047_v63 = vld [vmem:[%s1124_s1 + $0x78] sm:$0xff] }
  0x29   :  { %v697_v10 = vpop.eup %696  ;;  %716 = vpow2.f32 %v490_v61  ;;  %v1041_v61 = vld [vmem:[%s1123_s0 + $0x78] sm:$0xff]  ;;  %v484_v22 = vmul.f32 -1.442695, %v1029_v54 }
  0x2a   :  { %v699_v20 = vpop.eup %698  ;;  %587 = vmatmul.mubr.f32.vlgmr.msra.gmra.mrb[0].mxu1 %v282_v6  ;;  %v275_v26 = vmul.f32 %v259_v7, %v884_v30  ;;  %v267_v14 = vmul.f32 %v695_v4, %v155_v9  ;;  %718 = vpow2.f32 %v506_v16  ;;  %v148_v15 = vmul.f32 %v697_v10, %v902_v37 }
  0x2b   :  { %v701_v17 = vpop.eup %700  ;;  %v212_v18 = vadd.f32 1.0, %v699_v20  ;;  %720 = vpow2.f32 %v483_v2  ;;  %v491_v37 = vmul.f32 -1.442695, %v1018_v46  ;;  %v500_v2 = vmul.f32 -1.442695, %v1035_v19 }
  0x2c   :  { %v703_v24 = vpop.eup %702  ;;  %577 = vmatprep.mubr.f32.mxu0 %v275_v26  ;;  %v283_v25 = vmul.f32 %v267_v14, %v896_v34  ;;  %v108_v23 = vadd.f32 1.0, %v701_v17  ;;  %722 = vpow2.f32 %v499_v3  ;;  %v492_v6 = vmul.f32 -1.442695, %v1041_v61 }
  0x2d   :  { %v705_v27 = vpop.eup %704  ;;  %724 = vrcp.f32 %v212_v18  ;;  %v220_v32 = vadd.f32 1.0, %v703_v24  ;;  %v508_v20 = vmul.f32 -1.442695, %v1047_v63 }
  0x2e   :  { %v707_v29 = vpop.eup %706  ;;  %589 = vmatprep.mubr.f32.mxu1 %v283_v25  ;;  %726 = vrcp.f32 %v108_v23  ;;  %v101_v31 = vadd.f32 1.0, %v705_v27 }
  0x2f   :  { %v709_v33 = vpop.eup %708  ;;  %728 = vrcp.f32 %v220_v32  ;;  %v213_v30 = vadd.f32 1.0, %v707_v29 }
  0x30   :  { %v711_v38 = vpop.eup %710  ;;  %730 = vrcp.f32 %v101_v31  ;;  %v109_v39 = vadd.f32 1.0, %v709_v33 }
  0x31   :  { %v713_v40 = vpop.eup %712  ;;  %732 = vrcp.f32 %v213_v30  ;;  %v221_v41 = vadd.f32 1.0, %v711_v38 }
  0x32   :  { %v715_v11 = vpop.eup %714  ;;  %734 = vrcp.f32 %v109_v39  ;;  %v102_v34 = vadd.f32 1.0, %v713_v40 }
  0x33   :  { %v717_v42 = vpop.eup %716  ;;  %736 = vrcp.f32 %v221_v41  ;;  %v214_v45 = vadd.f32 1.0, %v715_v11 }
  0x34   :  { %v719_v47 = vpop.eup %718  ;;  %738 = vrcp.f32 %v102_v34  ;;  %v110_v48 = vadd.f32 1.0, %v717_v42 }
  0x35   :  { %v721_v50 = vpop.eup %720  ;;  %740 = vrcp.f32 %v214_v45  ;;  %v222_v53 = vadd.f32 1.0, %v719_v47 }
  0x36   :  { %v723_v12 = vpop.eup %722  ;;  %742 = vrcp.f32 %v110_v48  ;;  %v103_v55 = vadd.f32 1.0, %v721_v50 }
  0x37   :  { %v725_v56 = vpop.eup %724  ;;  %744 = vrcp.f32 %v222_v53  ;;  %v215_v57 = vadd.f32 1.0, %v723_v12 }
  0x38   :  { %v727_v16 = vpop.eup %726  ;;  %v260_v62 = vmul.f32 %v725_v56, %v148_v15  ;;  %746 = vrcp.f32 %v103_v55 }
  0x39   :  { %v729_v0 = vpop.eup %728  ;;  %v156_v1 = vmul.f32 %v727_v16, %v933_v8  ;;  %748 = vrcp.f32 %v215_v57 }
  0x3a   :  { %v731_v3 = vpop.eup %730  ;;  %v276_v4 = vmul.f32 %v260_v62, %v928_v5  ;;  %750 = vpow2.f32 %v491_v37 }
  0x3b   :  { %v733_v7 = vpop.eup %732  ;;  %v268_v9 = vmul.f32 %v729_v0, %v156_v1  ;;  %v149_v10 = vmul.f32 %v731_v3, %v944_v21  ;;  %752 = vpow2.f32 %v507_v60 }
  0x3c   :  { %v735_v26 = vpop.eup %734  ;;  %578 = vmatmul.mubr.f32.gmra.mrb[2].mxu0 %v276_v4  ;;  %754 = vpow2.f32 %v484_v22 }
  0x3d   :  { %v737_v8 = vpop.eup %736  ;;  %v284_v14 = vmul.f32 %v268_v9, %v938_v13  ;;  %v261_v17 = vmul.f32 %v733_v7, %v149_v10  ;;  %v157_v18 = vmul.f32 %v735_v26, %v957_v35  ;;  %756 = vpow2.f32 %v500_v2 }
  0x3e   :  { %v739_v5 = vpop.eup %738  ;;  %758 = vpow2.f32 %v492_v6 }
  0x3f   :  { %v741_v24 = vpop.eup %740  ;;  %590 = vmatmul.mubr.f32.gmra.mrb[2].mxu1 %v284_v14  ;;  %v277_v25 = vmul.f32 %v261_v17, %v950_v28  ;;  %v269_v21 = vmul.f32 %v737_v8, %v157_v18  ;;  %v150_v23 = vmul.f32 %v739_v5, %v970_v43  ;;  %760 = vpow2.f32 %v508_v20 }
  0x40   :  { %v743_v27 = vpop.eup %742 }
  0x41   :  { %v745_v32 = vpop.eup %744  ;;  %580 = vmatprep.mubr.f32.mxu0 %v277_v25  ;;  %v285_v29 = vmul.f32 %v269_v21, %v962_v36  ;;  %v262_v13 = vmul.f32 %v741_v24, %v150_v23  ;;  %v158_v31 = vmul.f32 %v743_v27, %v984_v51 }
  0x42   :  { %v747_v35 = vpop.eup %746 }
  0x43   :  { %v749_v33 = vpop.eup %748  ;;  %592 = vmatprep.mubr.f32.mxu1 %v285_v29  ;;  %v278_v30 = vmul.f32 %v262_v13, %v975_v44  ;;  %v270_v38 = vmul.f32 %v745_v32, %v158_v31  ;;  %v151_v28 = vmul.f32 %v747_v35, %v998_v58 }
  0x44   :  { %v751_v39 = vpop.eup %750 }
  0x45   :  { %v753_v40 = vpop.eup %752  ;;  %581 = vmatmul.mubr.f32.gmra.mrb[4].mxu0 %v278_v30  ;;  %v286_v43 = vmul.f32 %v270_v38, %v989_v52  ;;  %v263_v41 = vmul.f32 %v749_v33, %v151_v28  ;;  %v111_v11 = vadd.f32 1.0, %v751_v39 }
  0x46   :  { %v755_v34 = vpop.eup %754  ;;  %v223_v36 = vadd.f32 1.0, %v753_v40 }
  0x47   :  { %v757_v42 = vpop.eup %756  ;;  %593 = vmatmul.mubr.f32.gmra.mrb[4].mxu1 %v286_v43  ;;  %v279_v51 = vmul.f32 %v263_v41, %v1003_v59  ;;  %762 = vrcp.f32 %v111_v11  ;;  %v104_v45 = vadd.f32 1.0, %v755_v34 }
  0x48   :  { %v759_v47 = vpop.eup %758  ;;  %764 = vrcp.f32 %v223_v36  ;;  %v216_v44 = vadd.f32 1.0, %v757_v42 }
  0x49   :  { %v761_v15 = vpop.eup %760  ;;  %583 = vmatprep.mubr.f32.mxu0 %v279_v51  ;;  %766 = vrcp.f32 %v104_v45  ;;  %v112_v58 = vadd.f32 1.0, %v759_v47 }
  0x4a   :  { %768 = vrcp.f32 %v216_v44  ;;  %v224_v48 = vadd.f32 1.0, %v761_v15 }
  0x4b   :  { %770 = vrcp.f32 %v112_v58 }
  0x4c   :  { %772 = vrcp.f32 %v224_v48 }
  0x51   :  { %v763_v52 = vpop.eup %762 }
  0x52   :  { %v765_v50 = vpop.eup %764  ;;  %v159_v53 = vmul.f32 %v763_v52, %v1018_v46  ;;  %v509_v46 = vld [vmem:[%s1125_s3] ss:$0 sm:$0xff] }
  0x53   :  { %v767_v12 = vpop.eup %766 }
  0x54   :  { %v769_v55 = vpop.eup %768  ;;  %v271_v59 = vmul.f32 %v765_v50, %v159_v53  ;;  %v152_v37 = vmul.f32 %v767_v12, %v1029_v54 }
  0x55   :  { %v771_v56 = vpop.eup %770 }
  0x56   :  { %v773_v57 = vpop.eup %772  ;;  %v287_v60 = vmul.f32 %v271_v59, %v1024_v49  ;;  %v264_v16 = vmul.f32 %v769_v55, %v152_v37  ;;  %v160_v62 = vmul.f32 %v771_v56, %v1041_v61 }
  0x58   :  { %595 = vmatprep.mubr.f32.mxu1 %v287_v60  ;;  %v280_v22 = vmul.f32 %v264_v16, %v1035_v19  ;;  %v272_v0 = vmul.f32 %v773_v57, %v160_v62 }
  0x5a   :  { %584 = vmatmul.mubr.f32.gmra.mrb[6].mxu0 %v280_v22  ;;  %v288_v1 = vmul.f32 %v272_v0, %v1047_v63 }
  0x5c   :  { %596 = vmatmul.mubr.f32.gmra.mrb[6].mxu1 %v288_v1 }
  0xfb   :  { %v576_v54 = vpop.f32.mrb[0].mxu0 }
  0xfc   :  { %v384_v2 = vadd.f32 %v576_v54, %v509_v46  ;;  %v378_v3 = vpop.f32.mrb[1].mxu0 }
  0xfd   :  { %v588_v4 = vpop.f32.mrb[0].mxu1  ;;  %v379_v49 = vadd.f32 %v509_v46, %v378_v3 }
  0xfe   :  { %458 = vst [vmem:[%s1126_s4 + $0x8] sm:$0xff] %v384_v2  ;;  %v424_v61 = vadd.f32 %v588_v4, %v509_v46  ;;  %v418_v19 = vpop.f32.mrb[1].mxu1 }
  0xff   :  { %457 = vst [vmem:[%s1126_s4] sm:$0xff] %v379_v49  ;;  %v419_v63 = vadd.f32 %v509_v46, %v418_v19 }
 0x100   :  { %466 = vst [vmem:[%s1126_s4 + $0x48] sm:$0xff] %v424_v61 }
 0x101   :  { %465 = vst [vmem:[%s1126_s4 + $0x40] sm:$0xff] %v419_v63 }
 0x10f   :  { %v579_v6 = vpop.f32.mrb[2].mxu0 }
 0x110   :  { %v394_v7 = vadd.f32 %v579_v6, %v509_v46  ;;  %v388_v9 = vpop.f32.mrb[3].mxu0 }
 0x111   :  { %v389_v10 = vadd.f32 %v509_v46, %v388_v9 }
 0x112   :  { %460 = vst [vmem:[%s1126_s4 + $0x18] sm:$0xff] %v394_v7  ;;  %v591_v20 = vpop.f32.mrb[2].mxu1 }
 0x113   :  { %v434_v26 = vadd.f32 %v591_v20, %v509_v46  ;;  %459 = vst [vmem:[%s1126_s4 + $0x10] sm:$0xff] %v389_v10  ;;  %v428_v8 = vpop.f32.mrb[3].mxu1 }
 0x114   :  { %v429_v14 = vadd.f32 %v509_v46, %v428_v8 }
 0x115   :  { %468 = vst [vmem:[%s1126_s4 + $0x58] sm:$0xff] %v434_v26 }
 0x116   :  { %467 = vst [vmem:[%s1126_s4 + $0x50] sm:$0xff] %v429_v14 }
 0x118   :  { %v582_v17 = vpop.f32.mrb[4].mxu0 }
 0x119   :  { %v404_v18 = vadd.f32 %v582_v17, %v509_v46  ;;  %v398_v5 = vpop.f32.mrb[5].mxu0 }
 0x11a   :  { %v594_v24 = vpop.f32.mrb[4].mxu1  ;;  %v399_v25 = vadd.f32 %v509_v46, %v398_v5 }
 0x11b   :  { %462 = vst [vmem:[%s1126_s4 + $0x28] sm:$0xff] %v404_v18  ;;  %v444_v21 = vadd.f32 %v594_v24, %v509_v46  ;;  %v438_v23 = vpop.f32.mrb[5].mxu1 }
 0x11c   :  { %461 = vst [vmem:[%s1126_s4 + $0x20] sm:$0xff] %v399_v25  ;;  %v439_v27 = vadd.f32 %v509_v46, %v438_v23 }
 0x11d   :  { %470 = vst [vmem:[%s1126_s4 + $0x68] sm:$0xff] %v444_v21 }
 0x11e   :  { %469 = vst [vmem:[%s1126_s4 + $0x60] sm:$0xff] %v439_v27 }
 0x12d   :  { %v585_v32 = vpop.f32.mrb[6].mxu0 }
 0x12e   :  { %v414_v29 = vadd.f32 %v585_v32, %v509_v46  ;;  %v408_v13 = vpop.f32.mrb[7].mxu0 }
 0x12f   :  { %v597_v31 = vpop.f32.mrb[6].mxu1  ;;  %v409_v35 = vadd.f32 %v509_v46, %v408_v13 }
 0x130   :  { %464 = vst [vmem:[%s1126_s4 + $0x38] sm:$0xff] %v414_v29  ;;  %v454_v33 = vadd.f32 %v597_v31, %v509_v46  ;;  %v448_v30 = vpop.f32.mrb[7].mxu1 }
 0x131   :  { %463 = vst [vmem:[%s1126_s4 + $0x30] sm:$0xff] %v409_v35  ;;  %v449_v38 = vadd.f32 %v509_v46, %v448_v30 }
 0x132   :  { %472 = vst [vmem:[%s1126_s4 + $0x78] sm:$0xff] %v454_v33 }
 0x133   :  { %471 = vst [vmem:[%s1126_s4 + $0x70] sm:$0xff] %v449_v38 }

// kernel: fasa_forward.10
= control target key start
LH: loop header
LB: loop body
LE: loop exit
PB: predicated region body
PF: predicated region fallthrough
CT: control target
= control target key end

     0   :  { %s1446_s12 = smov 0   ;;  %s2037_s0 = inlined_call_operand.vmem [shape: f32[2,18,18,32], index: 0, kind: input, shape index: {}]   ;;  %s2038_s1 = inlined_call_operand.vmem [shape: f32[9,32], index: 1, kind: input, shape index: {}]   ;;  %s2039_s2 = inlined_call_operand.vmem [shape: f32[1,32], index: 2, kind: input, shape index: {}]   ;;  %s2040_s3 = inlined_call_operand.vmem [shape: f32[2,16,16,32], index: 3, kind: output, shape index: {}]  }
   0x1 LB: > { %s1202_s13 = sadd.s32 4294967295, %s1424_s12   ;;  %p1206_p0 = scmp.ge.s32.totalorder %s1424_s12, 1  ;;  %s1424_s12 = sphi %s1446_s12, %s13_s12  }
   0x2   : > { %p137_p1 = scmp.lt.s32.totalorder %s1424_s12, 3 }
   0x4   : > { %p138_p2 = pnand %p1206_p0, %p137_p1 }
   0x5   : > { %p161_p3 = scmp.lt.s32.totalorder (!%p138_p2), %s1202_s13, 1  ;;  %v205_v0 = vlaneseq (!%p138_p2)  ;;  %v171_v2 = vld [vmem:[%s2038_s1] sm:$0xff] (!%p138_p2)  ;;  %v1492_v27 = vld [vmem:[%s2038_s1 + $0x8] ss:$0 sm:$0xff] (!%p138_p2)  ;;  %vm1114_vm0 = vcmask (!%p138_p2), 261120  }
   0x6   : > { %141 = sbr.rel (%p138_p2) target bundleno = 173 (0xad), region = 32 }
   0x7   : > { %v206_v1 = vshrl.u32 (!%p138_p2), %v205_v0, 7 }
   0x9   : > { %v207_v3 = vsub.s32 (!%p138_p2), 0, %v206_v1  ;;  %v307_v4 = vsub.s32 (!%p138_p2), 1, %v206_v1  ;;  %v407_v5 = vsub.s32 (!%p138_p2), 2, %v206_v1  ;;  %v508_v6 = vsub.s32 (!%p138_p2), 3, %v206_v1 }
   0xa   : > { %v608_v7 = vsub.s32 (!%p138_p2), 4, %v206_v1  ;;  %v708_v8 = vsub.s32 (!%p138_p2), 5, %v206_v1  ;;  %v809_v9 = vsub.s32 (!%p138_p2), 6, %v206_v1  ;;  %v909_v10 = vsub.s32 (!%p138_p2), 7, %v206_v1 }
   0xb   : > { %v1465_v11 = vrot.slane (!%p138_p2), %v171_v2, %v207_v3  ;;  %v1467_v12 = vrot.slane (!%p138_p2), %v171_v2, %v307_v4  ;;  %v1469_v13 = vrot.slane (!%p138_p2), %v171_v2, %v407_v5  ;;  %v1471_v14 = vrot.slane (!%p138_p2), %v171_v2, %v508_v6 }
   0xc   : > { %v1476_v18 = vrot.slane (!%p138_p2), %v171_v2, %v608_v7  ;;  %v1478_v19 = vrot.slane (!%p138_p2), %v171_v2, %v708_v8  ;;  %v1480_v20 = vrot.slane (!%p138_p2), %v171_v2, %v809_v9  ;;  %v1487_v26 = vrot.slane (!%p138_p2), %v171_v2, %v909_v10 }
   0xd   : > { %s2042_s13 = smov (!%p161_p3, %s1202_s13), 1 }
   0xe   : > { %s1407_s16 = smul.u32 432, %s2042_s13  ;;  %s1406_s22 = sshll.u32 %s2042_s13, 8 }
   0xf   : > { %s1584_s27 = scalar_lea.vmem %s2040_s3, %s1406_s22 }
  0x10   : > { %s1463_s19 = scalar_lea.vmem %s2037_s0, %s1407_s16 }
  0x11   : > { %v173_v15 = vld [vmem:[%s1463_s19] sm:$0xff]  ;;  %v1210_v24 = vld [vmem:[%s1463_s19 + $0x18] sm:$0xff]  ;;  %v174_v33 = vld [vmem:[%s1463_s19 + $0x8] sm:$0xff] }
  0x12   : > { %v273_v16 = vld [vmem:[%s1463_s19 + $0x1] sm:$0xff]  ;;  %v209_v21 = vmul.f32 %v1465_v11, %v173_v15  ;;  %v1242_v25 = vld [vmem:[%s1463_s19 + $0x19] sm:$0xff]  ;;  %v510_v28 = vmul.f32 %v1210_v24, %v1471_v14  ;;  %v274_v34 = vld [vmem:[%s1463_s19 + $0x9] sm:$0xff]  ;;  %v211_v36 = vmul.f32 %v1210_v24, %v1465_v11  ;;  %v210_v40 = vmul.f32 %v1465_v11, %v174_v33 }
  0x13   : > { %v373_v17 = vld [vmem:[%s1463_s19 + $0x2] sm:$0xff]  ;;  %v309_v22 = vmul.f32 %v1467_v12, %v273_v16  ;;  %v1274_v29 = vld [vmem:[%s1463_s19 + $0x1a] sm:$0xff]  ;;  %v610_v31 = vmul.f32 %v1242_v25, %v1476_v18  ;;  %v374_v35 = vld [vmem:[%s1463_s19 + $0xa] sm:$0xff]  ;;  %v310_v41 = vmul.f32 %v1467_v12, %v274_v34  ;;  %v311_v43 = vmul.f32 %v1242_v25, %v1467_v12 }
  0x14   : > { %v409_v23 = vmul.f32 %v1469_v13, %v373_v17  ;;  %v710_v32 = vmul.f32 %v1274_v29, %v1478_v19  ;;  %v1306_v37 = vld [vmem:[%s1463_s19 + $0x30] sm:$0xff]  ;;  %v410_v42 = vmul.f32 %v1469_v13, %v374_v35  ;;  %v1211_v48 = vld [vmem:[%s1463_s19 + $0x20] sm:$0xff]  ;;  %v1519_v56 = vld [vmem:[%s1463_s19 + $0x38] sm:$0xff]  ;;  %v411_v60 = vmul.f32 %v1274_v29, %v1469_v13 }
  0x15   : > { %v341_v30 = vadd.f32 %v309_v22, %v209_v21  ;;  %v1338_v38 = vld [vmem:[%s1463_s19 + $0x31] sm:$0xff]  ;;  %v811_v45 = vmul.f32 %v1306_v37, %v1480_v20  ;;  %v1243_v49 = vld [vmem:[%s1463_s19 + $0x21] sm:$0xff]  ;;  %v342_v51 = vadd.f32 %v310_v41, %v210_v40  ;;  %v511_v52 = vmul.f32 %v1211_v48, %v1471_v14  ;;  %v1522_v57 = vld [vmem:[%s1463_s19 + $0x39] sm:$0xff] }
  0x16   : > { %v1370_v39 = vld [vmem:[%s1463_s19 + $0x32] sm:$0xff]  ;;  %v911_v46 = vmul.f32 %v1338_v38, %v1487_v26  ;;  %v1275_v50 = vld [vmem:[%s1463_s19 + $0x22] sm:$0xff]  ;;  %v611_v53 = vmul.f32 %v1243_v49, %v1476_v18  ;;  %v1525_v58 = vld [vmem:[%s1463_s19 + $0x3a] sm:$0xff]  ;;  %v343_v59 = vadd.f32 %v311_v43, %v211_v36  ;;  %v512_v61 = vmul.f32 %v1306_v37, %v1471_v14 }
  0x17   : > { %v441_v44 = vadd.f32 %v409_v23, %v341_v30  ;;  %v1011_v47 = vmul.f32 %v1492_v27, %v1370_v39  ;;  %v711_v54 = vmul.f32 %v1275_v50, %v1478_v19  ;;  %v442_v62 = vadd.f32 %v410_v42, %v342_v51  ;;  %v1538_v7 = vld [vmem:[%s1463_s19 + $0x48] sm:$0xff]  ;;  %v1562_v36 = vld [vmem:[%s1463_s19 + $0x50] sm:$0xff] }
  0x18   : > { %v812_v63 = vmul.f32 %v1519_v56, %v1480_v20  ;;  %v912_v0 = vmul.f32 %v1522_v57, %v1487_v26  ;;  %v1012_v1 = vmul.f32 %v1492_v27, %v1525_v58  ;;  %v443_v3 = vadd.f32 %v411_v60, %v343_v59  ;;  %v1541_v8 = vld [vmem:[%s1463_s19 + $0x49] sm:$0xff]  ;;  %v1341_v51 = vld [vmem:[%s1463_s19 + $0x51] sm:$0xff] }
  0x19   : > { %v542_v55 = vadd.f32 %v510_v28, %v441_v44  ;;  %v612_v4 = vmul.f32 %v1338_v38, %v1476_v18  ;;  %v712_v5 = vmul.f32 %v1370_v39, %v1478_v19  ;;  %v543_v6 = vadd.f32 %v511_v52, %v442_v62  ;;  %v1551_v23 = vld [vmem:[%s1463_s19 + $0x4a] sm:$0xff]  ;;  %v1373_v52 = vld [vmem:[%s1463_s19 + $0x52] sm:$0xff] }
  0x1a   : > { %v212_v9 = vmul.f32 %v1211_v48, %v1465_v11  ;;  %v312_v10 = vmul.f32 %v1243_v49, %v1467_v12  ;;  %v412_v15 = vmul.f32 %v1275_v50, %v1469_v13  ;;  %v544_v17 = vadd.f32 %v512_v61, %v443_v3  ;;  %v1573_v48 = vld [vmem:[%s2039_s2] ss:$0 sm:$0xff] }
  0x1b   : > { %v642_v2 = vadd.f32 %v610_v31, %v542_v55  ;;  %v813_v21 = vmul.f32 %v1538_v7, %v1480_v20  ;;  %v913_v22 = vmul.f32 %v1541_v8, %v1487_v26  ;;  %v643_v24 = vadd.f32 %v611_v53, %v543_v6 }
  0x1c   : > { %v1013_v25 = vmul.f32 %v1492_v27, %v1551_v23  ;;  %v344_v28 = vadd.f32 %v312_v10, %v212_v9  ;;  %v513_v29 = vmul.f32 %v1519_v56, %v1471_v14  ;;  %v644_v31 = vadd.f32 %v612_v4, %v544_v17 }
  0x1d   : > { %v742_v16 = vadd.f32 %v710_v32, %v642_v2  ;;  %v613_v32 = vmul.f32 %v1522_v57, %v1476_v18  ;;  %v713_v33 = vmul.f32 %v1525_v58, %v1478_v19  ;;  %v743_v34 = vadd.f32 %v711_v54, %v643_v24 }
  0x1e   : > { %v444_v35 = vadd.f32 %v412_v15, %v344_v28  ;;  %v213_v40 = vmul.f32 %v1306_v37, %v1465_v11  ;;  %v313_v41 = vmul.f32 %v1338_v38, %v1467_v12  ;;  %v744_v43 = vadd.f32 %v712_v5, %v644_v31 }
  0x1f   : > { %v843_v30 = vadd.f32 %v811_v45, %v742_v16  ;;  %v814_v44 = vmul.f32 %v1562_v36, %v1480_v20  ;;  %v413_v45 = vmul.f32 %v1370_v39, %v1469_v13  ;;  %v844_v49 = vadd.f32 %v812_v63, %v743_v34 }
  0x20   : > { %v545_v50 = vadd.f32 %v513_v29, %v444_v35  ;;  %v345_v37 = vadd.f32 %v313_v41, %v213_v40  ;;  %v514_v38 = vmul.f32 %v1538_v7, %v1471_v14  ;;  %v845_v53 = vadd.f32 %v813_v21, %v744_v43  ;;  %v1342_v21 = vld [vmem:[%s1463_s19 + $0x61] sm:$0xff] }
  0x21   : > { %v943_v42 = vadd.f32 %v911_v46, %v843_v30  ;;  %v914_v54 = vmul.f32 %v1341_v51, %v1487_v26  ;;  %v1014_v39 = vmul.f32 %v1492_v27, %v1373_v52  ;;  %v944_v55 = vadd.f32 %v912_v0, %v844_v49  ;;  %v1310_v0 = vld [vmem:[%s1463_s19 + $0x60] sm:$0xff]  ;;  %v1311_v43 = vld [vmem:[%s1463_s19 + $0x68] sm:$0xff] }
  0x22   : > { %v645_v59 = vadd.f32 %v613_v32, %v545_v50  ;;  %v445_v60 = vadd.f32 %v413_v45, %v345_v37  ;;  %v614_v61 = vmul.f32 %v1541_v8, %v1476_v18  ;;  %v945_v62 = vadd.f32 %v913_v22, %v845_v53  ;;  %v1374_v29 = vld [vmem:[%s1463_s19 + $0x62] sm:$0xff] }
  0x23   : > { %v1043_v46 = vadd.f32 %v1011_v47, %v943_v42  ;;  %v714_v63 = vmul.f32 %v1551_v23, %v1478_v19  ;;  %v214_v2 = vmul.f32 %v1519_v56, %v1465_v11  ;;  %v1044_v3 = vadd.f32 %v1012_v1, %v944_v55 }
  0x24   : > { %v745_v4 = vadd.f32 %v713_v33, %v645_v59  ;;  %v546_v5 = vadd.f32 %v514_v38, %v445_v60  ;;  %v314_v6 = vmul.f32 %v1522_v57, %v1467_v12  ;;  %v1045_v9 = vadd.f32 %v1013_v25, %v945_v62  ;;  %v1375_v38 = vld [vmem:[%s1463_s19 + $0x6a] sm:$0xff] }
  0x25   : > { %v1082_v47 = vadd.f32 %v1573_v48, %v1043_v46  ;;  %v815_v10 = vmul.f32 %v1310_v0, %v1480_v20  ;;  %v414_v15 = vmul.f32 %v1525_v58, %v1469_v13  ;;  %v515_v56 = vmul.f32 %v1562_v36, %v1471_v14 }
  0x26   : > { %v1083_v1 = vadd.f32 %v1573_v48, %v1044_v3  ;;  %v846_v16 = vadd.f32 %v814_v44, %v745_v4  ;;  %v646_v17 = vadd.f32 %v614_v61, %v546_v5  ;;  %v346_v22 = vadd.f32 %v314_v6, %v214_v2  ;;  %v1344_v6 = vld [vmem:[%s1463_s19 + $0x79] sm:$0xff] }
  0x27   : > { %1115 = vst.msk [vmem:[%s1584_s27] sm:$0xff] %vm1114_vm0, %v1082_v47  ;;  %v1084_v57 = vadd.f32 %v1573_v48, %v1045_v9  ;;  %v915_v24 = vmul.f32 %v1342_v21, %v1487_v26  ;;  %v615_v30 = vmul.f32 %v1341_v51, %v1476_v18  ;;  %v1015_v31 = vmul.f32 %v1492_v27, %v1374_v29 }
  0x28   : > { %1116 = vst.msk [vmem:[%s1584_s27 + $0x8] sm:$0xff] %vm1114_vm0, %v1083_v1  ;;  %v946_v25 = vadd.f32 %v914_v54, %v846_v16  ;;  %v746_v28 = vadd.f32 %v714_v63, %v646_v17  ;;  %v446_v58 = vadd.f32 %v414_v15, %v346_v22  ;;  %v215_v32 = vmul.f32 %v1538_v7, %v1465_v11  ;;  %v1312_v63 = vld [vmem:[%s1463_s19 + $0x78] sm:$0xff] }
  0x29   : > { %1117 = vst.msk [vmem:[%s1584_s27 + $0x10] sm:$0xff] %vm1114_vm0, %v1084_v57  ;;  %v315_v33 = vmul.f32 %v1541_v8, %v1467_v12  ;;  %v415_v34 = vmul.f32 %v1551_v23, %v1469_v13  ;;  %v715_v42 = vmul.f32 %v1373_v52, %v1478_v19  ;;  %v816_v44 = vmul.f32 %v1311_v43, %v1480_v20  ;;  %v1343_v23 = vld [vmem:[%s1463_s19 + $0x69] sm:$0xff]  ;;  %v1376_v57 = vld [vmem:[%s1463_s19 + $0x7a] sm:$0xff] }
  0x2a   : > { %v1046_v35 = vadd.f32 %v1014_v39, %v946_v25  ;;  %v847_v40 = vadd.f32 %v815_v10, %v746_v28  ;;  %v547_v41 = vadd.f32 %v515_v56, %v446_v58  ;;  %v516_v49 = vmul.f32 %v1310_v0, %v1471_v14  ;;  %v1313_v25 = vld [vmem:[%s1463_s19 + $0x80] sm:$0xff] }
  0x2b   : > { %v347_v45 = vadd.f32 %v315_v33, %v215_v32  ;;  %v616_v37 = vmul.f32 %v1342_v21, %v1476_v18  ;;  %v216_v53 = vmul.f32 %v1562_v36, %v1465_v11  ;;  %v316_v54 = vmul.f32 %v1341_v51, %v1467_v12 }
  0x2c   : > { %v1085_v7 = vadd.f32 %v1573_v48, %v1046_v35  ;;  %v947_v50 = vadd.f32 %v915_v24, %v847_v40  ;;  %v647_v8 = vadd.f32 %v615_v30, %v547_v41  ;;  %v416_v39 = vmul.f32 %v1373_v52, %v1469_v13 }
  0x2d   : > { %v447_v46 = vadd.f32 %v415_v34, %v347_v45  ;;  %v916_v60 = vmul.f32 %v1343_v23, %v1487_v26  ;;  %v1016_v61 = vmul.f32 %v1492_v27, %v1375_v38  ;;  %v716_v62 = vmul.f32 %v1374_v29, %v1478_v19 }
  0x2e   : > { %1118 = vst.msk [vmem:[%s1584_s27 + $0x18] sm:$0xff] %vm1114_vm0, %v1085_v7  ;;  %v1047_v55 = vadd.f32 %v1015_v31, %v947_v50  ;;  %v747_v59 = vadd.f32 %v715_v42, %v647_v8  ;;  %v348_v2 = vadd.f32 %v316_v54, %v216_v53  ;;  %v517_v36 = vmul.f32 %v1311_v43, %v1471_v14  ;;  %v1377_v7 = vld [vmem:[%s1463_s19 + $0x82] sm:$0xff] }
  0x2f   : > { %v548_v47 = vadd.f32 %v516_v49, %v447_v46  ;;  %v817_v3 = vmul.f32 %v1312_v63, %v1480_v20  ;;  %v617_v4 = vmul.f32 %v1343_v23, %v1476_v18  ;;  %v217_v10 = vmul.f32 %v1310_v0, %v1465_v11 }
  0x30   : > { %v1086_v51 = vadd.f32 %v1573_v48, %v1047_v55  ;;  %v848_v52 = vadd.f32 %v816_v44, %v747_v59  ;;  %v448_v9 = vadd.f32 %v416_v39, %v348_v2  ;;  %v317_v15 = vmul.f32 %v1342_v21, %v1467_v12  ;;  %v1346_v59 = vld [vmem:[%s1463_s19 + $0x91] sm:$0xff] }
  0x31   : > { %v648_v5 = vadd.f32 %v616_v37, %v548_v47  ;;  %v917_v1 = vmul.f32 %v1344_v6, %v1487_v26  ;;  %v717_v16 = vmul.f32 %v1375_v38, %v1478_v19  ;;  %v417_v17 = vmul.f32 %v1374_v29, %v1469_v13  ;;  %v1345_v29 = vld [vmem:[%s1463_s19 + $0x81] sm:$0xff]  ;;  %v1314_v37 = vld [vmem:[%s1463_s19 + $0x90] sm:$0xff] }
  0x32   : > { %1119 = vst.msk [vmem:[%s1584_s27 + $0x20] sm:$0xff] %vm1114_vm0, %v1086_v51  ;;  %v948_v56 = vadd.f32 %v916_v60, %v848_v52  ;;  %v549_v24 = vadd.f32 %v517_v36, %v448_v9  ;;  %v349_v28 = vadd.f32 %v317_v15, %v217_v10  ;;  %v518_v58 = vmul.f32 %v1312_v63, %v1471_v14  ;;  %v1315_v9 = vld [vmem:[%s1463_s19 + $0x98] sm:$0xff] }
  0x33   : > { %v748_v22 = vadd.f32 %v716_v62, %v648_v5  ;;  %v1017_v21 = vmul.f32 %v1492_v27, %v1376_v57  ;;  %v818_v30 = vmul.f32 %v1313_v25, %v1480_v20  ;;  %v618_v31 = vmul.f32 %v1344_v6, %v1476_v18 }
  0x34   : > { %v1048_v0 = vadd.f32 %v1016_v61, %v948_v56  ;;  %v649_v33 = vadd.f32 %v617_v4, %v549_v24  ;;  %v449_v34 = vadd.f32 %v417_v17, %v349_v28  ;;  %v218_v35 = vmul.f32 %v1311_v43, %v1465_v11 }
  0x35   : > { %v849_v32 = vadd.f32 %v817_v3, %v748_v22  ;;  %v918_v41 = vmul.f32 %v1345_v29, %v1487_v26  ;;  %v318_v42 = vmul.f32 %v1343_v23, %v1467_v12  ;;  %v418_v44 = vmul.f32 %v1375_v38, %v1469_v13  ;;  %v1378_v3 = vld [vmem:[%s1463_s19 + $0x92] sm:$0xff] }
  0x36   : > { %v1087_v40 = vadd.f32 %v1573_v48, %v1048_v0  ;;  %v749_v49 = vadd.f32 %v717_v16, %v649_v33  ;;  %v550_v50 = vadd.f32 %v518_v58, %v449_v34  ;;  %v718_v8 = vmul.f32 %v1376_v57, %v1478_v19  ;;  %v1347_v58 = vld [vmem:[%s1463_s19 + $0x99] sm:$0xff] }
  0x37   : > { %v949_v45 = vadd.f32 %v917_v1, %v849_v32  ;;  %v1018_v43 = vmul.f32 %v1492_v27, %v1377_v7  ;;  %v819_v46 = vmul.f32 %v1314_v37, %v1480_v20  ;;  %v350_v53 = vadd.f32 %v318_v42, %v218_v35  ;;  %v1379_v32 = vld [vmem:[%s1463_s19 + $0x9a] sm:$0xff] }
  0x38   : > { %1120 = vst.msk [vmem:[%s1584_s27 + $0x28] sm:$0xff] %vm1114_vm0, %v1087_v40  ;;  %v519_v23 = vmul.f32 %v1313_v25, %v1471_v14  ;;  %v850_v38 = vadd.f32 %v818_v30, %v749_v49  ;;  %v650_v39 = vadd.f32 %v618_v31, %v550_v50  ;;  %v619_v55 = vmul.f32 %v1345_v29, %v1476_v18  ;;  %v1316_v40 = vld [vmem:[%s1463_s19 + $0xa8] sm:$0xff] }
  0x39   : > { %v1049_v54 = vadd.f32 %v1017_v21, %v949_v45  ;;  %v450_v60 = vadd.f32 %v418_v44, %v350_v53  ;;  %v219_v61 = vmul.f32 %v1312_v63, %v1465_v11  ;;  %v319_v47 = vmul.f32 %v1344_v6, %v1467_v12  ;;  %v1348_v50 = vld [vmem:[%s1463_s19 + $0xa9] sm:$0xff] }
  0x3a   : > { %v419_v62 = vmul.f32 %v1376_v57, %v1469_v13  ;;  %v950_v36 = vadd.f32 %v918_v41, %v850_v38  ;;  %v750_v51 = vadd.f32 %v718_v8, %v650_v39  ;;  %v919_v52 = vmul.f32 %v1346_v59, %v1487_v26  ;;  %v1380_v39 = vld [vmem:[%s1463_s19 + $0xaa] sm:$0xff] }
  0x3b   : > { %v1088_v2 = vadd.f32 %v1573_v48, %v1049_v54  ;;  %v551_v4 = vadd.f32 %v519_v23, %v450_v60  ;;  %v719_v5 = vmul.f32 %v1377_v7, %v1478_v19  ;;  %v351_v10 = vadd.f32 %v319_v47, %v219_v61  ;;  %v1317_v61 = vld [vmem:[%s1463_s19 + $0xb0] sm:$0xff] }
  0x3c   : > { %v520_v15 = vmul.f32 %v1314_v37, %v1471_v14  ;;  %v1050_v63 = vadd.f32 %v1018_v43, %v950_v36  ;;  %v851_v6 = vadd.f32 %v819_v46, %v750_v51  ;;  %v1019_v56 = vmul.f32 %v1492_v27, %v1378_v3 }
  0x3d   : > { %1121 = vst.msk [vmem:[%s1584_s27 + $0x30] sm:$0xff] %vm1114_vm0, %v1088_v2  ;;  %v820_v1 = vmul.f32 %v1315_v9, %v1480_v20  ;;  %v651_v16 = vadd.f32 %v619_v55, %v551_v4  ;;  %v451_v17 = vadd.f32 %v419_v62, %v351_v10  ;;  %v620_v22 = vmul.f32 %v1346_v59, %v1476_v18 }
  0x3e   : > { %v220_v57 = vmul.f32 %v1313_v25, %v1465_v11  ;;  %v1089_v24 = vadd.f32 %v1573_v48, %v1050_v63  ;;  %v951_v28 = vadd.f32 %v919_v52, %v851_v6  ;;  %v320_v0 = vmul.f32 %v1345_v29, %v1467_v12 }
  0x3f   : > { %v420_v21 = vmul.f32 %v1377_v7, %v1469_v13  ;;  %v751_v30 = vadd.f32 %v719_v5, %v651_v16  ;;  %v920_v31 = vmul.f32 %v1347_v58, %v1487_v26  ;;  %v552_v33 = vadd.f32 %v520_v15, %v451_v17  ;;  %v1349_v15 = vld [vmem:[%s1463_s19 + $0xb1] sm:$0xff] }
  0x40   : > { %v720_v34 = vmul.f32 %v1378_v3, %v1478_v19  ;;  %1122 = vst.msk [vmem:[%s1584_s27 + $0x38] sm:$0xff] %vm1114_vm0, %v1089_v24  ;;  %v1051_v35 = vadd.f32 %v1019_v56, %v951_v28  ;;  %v1020_v25 = vmul.f32 %v1492_v27, %v1379_v32  ;;  %v352_v41 = vadd.f32 %v320_v0, %v220_v57  ;;  %v1381_v16 = vld [vmem:[%s1463_s19 + $0xb2] sm:$0xff]  ;;  %v1318_v24 = vld [vmem:[%s1463_s19 + $0xc0] sm:$0xff] }
  0x41   : > { %v521_v29 = vmul.f32 %v1315_v9, %v1471_v14  ;;  %v852_v42 = vadd.f32 %v820_v1, %v751_v30  ;;  %v652_v44 = vadd.f32 %v620_v22, %v552_v33  ;;  %v821_v45 = vmul.f32 %v1316_v40, %v1480_v20  ;;  %v1350_v33 = vld [vmem:[%s1463_s19 + $0xc1] sm:$0xff] }
  0x42   : > { %v621_v49 = vmul.f32 %v1347_v58, %v1476_v18  ;;  %v1090_v7 = vadd.f32 %v1573_v48, %v1051_v35  ;;  %v452_v8 = vadd.f32 %v420_v21, %v352_v41  ;;  %v221_v43 = vmul.f32 %v1314_v37, %v1465_v11 }
  0x43   : > { %v321_v46 = vmul.f32 %v1346_v59, %v1467_v12  ;;  %v952_v53 = vadd.f32 %v920_v31, %v852_v42  ;;  %v752_v23 = vadd.f32 %v720_v34, %v652_v44  ;;  %v921_v54 = vmul.f32 %v1348_v50, %v1487_v26 }
  0x44   : > { %v421_v38 = vmul.f32 %v1378_v3, %v1469_v13  ;;  %1123 = vst.msk [vmem:[%s1584_s27 + $0x40] sm:$0xff] %vm1114_vm0, %v1090_v7  ;;  %v553_v55 = vadd.f32 %v521_v29, %v452_v8  ;;  %v721_v60 = vmul.f32 %v1379_v32, %v1478_v19  ;;  %v522_v62 = vmul.f32 %v1316_v40, %v1471_v14  ;;  %v1319_v8 = vld [vmem:[%s1463_s19 + $0xc8] sm:$0xff] }
  0x45   : > { %v353_v47 = vadd.f32 %v321_v46, %v221_v43  ;;  %v1052_v37 = vadd.f32 %v1020_v25, %v952_v53  ;;  %v853_v59 = vadd.f32 %v821_v45, %v752_v23  ;;  %v1021_v2 = vmul.f32 %v1492_v27, %v1380_v39  ;;  %v1382_v45 = vld [vmem:[%s1463_s19 + $0xc2] sm:$0xff] }
  0x46   : > { %v822_v36 = vmul.f32 %v1317_v61, %v1480_v20  ;;  %v653_v51 = vadd.f32 %v621_v49, %v553_v55  ;;  %v622_v3 = vmul.f32 %v1348_v50, %v1476_v18  ;;  %v222_v4 = vmul.f32 %v1315_v9, %v1465_v11 }
  0x47   : > { %v453_v52 = vadd.f32 %v421_v38, %v353_v47  ;;  %v1091_v5 = vadd.f32 %v1573_v48, %v1052_v37  ;;  %v953_v10 = vadd.f32 %v921_v54, %v853_v59  ;;  %v322_v63 = vmul.f32 %v1347_v58, %v1467_v12 }
  0x48   : > { %v422_v6 = vmul.f32 %v1379_v32, %v1469_v13  ;;  %v753_v56 = vadd.f32 %v721_v60, %v653_v51  ;;  %v922_v1 = vmul.f32 %v1349_v15, %v1487_v26  ;;  %v722_v22 = vmul.f32 %v1380_v39, %v1478_v19  ;;  %v1383_v51 = vld [vmem:[%s1463_s19 + $0xca] sm:$0xff] }
  0x49   : > { %v554_v17 = vadd.f32 %v522_v62, %v453_v52  ;;  %1124 = vst.msk [vmem:[%s1584_s27 + $0x48] sm:$0xff] %vm1114_vm0, %v1091_v5  ;;  %v1053_v57 = vadd.f32 %v1021_v2, %v953_v10  ;;  %v1022_v9 = vmul.f32 %v1492_v27, %v1381_v16  ;;  %v354_v28 = vadd.f32 %v322_v63, %v222_v4  ;;  %v1351_v62 = vld [vmem:[%s1463_s19 + $0xc9] sm:$0xff]  ;;  %v1320_v5 = vld [vmem:[%s1463_s19 + $0xd8] sm:$0xff] }
  0x4a   : > { %v523_v58 = vmul.f32 %v1317_v61, %v1471_v14  ;;  %v854_v0 = vadd.f32 %v822_v36, %v753_v56  ;;  %v823_v30 = vmul.f32 %v1318_v24, %v1480_v20  ;;  %v623_v31 = vmul.f32 %v1349_v15, %v1476_v18 }
  0x4b   : > { %v654_v21 = vadd.f32 %v622_v3, %v554_v17  ;;  %v1092_v32 = vadd.f32 %v1573_v48, %v1053_v57  ;;  %v454_v34 = vadd.f32 %v422_v6, %v354_v28  ;;  %v223_v35 = vmul.f32 %v1316_v40, %v1465_v11  ;;  %v1352_v17 = vld [vmem:[%s1463_s19 + $0xd9] sm:$0xff] }
  0x4c   : > { %v323_v25 = vmul.f32 %v1348_v50, %v1467_v12  ;;  %v954_v41 = vadd.f32 %v922_v1, %v854_v0  ;;  %v923_v42 = vmul.f32 %v1350_v33, %v1487_v26  ;;  %v423_v44 = vmul.f32 %v1380_v39, %v1469_v13 }
  0x4d   : > { %v754_v29 = vadd.f32 %v722_v22, %v654_v21  ;;  %1125 = vst.msk [vmem:[%s1584_s27 + $0x50] sm:$0xff] %vm1114_vm0, %v1092_v32  ;;  %v555_v49 = vadd.f32 %v523_v58, %v454_v34  ;;  %v723_v7 = vmul.f32 %v1381_v16, %v1478_v19  ;;  %v524_v46 = vmul.f32 %v1318_v24, %v1471_v14  ;;  %v1321_v34 = vld [vmem:[%s1463_s19 + $0xe0] sm:$0xff] }
  0x4e   : > { %v355_v43 = vadd.f32 %v323_v25, %v223_v35  ;;  %v1054_v40 = vadd.f32 %v1022_v9, %v954_v41  ;;  %v1023_v53 = vmul.f32 %v1492_v27, %v1382_v45  ;;  %v824_v23 = vmul.f32 %v1319_v8, %v1480_v20 }
  0x4f   : > { %v855_v50 = vadd.f32 %v823_v30, %v754_v29  ;;  %v655_v54 = vadd.f32 %v623_v31, %v555_v49  ;;  %v624_v39 = vmul.f32 %v1350_v33, %v1476_v18  ;;  %v224_v55 = vmul.f32 %v1317_v61, %v1465_v11  ;;  %v1384_v30 = vld [vmem:[%s1463_s19 + $0xda] sm:$0xff] }
  0x50   : > { %v455_v38 = vadd.f32 %v423_v44, %v355_v43  ;;  %v1093_v60 = vadd.f32 %v1573_v48, %v1054_v40  ;;  %v324_v37 = vmul.f32 %v1349_v15, %v1467_v12  ;;  %v424_v59 = vmul.f32 %v1381_v16, %v1469_v13 }
  0x51   : > { %v955_v47 = vadd.f32 %v923_v42, %v855_v50  ;;  %v755_v2 = vadd.f32 %v723_v7, %v655_v54  ;;  %v924_v36 = vmul.f32 %v1351_v62, %v1487_v26  ;;  %v724_v3 = vmul.f32 %v1382_v45, %v1478_v19  ;;  %v1385_v54 = vld [vmem:[%s1463_s19 + $0xe2] sm:$0xff] }
  0x52   : > { %v556_v52 = vadd.f32 %v524_v46, %v455_v38  ;;  %1126 = vst.msk [vmem:[%s1584_s27 + $0x58] sm:$0xff] %vm1114_vm0, %v1093_v60  ;;  %v1024_v61 = vmul.f32 %v1492_v27, %v1383_v51  ;;  %v356_v10 = vadd.f32 %v324_v37, %v224_v55  ;;  %v525_v15 = vmul.f32 %v1319_v8, %v1471_v14  ;;  %v1353_v46 = vld [vmem:[%s1463_s19 + $0xe1] sm:$0xff]  ;;  %v1322_v60 = vld [vmem:[%s1463_s19 + $0xf0] sm:$0xff] }
  0x53   : > { %v1055_v4 = vadd.f32 %v1023_v53, %v955_v47  ;;  %v856_v63 = vadd.f32 %v824_v23, %v755_v2  ;;  %v825_v56 = vmul.f32 %v1320_v5, %v1480_v20  ;;  %v625_v1 = vmul.f32 %v1351_v62, %v1476_v18 }
  0x54   : > { %v656_v6 = vadd.f32 %v624_v39, %v556_v52  ;;  %v456_v22 = vadd.f32 %v424_v59, %v356_v10  ;;  %v225_v57 = vmul.f32 %v1318_v24, %v1465_v11  ;;  %v325_v9 = vmul.f32 %v1350_v33, %v1467_v12  ;;  %v1354_v52 = vld [vmem:[%s1463_s19 + $0xf1] sm:$0xff] }
  0x55   : > { %v1094_v16 = vadd.f32 %v1573_v48, %v1055_v4  ;;  %v956_v28 = vadd.f32 %v924_v36, %v856_v63  ;;  %v925_v0 = vmul.f32 %v1352_v17, %v1487_v26  ;;  %v425_v21 = vmul.f32 %v1382_v45, %v1469_v13 }
  0x56   : > { %v756_v58 = vadd.f32 %v724_v3, %v656_v6  ;;  %v557_v31 = vadd.f32 %v525_v15, %v456_v22  ;;  %v725_v32 = vmul.f32 %v1383_v51, %v1478_v19  ;;  %v357_v35 = vadd.f32 %v325_v9, %v225_v57  ;;  %v1323_v22 = vld [vmem:[%s1463_s19 + $0xf8] sm:$0xff] }
  0x57   : > { %1127 = vst.msk [vmem:[%s1584_s27 + $0x60] sm:$0xff] %vm1114_vm0, %v1094_v16  ;;  %v526_v25 = vmul.f32 %v1320_v5, %v1471_v14  ;;  %v1056_v24 = vadd.f32 %v1024_v61, %v956_v28  ;;  %v1025_v41 = vmul.f32 %v1492_v27, %v1384_v30  ;;  %v826_v29 = vmul.f32 %v1321_v34, %v1480_v20 }
  0x58   : > { %v857_v33 = vadd.f32 %v825_v56, %v756_v58  ;;  %v657_v42 = vadd.f32 %v625_v1, %v557_v31  ;;  %v457_v44 = vadd.f32 %v425_v21, %v357_v35  ;;  %v626_v45 = vmul.f32 %v1352_v17, %v1476_v18  ;;  %v1386_v56 = vld [vmem:[%s1463_s19 + $0xf2] sm:$0xff] }
  0x59   : > { %v226_v49 = vmul.f32 %v1319_v8, %v1465_v11  ;;  %v1095_v7 = vadd.f32 %v1573_v48, %v1056_v24  ;;  %v326_v40 = vmul.f32 %v1351_v62, %v1467_v12  ;;  %v426_v50 = vmul.f32 %v1383_v51, %v1469_v13 }
  0x5a   : > { %v957_v43 = vadd.f32 %v925_v0, %v857_v33  ;;  %v757_v53 = vadd.f32 %v725_v32, %v657_v42  ;;  %v926_v23 = vmul.f32 %v1353_v46, %v1487_v26  ;;  %v558_v38 = vadd.f32 %v526_v25, %v457_v44  ;;  %v1355_v25 = vld [vmem:[%s1463_s19 + $0xf9] sm:$0xff] }
  0x5b   : > { %v726_v39 = vmul.f32 %v1384_v30, %v1478_v19  ;;  %1128 = vst.msk [vmem:[%s1584_s27 + $0x68] sm:$0xff] %vm1114_vm0, %v1095_v7  ;;  %v1026_v8 = vmul.f32 %v1492_v27, %v1385_v54  ;;  %v358_v47 = vadd.f32 %v326_v40, %v226_v49  ;;  %v527_v62 = vmul.f32 %v1321_v34, %v1471_v14  ;;  %v1387_v42 = vld [vmem:[%s1463_s19 + $0xfa] sm:$0xff]  ;;  %v1324_v7 = vld [vmem:[%s1463_s19 + $0x108] sm:$0xff] }
  0x5c   : > { %v1057_v55 = vadd.f32 %v1025_v41, %v957_v43  ;;  %v858_v37 = vadd.f32 %v826_v29, %v757_v53  ;;  %v658_v59 = vadd.f32 %v626_v45, %v558_v38  ;;  %v827_v2 = vmul.f32 %v1322_v60, %v1480_v20  ;;  %v1356_v38 = vld [vmem:[%s1463_s19 + $0x109] sm:$0xff] }
  0x5d   : > { %v627_v36 = vmul.f32 %v1353_v46, %v1476_v18  ;;  %v458_v3 = vadd.f32 %v426_v50, %v358_v47  ;;  %v227_v4 = vmul.f32 %v1320_v5, %v1465_v11  ;;  %v327_v61 = vmul.f32 %v1352_v17, %v1467_v12 }
  0x5e   : > { %v1096_v51 = vadd.f32 %v1573_v48, %v1057_v55  ;;  %v958_v10 = vadd.f32 %v926_v23, %v858_v37  ;;  %v758_v15 = vadd.f32 %v726_v39, %v658_v59  ;;  %v927_v63 = vmul.f32 %v1354_v52, %v1487_v26 }
  0x5f   : > { %v427_v6 = vmul.f32 %v1384_v30, %v1469_v13  ;;  %v559_v1 = vadd.f32 %v527_v62, %v458_v3  ;;  %v727_v16 = vmul.f32 %v1385_v54, %v1478_v19  ;;  %v359_v57 = vadd.f32 %v327_v61, %v227_v4  ;;  %v1325_v3 = vld [vmem:[%s1463_s19 + $0x110] sm:$0xff] }
  0x60   : > { %1129 = vst.msk [vmem:[%s1584_s27 + $0x70] sm:$0xff] %vm1114_vm0, %v1096_v51  ;;  %v528_v9 = vmul.f32 %v1322_v60, %v1471_v14  ;;  %v1058_v5 = vadd.f32 %v1026_v8, %v958_v10  ;;  %v859_v17 = vadd.f32 %v827_v2, %v758_v15  ;;  %v1027_v28 = vmul.f32 %v1492_v27, %v1386_v56  ;;  %v1388_v2 = vld [vmem:[%s1463_s19 + $0x10a] sm:$0xff] }
  0x61   : > { %v828_v58 = vmul.f32 %v1323_v22, %v1480_v20  ;;  %v659_v0 = vadd.f32 %v627_v36, %v559_v1  ;;  %v459_v21 = vadd.f32 %v427_v6, %v359_v57  ;;  %v628_v30 = vmul.f32 %v1354_v52, %v1476_v18 }
  0x62   : > { %v228_v31 = vmul.f32 %v1321_v34, %v1465_v11  ;;  %v1097_v32 = vadd.f32 %v1573_v48, %v1058_v5  ;;  %v959_v35 = vadd.f32 %v927_v63, %v859_v17  ;;  %v328_v24 = vmul.f32 %v1353_v46, %v1467_v12 }
  0x63   : > { %v428_v33 = vmul.f32 %v1385_v54, %v1469_v13  ;;  %v759_v41 = vadd.f32 %v727_v16, %v659_v0  ;;  %v928_v29 = vmul.f32 %v1355_v25, %v1487_v26  ;;  %v560_v44 = vadd.f32 %v528_v9, %v459_v21  ;;  %v1357_v9 = vld [vmem:[%s1463_s19 + $0x111] sm:$0xff] }
  0x64   : > { %v728_v45 = vmul.f32 %v1386_v56, %v1478_v19  ;;  %1130 = vst.msk [vmem:[%s1584_s27 + $0x78] sm:$0xff] %vm1114_vm0, %v1097_v32  ;;  %v1059_v49 = vadd.f32 %v1027_v28, %v959_v35  ;;  %v1028_v34 = vmul.f32 %v1492_v27, %v1387_v42  ;;  %v360_v43 = vadd.f32 %v328_v24, %v228_v31  ;;  %v1389_v0 = vld [vmem:[%s1463_s19 + $0x112] sm:$0xff]  ;;  %v1326_v32 = vld [vmem:[%s1463_s19 + $0x120] sm:$0xff] }
  0x65   : > { %v529_v46 = vmul.f32 %v1323_v22, %v1471_v14  ;;  %v860_v40 = vadd.f32 %v828_v58, %v759_v41  ;;  %v660_v50 = vadd.f32 %v628_v30, %v560_v44  ;;  %v829_v53 = vmul.f32 %v1324_v7, %v1480_v20  ;;  %v1358_v44 = vld [vmem:[%s1463_s19 + $0x121] sm:$0xff] }
  0x66   : > { %v629_v23 = vmul.f32 %v1355_v25, %v1476_v18  ;;  %v1098_v54 = vadd.f32 %v1573_v48, %v1059_v49  ;;  %v460_v39 = vadd.f32 %v428_v33, %v360_v43  ;;  %v229_v55 = vmul.f32 %v1322_v60, %v1465_v11 }
  0x67   : > { %v329_v8 = vmul.f32 %v1354_v52, %v1467_v12  ;;  %v960_v47 = vadd.f32 %v928_v29, %v860_v40  ;;  %v760_v62 = vadd.f32 %v728_v45, %v660_v50  ;;  %v929_v37 = vmul.f32 %v1356_v38, %v1487_v26 }
  0x68   : > { %v429_v59 = vmul.f32 %v1386_v56, %v1469_v13  ;;  %1131 = vst.msk [vmem:[%s1584_s27 + $0x80] sm:$0xff] %vm1114_vm0, %v1098_v54  ;;  %v561_v36 = vadd.f32 %v529_v46, %v460_v39  ;;  %v729_v51 = vmul.f32 %v1387_v42, %v1478_v19  ;;  %v530_v61 = vmul.f32 %v1324_v7, %v1471_v14  ;;  %v1327_v39 = vld [vmem:[%s1463_s19 + $0x128] sm:$0xff] }
  0x69   : > { %v361_v4 = vadd.f32 %v329_v8, %v229_v55  ;;  %v1060_v60 = vadd.f32 %v1028_v34, %v960_v47  ;;  %v861_v52 = vadd.f32 %v829_v53, %v760_v62  ;;  %v1029_v10 = vmul.f32 %v1492_v27, %v1388_v2  ;;  %v1390_v53 = vld [vmem:[%s1463_s19 + $0x122] sm:$0xff] }
  0x6a   : > { %v830_v15 = vmul.f32 %v1325_v3, %v1480_v20  ;;  %v661_v63 = vadd.f32 %v629_v23, %v561_v36  ;;  %v630_v56 = vmul.f32 %v1356_v38, %v1476_v18  ;;  %v230_v1 = vmul.f32 %v1323_v22, %v1465_v11 }
  0x6b   : > { %v461_v6 = vadd.f32 %v429_v59, %v361_v4  ;;  %v1099_v16 = vadd.f32 %v1573_v48, %v1060_v60  ;;  %v961_v57 = vadd.f32 %v929_v37, %v861_v52  ;;  %v330_v5 = vmul.f32 %v1355_v25, %v1467_v12 }
  0x6c   : > { %v430_v17 = vmul.f32 %v1387_v42, %v1469_v13  ;;  %v761_v28 = vadd.f32 %v729_v51, %v661_v63  ;;  %v930_v58 = vmul.f32 %v1357_v9, %v1487_v26  ;;  %v730_v30 = vmul.f32 %v1388_v2, %v1478_v19  ;;  %v1391_v63 = vld [vmem:[%s1463_s19 + $0x12a] sm:$0xff] }
  0x6d   : > { %v562_v21 = vadd.f32 %v530_v61, %v461_v6  ;;  %1132 = vst.msk [vmem:[%s1584_s27 + $0x88] sm:$0xff] %vm1114_vm0, %v1099_v16  ;;  %v1061_v31 = vadd.f32 %v1029_v10, %v961_v57  ;;  %v1030_v22 = vmul.f32 %v1492_v27, %v1389_v0  ;;  %v362_v35 = vadd.f32 %v330_v5, %v230_v1  ;;  %v1359_v61 = vld [vmem:[%s1463_s19 + $0x129] sm:$0xff]  ;;  %v1328_v16 = vld [vmem:[%s1463_s19 + $0x138] sm:$0xff] }
  0x6e   : > { %v531_v25 = vmul.f32 %v1325_v3, %v1471_v14  ;;  %v862_v24 = vadd.f32 %v830_v15, %v761_v28  ;;  %v831_v41 = vmul.f32 %v1326_v32, %v1480_v20  ;;  %v631_v29 = vmul.f32 %v1357_v9, %v1476_v18 }
  0x6f   : > { %v662_v33 = vadd.f32 %v630_v56, %v562_v21  ;;  %v1100_v42 = vadd.f32 %v1573_v48, %v1061_v31  ;;  %v462_v45 = vadd.f32 %v430_v17, %v362_v35  ;;  %v231_v49 = vmul.f32 %v1324_v7, %v1465_v11  ;;  %v1360_v21 = vld [vmem:[%s1463_s19 + $0x139] sm:$0xff] }
  0x70   : > { %v331_v34 = vmul.f32 %v1356_v38, %v1467_v12  ;;  %v962_v43 = vadd.f32 %v930_v58, %v862_v24  ;;  %v931_v40 = vmul.f32 %v1358_v44, %v1487_v26  ;;  %v431_v50 = vmul.f32 %v1388_v2, %v1469_v13 }
  0x71   : > { %v762_v46 = vadd.f32 %v730_v30, %v662_v33  ;;  %1133 = vst.msk [vmem:[%s1584_s27 + $0x90] sm:$0xff] %vm1114_vm0, %v1100_v42  ;;  %v563_v23 = vadd.f32 %v531_v25, %v462_v45  ;;  %v731_v54 = vmul.f32 %v1389_v0, %v1478_v19  ;;  %v532_v8 = vmul.f32 %v1326_v32, %v1471_v14  ;;  %v1392_v33 = vld [vmem:[%s1463_s19 + $0x13a] sm:$0xff] }
  0x72   : > { %v363_v55 = vadd.f32 %v331_v34, %v231_v49  ;;  %v1062_v7 = vadd.f32 %v1030_v22, %v962_v43  ;;  %v1031_v47 = vmul.f32 %v1492_v27, %v1390_v53  ;;  %v832_v62 = vmul.f32 %v1327_v39, %v1480_v20  ;;  %v1329_v42 = vld [vmem:[%s1463_s19 + $0x140] sm:$0xff]  ;;  %v1896_v34 = vld [vmem:[%s2038_s1 + $0x8] ss:$0 sm:$0xff] }
  0x73   : > { %v863_v38 = vadd.f32 %v831_v41, %v762_v46  ;;  %v663_v37 = vadd.f32 %v631_v29, %v563_v23  ;;  %v632_v2 = vmul.f32 %v1358_v44, %v1476_v18  ;;  %v232_v36 = vmul.f32 %v1325_v3, %v1465_v11 }
  0x74   : > { %v463_v59 = vadd.f32 %v431_v50, %v363_v55  ;;  %v1101_v51 = vadd.f32 %v1573_v48, %v1062_v7  ;;  %v332_v60 = vmul.f32 %v1357_v9, %v1467_v12  ;;  %v432_v52 = vmul.f32 %v1389_v0, %v1469_v13 }
  0x75   : > { %v963_v4 = vadd.f32 %v931_v40, %v863_v38  ;;  %v763_v10 = vadd.f32 %v731_v54, %v663_v37  ;;  %v932_v15 = vmul.f32 %v1359_v61, %v1487_v26  ;;  %v732_v56 = vmul.f32 %v1390_v53, %v1478_v19  ;;  %v1393_v37 = vld [vmem:[%s1463_s19 + $0x142] sm:$0xff] }
  0x76   : > { %v564_v6 = vadd.f32 %v532_v8, %v463_v59  ;;  %1134 = vst.msk [vmem:[%s1584_s27 + $0x98] sm:$0xff] %vm1114_vm0, %v1101_v51  ;;  %v1032_v3 = vmul.f32 %v1492_v27, %v1391_v63  ;;  %v364_v57 = vadd.f32 %v332_v60, %v232_v36  ;;  %v533_v9 = vmul.f32 %v1327_v39, %v1471_v14  ;;  %v1361_v8 = vld [vmem:[%s1463_s19 + $0x141] sm:$0xff]  ;;  %v1330_v51 = vld [vmem:[%s1463_s19 + $0x150] sm:$0xff] }
  0x77   : > { %v1063_v1 = vadd.f32 %v1031_v47, %v963_v4  ;;  %v864_v5 = vadd.f32 %v832_v62, %v763_v10  ;;  %v833_v28 = vmul.f32 %v1328_v16, %v1480_v20  ;;  %v633_v58 = vmul.f32 %v1359_v61, %v1476_v18 }
  0x78   : > { %v664_v17 = vadd.f32 %v632_v2, %v564_v6  ;;  %v464_v30 = vadd.f32 %v432_v52, %v364_v57  ;;  %v233_v31 = vmul.f32 %v1326_v32, %v1465_v11  ;;  %v333_v27 = vmul.f32 %v1358_v44, %v1467_v12  ;;  %v1362_v6 = vld [vmem:[%s1463_s19 + $0x151] sm:$0xff] }
  0x79   : > { %v1102_v0 = vadd.f32 %v1573_v48, %v1063_v1  ;;  %v964_v22 = vadd.f32 %v932_v15, %v864_v5  ;;  %v933_v25 = vmul.f32 %v1360_v21, %v1487_v26  ;;  %v433_v24 = vmul.f32 %v1390_v53, %v1469_v13 }
  0x7a   : > { %v764_v35 = vadd.f32 %v732_v56, %v664_v17  ;;  %v565_v41 = vadd.f32 %v533_v9, %v464_v30  ;;  %v733_v29 = vmul.f32 %v1391_v63, %v1478_v19  ;;  %v365_v45 = vadd.f32 %v333_v27, %v233_v31  ;;  %v1331_v30 = vld [vmem:[%s1463_s19 + $0x158] sm:$0xff] }
  0x7b   : > { %1135 = vst.msk [vmem:[%s1584_s27 + $0xa0] sm:$0xff] %vm1114_vm0, %v1102_v0  ;;  %v534_v49 = vmul.f32 %v1328_v16, %v1471_v14  ;;  %v1064_v32 = vadd.f32 %v1032_v3, %v964_v22  ;;  %v1033_v43 = vmul.f32 %v1896_v34, %v1392_v33  ;;  %v834_v46 = vmul.f32 %v1329_v42, %v1480_v20 }
  0x7c   : > { %v865_v44 = vadd.f32 %v833_v28, %v764_v35  ;;  %v665_v40 = vadd.f32 %v633_v58, %v565_v41  ;;  %v465_v50 = vadd.f32 %v433_v24, %v365_v45  ;;  %v634_v53 = vmul.f32 %v1360_v21, %v1476_v18  ;;  %v1394_v28 = vld [vmem:[%s1463_s19 + $0x152] sm:$0xff] }
  0x7d   : > { %v234_v23 = vmul.f32 %v1327_v39, %v1465_v11  ;;  %v1103_v54 = vadd.f32 %v1573_v48, %v1064_v32  ;;  %v334_v7 = vmul.f32 %v1359_v61, %v1467_v12  ;;  %v434_v38 = vmul.f32 %v1391_v63, %v1469_v13 }
  0x7e   : > { %v965_v55 = vadd.f32 %v933_v25, %v865_v44  ;;  %v765_v47 = vadd.f32 %v733_v29, %v665_v40  ;;  %v934_v62 = vmul.f32 %v1361_v8, %v1487_v26  ;;  %v566_v59 = vadd.f32 %v534_v49, %v465_v50  ;;  %v1363_v49 = vld [vmem:[%s1463_s19 + $0x159] sm:$0xff] }
  0x7f   : > { %v734_v2 = vmul.f32 %v1392_v33, %v1478_v19  ;;  %1136 = vst.msk [vmem:[%s1584_s27 + $0xa8] sm:$0xff] %vm1114_vm0, %v1103_v54  ;;  %v1034_v39 = vmul.f32 %v1896_v34, %v1393_v37  ;;  %v366_v4 = vadd.f32 %v334_v7, %v234_v23  ;;  %v535_v61 = vmul.f32 %v1329_v42, %v1471_v14  ;;  %v1395_v40 = vld [vmem:[%s1463_s19 + $0x15a] sm:$0xff] }
  0x80   : > { %v1065_v36 = vadd.f32 %v1033_v43, %v965_v55  ;;  %v866_v60 = vadd.f32 %v834_v46, %v765_v47  ;;  %v666_v52 = vadd.f32 %v634_v53, %v566_v59  ;;  %v835_v10 = vmul.f32 %v1330_v51, %v1480_v20  ;;  %v1364_v59 = vld [vmem:[%s1463_s19 + $0x169] sm:$0xff] }
  0x81   : > { %v635_v15 = vmul.f32 %v1361_v8, %v1476_v18  ;;  %v466_v56 = vadd.f32 %v434_v38, %v366_v4  ;;  %v235_v1 = vmul.f32 %v1328_v16, %v1465_v11  ;;  %v335_v3 = vmul.f32 %v1360_v21, %v1467_v12 }
  0x82   : > { %v1104_v63 = vadd.f32 %v1573_v48, %v1065_v36  ;;  %v966_v57 = vadd.f32 %v934_v62, %v866_v60  ;;  %v766_v9 = vadd.f32 %v734_v2, %v666_v52  ;;  %v935_v5 = vmul.f32 %v1362_v6, %v1487_v26  ;;  %v1949_v62 = vld [vmem:[%s2039_s2] ss:$0 sm:$0xff] }
  0x83   : > { %v435_v17 = vmul.f32 %v1392_v33, %v1469_v13  ;;  %v567_v58 = vadd.f32 %v535_v61, %v466_v56  ;;  %v735_v0 = vmul.f32 %v1393_v37, %v1478_v19  ;;  %v367_v31 = vadd.f32 %v335_v3, %v235_v1  ;;  %v1333_v56 = vld [vmem:[%s1463_s19 + $0x170] sm:$0xff] }
  0x84   : > { %1137 = vst.msk [vmem:[%s1584_s27 + $0xb0] sm:$0xff] %vm1114_vm0, %v1104_v63  ;;  %v536_v27 = vmul.f32 %v1330_v51, %v1471_v14  ;;  %v1066_v16 = vadd.f32 %v1034_v39, %v966_v57  ;;  %v867_v21 = vadd.f32 %v835_v10, %v766_v9  ;;  %v1035_v22 = vmul.f32 %v1896_v34, %v1394_v28  ;;  %v1396_v10 = vld [vmem:[%s1463_s19 + $0x16a] sm:$0xff] }
  0x85   : > { %v836_v35 = vmul.f32 %v1331_v30, %v1480_v20  ;;  %v667_v25 = vadd.f32 %v635_v15, %v567_v58  ;;  %v467_v24 = vadd.f32 %v435_v17, %v367_v31  ;;  %v636_v33 = vmul.f32 %v1362_v6, %v1476_v18 }
  0x86   : > { %v236_v41 = vmul.f32 %v1329_v42, %v1465_v11  ;;  %v1105_v29 = vadd.f32 %v1573_v48, %v1066_v16  ;;  %v967_v45 = vadd.f32 %v935_v5, %v867_v21  ;;  %v336_v32 = vmul.f32 %v1361_v8, %v1467_v12  ;;  %v1332_v48 = vld [vmem:[%s1463_s19 + $0x168] sm:$0xff] }
  0x87   : > { %v436_v44 = vmul.f32 %v1393_v37, %v1469_v13  ;;  %v767_v43 = vadd.f32 %v735_v0, %v667_v25  ;;  %v936_v46 = vmul.f32 %v1363_v49, %v1487_v26  ;;  %v568_v50 = vadd.f32 %v536_v27, %v467_v24  ;;  %v1365_v27 = vld [vmem:[%s1463_s19 + $0x171] sm:$0xff] }
  0x88   : > { %v736_v53 = vmul.f32 %v1394_v28, %v1478_v19  ;;  %1138 = vst.msk [vmem:[%s1584_s27 + $0xb8] sm:$0xff] %vm1114_vm0, %v1105_v29  ;;  %v1067_v23 = vadd.f32 %v1035_v22, %v967_v45  ;;  %v1036_v42 = vmul.f32 %v1896_v34, %v1395_v40  ;;  %v368_v54 = vadd.f32 %v336_v32, %v236_v41  ;;  %v1397_v25 = vld [vmem:[%s1463_s19 + $0x172] sm:$0xff]  ;;  %v1334_v29 = vld [vmem:[%s1463_s19 + $0x180] sm:$0xff] }
  0x89   : > { %v537_v55 = vmul.f32 %v1331_v30, %v1471_v14  ;;  %v868_v8 = vadd.f32 %v836_v35, %v767_v43  ;;  %v668_v7 = vadd.f32 %v636_v33, %v568_v50  ;;  %v837_v38 = vmul.f32 %v1332_v48, %v1480_v20  ;;  %v1366_v50 = vld [vmem:[%s1463_s19 + $0x181] sm:$0xff] }
  0x8a   : > { %v637_v47 = vmul.f32 %v1363_v49, %v1476_v18  ;;  %v1106_v37 = vadd.f32 %v1949_v62, %v1067_v23  ;;  %v468_v2 = vadd.f32 %v436_v44, %v368_v54  ;;  %v237_v36 = vmul.f32 %v1330_v51, %v1465_v11 }
  0x8b   : > { %v337_v39 = vmul.f32 %v1362_v6, %v1467_v12  ;;  %v968_v4 = vadd.f32 %v936_v46, %v868_v8  ;;  %v768_v61 = vadd.f32 %v736_v53, %v668_v7  ;;  %v937_v60 = vmul.f32 %v1364_v59, %v1487_v26 }
  0x8c   : > { %v437_v52 = vmul.f32 %v1394_v28, %v1469_v13  ;;  %1139 = vst.msk [vmem:[%s1584_s27 + $0xc0] sm:$0xff] %vm1114_vm0, %v1106_v37  ;;  %v569_v15 = vadd.f32 %v537_v55, %v468_v2  ;;  %v737_v63 = vmul.f32 %v1395_v40, %v1478_v19  ;;  %v538_v3 = vmul.f32 %v1332_v48, %v1471_v14  ;;  %v1335_v2 = vld [vmem:[%s1463_s19 + $0x188] sm:$0xff] }
  0x8d   : > { %v369_v1 = vadd.f32 %v337_v39, %v237_v36  ;;  %v1068_v51 = vadd.f32 %v1036_v42, %v968_v4  ;;  %v869_v6 = vadd.f32 %v837_v38, %v768_v61  ;;  %v1037_v57 = vmul.f32 %v1896_v34, %v1396_v10  ;;  %v1398_v38 = vld [vmem:[%s1463_s19 + $0x182] sm:$0xff] }
  0x8e   : > { %v838_v9 = vmul.f32 %v1333_v56, %v1480_v20  ;;  %v669_v5 = vadd.f32 %v637_v47, %v569_v15  ;;  %v638_v28 = vmul.f32 %v1364_v59, %v1476_v18  ;;  %v238_v58 = vmul.f32 %v1331_v30, %v1465_v11 }
  0x8f   : > { %v469_v17 = vadd.f32 %v437_v52, %v369_v1  ;;  %v1107_v0 = vadd.f32 %v1949_v62, %v1068_v51  ;;  %v969_v31 = vadd.f32 %v937_v60, %v869_v6  ;;  %v338_v16 = vmul.f32 %v1363_v49, %v1467_v12  ;;  %v1336_v51 = vld [vmem:[%s1463_s19 + $0x198] sm:$0xff] }
  0x90   : > { %v438_v21 = vmul.f32 %v1395_v40, %v1469_v13  ;;  %v769_v22 = vadd.f32 %v737_v63, %v669_v5  ;;  %v938_v35 = vmul.f32 %v1365_v27, %v1487_v26  ;;  %v738_v33 = vmul.f32 %v1396_v10, %v1478_v19 }
  0x91   : > { %v570_v24 = vadd.f32 %v538_v3, %v469_v17  ;;  %1140 = vst.msk [vmem:[%s1584_s27 + $0xc8] sm:$0xff] %vm1114_vm0, %v1107_v0  ;;  %v1069_v41 = vadd.f32 %v1037_v57, %v969_v31  ;;  %v1038_v30 = vmul.f32 %v1896_v34, %v1397_v25  ;;  %v370_v45 = vadd.f32 %v338_v16, %v238_v58  ;;  %v1367_v3 = vld [vmem:[%s1463_s19 + $0x189] sm:$0xff] }
  0x92   : > { %v539_v49 = vmul.f32 %v1333_v56, %v1471_v14  ;;  %v870_v32 = vadd.f32 %v838_v9, %v769_v22  ;;  %v839_v43 = vmul.f32 %v1334_v29, %v1480_v20  ;;  %v639_v46 = vmul.f32 %v1365_v27, %v1476_v18  ;;  %v1400_v22 = vld [vmem:[%s1463_s19 + $0x19a] sm:$0xff] }
  0x93   : > { %v670_v44 = vadd.f32 %v638_v28, %v570_v24  ;;  %v1108_v40 = vadd.f32 %v1949_v62, %v1069_v41  ;;  %v470_v53 = vadd.f32 %v438_v21, %v370_v45  ;;  %v239_v23 = vmul.f32 %v1332_v48, %v1465_v11 }
  0x94   : > { %v339_v42 = vmul.f32 %v1364_v59, %v1467_v12  ;;  %v970_v54 = vadd.f32 %v938_v35, %v870_v32  ;;  %v939_v8 = vmul.f32 %v1366_v50, %v1487_v26  ;;  %v439_v7 = vmul.f32 %v1396_v10, %v1469_v13 }
  0x95   : > { %v770_v55 = vadd.f32 %v738_v33, %v670_v44  ;;  %1141 = vst.msk [vmem:[%s1584_s27 + $0xd0] sm:$0xff] %vm1114_vm0, %v1108_v40  ;;  %v571_v47 = vadd.f32 %v539_v49, %v470_v53  ;;  %v739_v37 = vmul.f32 %v1397_v25, %v1478_v19  ;;  %v540_v48 = vmul.f32 %v1334_v29, %v1471_v14  ;;  %v1369_v44 = vld [vmem:[%s1463_s19 + $0x1a1] sm:$0xff] }
  0x96   : > { %v371_v36 = vadd.f32 %v339_v42, %v239_v23  ;;  %v1070_v39 = vadd.f32 %v1038_v30, %v970_v54  ;;  %v1039_v4 = vmul.f32 %v1896_v34, %v1398_v38  ;;  %v840_v61 = vmul.f32 %v1335_v2, %v1480_v20 }
  0x97   : > { %v871_v59 = vadd.f32 %v839_v43, %v770_v55  ;;  %v671_v60 = vadd.f32 %v639_v46, %v571_v47  ;;  %v640_v10 = vmul.f32 %v1366_v50, %v1476_v18  ;;  %v240_v15 = vmul.f32 %v1333_v56, %v1465_v11  ;;  %v1399_v11 = vld [vmem:[%s1463_s19 + $0x18a] sm:$0xff]  ;;  %v1368_v56 = vld [vmem:[%s1463_s19 + $0x199] sm:$0xff]  ;;  %v1401_v50 = vld [vmem:[%s1463_s19 + $0x1a2] sm:$0xff] }
  0x98   : > { %v471_v52 = vadd.f32 %v439_v7, %v371_v36  ;;  %v1109_v63 = vadd.f32 %v1949_v62, %v1070_v39  ;;  %v340_v6 = vmul.f32 %v1365_v27, %v1467_v12  ;;  %v440_v57 = vmul.f32 %v1397_v25, %v1469_v13 }
  0x99   : > { %v971_v1 = vadd.f32 %v939_v8, %v871_v59  ;;  %v771_v9 = vadd.f32 %v739_v37, %v671_v60  ;;  %v940_v5 = vmul.f32 %v1367_v3, %v1487_v26  ;;  %v740_v28 = vmul.f32 %v1398_v38, %v1478_v19 }
  0x9a   : > { %v572_v17 = vadd.f32 %v540_v48, %v471_v52  ;;  %1142 = vst.msk [vmem:[%s1584_s27 + $0xd8] sm:$0xff] %vm1114_vm0, %v1109_v63  ;;  %v372_v0 = vadd.f32 %v340_v6, %v240_v15  ;;  %v541_v31 = vmul.f32 %v1335_v2, %v1471_v14  ;;  %v1040_v13 = vmul.f32 %v1896_v34, %v1399_v11  ;;  %v1337_v14 = vld [vmem:[%s1463_s19 + $0x1a0] sm:$0xff] }
  0x9b   : > { %v1071_v58 = vadd.f32 %v1039_v4, %v971_v1  ;;  %v872_v12 = vadd.f32 %v840_v61, %v771_v9  ;;  %v841_v16 = vmul.f32 %v1336_v51, %v1480_v20  ;;  %v641_v25 = vmul.f32 %v1367_v3, %v1476_v18 }
  0x9c   : > { %v672_v27 = vadd.f32 %v640_v10, %v572_v17  ;;  %v472_v35 = vadd.f32 %v440_v57, %v372_v0  ;;  %v941_v41 = vmul.f32 %v1368_v56, %v1487_v26  ;;  %v741_v29 = vmul.f32 %v1399_v11, %v1478_v19 }
  0x9d   : > { %v1110_v21 = vadd.f32 %v1949_v62, %v1071_v58  ;;  %v972_v24 = vadd.f32 %v940_v5, %v872_v12  ;;  %v1041_v32 = vmul.f32 %v1896_v34, %v1400_v22  ;;  %v842_v18 = vmul.f32 %v1337_v14, %v1480_v20 }
  0x9e   : > { %v772_v33 = vadd.f32 %v740_v28, %v672_v27  ;;  %v573_v30 = vadd.f32 %v541_v31, %v472_v35  ;;  %v942_v23 = vmul.f32 %v1369_v44, %v1487_v26  ;;  %v1042_v54 = vmul.f32 %v1896_v34, %v1401_v50 }
  0x9f   : > { %1143 = vst.msk [vmem:[%s1584_s27 + $0xe0] sm:$0xff] %vm1114_vm0, %v1110_v21  ;;  %v1072_v45 = vadd.f32 %v1040_v13, %v972_v24 }
  0xa0   : > { %v873_v49 = vadd.f32 %v841_v16, %v772_v33  ;;  %v673_v43 = vadd.f32 %v641_v25, %v573_v30 }
  0xa1   : > { %v1111_v46 = vadd.f32 %v1949_v62, %v1072_v45 }
  0xa2   : > { %v973_v40 = vadd.f32 %v941_v41, %v873_v49  ;;  %v773_v53 = vadd.f32 %v741_v29, %v673_v43 }
  0xa3   : > { %1144 = vst.msk [vmem:[%s1584_s27 + $0xe8] sm:$0xff] %vm1114_vm0, %v1111_v46 }
  0xa4   : > { %v1073_v19 = vadd.f32 %v1041_v32, %v973_v40  ;;  %v874_v42 = vadd.f32 %v842_v18, %v773_v53 }
  0xa6   : > { %v1112_v55 = vadd.f32 %v1949_v62, %v1073_v19  ;;  %v974_v8 = vadd.f32 %v942_v23, %v874_v42 }
  0xa8   : > { %1145 = vst.msk [vmem:[%s1584_s27 + $0xf0] sm:$0xff] %vm1114_vm0, %v1112_v55  ;;  %v1074_v7 = vadd.f32 %v1042_v54, %v974_v8 }
  0xaa   : > { %v1113_v20 = vadd.f32 %v1949_v62, %v1074_v7 }
  0xac   : > { %1146 = vst.msk [vmem:[%s1584_s27 + $0xf8] sm:$0xff] %vm1114_vm0, %v1113_v20 }
  0xad PF: > { %s13_s12 = sadd.s32 1, %s1424_s12  }
  0xae   : > { %p10_p4 = scmp.ge.s32.totalorder %s13_s12, 4  }
  0xb0   :  { %12 = sbr.rel (!%p10_p4) target bundleno = 1 (0x1), region = 64 }

// kernel: fasa_forward.9
= control target key start
LH: loop header
LB: loop body
LE: loop exit
PB: predicated region body
PF: predicated region fallthrough
CT: control target
= control target key end

     0   :  { %s7123_s9 = smov 0   ;;  %s10401_s0 = inlined_call_operand.vmem [shape: f32[2,256,32], index: 0, kind: input, shape index: {}]   ;;  %s10402_s1 = inlined_call_operand.vmem [shape: f32[2,64,64], index: 1, kind: input, shape index: {}]   ;;  %s10403_s2 = inlined_call_operand.vmem [shape: f32[2,256,32], index: 2, kind: output, shape index: {}]  }
   0x1 LB: > { %s5108_s10 = sadd.s32 4294967295, %s7096_s9   ;;  %p5112_p0 = scmp.ge.s32.totalorder %s7096_s9, 1  ;;  %s7096_s9 = sphi %s7123_s9, %s12_s9  }
   0x2   : > { %p122_p1 = scmp.lt.s32.totalorder %s7096_s9, 3 }
   0x4   : > { %p123_p2 = pnand %p5112_p0, %p122_p1 }
   0x6   : > { %126 = sbr.rel (%p123_p2) target bundleno = 1507 (0x5e3), region = 28 }
   0xd   : > { %p149_p3 = scmp.lt.s32.totalorder %s5108_s10, 1  ;;  %vm236_vm0 = vcmask 64512   ;;  %s7098_s19 = smov 96   ;;  %vm582_vm2 = vcmask 523264   ;;  %vm4942_vm3 = vcmask 130048   ;;  %vm4975_vm4 = vcmask 195584  }
   0xe   : > { %vm7142_vm1 = vmpackc.low %vm236_vm0, %vm236_vm0  ;;  %s7099_s20 = smov 120   ;;  %s7100_s21 = smov 112   ;;  %vm5008_vm5 = vcmask 261120  }
   0xf   : > { %s10859_s10 = smov (!%p149_p3, %s5108_s10), 1  ;;  %s7101_s22 = smov 104  }
  0x10   : > { %s5409_s11 = sshll.u32 %s10859_s10, 8  ;;  %s5410_s12 = sshll.u32 %s10859_s10, 6 }
  0x11   : > { %s7138_s15 = scalar_lea.vmem %s10402_s1, %s5410_s12  ;;  %s7151_s18 = scalar_lea.vmem %s10401_s0, %s5409_s11 }
  0x12   : > { %v228_v1 = vld [vmem:[%s7138_s15] sm:$0xff]  ;;  %v229_v2 = vld [vmem:[%s7138_s15 + $0x8] sm:$0xff]  ;;  %v230_v3 = vld [vmem:[%s7138_s15 + $0x10] sm:$0xff]  ;;  %s7102_s23 = smov 88   ;;  %s7103_s24 = smov 80  }
  0x13   : > { %v6244_v4 = vpack.c.bf16 %v229_v2, %v228_v1  ;;  %v7156_v5 = vpack.i.bf16 %v229_v2, %v228_v1  ;;  %v231_v6 = vld [vmem:[%s7138_s15 + $0x18] sm:$0xff]  ;;  %v164_v7 = vld [vmem:[%s7151_s18] sm:$0xff]  ;;  %v166_v11 = vld [vmem:[%s7151_s18 + $0x10] sm:$0xff]  ;;  %s7104_s25 = smov 72   ;;  %s7105_s26 = smov 8  }
  0x14   : > { %v6250_v8 = vpack.c.bf16 %v231_v6, %v230_v3  ;;  %v7160_v9 = vmul.f32 0.35355338, %v164_v7  ;;  %v7162_v10 = vpack.i.bf16 %v231_v6, %v230_v3  ;;  %v232_v12 = vld [vmem:[%s7138_s15 + $0x20] sm:$0xff]  ;;  %v233_v13 = vld [vmem:[%s7138_s15 + $0x28] sm:$0xff]  ;;  %v7181_v15 = vmul.f32 0.35355338, %v166_v11  ;;  %s10212_s3 = scalar_lea.vmem %s10403_s2, %s5409_s11 }
  0x15   : > { %6246 = vmatprep.subr.msk.bf16.mxu0 %vm7142_vm1, %v6244_v4  ;;  %6431 = vrot.lane.b32.xlu0 %v7156_v5, %s7098_s19  ;;  %v7177_v14 = vpack.i.bf16 %v233_v13, %v232_v12  ;;  %v168_v16 = vld [vmem:[%s7151_s18 + $0x20] sm:$0xff]  ;;  %v234_v17 = vld [vmem:[%s7138_s15 + $0x30] sm:$0xff]  ;;  %v235_v18 = vld [vmem:[%s7138_s15 + $0x38] sm:$0xff]  ;;  %v6256_v19 = vpack.c.bf16 %v233_v13, %v232_v12  ;;  %s7106_s27 = smov 16   ;;  %s7107_s28 = smov 24  }
  0x16   : > { %6249 = vmatpush3.bf16.xpose.msk.msra.mxu0 %vm7142_vm1, %v6244_v4  ;;  %5748 = vmatprep.mubr.msk.f32.mxu0 %vm236_vm0, %v7160_v9  ;;  %v7187_v20 = vpack.i.bf16 %v235_v18, %v234_v17  ;;  %v7191_v21 = vmul.f32 0.35355338, %v168_v16  ;;  %v170_v22 = vld [vmem:[%s7151_s18 + $0x30] sm:$0xff]  ;;  %v165_v23 = vld [vmem:[%s7151_s18 + $0x8] sm:$0xff]  ;;  %v172_v26 = vld [vmem:[%s7151_s18 + $0x40] sm:$0xff]  ;;  %v6262_v28 = vpack.c.bf16 %v235_v18, %v234_v17 }
  0x17   : > { %6252 = vmatprep.subr.msk.bf16.mxu0 %vm7142_vm1, %v6250_v8  ;;  %6436 = vrot.lane.b32.xlu1 %v7162_v10, %s7098_s19  ;;  %v7202_v24 = vmul.f32 0.35355338, %v170_v22  ;;  %v7204_v25 = vmul.f32 0.35355338, %v165_v23  ;;  %v167_v27 = vld [vmem:[%s7151_s18 + $0x18] sm:$0xff]  ;;  %v174_v31 = vld [vmem:[%s7151_s18 + $0x50] sm:$0xff] }
  0x18   : > { %v7212_v29 = vmul.f32 0.35355338, %v172_v26  ;;  %v7214_v30 = vmul.f32 0.35355338, %v167_v27  ;;  %v169_v32 = vld [vmem:[%s7151_s18 + $0x28] sm:$0xff]  ;;  %v176_v35 = vld [vmem:[%s7151_s18 + $0x60] sm:$0xff] }
  0x19   : > { %1280 = vrot.lane.b32.xlu0 %v7160_v9, %s7099_s20  ;;  %v7226_v33 = vmul.f32 0.35355338, %v174_v31  ;;  %v7228_v34 = vmul.f32 0.35355338, %v169_v32  ;;  %v171_v36 = vld [vmem:[%s7151_s18 + $0x38] sm:$0xff]  ;;  %v178_v39 = vld [vmem:[%s7151_s18 + $0x70] sm:$0xff] }
  0x1a   : > { %v7236_v37 = vmul.f32 0.35355338, %v176_v35  ;;  %v7238_v38 = vmul.f32 0.35355338, %v171_v36  ;;  %v173_v40 = vld [vmem:[%s7151_s18 + $0x48] sm:$0xff]  ;;  %v180_v43 = vld [vmem:[%s7151_s18 + $0x80] sm:$0xff] }
  0x1b   : > { %6441 = vrot.lane.b32.xlu1 %v7177_v14, %s7098_s19  ;;  %v7248_v41 = vmul.f32 0.35355338, %v178_v39  ;;  %v7250_v42 = vmul.f32 0.35355338, %v173_v40  ;;  %v175_v44 = vld [vmem:[%s7151_s18 + $0x58] sm:$0xff]  ;;  %v182_v47 = vld [vmem:[%s7151_s18 + $0x90] sm:$0xff] }
  0x1c   : > { %v7260_v45 = vmul.f32 0.35355338, %v180_v43  ;;  %v7262_v46 = vmul.f32 0.35355338, %v175_v44  ;;  %v177_v48 = vld [vmem:[%s7151_s18 + $0x68] sm:$0xff]  ;;  %v184_v51 = vld [vmem:[%s7151_s18 + $0xa0] sm:$0xff] }
  0x1d   : > { %1284 = vrot.lane.b32.xlu0 %v7181_v15, %s7099_s20  ;;  %v7274_v49 = vmul.f32 0.35355338, %v182_v47  ;;  %v7276_v50 = vmul.f32 0.35355338, %v177_v48  ;;  %v179_v52 = vld [vmem:[%s7151_s18 + $0x78] sm:$0xff]  ;;  %v186_v55 = vld [vmem:[%s7151_s18 + $0xb0] sm:$0xff] }
  0x1e   : > { %6255 = vmatpush3.bf16.xpose.msk.msra.mxu0 %vm7142_vm1, %v6250_v8  ;;  %v7288_v53 = vmul.f32 0.35355338, %v184_v51  ;;  %v7290_v54 = vmul.f32 0.35355338, %v179_v52  ;;  %v181_v56 = vld [vmem:[%s7151_s18 + $0x88] sm:$0xff]  ;;  %v188_v59 = vld [vmem:[%s7151_s18 + $0xc0] sm:$0xff] }
  0x1f   : > { %6258 = vmatprep.subr.msk.bf16.mxu0 %vm7142_vm1, %v6256_v19  ;;  %6446 = vrot.lane.b32.xlu1 %v7187_v20, %s7098_s19  ;;  %v7302_v57 = vmul.f32 0.35355338, %v186_v55  ;;  %v7304_v58 = vmul.f32 0.35355338, %v181_v56  ;;  %v183_v60 = vld [vmem:[%s7151_s18 + $0x98] sm:$0xff]  ;;  %v190_v63 = vld [vmem:[%s7151_s18 + $0xd0] sm:$0xff] }
  0x20   : > { %v7316_v61 = vmul.f32 0.35355338, %v188_v59  ;;  %v7318_v62 = vmul.f32 0.35355338, %v183_v60  ;;  %v185_v1 = vld [vmem:[%s7151_s18 + $0xa8] sm:$0xff]  ;;  %v192_v4 = vld [vmem:[%s7151_s18 + $0xe0] sm:$0xff] }
  0x21   : > { %1288 = vrot.lane.b32.xlu0 %v7191_v21, %s7099_s20  ;;  %v7330_v2 = vmul.f32 0.35355338, %v190_v63  ;;  %v7332_v3 = vmul.f32 0.35355338, %v185_v1  ;;  %v187_v6 = vld [vmem:[%s7151_s18 + $0xb8] sm:$0xff]  ;;  %v194_v11 = vld [vmem:[%s7151_s18 + $0xf0] sm:$0xff] }
  0x22   : > { %v7344_v7 = vmul.f32 0.35355338, %v192_v4  ;;  %v7346_v8 = vmul.f32 0.35355338, %v187_v6  ;;  %v189_v12 = vld [vmem:[%s7151_s18 + $0xc8] sm:$0xff]  ;;  %v191_v17 = vld [vmem:[%s7151_s18 + $0xd8] sm:$0xff] }
  0x23   : > { %1282 = vrot.lane.b32.xlu1 %v7204_v25, %s7099_s20  ;;  %v7358_v13 = vmul.f32 0.35355338, %v194_v11  ;;  %v7360_v16 = vmul.f32 0.35355338, %v189_v12  ;;  %v7371_v18 = vmul.f32 0.35355338, %v191_v17 }
  0x24   : > { %v195_v23 = vld [vmem:[%s7151_s18 + $0xf8] sm:$0xff] }
  0x25   : > { %1292 = vrot.lane.b32.xlu0 %v7202_v24, %s7099_s20  ;;  %v7393_v26 = vmul.f32 0.35355338, %v195_v23 }
  0x26   : > { %6261 = vmatpush3.bf16.xpose.msk.msra.mxu0 %vm7142_vm1, %v6256_v19  ;;  %v193_v19 = vld [vmem:[%s7151_s18 + $0xe8] sm:$0xff] }
  0x27   : > { %6264 = vmatprep.subr.msk.bf16.mxu0 %vm7142_vm1, %v6262_v28  ;;  %1286 = vrot.lane.b32.xlu1 %v7214_v30, %s7099_s20  ;;  %v7382_v22 = vmul.f32 0.35355338, %v193_v19 }
  0x29   : > { %1296 = vrot.lane.b32.xlu0 %v7212_v29, %s7099_s20 }
  0x2b   : > { %1290 = vrot.lane.b32.xlu1 %v7228_v34, %s7099_s20 }
  0x2d   : > { %1300 = vrot.lane.b32.xlu0 %v7226_v33, %s7099_s20 }
  0x2e   : > { %6267 = vmatpush3.bf16.xpose.msk.msra.mxu0 %vm7142_vm1, %v6262_v28 }
  0x2f   : > { %1294 = vrot.lane.b32.xlu1 %v7238_v38, %s7099_s20 }
  0x31   : > { %1304 = vrot.lane.b32.xlu0 %v7236_v37, %s7099_s20 }
  0x33   : > { %1298 = vrot.lane.b32.xlu1 %v7250_v42, %s7099_s20 }
  0x35   : > { %5749 = vmatmul.mubr.msk.f32.vlgmr.msra.gmra.mrb[0].mxu0 %vm236_vm0, %v7204_v25  ;;  %1308 = vrot.lane.b32.xlu0 %v7248_v41, %s7099_s20 }
  0x36   : > { %5751 = vmatprep.mubr.msk.f32.mxu0 %vm236_vm0, %v7181_v15 }
  0x37   : > { %1302 = vrot.lane.b32.xlu1 %v7262_v46, %s7099_s20 }
  0x39   : > { %5752 = vmatmul.mubr.msk.f32.gmra.mrb[2].mxu0 %vm236_vm0, %v7214_v30  ;;  %1312 = vrot.lane.b32.xlu0 %v7260_v45, %s7099_s20 }
  0x3a   : > { %5754 = vmatprep.mubr.msk.f32.mxu0 %vm236_vm0, %v7191_v21 }
  0x3b   : > { %1306 = vrot.lane.b32.xlu1 %v7276_v50, %s7099_s20 }
  0x3d   : > { %5755 = vmatmul.mubr.msk.f32.gmra.mrb[4].mxu0 %vm236_vm0, %v7228_v34  ;;  %1316 = vrot.lane.b32.xlu0 %v7274_v49, %s7099_s20 }
  0x3e   : > { %5757 = vmatprep.mubr.msk.f32.mxu0 %vm236_vm0, %v7202_v24 }
  0x3f   : > { %1310 = vrot.lane.b32.xlu1 %v7290_v54, %s7099_s20 }
  0x41   : > { %5758 = vmatmul.mubr.msk.f32.gmra.mrb[6].mxu0 %vm236_vm0, %v7238_v38  ;;  %1320 = vrot.lane.b32.xlu0 %v7288_v53, %s7099_s20 }
  0x42   : > { %5760 = vmatprep.mubr.msk.f32.mxu0 %vm236_vm0, %v7212_v29 }
  0x43   : > { %1314 = vrot.lane.b32.xlu1 %v7304_v58, %s7099_s20 }
  0x45   : > { %5761 = vmatmul.mubr.msk.f32.gmra.mrb[8].mxu0 %vm236_vm0, %v7250_v42  ;;  %1324 = vrot.lane.b32.xlu0 %v7302_v57, %s7099_s20 }
  0x46   : > { %5763 = vmatprep.mubr.msk.f32.mxu0 %vm236_vm0, %v7226_v33 }
  0x47   : > { %1318 = vrot.lane.b32.xlu1 %v7318_v62, %s7099_s20 }
  0x49   : > { %5764 = vmatmul.mubr.msk.f32.gmra.mrb[10].mxu0 %vm236_vm0, %v7262_v46  ;;  %1328 = vrot.lane.b32.xlu0 %v7316_v61, %s7099_s20 }
  0x4a   : > { %5766 = vmatprep.mubr.msk.f32.mxu0 %vm236_vm0, %v7236_v37 }
  0x4b   : > { %1322 = vrot.lane.b32.xlu1 %v7332_v3, %s7099_s20 }
  0x4d   : > { %5767 = vmatmul.mubr.msk.f32.gmra.mrb[12].mxu0 %vm236_vm0, %v7276_v50  ;;  %1332 = vrot.lane.b32.xlu0 %v7330_v2, %s7099_s20 }
  0x4e   : > { %5769 = vmatprep.mubr.msk.f32.mxu0 %vm236_vm0, %v7248_v41 }
  0x4f   : > { %1326 = vrot.lane.b32.xlu1 %v7346_v8, %s7099_s20 }
  0x51   : > { %5770 = vmatmul.mubr.msk.f32.gmra.mrb[14].mxu0 %vm236_vm0, %v7290_v54  ;;  %1336 = vrot.lane.b32.xlu0 %v7344_v7, %s7099_s20 }
  0x52   : > { %5772 = vmatprep.mubr.msk.f32.mxu0 %vm236_vm0, %v7260_v45 }
  0x53   : > { %1330 = vrot.lane.b32.xlu1 %v7360_v16, %s7099_s20 }
  0x55   : > { %5773 = vmatmul.mubr.msk.f32.gmra.mrb[16].mxu0 %vm236_vm0, %v7304_v58  ;;  %1340 = vrot.lane.b32.xlu0 %v7358_v13, %s7099_s20 }
  0x56   : > { %5775 = vmatprep.mubr.msk.f32.mxu0 %vm236_vm0, %v7274_v49 }
  0x57   : > { %1334 = vrot.lane.b32.xlu1 %v7371_v18, %s7099_s20 }
  0x59   : > { %5776 = vmatmul.mubr.msk.f32.gmra.mrb[18].mxu0 %vm236_vm0, %v7318_v62  ;;  %6451 = vrot.lane.b32.xlu0 %v7156_v5, %s7099_s20 }
  0x5a   : > { %5778 = vmatprep.mubr.msk.f32.mxu0 %vm236_vm0, %v7288_v53 }
  0x5b   : > { %1338 = vrot.lane.b32.xlu1 %v7382_v22, %s7099_s20 }
  0x5d   : > { %5779 = vmatmul.mubr.msk.f32.gmra.mrb[20].mxu0 %vm236_vm0, %v7332_v3  ;;  %6461 = vrot.lane.b32.xlu0 %v7177_v14, %s7099_s20 }
  0x5e   : > { %5781 = vmatprep.mubr.msk.f32.mxu0 %vm236_vm0, %v7302_v57 }
  0x5f   : > { %1342 = vrot.lane.b32.xlu1 %v7393_v26, %s7099_s20 }
  0x61   : > { %5782 = vmatmul.mubr.msk.f32.gmra.mrb[22].mxu0 %vm236_vm0, %v7346_v8  ;;  %6471 = vrot.lane.b32.xlu0 %v7156_v5, %s7100_s21 }
  0x62   : > { %5784 = vmatprep.mubr.msk.f32.mxu0 %vm236_vm0, %v7316_v61 }
  0x63   : > { %6456 = vrot.lane.b32.xlu1 %v7162_v10, %s7099_s20 }
  0x65   : > { %5785 = vmatmul.mubr.msk.f32.gmra.mrb[24].mxu0 %vm236_vm0, %v7360_v16  ;;  %6486 = vrot.lane.b32.xlu0 %v7187_v20, %s7100_s21 }
  0x66   : > { %5787 = vmatprep.mubr.msk.f32.mxu0 %vm236_vm0, %v7330_v2 }
  0x67   : > { %6466 = vrot.lane.b32.xlu1 %v7187_v20, %s7099_s20 }
  0x69   : > { %5788 = vmatmul.mubr.msk.f32.gmra.mrb[26].mxu0 %vm236_vm0, %v7371_v18  ;;  %2362 = vrot.lane.b32.xlu0 %v7160_v9, %s7100_s21 }
  0x6a   : > { %5790 = vmatprep.mubr.msk.f32.mxu0 %vm236_vm0, %v7344_v7 }
  0x6b   : > { %6476 = vrot.lane.b32.xlu1 %v7162_v10, %s7100_s21 }
  0x6d   : > { %5791 = vmatmul.mubr.msk.f32.gmra.mrb[28].mxu0 %vm236_vm0, %v7382_v22  ;;  %2364 = vrot.lane.b32.xlu0 %v7204_v25, %s7100_s21 }
  0x6e   : > { %5793 = vmatprep.mubr.msk.f32.mxu0 %vm236_vm0, %v7358_v13 }
  0x6f   : > { %6481 = vrot.lane.b32.xlu1 %v7177_v14, %s7100_s21 }
  0x71   : > { %5794 = vmatmul.mubr.msk.f32.gmra.mrb[30].mxu0 %vm236_vm0, %v7393_v26  ;;  %2366 = vrot.lane.b32.xlu0 %v7181_v15, %s7100_s21 }
  0x73   : > { %2378 = vrot.lane.b32.xlu1 %v7212_v29, %s7100_s21 }
  0x75   : > { %2368 = vrot.lane.b32.xlu0 %v7214_v30, %s7100_s21 }
  0x77   : > { %2390 = vrot.lane.b32.xlu1 %v7248_v41, %s7100_s21 }
  0x79   : > { %2370 = vrot.lane.b32.xlu0 %v7191_v21, %s7100_s21 }
  0x7b   : > { %6491 = vrot.lane.b32.xlu1 %v7156_v5, %s7101_s22 }
  0x7d   : > { %2372 = vrot.lane.b32.xlu0 %v7228_v34, %s7100_s21 }
  0x7f   : > { %2396 = vrot.lane.b32.xlu1 %v7304_v58, %s7100_s21 }
  0x81   : > { %2374 = vrot.lane.b32.xlu0 %v7202_v24, %s7100_s21 }
  0x83   : > { %2400 = vrot.lane.b32.xlu1 %v7318_v62, %s7100_s21 }
  0x85   : > { %2376 = vrot.lane.b32.xlu0 %v7238_v38, %s7100_s21 }
  0x87   : > { %v6432_v27 = vpop.permute.xlu0 %6431  ;;  %2402 = vrot.lane.b32.xlu1 %v7288_v53, %s7100_s21 }
  0x88   : > { %v6434_v28 = vunpack.i.h.bf16 %v6432_v27  ;;  %v6433_v31 = vunpack.i.l.bf16 %v6432_v27 }
  0x89   : > { %2380 = vrot.lane.b32.xlu0 %v7250_v42, %s7100_s21  ;;  %v6437_v32 = vpop.permute.xlu1 %6436 }
  0x8a   : > { %v6268_v35 = vpack.c.bf16 %v6434_v28, %v6433_v31  ;;  %v6439_v36 = vunpack.i.h.bf16 %v6437_v32  ;;  %v6438_v39 = vunpack.i.l.bf16 %v6437_v32 }
  0x8b   : > { %v7459_v40 = vpop.permute.xlu0 %1280  ;;  %2406 = vrot.lane.b32.xlu1 %v7302_v57, %s7100_s21 }
  0x8c   : > { %10448 = vst [vmem:[#allocation2_spill] sm:$0xff] %v7459_v40  ;;  %6269 = vmatprep.subr.bf16.mxu1 %v6268_v35  ;;  %v6272_v43 = vpack.c.bf16 %v6439_v36, %v6438_v39 }
  0x8d   : > { %6271 = vmatpush3.bf16.msra.mxu1 %v6268_v35  ;;  %2382 = vrot.lane.b32.xlu0 %v7226_v33, %s7100_s21  ;;  %v6442_v44 = vpop.permute.xlu1 %6441 }
  0x8e   : > { %v6444_v47 = vunpack.i.h.bf16 %v6442_v44  ;;  %v6443_v48 = vunpack.i.l.bf16 %v6442_v44  ;;  %6273 = vmatprep.subr.bf16.mxu1 %v6272_v43 }
  0x8f   : > { %v7465_v51 = vpop.permute.xlu0 %1284  ;;  %6501 = vrot.lane.b32.xlu1 %v7177_v14, %s7101_s22 }
  0x90   : > { %10449 = vst [vmem:[#allocation3_spill] sm:$0xff] %v7465_v51  ;;  %v6276_v52 = vpack.c.bf16 %v6444_v47, %v6443_v48 }
  0x91   : > { %2384 = vrot.lane.b32.xlu0 %v7262_v46, %s7100_s21  ;;  %6275 = vmatpush3.bf16.msra.mxu1 %v6272_v43  ;;  %v6447_v55 = vpop.permute.xlu1 %6446 }
  0x92   : > { %v6449_v56 = vunpack.i.h.bf16 %v6447_v55  ;;  %v6448_v59 = vunpack.i.l.bf16 %v6447_v55  ;;  %6277 = vmatprep.subr.bf16.mxu1 %v6276_v52 }
  0x93   : > { %v7471_v60 = vpop.permute.xlu0 %1288  ;;  %2412 = vrot.lane.b32.xlu1 %v7360_v16, %s7100_s21 }
  0x94   : > { %10450 = vst [vmem:[#allocation4_spill] sm:$0xff] %v7471_v60  ;;  %v6280_v63 = vpack.c.bf16 %v6449_v56, %v6448_v59 }
  0x95   : > { %2386 = vrot.lane.b32.xlu0 %v7236_v37, %s7100_s21  ;;  %6279 = vmatpush3.bf16.msra.mxu1 %v6276_v52  ;;  %v7495_v11 = vpop.permute.xlu1 %1282 }
  0x96   : > { %6281 = vmatprep.subr.bf16.mxu1 %v6280_v63  ;;  %10454 = vst [vmem:[#allocation8_spill] sm:$0xff] %v7495_v11 }
  0x97   : > { %v7477_v1 = vpop.permute.xlu0 %1292  ;;  %2416 = vrot.lane.b32.xlu1 %v7371_v18, %s7100_s21 }
  0x98   : > { %10451 = vst [vmem:[#allocation5_spill] sm:$0xff] %v7477_v1 }
  0x99   : > { %2388 = vrot.lane.b32.xlu0 %v7276_v50, %s7100_s21  ;;  %6283 = vmatpush3.bf16.msra.mxu1 %v6280_v63  ;;  %v7507_v19 = vpop.permute.xlu1 %1286 }
  0x9a   : > { %10457 = vst [vmem:[#allocation11_spill] sm:$0xff] %v7507_v19 }
  0x9b   : > { %v7483_v4 = vpop.permute.xlu0 %1296  ;;  %2418 = vrot.lane.b32.xlu1 %v7344_v7, %s7100_s21 }
  0x9c   : > { %10452 = vst [vmem:[#allocation6_spill] sm:$0xff] %v7483_v4 }
  0x9d   : > { %2392 = vrot.lane.b32.xlu0 %v7290_v54, %s7100_s21 }
  0x9f   : > { %v7489_v6 = vpop.permute.xlu0 %1300  ;;  %2422 = vrot.lane.b32.xlu1 %v7358_v13, %s7100_s21 }
  0xa0   : > { %10453 = vst [vmem:[#allocation7_spill] sm:$0xff] %v7489_v6 }
  0xa1   : > { %2394 = vrot.lane.b32.xlu0 %v7260_v45, %s7100_s21 }
  0xa3   : > { %v7497_v12 = vpop.permute.xlu0 %1304  ;;  %3444 = vrot.lane.b32.xlu1 %v7160_v9, %s7101_s22  ;;  %v7517_v9 = vpop.permute.xlu1 %1290 }
  0xa4   : > { %10455 = vst [vmem:[#allocation9_spill] sm:$0xff] %v7497_v12  ;;  %10459 = vst [vmem:[#allocation13_spill] sm:$0xff] %v7517_v9 }
  0xa5   : > { %2398 = vrot.lane.b32.xlu0 %v7274_v49, %s7100_s21 }
  0xa7   : > { %v7503_v17 = vpop.permute.xlu0 %1308  ;;  %3448 = vrot.lane.b32.xlu1 %v7181_v15, %s7101_s22  ;;  %v7529_v28 = vpop.permute.xlu1 %1294 }
  0xa8   : > { %10456 = vst [vmem:[#allocation10_spill] sm:$0xff] %v7503_v17  ;;  %10462 = vst [vmem:[#allocation16_spill] sm:$0xff] %v7529_v28 }
  0xa9   : > { %6496 = vrot.lane.b32.xlu0 %v7162_v10, %s7101_s22 }
  0xab   : > { %v7511_v23 = vpop.permute.xlu0 %1312  ;;  %3452 = vrot.lane.b32.xlu1 %v7191_v21, %s7101_s22 }
  0xac   : > { %10458 = vst [vmem:[#allocation12_spill] sm:$0xff] %v7511_v23 }
  0xad   : > { %2404 = vrot.lane.b32.xlu0 %v7332_v3, %s7100_s21 }
  0xaf   : > { %v7519_v27 = vpop.permute.xlu0 %1316  ;;  %3456 = vrot.lane.b32.xlu1 %v7202_v24, %s7101_s22  ;;  %v7539_v24 = vpop.permute.xlu1 %1298 }
  0xb0   : > { %10460 = vst [vmem:[#allocation14_spill] sm:$0xff] %v7519_v27  ;;  %10464 = vst [vmem:[#allocation18_spill] sm:$0xff] %v7539_v24 }
  0xb1   : > { %2408 = vrot.lane.b32.xlu0 %v7346_v8, %s7100_s21 }
  0xb3   : > { %v7525_v15 = vpop.permute.xlu0 %1320  ;;  %3460 = vrot.lane.b32.xlu1 %v7212_v29, %s7101_s22  ;;  %v7551_v32 = vpop.permute.xlu1 %1302 }
  0xb4   : > { %10461 = vst [vmem:[#allocation15_spill] sm:$0xff] %v7525_v15  ;;  %10467 = vst [vmem:[#allocation21_spill] sm:$0xff] %v7551_v32 }
  0xb5   : > { %2410 = vrot.lane.b32.xlu0 %v7316_v61, %s7100_s21 }
  0xb7   : > { %v7533_v21 = vpop.permute.xlu0 %1324  ;;  %3464 = vrot.lane.b32.xlu1 %v7226_v33, %s7101_s22 }
  0xb8   : > { %10463 = vst [vmem:[#allocation17_spill] sm:$0xff] %v7533_v21 }
  0xb9   : > { %2414 = vrot.lane.b32.xlu0 %v7330_v2, %s7100_s21 }
  0xbb   : > { %v7541_v31 = vpop.permute.xlu0 %1328  ;;  %3468 = vrot.lane.b32.xlu1 %v7236_v37, %s7101_s22  ;;  %v7561_v37 = vpop.permute.xlu1 %1306 }
  0xbc   : > { %10465 = vst [vmem:[#allocation19_spill] sm:$0xff] %v7541_v31  ;;  %10469 = vst [vmem:[#allocation23_spill] sm:$0xff] %v7561_v37 }
  0xbd   : > { %6506 = vrot.lane.b32.xlu0 %v7187_v20, %s7101_s22 }
  0xbf   : > { %v7547_v29 = vpop.permute.xlu0 %1332  ;;  %3472 = vrot.lane.b32.xlu1 %v7248_v41, %s7101_s22  ;;  %v7569_v36 = vpop.permute.xlu1 %1310 }
  0xc0   : > { %10466 = vst [vmem:[#allocation20_spill] sm:$0xff] %v7547_v29  ;;  %10471 = vst [vmem:[#allocation25_spill] sm:$0xff] %v7569_v36 }
  0xc1   : > { %2420 = vrot.lane.b32.xlu0 %v7382_v22, %s7100_s21 }
  0xc3   : > { %v7555_v33 = vpop.permute.xlu0 %1336  ;;  %3476 = vrot.lane.b32.xlu1 %v7260_v45, %s7101_s22 }
  0xc4   : > { %10468 = vst [vmem:[#allocation22_spill] sm:$0xff] %v7555_v33 }
  0xc5   : > { %2424 = vrot.lane.b32.xlu0 %v7393_v26, %s7100_s21 }
  0xc7   : > { %v7563_v35 = vpop.permute.xlu0 %1340  ;;  %3480 = vrot.lane.b32.xlu1 %v7274_v49, %s7101_s22 }
  0xc8   : > { %10470 = vst [vmem:[#allocation24_spill] sm:$0xff] %v7563_v35 }
  0xc9   : > { %3446 = vrot.lane.b32.xlu0 %v7204_v25, %s7101_s22  ;;  %v7582_v25 = vpop.permute.xlu1 %1314 }
  0xca   : > { %10472 = vst [vmem:[#allocation26_spill] sm:$0xff] %v7582_v25 }
  0xcb   : > { %v6452_v41 = vpop.permute.xlu0 %6451 }
  0xcc   : > { %v6454_v39 = vunpack.i.h.bf16 %v6452_v41  ;;  %v6453_v43 = vunpack.i.l.bf16 %v6452_v41 }
  0xcd   : > { %3450 = vrot.lane.b32.xlu0 %v7214_v30, %s7101_s22  ;;  %v7590_v30 = vpop.permute.xlu1 %1318 }
  0xce   : > { %v7573_v45 = vpack.c.bf16 %v6454_v39, %v6453_v43  ;;  %10474 = vst [vmem:[#allocation28_spill] sm:$0xff] %v7590_v30 }
  0xcf   : > { %v7575_v44 = vpop.permute.xlu0 %6461 }
  0xd0   : > { %6286 = vmatprep.subr.msk.bf16.mxu1 %vm7142_vm1, %v7573_v45 }
  0xd1   : > { %3454 = vrot.lane.b32.xlu0 %v7228_v34, %s7101_s22  ;;  %v7598_v34 = vpop.permute.xlu1 %1322 }
  0xd2   : > { %10476 = vst [vmem:[#allocation30_spill] sm:$0xff] %v7598_v34 }
  0xd3   : > { %v7584_v49 = vpop.permute.xlu0 %6471 }
  0xd5   : > { %3458 = vrot.lane.b32.xlu0 %v7238_v38, %s7101_s22  ;;  %v7604_v38 = vpop.permute.xlu1 %1326 }
  0xd6   : > { %10478 = vst [vmem:[#allocation32_spill] sm:$0xff] %v7604_v38 }
  0xd7   : > { %v7588_v47 = vpop.permute.xlu0 %6486 }
  0xd8   : > { %10473 = vst [vmem:[#allocation27_spill] sm:$0xff] %v7588_v47 }
  0xd9   : > { %3462 = vrot.lane.b32.xlu0 %v7250_v42, %s7101_s22  ;;  %v7610_v42 = vpop.permute.xlu1 %1330 }
  0xda   : > { %10480 = vst [vmem:[#allocation34_spill] sm:$0xff] %v7610_v42 }
  0xdb   : > { %v7594_v48 = vpop.permute.xlu0 %2362 }
  0xdc   : > { %10475 = vst [vmem:[#allocation29_spill] sm:$0xff] %v7594_v48 }
  0xdd   : > { %3466 = vrot.lane.b32.xlu0 %v7262_v46, %s7101_s22  ;;  %v7614_v59 = vpop.permute.xlu1 %1334 }
  0xde   : > { %10482 = vst [vmem:[#allocation36_spill] sm:$0xff] %v7614_v59 }
  0xdf   : > { %v7600_v52 = vpop.permute.xlu0 %2364 }
  0xe0   : > { %10477 = vst [vmem:[#allocation31_spill] sm:$0xff] %v7600_v52 }
  0xe1   : > { %3470 = vrot.lane.b32.xlu0 %v7276_v50, %s7101_s22  ;;  %v7618_v63 = vpop.permute.xlu1 %1338 }
  0xe2   : > { %10484 = vst [vmem:[#allocation38_spill] sm:$0xff] %v7618_v63 }
  0xe3   : > { %v7606_v55 = vpop.permute.xlu0 %2366 }
  0xe4   : > { %10479 = vst [vmem:[#allocation33_spill] sm:$0xff] %v7606_v55 }
  0xe5   : > { %3474 = vrot.lane.b32.xlu0 %v7290_v54, %s7101_s22  ;;  %v7622_v50 = vpop.permute.xlu1 %1342 }
  0xe6   : > { %10486 = vst [vmem:[#allocation40_spill] sm:$0xff] %v7622_v50 }
  0xe7   : > { %v7612_v56 = vpop.permute.xlu0 %2368 }
  0xe8   : > { %10481 = vst [vmem:[#allocation35_spill] sm:$0xff] %v7612_v56 }
  0xe9   : > { %v7626_v43 = vpop.permute.xlu1 %6456 }
  0xeb   : > { %v7616_v46 = vpop.permute.xlu0 %2370 }
  0xec   : > { %10483 = vst [vmem:[#allocation37_spill] sm:$0xff] %v7616_v46 }
  0xed   : > { %v7630_v54 = vpop.permute.xlu1 %6466 }
  0xef   : > { %v7620_v41 = vpop.permute.xlu0 %2372 }
  0xf0   : > { %10485 = vst [vmem:[#allocation39_spill] sm:$0xff] %v7620_v41 }
  0xf1   : > { %v7648_v35 = vpop.permute.xlu1 %6476 }
  0xf2   : > { %10490 = vst [vmem:[#allocation44_spill] sm:$0xff] %v7648_v35 }
  0xf3   : > { %v7624_v39 = vpop.permute.xlu0 %2374 }
  0xf4   : > { %10487 = vst [vmem:[#allocation41_spill] sm:$0xff] %v7624_v39 }
  0xf5   : > { %v7660_v29 = vpop.permute.xlu1 %6481 }
  0xf6   : > { %10492 = vst [vmem:[#allocation46_spill] sm:$0xff] %v7660_v29 }
  0xf7   : > { %v7628_v55 = vpop.permute.xlu0 %2376 }
  0xf8   : > { %10488 = vst [vmem:[#allocation42_spill] sm:$0xff] %v7628_v55 }
  0xfb   : > { %v7634_v52 = vpop.permute.xlu0 %2380 }
  0xfc   : > { %10489 = vst [vmem:[#allocation43_spill] sm:$0xff] %v7634_v52 }
  0xff   : > { %v7650_v52 = vpop.permute.xlu0 %2382 }
 0x100   : > { %10491 = vst [vmem:[#allocation45_spill] sm:$0xff] %v7650_v52 }
 0x103   : > { %v7664_v31 = vpop.permute.xlu0 %2384 }
 0x104   : > { %10493 = vst [vmem:[#allocation47_spill] sm:$0xff] %v7664_v31 }
 0x107   : > { %v7676_v21 = vpop.permute.xlu0 %2386 }
 0x108   : > { %v7632_v56 = vpop.f32.mrb[0].mxu0  ;;  %10495 = vst [vmem:[#allocation49_spill] sm:$0xff] %v7676_v21 }
 0x109   : > { %v7636_v46 = vpop.f32.mrb[1].mxu0  ;;  %v586_v41 = vsel %vm582_vm2, %v7632_v56, -inf }
 0x10a   : > { %587 = vmax.xlane.f32.xlu0 %v586_v41  ;;  %v583_v39 = vsel %vm582_vm2, %v7636_v46, -inf }
 0x10b   : > { %v7690_v25 = vpop.permute.xlu0 %2388 }
 0x10c   : > { %v7640_v48 = vpop.f32.mrb[2].mxu0  ;;  %10497 = vst [vmem:[#allocation51_spill] sm:$0xff] %v7690_v25 }
 0x10d   : > { %v592_v55 = vsel %vm582_vm2, %v7640_v48, -inf  ;;  %v7646_v50 = vpop.f32.mrb[3].mxu0 }
 0x10e   : > { %584 = vmax.xlane.f32.xlu0 %v583_v39  ;;  %593 = vmax.xlane.f32.xlu1 %v592_v55  ;;  %v589_v63 = vsel %vm582_vm2, %v7646_v50, -inf }
 0x110   : > { %v7654_v41 = vpop.f32.mrb[4].mxu0 }
 0x111   : > { %v7656_v33 = vpop.f32.mrb[5].mxu0  ;;  %v598_v59 = vsel %vm582_vm2, %v7654_v41, -inf }
 0x112   : > { %590 = vmax.xlane.f32.xlu1 %v589_v63  ;;  %v7674_v63 = vpop.permute.xlu1 %2378 }
 0x113   : > { %10494 = vst [vmem:[#allocation48_spill] sm:$0xff] %v7674_v63 }
 0x114   : > { %v7662_v42 = vpop.f32.mrb[6].mxu0 }
 0x115   : > { %v7666_v55 = vpop.f32.mrb[7].mxu0  ;;  %v604_v39 = vsel %vm582_vm2, %v7662_v42, -inf }
 0x116   : > { %599 = vmax.xlane.f32.xlu1 %v598_v59  ;;  %v7686_v30 = vpop.permute.xlu1 %2390 }
 0x117   : > { %10496 = vst [vmem:[#allocation50_spill] sm:$0xff] %v7686_v30  ;;  %v7704_v30 = vpop.permute.xlu0 %2392 }
 0x118   : > { %v7670_v52 = vpop.f32.mrb[8].mxu0  ;;  %10499 = vst [vmem:[#allocation53_spill] sm:$0xff] %v7704_v30 }
 0x119   : > { %v7672_v38 = vpop.f32.mrb[9].mxu0  ;;  %v610_v34 = vsel %vm582_vm2, %v7670_v52, -inf }
 0x11a   : > { %605 = vmax.xlane.f32.xlu1 %v604_v39  ;;  %v7702_v23 = vpop.permute.xlu1 %6491 }
 0x11b   : > { %10498 = vst [vmem:[#allocation52_spill] sm:$0xff] %v7702_v23  ;;  %v7718_v12 = vpop.permute.xlu0 %2394 }
 0x11c   : > { %v7680_v15 = vpop.f32.mrb[10].mxu0  ;;  %10501 = vst [vmem:[#allocation55_spill] sm:$0xff] %v7718_v12 }
 0x11d   : > { %v7682_v31 = vpop.f32.mrb[11].mxu0  ;;  %v616_v59 = vsel %vm582_vm2, %v7680_v15, -inf }
 0x11e   : > { %611 = vmax.xlane.f32.xlu1 %v610_v34  ;;  %v7714_v17 = vpop.permute.xlu1 %2396  ;;  %v613_v40 = vsel %vm582_vm2, %v7682_v31, -inf }
 0x11f   : > { %10500 = vst [vmem:[#allocation54_spill] sm:$0xff] %v7714_v17  ;;  %v7730_v6 = vpop.permute.xlu0 %2398 }
 0x120   : > { %v7688_v27 = vpop.f32.mrb[12].mxu0  ;;  %10503 = vst [vmem:[#allocation57_spill] sm:$0xff] %v7730_v6 }
 0x121   : > { %v7692_v39 = vpop.f32.mrb[13].mxu0  ;;  %v622_v21 = vsel %vm582_vm2, %v7688_v27, -inf }
 0x122   : > { %617 = vmax.xlane.f32.xlu1 %v616_v59 }
 0x123   : > { %v7744_v47 = vpop.permute.xlu0 %6496 }
 0x124   : > { %3478 = vrot.lane.b32.xlu0 %v7304_v58, %s7101_s22  ;;  %v7698_v63 = vpop.f32.mrb[14].mxu0  ;;  %10505 = vst [vmem:[#allocation59_spill] sm:$0xff] %v7744_v47  ;;  %v595_v47 = vsel %vm582_vm2, %v7656_v33, -inf }
 0x125   : > { %v7700_v34 = vpop.f32.mrb[15].mxu0  ;;  %v628_v25 = vsel %vm582_vm2, %v7698_v63, -inf }
 0x126   : > { %623 = vmax.xlane.f32.xlu1 %v622_v21  ;;  %v625_v35 = vsel %vm582_vm2, %v7700_v34, -inf }
 0x127   : > { %v7756_v9 = vpop.permute.xlu0 %2404  ;;  %v10595_v0 = vld [vmem:[#allocation57_spill] sm:$0xff] }
 0x128   : > { %v7708_v36 = vpop.f32.mrb[16].mxu0  ;;  %10507 = vst [vmem:[#allocation61_spill] sm:$0xff] %v7756_v9 }
 0x129   : > { %v7710_v59 = vpop.f32.mrb[17].mxu0  ;;  %v634_v58 = vsel %vm582_vm2, %v7708_v36, -inf }
 0x12a   : > { %629 = vmax.xlane.f32.xlu1 %v628_v25  ;;  %v7728_v25 = vpop.permute.xlu1 %2400 }
 0x12b   : > { %10502 = vst [vmem:[#allocation56_spill] sm:$0xff] %v7728_v25  ;;  %v7774_v9 = vpop.permute.xlu0 %2408 }
 0x12c   : > { %v7716_v37 = vpop.f32.mrb[18].mxu0  ;;  %10509 = vst [vmem:[#allocation63_spill] sm:$0xff] %v7774_v9 }
 0x12d   : > { %v7720_v21 = vpop.f32.mrb[19].mxu0  ;;  %v640_v30 = vsel %vm582_vm2, %v7716_v37, -inf }
 0x12e   : > { %635 = vmax.xlane.f32.xlu1 %v634_v58  ;;  %v7740_v4 = vpop.permute.xlu1 %2402 }
 0x12f   : > { %10504 = vst [vmem:[#allocation58_spill] sm:$0xff] %v7740_v4 }
 0x130   : > { %v7724_v32 = vpop.f32.mrb[20].mxu0 }
 0x131   : > { %v7726_v23 = vpop.f32.mrb[21].mxu0  ;;  %v646_v17 = vsel %vm582_vm2, %v7724_v32, -inf }
 0x132   : > { %641 = vmax.xlane.f32.xlu1 %v640_v30 }
 0x134   : > { %v7734_v24 = vpop.f32.mrb[22].mxu0 }
 0x135   : > { %v7736_v12 = vpop.f32.mrb[23].mxu0  ;;  %v652_v58 = vsel %vm582_vm2, %v7734_v24, -inf }
 0x136   : > { %647 = vmax.xlane.f32.xlu1 %v646_v17  ;;  %v7754_v17 = vpop.permute.xlu1 %2406 }
 0x137   : > { %10506 = vst [vmem:[#allocation60_spill] sm:$0xff] %v7754_v17 }
 0x138   : > { %v7742_v28 = vpop.f32.mrb[24].mxu0 }
 0x139   : > { %v7746_v30 = vpop.f32.mrb[25].mxu0  ;;  %v658_v25 = vsel %vm582_vm2, %v7742_v28, -inf }
 0x13a   : > { %653 = vmax.xlane.f32.xlu1 %v652_v58  ;;  %v7768_v29 = vpop.permute.xlu1 %6501 }
 0x13b   : > { %10508 = vst [vmem:[#allocation62_spill] sm:$0xff] %v7768_v29  ;;  %v7784_v29 = vpop.permute.xlu0 %2410 }
 0x13c   : > { %v7750_v6 = vpop.f32.mrb[26].mxu0 }
 0x13d   : > { %v7752_v1 = vpop.f32.mrb[27].mxu0  ;;  %v664_v4 = vsel %vm582_vm2, %v7750_v6, -inf }
 0x13e   : > { %659 = vmax.xlane.f32.xlu1 %v658_v25  ;;  %v601_v25 = vsel %vm582_vm2, %v7666_v55, -inf  ;;  %v7782_v11 = vpop.permute.xlu1 %2412 }
 0x13f   : > { %10510 = vst [vmem:[#allocation64_spill] sm:$0xff] %v7782_v11 }
 0x140   : > { %v7762_v60 = vpop.f32.mrb[28].mxu0 }
 0x141   : > { %v7764_v58 = vpop.f32.mrb[29].mxu0  ;;  %v670_v19 = vsel %vm582_vm2, %v7762_v60, -inf }
 0x142   : > { %665 = vmax.xlane.f32.xlu1 %v664_v4  ;;  %v7788_v9 = vpop.permute.xlu1 %2416 }
 0x143   : > { %596 = vmax.xlane.f32.xlu0 %v595_v47  ;;  %v607_v47 = vsel %vm582_vm2, %v7672_v38, -inf  ;;  %10511 = vst [vmem:[#allocation65_spill] sm:$0xff] %v7788_v9 }
 0x144   : > { %v7772_v17 = vpop.f32.mrb[30].mxu0 }
 0x145   : > { %v7776_v51 = vpop.f32.mrb[31].mxu0  ;;  %v676_v4 = vsel %vm582_vm2, %v7772_v17, -inf }
 0x146   : > { %671 = vmax.xlane.f32.xlu1 %v670_v19  ;;  %v619_v19 = vsel %vm582_vm2, %v7692_v39, -inf  ;;  %v7796_v11 = vpop.permute.xlu1 %2418 }
 0x147   : > { %602 = vmax.xlane.f32.xlu0 %v601_v25  ;;  %v7792_v25 = vpop.permute.xlu0 %2414  ;;  %10512 = vst [vmem:[#allocation66_spill] sm:$0xff] %v7796_v11 }
 0x14a   : > { %677 = vmax.xlane.f32.xlu1 %v676_v4 }
 0x14b   : > { %608 = vmax.xlane.f32.xlu0 %v607_v47  ;;  %v7798_v4 = vpop.permute.xlu0 %6506  ;;  %v631_v47 = vsel %vm582_vm2, %v7710_v59, -inf }
 0x14f   : > { %614 = vmax.xlane.f32.xlu0 %v613_v40  ;;  %v7804_v40 = vpop.permute.xlu1 %2422  ;;  %v7808_v9 = vpop.permute.xlu0 %2420 }
 0x150   : > { %10513 = vst [vmem:[#allocation67_spill] sm:$0xff] %v7804_v40 }
 0x153   : > { %620 = vmax.xlane.f32.xlu0 %v619_v19  ;;  %v637_v19 = vsel %vm582_vm2, %v7720_v21, -inf  ;;  %v7814_v11 = vpop.permute.xlu1 %3444 }
 0x157   : > { %626 = vmax.xlane.f32.xlu0 %v625_v35  ;;  %v643_v35 = vsel %vm582_vm2, %v7726_v23, -inf }
 0x15b   : > { %632 = vmax.xlane.f32.xlu0 %v631_v47  ;;  %3484 = vrot.lane.b32.xlu1 %v7288_v53, %s7101_s22  ;;  %v7816_v47 = vpop.permute.xlu0 %2424  ;;  %v649_v53 = vsel %vm582_vm2, %v7736_v12, -inf }
 0x15f   : > { %638 = vmax.xlane.f32.xlu0 %v637_v19  ;;  %3488 = vrot.lane.b32.xlu1 %v7302_v57, %s7101_s22  ;;  %v7824_v19 = vpop.permute.xlu1 %3448  ;;  %v655_v57 = vsel %vm582_vm2, %v7746_v30, -inf  ;;  %v7828_v40 = vpop.permute.xlu0 %3446 }
 0x160   : > { %10514 = vst [vmem:[#allocation68_spill] sm:$0xff] %v7824_v19 }
 0x163   : > { %644 = vmax.xlane.f32.xlu0 %v643_v35  ;;  %3492 = vrot.lane.b32.xlu1 %v7316_v61, %s7101_s22  ;;  %v661_v61 = vsel %vm582_vm2, %v7752_v1, -inf  ;;  %v7834_v35 = vpop.permute.xlu1 %3452 }
 0x167   : > { %650 = vmax.xlane.f32.xlu0 %v649_v53  ;;  %3496 = vrot.lane.b32.xlu1 %v7330_v2, %s7101_s22  ;;  %v7836_v53 = vpop.permute.xlu0 %3450  ;;  %v667_v2 = vsel %vm582_vm2, %v7764_v58, -inf  ;;  %v7842_v19 = vpop.permute.xlu1 %3456 }
 0x168   : > { %10515 = vst [vmem:[#allocation69_spill] sm:$0xff] %v7842_v19 }
 0x16b   : > { %656 = vmax.xlane.f32.xlu0 %v655_v57  ;;  %3500 = vrot.lane.b32.xlu1 %v7344_v7, %s7101_s22  ;;  %v673_v7 = vsel %vm582_vm2, %v7776_v51, -inf  ;;  %v7848_v57 = vpop.permute.xlu0 %3454 }
 0x16c   : > { %10516 = vst [vmem:[#allocation70_spill] sm:$0xff] %v7848_v57 }
 0x16f   : > { %662 = vmax.xlane.f32.xlu0 %v661_v61  ;;  %3504 = vrot.lane.b32.xlu1 %v7358_v13, %s7101_s22  ;;  %v7852_v13 = vpop.permute.xlu1 %3460  ;;  %v7854_v61 = vpop.permute.xlu0 %3458 }
 0x170   : > { %10517 = vst [vmem:[#allocation71_spill] sm:$0xff] %v7852_v13  ;;  %10518 = vst [vmem:[#allocation72_spill] sm:$0xff] %v7854_v61 }
 0x173   : > { %668 = vmax.xlane.f32.xlu0 %v667_v2  ;;  %6511 = vrot.lane.b32.xlu1 %v7156_v5, %s7102_s23  ;;  %v7858_v2 = vpop.permute.xlu1 %3464  ;;  %v7862_v19 = vpop.permute.xlu0 %3462 }
 0x174   : > { %10519 = vst [vmem:[#allocation73_spill] sm:$0xff] %v7858_v2  ;;  %10520 = vst [vmem:[#allocation74_spill] sm:$0xff] %v7862_v19 }
 0x177   : > { %674 = vmax.xlane.f32.xlu0 %v673_v7  ;;  %6521 = vrot.lane.b32.xlu1 %v7177_v14, %s7102_s23  ;;  %v7866_v7 = vpop.permute.xlu1 %3468  ;;  %v7868_v57 = vpop.permute.xlu0 %3466 }
 0x178   : > { %10521 = vst [vmem:[#allocation75_spill] sm:$0xff] %v7866_v7  ;;  %10522 = vst [vmem:[#allocation76_spill] sm:$0xff] %v7868_v57 }
 0x17b   : > { %6526 = vrot.lane.b32.xlu1 %v7187_v20, %s7102_s23  ;;  %v7870_v13 = vpop.permute.xlu1 %3472  ;;  %v7872_v61 = vpop.permute.xlu0 %3470 }
 0x17c   : > { %10523 = vst [vmem:[#allocation77_spill] sm:$0xff] %v7870_v13  ;;  %10524 = vst [vmem:[#allocation78_spill] sm:$0xff] %v7872_v61 }
 0x17f   : > { %6536 = vrot.lane.b32.xlu1 %v7162_v10, %s7103_s24  ;;  %v7876_v2 = vpop.permute.xlu1 %3476  ;;  %v7880_v19 = vpop.permute.xlu0 %3474 }
 0x180   : > { %10525 = vst [vmem:[#allocation79_spill] sm:$0xff] %v7876_v2  ;;  %10526 = vst [vmem:[#allocation80_spill] sm:$0xff] %v7880_v19 }
 0x183   : > { %6546 = vrot.lane.b32.xlu1 %v7187_v20, %s7103_s24  ;;  %v7884_v20 = vpop.permute.xlu1 %3480 }
 0x184   : > { %10527 = vst [vmem:[#allocation81_spill] sm:$0xff] %v7884_v20 }
 0x18d   : > { %3482 = vrot.lane.b32.xlu0 %v7318_v62, %s7101_s22 }
 0x191   : > { %3486 = vrot.lane.b32.xlu0 %v7332_v3, %s7101_s22 }
 0x195   : > { %3490 = vrot.lane.b32.xlu0 %v7346_v8, %s7101_s22 }
 0x197   : > { %v588_v7 = vpop.xlane.xlu0 %587 }
 0x198   : > { %v680_v13 = vsub.f32 %v7632_v56, %v588_v7 }
 0x199   : > { %3494 = vrot.lane.b32.xlu0 %v7360_v16, %s7101_s22 }
 0x19a   : > { %v713_v61 = vmul.f32 1.442695, %v680_v13 }
 0x19b   : > { %v585_v62 = vpop.xlane.xlu0 %584  ;;  %v594_v57 = vpop.xlane.xlu1 %593 }
 0x19c   : > { %6570 = vpow2.f32 %v713_v61  ;;  %v679_v2 = vsub.f32 %v7636_v46, %v585_v62  ;;  %v682_v3 = vsub.f32 %v7640_v48, %v594_v57 }
 0x19d   : > { %3498 = vrot.lane.b32.xlu0 %v7371_v18, %s7101_s22 }
 0x19e   : > { %v711_v8 = vmul.f32 1.442695, %v679_v2  ;;  %v717_v19 = vmul.f32 1.442695, %v682_v3  ;;  %v6459_v2 = vunpack.i.h.bf16 %v7626_v43  ;;  %v6464_v3 = vunpack.i.h.bf16 %v7575_v44 }
 0x19f   : > { %v591_v20 = vpop.xlane.xlu1 %590 }
 0x1a0   : > { %6572 = vpow2.f32 %v711_v8  ;;  %v681_v56 = vsub.f32 %v7646_v50, %v591_v20  ;;  %v6458_v50 = vunpack.i.l.bf16 %v7626_v43  ;;  %v6463_v8 = vunpack.i.l.bf16 %v7575_v44 }
 0x1a1   : > { %6574 = vpow2.f32 %v717_v19  ;;  %3502 = vrot.lane.b32.xlu0 %v7382_v22, %s7101_s22 }
 0x1a2   : > { %v715_v16 = vmul.f32 1.442695, %v681_v56  ;;  %v6290_v20 = vpack.c.bf16 %v6459_v2, %v6458_v50 }
 0x1a3   : > { %v600_v13 = vpop.xlane.xlu1 %599 }
 0x1a4   : > { %6576 = vpow2.f32 %v715_v16  ;;  %v684_v46 = vsub.f32 %v7654_v41, %v600_v13 }
 0x1a5   : > { %3506 = vrot.lane.b32.xlu0 %v7393_v26, %s7101_s22 }
 0x1a6   : > { %v6571_v48 = vpop.eup %6570  ;;  %v721_v18 = vmul.f32 1.442695, %v684_v46  ;;  %v6296_v46 = vpack.c.bf16 %v6464_v3, %v6463_v8 }
 0x1a7   : > { %v606_v57 = vpop.xlane.xlu1 %605  ;;  %v778_v61 = vsel %vm582_vm2, %v6571_v48, 0.0 }
 0x1a8   : > { %6578 = vpow2.f32 %v721_v18  ;;  %v686_v22 = vsub.f32 %v7662_v42, %v606_v57  ;;  %779 = vadd.xlane.f32.xlu1 %v778_v61  ;;  %v6469_v57 = vunpack.i.h.bf16 %v7630_v54  ;;  %v6468_v61 = vunpack.i.l.bf16 %v7630_v54 }
 0x1a9   : > { %6516 = vrot.lane.b32.xlu0 %v7162_v10, %s7102_s23 }
 0x1aa   : > { %v7905_v41 = vpop.eup %6572  ;;  %v725_v19 = vmul.f32 1.442695, %v686_v22 }
 0x1ab   : > { %v6575_v26 = vpop.eup %6574  ;;  %5812 = vmatprep.mubr.msk.f32.mxu1 %vm582_vm2, %v7905_v41  ;;  %v612_v7 = vpop.xlane.xlu1 %611 }
 0x1ac   : > { %6580 = vpow2.f32 %v725_v19  ;;  %v688_v62 = vsub.f32 %v7670_v52, %v612_v7  ;;  %5813 = vmatmul.mubr.msk.f32.vlgmr.msra.gmra.mrb[0].mxu1 %vm582_vm2, %v6571_v48  ;;  %v784_v42 = vsel %vm582_vm2, %v6575_v26, 0.0 }
 0x1ad   : > { %6289 = vmatpush3.bf16.xpose.msk.msra.mxu1 %vm7142_vm1, %v7573_v45  ;;  %785 = vadd.xlane.f32.xlu1 %v784_v42  ;;  %v6474_v42 = vunpack.i.h.bf16 %v7584_v49 }
 0x1ae   : > { %v7915_v10 = vpop.eup %6576  ;;  %v729_v43 = vmul.f32 1.442695, %v688_v62  ;;  %6292 = vmatprep.subr.msk.bf16.mxu1 %vm7142_vm1, %v6290_v20  ;;  %6531 = vrot.lane.b32.xlu0 %v7156_v5, %s7103_s24 }
 0x1af   : > { %5815 = vmatprep.mubr.msk.f32.mxu1 %vm582_vm2, %v7915_v10  ;;  %v618_v52 = vpop.xlane.xlu1 %617 }
 0x1b0   : > { %6582 = vpow2.f32 %v729_v43  ;;  %v690_v45 = vsub.f32 %v7680_v15, %v618_v52  ;;  %5816 = vmatmul.mubr.msk.f32.gmra.mrb[2].mxu1 %vm582_vm2, %v6575_v26  ;;  %v6302_v26 = vpack.c.bf16 %v6469_v57, %v6468_v61  ;;  %v6473_v43 = vunpack.i.l.bf16 %v7584_v49  ;;  %v7982_v57 = vpop.permute.xlu0 %3478 }
 0x1b2   : > { %v7927_v56 = vpop.eup %6578  ;;  %v733_v16 = vmul.f32 1.442695, %v690_v45  ;;  %6541 = vrot.lane.b32.xlu0 %v7177_v14, %s7103_s24 }
 0x1b3   : > { %v624_v5 = vpop.xlane.xlu1 %623  ;;  %v790_v13 = vsel %vm582_vm2, %v7927_v56, 0.0 }
 0x1b4   : > { %6584 = vpow2.f32 %v733_v16  ;;  %v692_v48 = vsub.f32 %v7688_v27, %v624_v5  ;;  %791 = vadd.xlane.f32.xlu1 %v790_v13  ;;  %v7965_v16 = vpack.c.bf16 %v6474_v42, %v6473_v43 }
 0x1b5   : > { %6295 = vmatpush3.bf16.xpose.msk.msra.mxu1 %vm7142_vm1, %v6290_v20 }
 0x1b6   : > { %v7936_v15 = vpop.eup %6580  ;;  %v737_v44 = vmul.f32 1.442695, %v692_v48  ;;  %6298 = vmatprep.subr.msk.bf16.mxu1 %vm7142_vm1, %v6296_v46 }
 0x1b7   : > { %v630_v18 = vpop.xlane.xlu1 %629  ;;  %v796_v14 = vsel %vm582_vm2, %v7936_v15, 0.0 }
 0x1b8   : > { %6586 = vpow2.f32 %v737_v44  ;;  %v694_v27 = vsub.f32 %v7698_v63, %v630_v18  ;;  %797 = vadd.xlane.f32.xlu1 %v796_v14 }
 0x1ba   : > { %v7945_v2 = vpop.eup %6582  ;;  %v741_v50 = vmul.f32 1.442695, %v694_v27 }
 0x1bb   : > { %v636_v22 = vpop.xlane.xlu1 %635  ;;  %v802_v19 = vsel %vm582_vm2, %v7945_v2, 0.0 }
 0x1bc   : > { %6588 = vpow2.f32 %v741_v50  ;;  %v696_v7 = vsub.f32 %v7708_v36, %v636_v22  ;;  %803 = vadd.xlane.f32.xlu1 %v802_v19 }
 0x1bd   : > { %6301 = vmatpush3.bf16.xpose.msk.msra.mxu1 %vm7142_vm1, %v6296_v46 }
 0x1be   : > { %v7952_v54 = vpop.eup %6584  ;;  %v745_v20 = vmul.f32 1.442695, %v696_v7  ;;  %6304 = vmatprep.subr.msk.bf16.mxu1 %vm7142_vm1, %v6302_v26  ;;  %v775_v7 = vsel %vm582_vm2, %v7905_v41, 0.0 }
 0x1bf   : > { %v642_v63 = vpop.xlane.xlu1 %641  ;;  %v808_v62 = vsel %vm582_vm2, %v7952_v54, 0.0 }
 0x1c0   : > { %6590 = vpow2.f32 %v745_v20  ;;  %v698_v36 = vsub.f32 %v7716_v37, %v642_v63  ;;  %809 = vadd.xlane.f32.xlu1 %v808_v62 }
 0x1c2   : > { %v7961_v52 = vpop.eup %6586  ;;  %v749_v3 = vmul.f32 1.442695, %v698_v36 }
 0x1c3   : > { %v648_v8 = vpop.xlane.xlu1 %647  ;;  %v814_v45 = vsel %vm582_vm2, %v7961_v52, 0.0 }
 0x1c4   : > { %6592 = vpow2.f32 %v749_v3  ;;  %v700_v5 = vsub.f32 %v7724_v32, %v648_v8  ;;  %815 = vadd.xlane.f32.xlu1 %v814_v45  ;;  %v781_v3 = vsel %vm582_vm2, %v7915_v10, 0.0 }
 0x1c5   : > { %6307 = vmatpush3.bf16.xpose.msk.msra.mxu1 %vm7142_vm1, %v6302_v26 }
 0x1c6   : > { %v7970_v49 = vpop.eup %6588  ;;  %v753_v37 = vmul.f32 1.442695, %v700_v5  ;;  %6326 = vmatprep.subr.msk.bf16.mxu1 %vm7142_vm1, %v7965_v16 }
 0x1c7   : > { %v654_v13 = vpop.xlane.xlu1 %653  ;;  %v820_v46 = vsel %vm582_vm2, %v7970_v49, 0.0 }
 0x1c8   : > { %6594 = vpow2.f32 %v753_v37  ;;  %v702_v48 = vsub.f32 %v7734_v24, %v654_v13  ;;  %821 = vadd.xlane.f32.xlu1 %v820_v46 }
 0x1ca   : > { %v7978_v32 = vpop.eup %6590  ;;  %v757_v44 = vmul.f32 1.442695, %v702_v48 }
 0x1cb   : > { %v660_v18 = vpop.xlane.xlu1 %659  ;;  %v826_v14 = vsel %vm582_vm2, %v7978_v32, 0.0 }
 0x1cc   : > { %6596 = vpow2.f32 %v757_v44  ;;  %v704_v61 = vsub.f32 %v7742_v28, %v660_v18  ;;  %827 = vadd.xlane.f32.xlu1 %v826_v14 }
 0x1ce   : > { %v7985_v27 = vpop.eup %6592  ;;  %v761_v50 = vmul.f32 1.442695, %v704_v61 }
 0x1cf   : > { %v666_v22 = vpop.xlane.xlu1 %665  ;;  %v832_v24 = vsel %vm582_vm2, %v7985_v27, 0.0 }
 0x1d0   : > { %6598 = vpow2.f32 %v761_v50  ;;  %v706_v19 = vsub.f32 %v7750_v6, %v666_v22  ;;  %v597_v26 = vpop.xlane.xlu0 %596  ;;  %833 = vadd.xlane.f32.xlu1 %v832_v24 }
 0x1d1   : > { %v683_v20 = vsub.f32 %v7656_v33, %v597_v26  ;;  %776 = vadd.xlane.f32.xlu0 %v775_v7 }
 0x1d2   : > { %v7993_v28 = vpop.eup %6594  ;;  %v765_v63 = vmul.f32 1.442695, %v706_v19 }
 0x1d3   : > { %v719_v62 = vmul.f32 1.442695, %v683_v20  ;;  %v672_v42 = vpop.xlane.xlu1 %671  ;;  %v838_v43 = vsel %vm582_vm2, %v7993_v28, 0.0 }
 0x1d4   : > { %6600 = vpow2.f32 %v765_v63  ;;  %v708_v36 = vsub.f32 %v7762_v60, %v672_v42  ;;  %v603_v6 = vpop.xlane.xlu0 %602  ;;  %839 = vadd.xlane.f32.xlu1 %v838_v43 }
 0x1d5   : > { %6602 = vpow2.f32 %v719_v62  ;;  %v685_v33 = vsub.f32 %v7666_v55, %v603_v6  ;;  %782 = vadd.xlane.f32.xlu0 %v781_v3 }
 0x1d6   : > { %v8001_v41 = vpop.eup %6596  ;;  %v769_v8 = vmul.f32 1.442695, %v708_v36 }
 0x1d7   : > { %v723_v45 = vmul.f32 1.442695, %v685_v33  ;;  %v678_v5 = vpop.xlane.xlu1 %677  ;;  %v844_v37 = vsel %vm582_vm2, %v8001_v41, 0.0 }
 0x1d8   : > { %6604 = vpow2.f32 %v769_v8  ;;  %v710_v60 = vsub.f32 %v7772_v17, %v678_v5  ;;  %v609_v13 = vpop.xlane.xlu0 %608  ;;  %845 = vadd.xlane.f32.xlu1 %v844_v37 }
 0x1d9   : > { %6606 = vpow2.f32 %v723_v45  ;;  %v687_v10 = vsub.f32 %v7672_v38, %v609_v13 }
 0x1da   : > { %v8007_v46 = vpop.eup %6598  ;;  %v773_v55 = vmul.f32 1.442695, %v710_v60 }
 0x1db   : > { %v727_v48 = vmul.f32 1.442695, %v687_v10  ;;  %v850_v44 = vsel %vm582_vm2, %v8007_v46, 0.0 }
 0x1dc   : > { %6608 = vpow2.f32 %v773_v55  ;;  %v615_v18 = vpop.xlane.xlu0 %614  ;;  %851 = vadd.xlane.f32.xlu1 %v850_v44 }
 0x1dd   : > { %6610 = vpow2.f32 %v727_v48  ;;  %v689_v14 = vsub.f32 %v7682_v31, %v615_v18 }
 0x1de   : > { %v8012_v61 = vpop.eup %6600 }
 0x1df   : > { %v6603_v17 = vpop.eup %6602  ;;  %v731_v50 = vmul.f32 1.442695, %v689_v14  ;;  %v856_v38 = vsel %vm582_vm2, %v8012_v61, 0.0 }
 0x1e0   : > { %5818 = vmatprep.mubr.msk.f32.mxu1 %vm582_vm2, %v6603_v17  ;;  %v621_v22 = vpop.xlane.xlu0 %620  ;;  %857 = vadd.xlane.f32.xlu1 %v856_v38  ;;  %v787_v24 = vsel %vm582_vm2, %v6603_v17, 0.0 }
 0x1e1   : > { %6612 = vpow2.f32 %v731_v50  ;;  %v691_v19 = vsub.f32 %v7692_v39, %v621_v22  ;;  %5819 = vmatmul.mubr.msk.f32.gmra.mrb[4].mxu1 %vm582_vm2, %v7927_v56  ;;  %788 = vadd.xlane.f32.xlu0 %v787_v24 }
 0x1e2   : > { %v8021_v31 = vpop.eup %6604 }
 0x1e3   : > { %v6607_v26 = vpop.eup %6606  ;;  %v735_v7 = vmul.f32 1.442695, %v691_v19  ;;  %v862_v20 = vsel %vm582_vm2, %v8021_v31, 0.0 }
 0x1e4   : > { %5821 = vmatprep.mubr.msk.f32.mxu1 %vm582_vm2, %v6607_v26  ;;  %v627_v63 = vpop.xlane.xlu0 %626  ;;  %863 = vadd.xlane.f32.xlu1 %v862_v20  ;;  %v793_v62 = vsel %vm582_vm2, %v6607_v26, 0.0 }
 0x1e5   : > { %6614 = vpow2.f32 %v735_v7  ;;  %v693_v39 = vsub.f32 %v7700_v34, %v627_v63  ;;  %5822 = vmatmul.mubr.msk.f32.gmra.mrb[6].mxu1 %vm582_vm2, %v7936_v15  ;;  %794 = vadd.xlane.f32.xlu0 %v793_v62 }
 0x1e6   : > { %v8030_v56 = vpop.eup %6608 }
 0x1e7   : > { %v6611_v42 = vpop.eup %6610  ;;  %v739_v43 = vmul.f32 1.442695, %v693_v39  ;;  %v868_v36 = vsel %vm582_vm2, %v8030_v56, 0.0 }
 0x1e8   : > { %5824 = vmatprep.mubr.msk.f32.mxu1 %vm582_vm2, %v6611_v42  ;;  %v633_v6 = vpop.xlane.xlu0 %632  ;;  %869 = vadd.xlane.f32.xlu1 %v868_v36  ;;  %v799_v3 = vsel %vm582_vm2, %v6611_v42, 0.0 }
 0x1e9   : > { %6616 = vpow2.f32 %v739_v43  ;;  %v695_v34 = vsub.f32 %v7710_v59, %v633_v6  ;;  %5825 = vmatmul.mubr.msk.f32.gmra.mrb[8].mxu1 %vm582_vm2, %v7945_v2  ;;  %800 = vadd.xlane.f32.xlu0 %v799_v3 }
 0x1eb   : > { %v6613_v15 = vpop.eup %6612  ;;  %v743_v33 = vmul.f32 1.442695, %v695_v34  ;;  %v10529_v34 = vld [vmem:[#allocation2_spill] sm:$0xff] }
 0x1ec   : > { %5827 = vmatprep.mubr.msk.f32.mxu1 %vm582_vm2, %v6613_v15  ;;  %v639_v8 = vpop.xlane.xlu0 %638  ;;  %v805_v45 = vsel %vm582_vm2, %v6613_v15, 0.0 }
 0x1ed   : > { %6618 = vpow2.f32 %v743_v33  ;;  %v697_v5 = vsub.f32 %v7720_v21, %v639_v8  ;;  %5828 = vmatmul.mubr.msk.f32.gmra.mrb[10].mxu1 %vm582_vm2, %v7952_v54  ;;  %806 = vadd.xlane.f32.xlu0 %v805_v45  ;;  %v10530_v8 = vld [vmem:[#allocation8_spill] sm:$0xff]  ;;  %v10531_v45 = vld [vmem:[#allocation3_spill] sm:$0xff] }
 0x1ef   : > { %v6615_v37 = vpop.eup %6614  ;;  %v747_v59 = vmul.f32 1.442695, %v697_v5  ;;  %v10532_v5 = vld [vmem:[#allocation46_spill] sm:$0xff] }
 0x1f0   : > { %5830 = vmatprep.mubr.msk.f32.mxu1 %vm582_vm2, %v6615_v37  ;;  %v645_v2 = vpop.xlane.xlu0 %644  ;;  %v811_v60 = vsel %vm582_vm2, %v6615_v37, 0.0  ;;  %v6484_v37 = vunpack.i.h.bf16 %v10532_v5 }
 0x1f1   : > { %6620 = vpow2.f32 %v747_v59  ;;  %v699_v13 = vsub.f32 %v7726_v23, %v645_v2  ;;  %5831 = vmatmul.mubr.msk.f32.gmra.mrb[12].mxu1 %vm582_vm2, %v7961_v52  ;;  %812 = vadd.xlane.f32.xlu0 %v811_v60  ;;  %v6483_v59 = vunpack.i.l.bf16 %v10532_v5  ;;  %v10533_v2 = vld [vmem:[#allocation11_spill] sm:$0xff] }
 0x1f3   : > { %v6617_v10 = vpop.eup %6616  ;;  %v751_v21 = vmul.f32 1.442695, %v699_v13  ;;  %v10534_v13 = vld [vmem:[#allocation4_spill] sm:$0xff] }
 0x1f4   : > { %5833 = vmatprep.mubr.msk.f32.mxu1 %vm582_vm2, %v6617_v10  ;;  %v651_v54 = vpop.xlane.xlu0 %650  ;;  %v817_v55 = vsel %vm582_vm2, %v6617_v10, 0.0  ;;  %v10535_v10 = vld [vmem:[#allocation13_spill] sm:$0xff] }
 0x1f5   : > { %6622 = vpow2.f32 %v751_v21  ;;  %v701_v48 = vsub.f32 %v7736_v12, %v651_v54  ;;  %5834 = vmatmul.mubr.msk.f32.gmra.mrb[14].mxu1 %vm582_vm2, %v7970_v49  ;;  %818 = vadd.xlane.f32.xlu0 %v817_v55  ;;  %v10536_v21 = vld [vmem:[#allocation5_spill] sm:$0xff] }
 0x1f7   : > { %v6619_v44 = vpop.eup %6618  ;;  %v755_v23 = vmul.f32 1.442695, %v701_v48  ;;  %v10537_v48 = vld [vmem:[#allocation27_spill] sm:$0xff] }
 0x1f8   : > { %5836 = vmatprep.mubr.msk.f32.mxu1 %vm582_vm2, %v6619_v44  ;;  %v657_v52 = vpop.xlane.xlu0 %656  ;;  %v823_v18 = vsel %vm582_vm2, %v6619_v44, 0.0  ;;  %v6489_v44 = vunpack.i.h.bf16 %v10537_v48 }
 0x1f9   : > { %6624 = vpow2.f32 %v755_v23  ;;  %v703_v14 = vsub.f32 %v7746_v30, %v657_v52  ;;  %5837 = vmatmul.mubr.msk.f32.gmra.mrb[16].mxu1 %vm582_vm2, %v7978_v32  ;;  %824 = vadd.xlane.f32.xlu0 %v823_v18  ;;  %v6488_v23 = vunpack.i.l.bf16 %v10537_v48  ;;  %v10538_v52 = vld [vmem:[#allocation16_spill] sm:$0xff]  ;;  %v10539_v18 = vld [vmem:[#allocation6_spill] sm:$0xff] }
 0x1fb   : > { %v6621_v17 = vpop.eup %6620  ;;  %v759_v12 = vmul.f32 1.442695, %v703_v14 }
 0x1fc   : > { %5839 = vmatprep.mubr.msk.f32.mxu1 %vm582_vm2, %v6621_v17  ;;  %v663_v49 = vpop.xlane.xlu0 %662  ;;  %v829_v50 = vsel %vm582_vm2, %v6621_v17, 0.0  ;;  %v6342_v17 = vpack.c.bf16 %v6489_v44, %v6488_v23  ;;  %v10555_v23 = vld [vmem:[#allocation32_spill] sm:$0xff] }
 0x1fd   : > { %6626 = vpow2.f32 %v759_v12  ;;  %v705_v38 = vsub.f32 %v7752_v1, %v663_v49  ;;  %5840 = vmatmul.mubr.msk.f32.gmra.mrb[18].mxu1 %vm582_vm2, %v7985_v27  ;;  %830 = vadd.xlane.f32.xlu0 %v829_v50  ;;  %v10540_v12 = vld [vmem:[#allocation18_spill] sm:$0xff]  ;;  %v10541_v50 = vld [vmem:[#allocation7_spill] sm:$0xff] }
 0x1ff   : > { %v6623_v22 = vpop.eup %6622  ;;  %v763_v30 = vmul.f32 1.442695, %v705_v38  ;;  %v10542_v38 = vld [vmem:[#allocation52_spill] sm:$0xff] }
 0x200   : > { %5842 = vmatprep.mubr.msk.f32.mxu1 %vm582_vm2, %v6623_v22  ;;  %v669_v32 = vpop.xlane.xlu0 %668  ;;  %v835_v24 = vsel %vm582_vm2, %v6623_v22, 0.0  ;;  %v6494_v22 = vunpack.i.h.bf16 %v10542_v38 }
 0x201   : > { %6628 = vpow2.f32 %v763_v30  ;;  %v707_v19 = vsub.f32 %v7764_v58, %v669_v32  ;;  %5843 = vmatmul.mubr.msk.f32.gmra.mrb[20].mxu1 %vm582_vm2, %v7993_v28  ;;  %836 = vadd.xlane.f32.xlu0 %v835_v24  ;;  %v6493_v30 = vunpack.i.l.bf16 %v10542_v38  ;;  %v10543_v32 = vld [vmem:[#allocation21_spill] sm:$0xff] }
 0x202   : > { %v10544_v24 = vld [vmem:[#allocation9_spill] sm:$0xff] }
 0x203   : > { %v6625_v26 = vpop.eup %6624  ;;  %v767_v1 = vmul.f32 1.442695, %v707_v19 }
 0x204   : > { %5845 = vmatprep.mubr.msk.f32.mxu1 %vm582_vm2, %v6625_v26  ;;  %v675_v27 = vpop.xlane.xlu0 %674  ;;  %v841_v7 = vsel %vm582_vm2, %v6625_v26, 0.0 }
 0x205   : > { %6630 = vpow2.f32 %v767_v1  ;;  %v709_v20 = vsub.f32 %v7776_v51, %v675_v27  ;;  %5846 = vmatmul.mubr.msk.f32.gmra.mrb[22].mxu1 %vm582_vm2, %v8001_v41  ;;  %842 = vadd.xlane.f32.xlu0 %v841_v7  ;;  %v8161_v1 = vpack.c.bf16 %v6494_v22, %v6493_v30  ;;  %v10545_v27 = vld [vmem:[#allocation23_spill] sm:$0xff]  ;;  %v10546_v7 = vld [vmem:[#allocation10_spill] sm:$0xff] }
 0x206   : > { %v10557_v22 = vld [vmem:[#allocation34_spill] sm:$0xff] }
 0x207   : > { %v6627_v63 = vpop.eup %6626  ;;  %v771_v58 = vmul.f32 1.442695, %v709_v20 }
 0x208   : > { %5848 = vmatprep.mubr.msk.f32.mxu1 %vm582_vm2, %v6627_v63  ;;  %v847_v28 = vsel %vm582_vm2, %v6627_v63, 0.0  ;;  %v8084_v42 = vpop.permute.xlu0 %3482  ;;  %v10547_v63 = vld [vmem:[#allocation25_spill] sm:$0xff] }
 0x209   : > { %6632 = vpow2.f32 %v771_v58  ;;  %5849 = vmatmul.mubr.msk.f32.gmra.mrb[24].mxu1 %vm582_vm2, %v8007_v46  ;;  %848 = vadd.xlane.f32.xlu0 %v847_v28  ;;  %v8088_v46 = vpop.permute.xlu1 %3484  ;;  %v10548_v28 = vld [vmem:[#allocation12_spill] sm:$0xff] }
 0x20b   : > { %v6629_v62 = vpop.eup %6628 }
 0x20c   : > { %5851 = vmatprep.mubr.msk.f32.mxu1 %vm582_vm2, %v6629_v62  ;;  %v853_v51 = vsel %vm582_vm2, %v6629_v62, 0.0 }
 0x20d   : > { %5852 = vmatmul.mubr.msk.f32.gmra.mrb[26].mxu1 %vm582_vm2, %v8012_v61  ;;  %854 = vadd.xlane.f32.xlu0 %v853_v51  ;;  %v10528_v61 = vld [vmem:[#allocation44_spill] sm:$0xff]  ;;  %v8100_v15 = vpop.permute.xlu1 %3488 }
 0x20e   : > { %v6479_v6 = vunpack.i.h.bf16 %v10528_v61  ;;  %v6478_v3 = vunpack.i.l.bf16 %v10528_v61 }
 0x20f   : > { %v6631_v41 = vpop.eup %6630 }
 0x210   : > { %5854 = vmatprep.mubr.msk.f32.mxu1 %vm582_vm2, %v6631_v41  ;;  %v859_v39 = vsel %vm582_vm2, %v6631_v41, 0.0  ;;  %v6330_v33 = vpack.c.bf16 %v6479_v6, %v6478_v3  ;;  %v10549_v41 = vld [vmem:[#allocation26_spill] sm:$0xff] }
 0x211   : > { %5855 = vmatmul.mubr.msk.f32.gmra.mrb[28].mxu1 %vm582_vm2, %v8021_v31  ;;  %860 = vadd.xlane.f32.xlu0 %v859_v39  ;;  %v8098_v31 = vpop.permute.xlu0 %3486  ;;  %v8117_v60 = vpop.permute.xlu1 %3492  ;;  %v10550_v39 = vld [vmem:[#allocation14_spill] sm:$0xff] }
 0x213   : > { %v6633_v43 = vpop.eup %6632 }
 0x214   : > { %5857 = vmatprep.mubr.msk.f32.mxu1 %vm582_vm2, %v6633_v43  ;;  %v865_v36 = vsel %vm582_vm2, %v6633_v43, 0.0 }
 0x215   : > { %5858 = vmatmul.mubr.msk.f32.gmra.mrb[30].mxu1 %vm582_vm2, %v8030_v56  ;;  %866 = vadd.xlane.f32.xlu0 %v865_v36  ;;  %v8111_v56 = vpop.permute.xlu0 %3490  ;;  %v8131_v55 = vpop.permute.xlu1 %3496 }
 0x216   : > { %5876 = vmatprep.mubr.msk.f32.mxu1 %vm236_vm0, %v10529_v34  ;;  %v10551_v34 = vld [vmem:[#allocation28_spill] sm:$0xff] }
 0x219   : > { %5877 = vmatmul.mubr.msk.f32.vlgmr.msra.gmra.mrb[32].mxu1 %vm236_vm0, %v10530_v8  ;;  %v8127_v54 = vpop.permute.xlu0 %3494  ;;  %v8143_v49 = vpop.permute.xlu1 %3500 }
 0x21a   : > { %6329 = vmatpush3.bf16.xpose.msk.msra.mxu1 %vm7142_vm1, %v7965_v16  ;;  %5879 = vmatprep.mubr.msk.f32.mxu1 %vm236_vm0, %v10531_v45  ;;  %v6336_v16 = vpack.c.bf16 %v6484_v37, %v6483_v59  ;;  %v10553_v37 = vld [vmem:[#allocation30_spill] sm:$0xff] }
 0x21b   : > { %6332 = vmatprep.subr.msk.bf16.mxu1 %vm7142_vm1, %v6330_v33  ;;  %v7082_v59 = vld [vmem:[%s7138_s15] sm:$0xff] }
 0x21d   : > { %5880 = vmatmul.mubr.msk.f32.gmra.mrb[34].mxu1 %vm236_vm0, %v10533_v2  ;;  %v8139_v14 = vpop.permute.xlu0 %3498  ;;  %v8159_v26 = vpop.permute.xlu1 %3504  ;;  %v7083_v2 = vld [vmem:[%s7138_s15 + $0x8] sm:$0xff] }
 0x21e   : > { %5882 = vmatprep.mubr.msk.f32.mxu1 %vm236_vm0, %v10534_v13  ;;  %v6550_v13 = vpack.i.bf16 %v7083_v2, %v7082_v59  ;;  %v10567_v59 = vld [vmem:[#allocation33_spill] sm:$0xff] }
 0x221   : > { %5883 = vmatmul.mubr.msk.f32.gmra.mrb[36].mxu1 %vm236_vm0, %v10535_v10  ;;  %v8157_v19 = vpop.permute.xlu0 %3502  ;;  %v6512_v58 = vpop.permute.xlu1 %6511  ;;  %v10554_v10 = vld [vmem:[#allocation17_spill] sm:$0xff] }
 0x222   : > { %6335 = vmatpush3.bf16.xpose.msk.msra.mxu1 %vm7142_vm1, %v6330_v33  ;;  %5885 = vmatprep.mubr.msk.f32.mxu1 %vm236_vm0, %v10536_v21  ;;  %v6514_v62 = vunpack.i.h.bf16 %v6512_v58  ;;  %v6513_v51 = vunpack.i.l.bf16 %v6512_v58  ;;  %v10552_v33 = vld [vmem:[#allocation15_spill] sm:$0xff] }
 0x223   : > { %6338 = vmatprep.subr.msk.bf16.mxu1 %vm7142_vm1, %v6336_v16  ;;  %v7089_v58 = vld [vmem:[%s7138_s15 + $0x28] sm:$0xff] }
 0x224   : > { %v6308_v6 = vpack.c.bf16 %v6514_v62, %v6513_v51  ;;  %v10558_v62 = vld [vmem:[#allocation20_spill] sm:$0xff] }
 0x225   : > { %5886 = vmatmul.mubr.msk.f32.gmra.mrb[38].mxu1 %vm236_vm0, %v10538_v52  ;;  %v8172_v20 = vpop.permute.xlu0 %3506  ;;  %v6522_v3 = vpop.permute.xlu1 %6521  ;;  %v7084_v52 = vld [vmem:[%s7138_s15 + $0x10] sm:$0xff] }
 0x226   : > { %5888 = vmatprep.mubr.msk.f32.mxu1 %vm236_vm0, %v10539_v18  ;;  %6309 = vmatprep.subr.bf16.mxu0 %v6308_v6  ;;  %v6524_v8 = vunpack.i.h.bf16 %v6522_v3  ;;  %v6523_v45 = vunpack.i.l.bf16 %v6522_v3  ;;  %v7085_v18 = vld [vmem:[%s7138_s15 + $0x18] sm:$0xff]  ;;  %v10559_v51 = vld [vmem:[#allocation36_spill] sm:$0xff] }
 0x227   : > { %6311 = vmatpush3.bf16.msra.mxu0 %v6308_v6  ;;  %v10563_v6 = vld [vmem:[#allocation59_spill] sm:$0xff] }
 0x228   : > { %v6316_v44 = vpack.c.bf16 %v6524_v8, %v6523_v45  ;;  %v6499_v3 = vunpack.i.h.bf16 %v10563_v6  ;;  %v10565_v45 = vld [vmem:[#allocation29_spill] sm:$0xff] }
 0x229   : > { %5889 = vmatmul.mubr.msk.f32.gmra.mrb[40].mxu1 %vm236_vm0, %v10540_v12  ;;  %v6517_v43 = vpop.permute.xlu0 %6516  ;;  %v10556_v12 = vld [vmem:[#allocation19_spill] sm:$0xff] }
 0x22a   : > { %6341 = vmatpush3.bf16.xpose.msk.msra.mxu1 %vm7142_vm1, %v6336_v16  ;;  %5891 = vmatprep.mubr.msk.f32.mxu1 %vm236_vm0, %v10541_v50  ;;  %v6519_v36 = vunpack.i.h.bf16 %v6517_v43  ;;  %v6518_v61 = vunpack.i.l.bf16 %v6517_v43  ;;  %v6527_v16 = vpop.permute.xlu1 %6526 }
 0x22b   : > { %6344 = vmatprep.subr.msk.bf16.mxu1 %vm7142_vm1, %v6342_v17  ;;  %v6529_v21 = vunpack.i.h.bf16 %v6527_v16  ;;  %v6528_v48 = vunpack.i.l.bf16 %v6527_v16  ;;  %6551 = vrot.lane.b32.xlu0 %v6550_v13, %s7104_s25  ;;  %v10569_v13 = vld [vmem:[#allocation62_spill] sm:$0xff] }
 0x22c   : > { %v6312_v5 = vpack.c.bf16 %v6519_v36, %v6518_v61  ;;  %v10561_v36 = vld [vmem:[#allocation38_spill] sm:$0xff]  ;;  %v10562_v61 = vld [vmem:[#allocation24_spill] sm:$0xff]  ;;  %v6504_v16 = vunpack.i.h.bf16 %v10569_v13 }
 0x22d   : > { %5892 = vmatmul.mubr.msk.f32.gmra.mrb[42].mxu1 %vm236_vm0, %v10543_v32  ;;  %v6320_v50 = vpack.c.bf16 %v6529_v21, %v6528_v48  ;;  %v6532_v38 = vpop.permute.xlu0 %6531  ;;  %v10570_v21 = vld [vmem:[#allocation35_spill] sm:$0xff] }
 0x22e   : > { %5894 = vmatprep.mubr.msk.f32.mxu1 %vm236_vm0, %v10544_v24  ;;  %6313 = vmatprep.subr.bf16.mxu0 %v6312_v5  ;;  %v6534_v30 = vunpack.i.h.bf16 %v6532_v38  ;;  %v6533_v32 = vunpack.i.l.bf16 %v6532_v38  ;;  %v7086_v24 = vld [vmem:[%s7138_s15 + $0x30] sm:$0xff]  ;;  %v8213_v43 = vpop.permute.xlu1 %6536  ;;  %v10576_v38 = vld [vmem:[#allocation42_spill] sm:$0xff] }
 0x22f   : > { %6315 = vmatpush3.bf16.msra.mxu0 %v6312_v5 }
 0x230   : > { %6317 = vmatprep.subr.bf16.mxu0 %v6316_v44 }
 0x231   : > { %5895 = vmatmul.mubr.msk.f32.gmra.mrb[44].mxu1 %vm236_vm0, %v10545_v27  ;;  %v7087_v27 = vld [vmem:[%s7138_s15 + $0x38] sm:$0xff]  ;;  %v8242_v48 = vpop.permute.xlu0 %6541 }
 0x232   : > { %6347 = vmatpush3.bf16.xpose.msk.msra.mxu1 %vm7142_vm1, %v6342_v17  ;;  %5897 = vmatprep.mubr.msk.f32.mxu1 %vm236_vm0, %v10546_v7  ;;  %v6555_v17 = vpack.i.bf16 %v7085_v18, %v7084_v52  ;;  %v6565_v7 = vpack.i.bf16 %v7087_v27, %v7086_v24  ;;  %v8223_v8 = vpop.permute.xlu1 %6546  ;;  %v10574_v18 = vld [vmem:[#allocation41_spill] sm:$0xff]  ;;  %v10579_v24 = vld [vmem:[#allocation43_spill] sm:$0xff] }
 0x233   : > { %6366 = vmatprep.subr.msk.bf16.mxu1 %vm7142_vm1, %v8161_v1  ;;  %6319 = vmatpush3.bf16.msra.mxu0 %v6316_v44  ;;  %v10571_v44 = vld [vmem:[#allocation37_spill] sm:$0xff] }
 0x234   : > { %6556 = vrot.lane.b32.xlu1 %v6555_v17, %s7104_s25  ;;  %6321 = vmatprep.subr.bf16.mxu0 %v6320_v50 }
 0x235   : > { %5898 = vmatmul.mubr.msk.f32.gmra.mrb[46].mxu1 %vm236_vm0, %v10547_v63  ;;  %v7088_v63 = vld [vmem:[%s7138_s15 + $0x20] sm:$0xff] }
 0x236   : > { %5900 = vmatprep.mubr.msk.f32.mxu1 %vm236_vm0, %v10548_v28  ;;  %v6560_v28 = vpack.i.bf16 %v7089_v58, %v7088_v63  ;;  %v8236_v2 = vpop.xlane.xlu1 %779  ;;  %v10583_v63 = vld [vmem:[#allocation47_spill] sm:$0xff]  ;;  %v10584_v58 = vld [vmem:[#allocation49_spill] sm:$0xff] }
 0x237   : > { %6323 = vmatpush3.bf16.msra.mxu0 %v6320_v50  ;;  %10568 = vst [vmem:[#allocation44_spill] sm:$0xff] %v8236_v2  ;;  %v6508_v50 = vunpack.i.l.bf16 %v7798_v4 }
 0x238   : > { %6566 = vrot.lane.b32.xlu1 %v6565_v7, %s7104_s25  ;;  %6561 = vrot.lane.b32.xlu0 %v6560_v28, %s7104_s25  ;;  %v10581_v7 = vld [vmem:[#allocation45_spill] sm:$0xff] }
 0x239   : > { %5901 = vmatmul.mubr.msk.f32.gmra.mrb[48].mxu1 %vm236_vm0, %v10549_v41  ;;  %v8208_v41 = vpack.c.bf16 %v6534_v30, %v6533_v32  ;;  %v10578_v30 = vld [vmem:[#allocation48_spill] sm:$0xff] }
 0x23a   : > { %5903 = vmatprep.mubr.msk.f32.mxu1 %vm236_vm0, %v10550_v39  ;;  %v10560_v39 = vld [vmem:[#allocation22_spill] sm:$0xff]  ;;  %v8248_v52 = vpop.xlane.xlu1 %785 }
 0x23b   : > { %6349 = vmatprep.subr.bf16.mxu0 %v8208_v41  ;;  %10573 = vst [vmem:[#allocation2_spill] sm:$0xff] %v8248_v52 }
 0x23d   : > { %5904 = vmatmul.mubr.msk.f32.gmra.mrb[50].mxu1 %vm236_vm0, %v10551_v34  ;;  %v6498_v34 = vunpack.i.l.bf16 %v10563_v6  ;;  %v10591_v6 = vld [vmem:[#allocation55_spill] sm:$0xff] }
 0x23e   : > { %5906 = vmatprep.mubr.msk.f32.mxu1 %vm236_vm0, %v10552_v33  ;;  %v10564_v33 = vld [vmem:[#allocation40_spill] sm:$0xff] }
 0x23f   : > { %v6370_v5 = vpack.c.bf16 %v6499_v3, %v6498_v34 }
 0x241   : > { %5907 = vmatmul.mubr.msk.f32.gmra.mrb[52].mxu1 %vm236_vm0, %v10553_v37  ;;  %v10566_v37 = vld [vmem:[#allocation31_spill] sm:$0xff] }
 0x242   : > { %5909 = vmatprep.mubr.msk.f32.mxu1 %vm236_vm0, %v10554_v10  ;;  %v6503_v10 = vunpack.i.l.bf16 %v10569_v13 }
 0x245   : > { %5910 = vmatmul.mubr.msk.f32.gmra.mrb[54].mxu1 %vm236_vm0, %v10555_v23  ;;  %v10572_v23 = vld [vmem:[#allocation39_spill] sm:$0xff] }
 0x246   : > { %5912 = vmatprep.mubr.msk.f32.mxu1 %vm236_vm0, %v10556_v12  ;;  %v6509_v12 = vunpack.i.h.bf16 %v7798_v4 }
 0x248   : > { %v6382_v32 = vpack.c.bf16 %v6509_v12, %v6508_v50  ;;  %v10609_v50 = vld [vmem:[#allocation63_spill] sm:$0xff] }
 0x249   : > { %5913 = vmatmul.mubr.msk.f32.gmra.mrb[56].mxu1 %vm236_vm0, %v10557_v22  ;;  %v8262_v22 = vpop.xlane.xlu1 %791 }
 0x24a   : > { %5915 = vmatprep.mubr.msk.f32.mxu1 %vm236_vm0, %v10558_v62  ;;  %10577 = vst [vmem:[#allocation3_spill] sm:$0xff] %v8262_v22  ;;  %v10586_v62 = vld [vmem:[#allocation51_spill] sm:$0xff] }
 0x24d   : > { %5916 = vmatmul.mubr.msk.f32.gmra.mrb[58].mxu1 %vm236_vm0, %v10559_v51  ;;  %v8276_v4 = vpop.xlane.xlu1 %797 }
 0x24e   : > { %5918 = vmatprep.mubr.msk.f32.mxu1 %vm236_vm0, %v10560_v39  ;;  %10582 = vst [vmem:[#allocation11_spill] sm:$0xff] %v8276_v4  ;;  %v10588_v39 = vld [vmem:[#allocation50_spill] sm:$0xff] }
 0x251   : > { %5919 = vmatmul.mubr.msk.f32.gmra.mrb[60].mxu1 %vm236_vm0, %v10561_v36  ;;  %v8286_v51 = vpop.xlane.xlu1 %803 }
 0x252   : > { %5921 = vmatprep.mubr.msk.f32.mxu1 %vm236_vm0, %v10562_v61  ;;  %10587 = vst [vmem:[#allocation13_spill] sm:$0xff] %v8286_v51  ;;  %v10590_v61 = vld [vmem:[#allocation53_spill] sm:$0xff] }
 0x255   : > { %5922 = vmatmul.mubr.msk.f32.gmra.mrb[62].mxu1 %vm236_vm0, %v10564_v33  ;;  %v8300_v34 = vpop.xlane.xlu1 %809  ;;  %v10594_v33 = vld [vmem:[#allocation54_spill] sm:$0xff] }
 0x256   : > { %6004 = vmatprep.mubr.msk.f32.mxu1 %vm236_vm0, %v10565_v45  ;;  %10593 = vst [vmem:[#allocation16_spill] sm:$0xff] %v8300_v34 }
 0x259   : > { %6005 = vmatmul.mubr.msk.f32.vlgmr.msra.gmra.mrb[64].mxu1 %vm236_vm0, %v10566_v37  ;;  %v8310_v37 = vpop.xlane.xlu1 %815 }
 0x25a   : > { %6369 = vmatpush3.bf16.xpose.msk.msra.mxu1 %vm7142_vm1, %v8161_v1  ;;  %6007 = vmatprep.mubr.msk.f32.mxu1 %vm236_vm0, %v10567_v59  ;;  %v6376_v1 = vpack.c.bf16 %v6504_v16, %v6503_v10  ;;  %10598 = vst [vmem:[#allocation18_spill] sm:$0xff] %v8310_v37  ;;  %v10599_v59 = vld [vmem:[#allocation58_spill] sm:$0xff] }
 0x25b   : > { %6372 = vmatprep.subr.msk.bf16.mxu1 %vm7142_vm1, %v6370_v5 }
 0x25d   : > { %6008 = vmatmul.mubr.msk.f32.gmra.mrb[66].mxu1 %vm236_vm0, %v10570_v21  ;;  %v10603_v21 = vld [vmem:[#allocation61_spill] sm:$0xff] }
 0x25e   : > { %6010 = vmatprep.mubr.msk.f32.mxu1 %vm236_vm0, %v10571_v44  ;;  %v8256_v17 = vpop.xlane.xlu0 %776  ;;  %v10604_v44 = vld [vmem:[#allocation60_spill] sm:$0xff] }
 0x25f   : > { %10575 = vst [vmem:[#allocation8_spill] sm:$0xff] %v8256_v17 }
 0x261   : > { %6011 = vmatmul.mubr.msk.f32.gmra.mrb[68].mxu1 %vm236_vm0, %v10572_v23 }
 0x262   : > { %6375 = vmatpush3.bf16.xpose.msk.msra.mxu1 %vm7142_vm1, %v6370_v5  ;;  %6013 = vmatprep.mubr.msk.f32.mxu1 %vm236_vm0, %v10574_v18  ;;  %v8268_v27 = vpop.xlane.xlu0 %782  ;;  %v10597_v5 = vld [vmem:[#allocation56_spill] sm:$0xff]  ;;  %v8328_v18 = vpop.xlane.xlu1 %821 }
 0x263   : > { %6378 = vmatprep.subr.msk.bf16.mxu1 %vm7142_vm1, %v6376_v1  ;;  %10580 = vst [vmem:[#allocation46_spill] sm:$0xff] %v8268_v27  ;;  %10607 = vst [vmem:[#allocation10_spill] sm:$0xff] %v8328_v18 }
 0x265   : > { %6014 = vmatmul.mubr.msk.f32.gmra.mrb[70].mxu1 %vm236_vm0, %v10576_v38 }
 0x266   : > { %6016 = vmatprep.mubr.msk.f32.mxu1 %vm236_vm0, %v10578_v30  ;;  %v10611_v30 = vld [vmem:[#allocation64_spill] sm:$0xff] }
 0x269   : > { %6017 = vmatmul.mubr.msk.f32.gmra.mrb[72].mxu1 %vm236_vm0, %v10579_v24 }
 0x26a   : > { %6381 = vmatpush3.bf16.xpose.msk.msra.mxu1 %vm7142_vm1, %v6376_v1  ;;  %6019 = vmatprep.mubr.msk.f32.mxu1 %vm236_vm0, %v10581_v7  ;;  %v10614_v7 = vld [vmem:[#allocation65_spill] sm:$0xff] }
 0x26b   : > { %6384 = vmatprep.subr.msk.bf16.mxu1 %vm7142_vm1, %v6382_v32 }
 0x26d   : > { %6020 = vmatmul.mubr.msk.f32.gmra.mrb[74].mxu1 %vm236_vm0, %v10583_v63  ;;  %v10615_v63 = vld [vmem:[#allocation66_spill] sm:$0xff] }
 0x26e   : > { %6022 = vmatprep.mubr.msk.f32.mxu1 %vm236_vm0, %v10584_v58  ;;  %v8282_v28 = vpop.xlane.xlu0 %788 }
 0x26f   : > { %10585 = vst [vmem:[#allocation4_spill] sm:$0xff] %v8282_v28 }
 0x271   : > { %6023 = vmatmul.mubr.msk.f32.gmra.mrb[76].mxu1 %vm236_vm0, %v10586_v62 }
 0x272   : > { %6387 = vmatpush3.bf16.xpose.msk.msra.mxu1 %vm7142_vm1, %v6382_v32  ;;  %6025 = vmatprep.mubr.msk.f32.mxu1 %vm236_vm0, %v10588_v39  ;;  %v8292_v36 = vpop.xlane.xlu0 %794  ;;  %v8340_v32 = vpop.xlane.xlu1 %827 }
 0x273   : > { %10589 = vst [vmem:[#allocation5_spill] sm:$0xff] %v8292_v36  ;;  %10612 = vst [vmem:[#allocation26_spill] sm:$0xff] %v8340_v32 }
 0x275   : > { %6026 = vmatmul.mubr.msk.f32.gmra.mrb[78].mxu1 %vm236_vm0, %v10590_v61  ;;  %v10621_v61 = vld [vmem:[#allocation68_spill] sm:$0xff] }
 0x276   : > { %6028 = vmatprep.mubr.msk.f32.mxu1 %vm236_vm0, %v10591_v6  ;;  %v8298_v3 = vpop.xlane.xlu0 %800  ;;  %v8350_v58 = vpop.xlane.xlu1 %833  ;;  %v10624_v6 = vld [vmem:[#allocation70_spill] sm:$0xff] }
 0x277   : > { %10592 = vst [vmem:[#allocation27_spill] sm:$0xff] %v8298_v3  ;;  %10616 = vst [vmem:[#allocation28_spill] sm:$0xff] %v8350_v58 }
 0x279   : > { %6029 = vmatmul.mubr.msk.f32.gmra.mrb[80].mxu1 %vm236_vm0, %v10594_v33  ;;  %v10626_v33 = vld [vmem:[#allocation69_spill] sm:$0xff] }
 0x27a   : > { %6031 = vmatprep.mubr.msk.f32.mxu1 %vm236_vm0, %v10595_v0  ;;  %v8306_v45 = vpop.xlane.xlu0 %806  ;;  %v10628_v0 = vld [vmem:[#allocation72_spill] sm:$0xff] }
 0x27b   : > { %10596 = vst [vmem:[#allocation6_spill] sm:$0xff] %v8306_v45 }
 0x27d   : > { %6032 = vmatmul.mubr.msk.f32.gmra.mrb[82].mxu1 %vm236_vm0, %v10597_v5  ;;  %v10629_v5 = vld [vmem:[#allocation71_spill] sm:$0xff] }
 0x27e   : > { %6034 = vmatprep.mubr.msk.f32.mxu1 %vm236_vm0, %v10599_v59  ;;  %v8314_v13 = vpop.xlane.xlu0 %812  ;;  %v10632_v59 = vld [vmem:[#allocation73_spill] sm:$0xff] }
 0x27f   : > { %10600 = vst [vmem:[#allocation7_spill] sm:$0xff] %v8314_v13  ;;  %v8316_v16 = vpop.f32.mrb[0].mxu1 }
 0x280   : > { %10601 = vst [vmem:[#allocation52_spill] sm:$0xff] %v8316_v16  ;;  %v8318_v10 = vpop.f32.mrb[1].mxu1 }
 0x281   : > { %10602 = vst [vmem:[#allocation21_spill] sm:$0xff] %v8318_v10  ;;  %6035 = vmatmul.mubr.msk.f32.gmra.mrb[84].mxu1 %vm236_vm0, %v10603_v21 }
 0x282   : > { %6037 = vmatprep.mubr.msk.f32.mxu1 %vm236_vm0, %v10604_v44  ;;  %v8324_v1 = vpop.xlane.xlu0 %818  ;;  %v10634_v44 = vld [vmem:[#allocation76_spill] sm:$0xff] }
 0x283   : > { %10605 = vst [vmem:[#allocation9_spill] sm:$0xff] %v8324_v1  ;;  %v8326_v23 = vpop.f32.mrb[2].mxu1 }
 0x284   : > { %10606 = vst [vmem:[#allocation23_spill] sm:$0xff] %v8326_v23  ;;  %v8330_v12 = vpop.f32.mrb[3].mxu1 }
 0x285   : > { %10608 = vst [vmem:[#allocation25_spill] sm:$0xff] %v8330_v12  ;;  %6038 = vmatmul.mubr.msk.f32.gmra.mrb[86].mxu1 %vm236_vm0, %v10609_v50 }
 0x286   : > { %6040 = vmatprep.mubr.msk.f32.mxu1 %vm236_vm0, %v7784_v29  ;;  %v8336_v38 = vpop.xlane.xlu0 %824  ;;  %v10617_v29 = vld [vmem:[#allocation67_spill] sm:$0xff] }
 0x287   : > { %10610 = vst [vmem:[#allocation12_spill] sm:$0xff] %v8336_v38 }
 0x289   : > { %6041 = vmatmul.mubr.msk.f32.gmra.mrb[88].mxu1 %vm236_vm0, %v10611_v30  ;;  %v10636_v30 = vld [vmem:[#allocation75_spill] sm:$0xff] }
 0x28a   : > { %6043 = vmatprep.mubr.msk.f32.mxu1 %vm236_vm0, %v7792_v25  ;;  %v8344_v24 = vpop.xlane.xlu0 %830  ;;  %v8360_v25 = vpop.xlane.xlu1 %839 }
 0x28b   : > { %10613 = vst [vmem:[#allocation14_spill] sm:$0xff] %v8344_v24  ;;  %10619 = vst [vmem:[#allocation30_spill] sm:$0xff] %v8360_v25 }
 0x28d   : > { %6044 = vmatmul.mubr.msk.f32.gmra.mrb[90].mxu1 %vm236_vm0, %v10614_v7 }
 0x28e   : > { %6046 = vmatprep.mubr.msk.f32.mxu1 %vm236_vm0, %v10615_v63  ;;  %v8356_v62 = vpop.xlane.xlu0 %836  ;;  %v10638_v63 = vld [vmem:[#allocation78_spill] sm:$0xff] }
 0x28f   : > { %10618 = vst [vmem:[#allocation15_spill] sm:$0xff] %v8356_v62 }
 0x291   : > { %6047 = vmatmul.mubr.msk.f32.gmra.mrb[92].mxu1 %vm236_vm0, %v7808_v9  ;;  %v8370_v9 = vpop.xlane.xlu1 %845 }
 0x292   : > { %6049 = vmatprep.mubr.msk.f32.mxu1 %vm236_vm0, %v10617_v29  ;;  %v8364_v39 = vpop.xlane.xlu0 %842  ;;  %10622 = vst [vmem:[#allocation32_spill] sm:$0xff] %v8370_v9  ;;  %v10639_v29 = vld [vmem:[#allocation77_spill] sm:$0xff] }
 0x293   : > { %10620 = vst [vmem:[#allocation17_spill] sm:$0xff] %v8364_v39 }
 0x295   : > { %6050 = vmatmul.mubr.msk.f32.gmra.mrb[94].mxu1 %vm236_vm0, %v7816_v47 }
 0x296   : > { %6132 = vmatprep.mubr.msk.f32.mxu1 %vm236_vm0, %v7814_v11  ;;  %v8376_v47 = vpop.xlane.xlu0 %848  ;;  %v8380_v11 = vpop.xlane.xlu1 %851 }
 0x297   : > { %10623 = vst [vmem:[#allocation19_spill] sm:$0xff] %v8376_v47  ;;  %10625 = vst [vmem:[#allocation34_spill] sm:$0xff] %v8380_v11 }
 0x299   : > { %6133 = vmatmul.mubr.msk.f32.vlgmr.msra.gmra.mrb[96].mxu1 %vm236_vm0, %v7828_v40 }
 0x29a   : > { %6135 = vmatprep.mubr.msk.f32.mxu1 %vm236_vm0, %v10621_v61  ;;  %v8384_v40 = vpop.xlane.xlu0 %854 }
 0x29b   : > { %10627 = vst [vmem:[#allocation20_spill] sm:$0xff] %v8384_v40 }
 0x29d   : > { %6136 = vmatmul.mubr.msk.f32.gmra.mrb[98].mxu1 %vm236_vm0, %v7836_v53  ;;  %v8390_v53 = vpop.xlane.xlu1 %857 }
 0x29e   : > { %6138 = vmatprep.mubr.msk.f32.mxu1 %vm236_vm0, %v7834_v35  ;;  %10630 = vst [vmem:[#allocation36_spill] sm:$0xff] %v8390_v53  ;;  %v10631_v35 = vld [vmem:[#allocation74_spill] sm:$0xff]  ;;  %v8396_v21 = vpop.xlane.xlu0 %860 }
 0x29f   : > { %10633 = vst [vmem:[#allocation22_spill] sm:$0xff] %v8396_v21 }
 0x2a1   : > { %6139 = vmatmul.mubr.msk.f32.gmra.mrb[100].mxu1 %vm236_vm0, %v10624_v6  ;;  %v8400_v50 = vpop.xlane.xlu1 %863 }
 0x2a2   : > { %6141 = vmatprep.mubr.msk.f32.mxu1 %vm236_vm0, %v10626_v33  ;;  %10635 = vst [vmem:[#allocation38_spill] sm:$0xff] %v8400_v50  ;;  %v8404_v7 = vpop.xlane.xlu0 %866 }
 0x2a3   : > { %10637 = vst [vmem:[#allocation24_spill] sm:$0xff] %v8404_v7  ;;  %v10647_v7 = vld [vmem:[#allocation81_spill] sm:$0xff] }
 0x2a5   : > { %6142 = vmatmul.mubr.msk.f32.gmra.mrb[102].mxu1 %vm236_vm0, %v10628_v0  ;;  %v8410_v61 = vpop.xlane.xlu1 %869  ;;  %v10643_v0 = vld [vmem:[#allocation80_spill] sm:$0xff] }
 0x2a6   : > { %6144 = vmatprep.mubr.msk.f32.mxu1 %vm236_vm0, %v10629_v5  ;;  %10640 = vst [vmem:[#allocation59_spill] sm:$0xff] %v8410_v61  ;;  %v6552_v5 = vpop.permute.xlu0 %6551 }
 0x2a9   : > { %6145 = vmatmul.mubr.msk.f32.gmra.mrb[104].mxu1 %vm236_vm0, %v10631_v35  ;;  %v10644_v35 = vld [vmem:[#allocation79_spill] sm:$0xff]  ;;  %v6557_v61 = vpop.permute.xlu1 %6556 }
 0x2aa   : > { %6147 = vmatprep.mubr.msk.f32.mxu1 %vm236_vm0, %v10632_v59  ;;  %v6554_v59 = vunpack.i.h.bf16 %v6552_v5  ;;  %v6558_v50 = vunpack.i.l.bf16 %v6557_v61 }
 0x2ad   : > { %6148 = vmatmul.mubr.msk.f32.gmra.mrb[106].mxu1 %vm236_vm0, %v10634_v44  ;;  %v6553_v44 = vunpack.i.l.bf16 %v6552_v5 }
 0x2ae   : > { %6150 = vmatprep.mubr.msk.f32.mxu1 %vm236_vm0, %v10636_v30 }
 0x2b1   : > { %6151 = vmatmul.mubr.msk.f32.gmra.mrb[108].mxu1 %vm236_vm0, %v10638_v63  ;;  %v8422_v63 = vpack.c.bf16 %v6554_v59, %v6553_v44 }
 0x2b2   : > { %6153 = vmatprep.mubr.msk.f32.mxu1 %vm236_vm0, %v10639_v29 }
 0x2b3   : > { %6404 = vmatprep.subr.bf16.mxu1 %v8422_v63 }
 0x2b4   : > { %v8412_v6 = vpop.f32.mrb[4].mxu1  ;;  %6408 = vmatpush3.bf16.msra.mxu1 %v8422_v63 }
 0x2b5   : > { %10641 = vst [vmem:[#allocation40_spill] sm:$0xff] %v8412_v6  ;;  %v8414_v33 = vpop.f32.mrb[5].mxu1  ;;  %6154 = vmatmul.mubr.msk.f32.gmra.mrb[110].mxu1 %vm236_vm0, %v10643_v0  ;;  %v6559_v0 = vunpack.i.h.bf16 %v6557_v61  ;;  %v6567_v61 = vpop.permute.xlu1 %6566 }
 0x2b6   : > { %10642 = vst [vmem:[#allocation29_spill] sm:$0xff] %v8414_v33  ;;  %6156 = vmatprep.mubr.msk.f32.mxu1 %vm236_vm0, %v10644_v35  ;;  %v6568_v53 = vunpack.i.l.bf16 %v6567_v61 }
 0x2b7   : > { %v8434_v35 = vpack.c.bf16 %v6559_v0, %v6558_v50  ;;  %v6569_v0 = vunpack.i.h.bf16 %v6567_v61 }
 0x2b8   : > { %v8420_v30 = vpop.f32.mrb[6].mxu1 }
 0x2b9   : > { %10645 = vst [vmem:[#allocation31_spill] sm:$0xff] %v8420_v30  ;;  %v8424_v29 = vpop.f32.mrb[7].mxu1  ;;  %6157 = vmatmul.mubr.msk.f32.gmra.mrb[112].mxu1 %vm236_vm0, %v7982_v57  ;;  %v6562_v57 = vpop.permute.xlu0 %6561  ;;  %6405 = vmatprep.subr.bf16.mxu1 %v8434_v35 }
 0x2ba   : > { %10646 = vst [vmem:[#allocation33_spill] sm:$0xff] %v8424_v29  ;;  %6159 = vmatprep.mubr.msk.f32.mxu1 %vm236_vm0, %v10647_v7  ;;  %v6564_v7 = vunpack.i.h.bf16 %v6562_v57  ;;  %v6563_v44 = vunpack.i.l.bf16 %v6562_v57  ;;  %6409 = vmatpush3.bf16.msra.mxu1 %v8434_v35 }
 0x2bc   : > { %v8432_v5 = vpop.f32.mrb[8].mxu1  ;;  %v8446_v50 = vpack.c.bf16 %v6564_v7, %v6563_v44 }
 0x2bd   : > { %10648 = vst [vmem:[#allocation62_spill] sm:$0xff] %v8432_v5  ;;  %v8436_v59 = vpop.f32.mrb[9].mxu1  ;;  %6160 = vmatmul.mubr.msk.f32.gmra.mrb[114].mxu1 %vm236_vm0, %v8084_v42  ;;  %v8454_v42 = vpack.c.bf16 %v6569_v0, %v6568_v53 }
 0x2be   : > { %10649 = vst [vmem:[#allocation35_spill] sm:$0xff] %v8436_v59  ;;  %6162 = vmatprep.mubr.msk.f32.mxu1 %vm236_vm0, %v8088_v46  ;;  %6406 = vmatprep.subr.bf16.mxu1 %v8446_v50 }
 0x2bf   : > { %10652 = vst [vmem:[#allocation41_spill] sm:$0xff] %v8454_v42  ;;  %6410 = vmatpush3.bf16.msra.mxu1 %v8446_v50 }
 0x2c0   : > { %v8444_v21 = vpop.f32.mrb[10].mxu1  ;;  %6407 = vmatprep.subr.bf16.mxu1 %v8454_v42 }
 0x2c1   : > { %10650 = vst [vmem:[#allocation37_spill] sm:$0xff] %v8444_v21  ;;  %v8448_v40 = vpop.f32.mrb[11].mxu1  ;;  %6163 = vmatmul.mubr.msk.f32.gmra.mrb[116].mxu1 %vm236_vm0, %v8098_v31 }
 0x2c2   : > { %10651 = vst [vmem:[#allocation39_spill] sm:$0xff] %v8448_v40  ;;  %6165 = vmatprep.mubr.msk.f32.mxu1 %vm236_vm0, %v8100_v15 }
 0x2c3   : > { %6411 = vmatpush3.bf16.msra.mxu1 %v8454_v42 }
 0x2c4   : > { %v8458_v46 = vpop.f32.mrb[12].mxu1 }
 0x2c5   : > { %10653 = vst [vmem:[#allocation42_spill] sm:$0xff] %v8458_v46  ;;  %v8461_v57 = vpop.f32.mrb[13].mxu1  ;;  %6166 = vmatmul.mubr.msk.f32.gmra.mrb[118].mxu1 %vm236_vm0, %v8111_v56 }
 0x2c6   : > { %10654 = vst [vmem:[#allocation48_spill] sm:$0xff] %v8461_v57  ;;  %6168 = vmatprep.mubr.msk.f32.mxu1 %vm236_vm0, %v8117_v60 }
 0x2c8   : > { %v8468_v31 = vpop.f32.mrb[14].mxu1 }
 0x2c9   : > { %10655 = vst [vmem:[#allocation43_spill] sm:$0xff] %v8468_v31  ;;  %v8470_v15 = vpop.f32.mrb[15].mxu1  ;;  %6169 = vmatmul.mubr.msk.f32.gmra.mrb[120].mxu1 %vm236_vm0, %v8127_v54 }
 0x2ca   : > { %10656 = vst [vmem:[#allocation45_spill] sm:$0xff] %v8470_v15  ;;  %6171 = vmatprep.mubr.msk.f32.mxu1 %vm236_vm0, %v8131_v55 }
 0x2cc   : > { %v8476_v53 = vpop.f32.mrb[16].mxu1 }
 0x2cd   : > { %10657 = vst [vmem:[#allocation47_spill] sm:$0xff] %v8476_v53  ;;  %v8478_v7 = vpop.f32.mrb[17].mxu1  ;;  %6172 = vmatmul.mubr.msk.f32.gmra.mrb[122].mxu1 %vm236_vm0, %v8139_v14 }
 0x2ce   : > { %10658 = vst [vmem:[#allocation49_spill] sm:$0xff] %v8478_v7  ;;  %6174 = vmatprep.mubr.msk.f32.mxu1 %vm236_vm0, %v8143_v49 }
 0x2d0   : > { %v8484_v56 = vpop.f32.mrb[18].mxu1 }
 0x2d1   : > { %10659 = vst [vmem:[#allocation51_spill] sm:$0xff] %v8484_v56  ;;  %v8486_v60 = vpop.f32.mrb[19].mxu1  ;;  %6175 = vmatmul.mubr.msk.f32.gmra.mrb[124].mxu1 %vm236_vm0, %v8157_v19 }
 0x2d2   : > { %10660 = vst [vmem:[#allocation50_spill] sm:$0xff] %v8486_v60  ;;  %6177 = vmatprep.mubr.msk.f32.mxu1 %vm236_vm0, %v8159_v26 }
 0x2d4   : > { %v8492_v54 = vpop.f32.mrb[20].mxu1 }
 0x2d5   : > { %10661 = vst [vmem:[#allocation53_spill] sm:$0xff] %v8492_v54  ;;  %v8494_v55 = vpop.f32.mrb[21].mxu1  ;;  %6178 = vmatmul.mubr.msk.f32.gmra.mrb[126].mxu1 %vm236_vm0, %v8172_v20 }
 0x2d6   : > { %10662 = vst [vmem:[#allocation55_spill] sm:$0xff] %v8494_v55 }
 0x2d8   : > { %v8498_v14 = vpop.f32.mrb[22].mxu1 }
 0x2d9   : > { %10663 = vst [vmem:[#allocation54_spill] sm:$0xff] %v8498_v14  ;;  %v8500_v49 = vpop.f32.mrb[23].mxu1 }
 0x2da   : > { %10664 = vst [vmem:[#allocation57_spill] sm:$0xff] %v8500_v49 }
 0x2dc   : > { %v8502_v44 = vpop.f32.mrb[24].mxu1 }
 0x2dd   : > { %10665 = vst [vmem:[#allocation56_spill] sm:$0xff] %v8502_v44  ;;  %v8504_v61 = vpop.f32.mrb[25].mxu1 }
 0x2de   : > { %10666 = vst [vmem:[#allocation58_spill] sm:$0xff] %v8504_v61 }
 0x2e0   : > { %v8506_v0 = vpop.f32.mrb[26].mxu1 }
 0x2e1   : > { %10667 = vst [vmem:[#allocation61_spill] sm:$0xff] %v8506_v0  ;;  %v8508_v19 = vpop.f32.mrb[27].mxu1 }
 0x2e2   : > { %10668 = vst [vmem:[#allocation60_spill] sm:$0xff] %v8508_v19 }
 0x2e4   : > { %v8510_v26 = vpop.f32.mrb[28].mxu1 }
 0x2e5   : > { %10669 = vst [vmem:[#allocation63_spill] sm:$0xff] %v8510_v26  ;;  %v8512_v54 = vpop.f32.mrb[29].mxu1 }
 0x2e6   : > { %10670 = vst [vmem:[#allocation64_spill] sm:$0xff] %v8512_v54 }
 0x2e8   : > { %v8514_v55 = vpop.f32.mrb[30].mxu1 }
 0x2e9   : > { %10671 = vst [vmem:[#allocation65_spill] sm:$0xff] %v8514_v55  ;;  %v8516_v56 = vpop.f32.mrb[31].mxu1 }
 0x2ea   : > { %10672 = vst [vmem:[#allocation66_spill] sm:$0xff] %v8516_v56 }
 0x2ec   : > { %v8518_v20 = vpop.f32.mrb[32].mxu1 }
 0x2ed   : > { %v8520_v14 = vpop.f32.mrb[33].mxu1  ;;  %v1668_v44 = vsel %vm582_vm2, %v8518_v20, -inf }
 0x2ee   : > { %1669 = vmax.xlane.f32.xlu1 %v1668_v44  ;;  %v1665_v0 = vsel %vm582_vm2, %v8520_v14, -inf }
 0x2ef   : > { %1666 = vmax.xlane.f32.xlu0 %v1665_v0 }
 0x2f0   : > { %v8526_v19 = vpop.f32.mrb[34].mxu1 }
 0x2f1   : > { %v8528_v26 = vpop.f32.mrb[35].mxu1  ;;  %v1674_v55 = vsel %vm582_vm2, %v8526_v19, -inf }
 0x2f2   : > { %v1671_v44 = vsel %vm582_vm2, %v8528_v26, -inf }
 0x2f3   : > { %1675 = vmax.xlane.f32.xlu0 %v1674_v55 }
 0x2f4   : > { %v8532_v56 = vpop.f32.mrb[36].mxu1 }
 0x2f5   : > { %v8534_v54 = vpop.f32.mrb[37].mxu1  ;;  %v1680_v61 = vsel %vm582_vm2, %v8532_v56, -inf }
 0x2f6   : > { %1681 = vmax.xlane.f32.xlu1 %v1680_v61  ;;  %v1677_v55 = vsel %vm582_vm2, %v8534_v54, -inf }
 0x2f7   : > { %1672 = vmax.xlane.f32.xlu0 %v1671_v44 }
 0x2f8   : > { %v8540_v0 = vpop.f32.mrb[38].mxu1 }
 0x2f9   : > { %v8542_v49 = vpop.f32.mrb[39].mxu1  ;;  %v1686_v11 = vsel %vm582_vm2, %v8540_v0, -inf }
 0x2fa   : > { %1687 = vmax.xlane.f32.xlu1 %v1686_v11  ;;  %v1683_v44 = vsel %vm582_vm2, %v8542_v49, -inf }
 0x2fb   : > { %1678 = vmax.xlane.f32.xlu0 %v1677_v55 }
 0x2fc   : > { %v8548_v60 = vpop.f32.mrb[40].mxu1 }
 0x2fd   : > { %v8550_v53 = vpop.f32.mrb[41].mxu1  ;;  %v1692_v61 = vsel %vm582_vm2, %v8548_v60, -inf }
 0x2fe   : > { %1693 = vmax.xlane.f32.xlu1 %v1692_v61  ;;  %v1689_v55 = vsel %vm582_vm2, %v8550_v53, -inf }
 0x2ff   : > { %1684 = vmax.xlane.f32.xlu0 %v1683_v44 }
 0x300   : > { %v8556_v47 = vpop.f32.mrb[42].mxu1 }
 0x301   : > { %v8558_v9 = vpop.f32.mrb[43].mxu1  ;;  %v1698_v11 = vsel %vm582_vm2, %v8556_v47, -inf }
 0x302   : > { %1699 = vmax.xlane.f32.xlu1 %v1698_v11  ;;  %v1695_v44 = vsel %vm582_vm2, %v8558_v9, -inf }
 0x303   : > { %1690 = vmax.xlane.f32.xlu0 %v1689_v55 }
 0x304   : > { %v8564_v39 = vpop.f32.mrb[44].mxu1 }
 0x305   : > { %v8566_v7 = vpop.f32.mrb[45].mxu1  ;;  %v1704_v61 = vsel %vm582_vm2, %v8564_v39, -inf }
 0x306   : > { %1705 = vmax.xlane.f32.xlu1 %v1704_v61  ;;  %v1701_v55 = vsel %vm582_vm2, %v8566_v7, -inf }
 0x307   : > { %1696 = vmax.xlane.f32.xlu0 %v1695_v44 }
 0x308   : > { %v8572_v31 = vpop.f32.mrb[46].mxu1 }
 0x309   : > { %v8574_v25 = vpop.f32.mrb[47].mxu1  ;;  %v1710_v11 = vsel %vm582_vm2, %v8572_v31, -inf }
 0x30a   : > { %1711 = vmax.xlane.f32.xlu1 %v1710_v11  ;;  %v1707_v44 = vsel %vm582_vm2, %v8574_v25, -inf }
 0x30b   : > { %1702 = vmax.xlane.f32.xlu0 %v1701_v55 }
 0x30c   : > { %v8580_v15 = vpop.f32.mrb[48].mxu1 }
 0x30d   : > { %v8582_v46 = vpop.f32.mrb[49].mxu1  ;;  %v1716_v61 = vsel %vm582_vm2, %v8580_v15, -inf }
 0x30e   : > { %1717 = vmax.xlane.f32.xlu1 %v1716_v61  ;;  %v1713_v55 = vsel %vm582_vm2, %v8582_v46, -inf }
 0x30f   : > { %1708 = vmax.xlane.f32.xlu0 %v1707_v44 }
 0x310   : > { %v8588_v62 = vpop.f32.mrb[50].mxu1 }
 0x311   : > { %v8590_v58 = vpop.f32.mrb[51].mxu1  ;;  %v1722_v11 = vsel %vm582_vm2, %v8588_v62, -inf }
 0x312   : > { %1723 = vmax.xlane.f32.xlu1 %v1722_v11  ;;  %v1719_v44 = vsel %vm582_vm2, %v8590_v58, -inf }
 0x313   : > { %1714 = vmax.xlane.f32.xlu0 %v1713_v55 }
 0x314   : > { %v8596_v24 = vpop.f32.mrb[52].mxu1 }
 0x315   : > { %v8598_v57 = vpop.f32.mrb[53].mxu1  ;;  %v1728_v61 = vsel %vm582_vm2, %v8596_v24, -inf }
 0x316   : > { %1729 = vmax.xlane.f32.xlu1 %v1728_v61  ;;  %v1725_v55 = vsel %vm582_vm2, %v8598_v57, -inf }
 0x317   : > { %1720 = vmax.xlane.f32.xlu0 %v1719_v44 }
 0x318   : > { %v8604_v21 = vpop.f32.mrb[54].mxu1 }
 0x319   : > { %v8606_v32 = vpop.f32.mrb[55].mxu1  ;;  %v1734_v11 = vsel %vm582_vm2, %v8604_v21, -inf }
 0x31a   : > { %1735 = vmax.xlane.f32.xlu1 %v1734_v11  ;;  %v1731_v44 = vsel %vm582_vm2, %v8606_v32, -inf }
 0x31b   : > { %1726 = vmax.xlane.f32.xlu0 %v1725_v55 }
 0x31c   : > { %v8612_v40 = vpop.f32.mrb[56].mxu1 }
 0x31d   : > { %v8614_v5 = vpop.f32.mrb[57].mxu1  ;;  %v1740_v61 = vsel %vm582_vm2, %v8612_v40, -inf }
 0x31e   : > { %1741 = vmax.xlane.f32.xlu1 %v1740_v61  ;;  %v1737_v11 = vsel %vm582_vm2, %v8614_v5, -inf }
 0x31f   : > { %1732 = vmax.xlane.f32.xlu0 %v1731_v44 }
 0x320   : > { %v8620_v38 = vpop.f32.mrb[58].mxu1 }
 0x321   : > { %v8622_v18 = vpop.f32.mrb[59].mxu1  ;;  %v1746_v55 = vsel %vm582_vm2, %v8620_v38, -inf }
 0x322   : > { %1738 = vmax.xlane.f32.xlu1 %v1737_v11  ;;  %v1743_v44 = vsel %vm582_vm2, %v8622_v18, -inf }
 0x323   : > { %1747 = vmax.xlane.f32.xlu0 %v1746_v55 }
 0x324   : > { %v8628_v59 = vpop.f32.mrb[60].mxu1 }
 0x325   : > { %v8630_v30 = vpop.f32.mrb[61].mxu1  ;;  %v1752_v55 = vsel %vm582_vm2, %v8628_v59, -inf }
 0x326   : > { %v1749_v61 = vsel %vm582_vm2, %v8630_v30, -inf }
 0x327   : > { %1750 = vmax.xlane.f32.xlu1 %v1749_v61  ;;  %1744 = vmax.xlane.f32.xlu0 %v1743_v44 }
 0x328   : > { %v8636_v1 = vpop.f32.mrb[62].mxu1 }
 0x329   : > { %v8638_v37 = vpop.f32.mrb[63].mxu1  ;;  %v1758_v44 = vsel %vm582_vm2, %v8636_v1, -inf }
 0x32a   : > { %v1755_v11 = vsel %vm582_vm2, %v8638_v37, -inf }
 0x32b   : > { %1756 = vmax.xlane.f32.xlu1 %v1755_v11  ;;  %1753 = vmax.xlane.f32.xlu0 %v1752_v55 }
 0x32c   : > { %v8644_v29 = vpop.f32.mrb[64].mxu1 }
 0x32d   : > { %v8646_v6 = vpop.f32.mrb[65].mxu1  ;;  %v2750_v55 = vsel %vm582_vm2, %v8644_v29, -inf }
 0x32e   : > { %v2747_v61 = vsel %vm582_vm2, %v8646_v6, -inf }
 0x32f   : > { %2748 = vmax.xlane.f32.xlu1 %v2747_v61  ;;  %1759 = vmax.xlane.f32.xlu0 %v1758_v44 }
 0x330   : > { %v8652_v13 = vpop.f32.mrb[66].mxu1 }
 0x331   : > { %v8654_v34 = vpop.f32.mrb[67].mxu1  ;;  %v2756_v44 = vsel %vm582_vm2, %v8652_v13, -inf }
 0x332   : > { %v2753_v11 = vsel %vm582_vm2, %v8654_v34, -inf }
 0x333   : > { %2754 = vmax.xlane.f32.xlu1 %v2753_v11  ;;  %2751 = vmax.xlane.f32.xlu0 %v2750_v55 }
 0x334   : > { %v8660_v33 = vpop.f32.mrb[68].mxu1 }
 0x335   : > { %v8662_v23 = vpop.f32.mrb[69].mxu1  ;;  %v2762_v55 = vsel %vm582_vm2, %v8660_v33, -inf }
 0x336   : > { %v2759_v61 = vsel %vm582_vm2, %v8662_v23, -inf }
 0x337   : > { %2760 = vmax.xlane.f32.xlu1 %v2759_v61  ;;  %2757 = vmax.xlane.f32.xlu0 %v2756_v44 }
 0x338   : > { %v8668_v45 = vpop.f32.mrb[70].mxu1 }
 0x339   : > { %v8670_v51 = vpop.f32.mrb[71].mxu1  ;;  %v2768_v11 = vsel %vm582_vm2, %v8668_v45, -inf }
 0x33a   : > { %v2765_v44 = vsel %vm582_vm2, %v8670_v51, -inf }
 0x33b   : > { %2769 = vmax.xlane.f32.xlu1 %v2768_v11  ;;  %2763 = vmax.xlane.f32.xlu0 %v2762_v55 }
 0x33c   : > { %v8676_v12 = vpop.f32.mrb[72].mxu1 }
 0x33d   : > { %v8678_v16 = vpop.f32.mrb[73].mxu1  ;;  %v2774_v61 = vsel %vm582_vm2, %v8676_v12, -inf }
 0x33e   : > { %v2771_v11 = vsel %vm582_vm2, %v8678_v16, -inf }
 0x33f   : > { %2766 = vmax.xlane.f32.xlu1 %v2765_v44  ;;  %2775 = vmax.xlane.f32.xlu0 %v2774_v61 }
 0x340   : > { %v8684_v3 = vpop.f32.mrb[74].mxu1 }
 0x341   : > { %v8686_v4 = vpop.f32.mrb[75].mxu1  ;;  %v2780_v44 = vsel %vm582_vm2, %v8684_v3, -inf }
 0x342   : > { %10673 = vst [vmem:[#allocation67_spill] sm:$0xff] %v8686_v4 }
 0x343   : > { %2772 = vmax.xlane.f32.xlu1 %v2771_v11  ;;  %v2777_v11 = vsel %vm582_vm2, %v8686_v4, -inf }
 0x344   : > { %v8690_v55 = vpop.f32.mrb[76].mxu1 }
 0x345   : > { %10674 = vst [vmem:[#allocation68_spill] sm:$0xff] %v8690_v55  ;;  %v8692_v10 = vpop.f32.mrb[77].mxu1  ;;  %v2786_v36 = vsel %vm582_vm2, %v8690_v55, -inf }
 0x346   : > { %10675 = vst [vmem:[#allocation70_spill] sm:$0xff] %v8692_v10  ;;  %2787 = vmax.xlane.f32.xlu0 %v2786_v36 }
 0x347   : > { %2781 = vmax.xlane.f32.xlu1 %v2780_v44  ;;  %v2783_v44 = vsel %vm582_vm2, %v8692_v10, -inf }
 0x348   : > { %v8698_v61 = vpop.f32.mrb[78].mxu1 }
 0x349   : > { %10676 = vst [vmem:[#allocation69_spill] sm:$0xff] %v8698_v61  ;;  %v8700_v22 = vpop.f32.mrb[79].mxu1  ;;  %v2792_v28 = vsel %vm582_vm2, %v8698_v61, -inf }
 0x34a   : > { %10677 = vst [vmem:[#allocation72_spill] sm:$0xff] %v8700_v22  ;;  %2793 = vmax.xlane.f32.xlu0 %v2792_v28 }
 0x34b   : > { %2778 = vmax.xlane.f32.xlu1 %v2777_v11  ;;  %v2789_v11 = vsel %vm582_vm2, %v8700_v22, -inf }
 0x34c   : > { %v8706_v52 = vpop.f32.mrb[80].mxu1 }
 0x34d   : > { %10678 = vst [vmem:[#allocation71_spill] sm:$0xff] %v8706_v52  ;;  %v8708_v27 = vpop.f32.mrb[81].mxu1  ;;  %v2798_v36 = vsel %vm582_vm2, %v8706_v52, -inf }
 0x34e   : > { %10679 = vst [vmem:[#allocation74_spill] sm:$0xff] %v8708_v27  ;;  %2799 = vmax.xlane.f32.xlu0 %v2798_v36  ;;  %v2795_v28 = vsel %vm582_vm2, %v8708_v27, -inf }
 0x34f   : > { %2784 = vmax.xlane.f32.xlu1 %v2783_v44 }
 0x350   : > { %v8714_v2 = vpop.f32.mrb[82].mxu1 }
 0x351   : > { %10680 = vst [vmem:[#allocation73_spill] sm:$0xff] %v8714_v2  ;;  %v8716_v17 = vpop.f32.mrb[83].mxu1  ;;  %v2804_v36 = vsel %vm582_vm2, %v8714_v2, -inf }
 0x352   : > { %10681 = vst [vmem:[#allocation76_spill] sm:$0xff] %v8716_v17  ;;  %2796 = vmax.xlane.f32.xlu0 %v2795_v28  ;;  %v2801_v28 = vsel %vm582_vm2, %v8716_v17, -inf }
 0x353   : > { %2790 = vmax.xlane.f32.xlu1 %v2789_v11 }
 0x354   : > { %v8722_v61 = vpop.f32.mrb[84].mxu1 }
 0x355   : > { %10682 = vst [vmem:[#allocation75_spill] sm:$0xff] %v8722_v61  ;;  %v8724_v52 = vpop.f32.mrb[85].mxu1 }
 0x356   : > { %10683 = vst [vmem:[#allocation78_spill] sm:$0xff] %v8724_v52  ;;  %2805 = vmax.xlane.f32.xlu0 %v2804_v36  ;;  %v2807_v44 = vsel %vm582_vm2, %v8724_v52, -inf  ;;  %v2810_v36 = vsel %vm582_vm2, %v8722_v61, -inf }
 0x357   : > { %2808 = vmax.xlane.f32.xlu1 %v2807_v44 }
 0x358   : > { %v8730_v10 = vpop.f32.mrb[86].mxu1 }
 0x359   : > { %10684 = vst [vmem:[#allocation77_spill] sm:$0xff] %v8730_v10  ;;  %v8732_v27 = vpop.f32.mrb[87].mxu1 }
 0x35a   : > { %10685 = vst [vmem:[#allocation80_spill] sm:$0xff] %v8732_v27  ;;  %2802 = vmax.xlane.f32.xlu0 %v2801_v28  ;;  %v2813_v11 = vsel %vm582_vm2, %v8732_v27, -inf  ;;  %v2816_v28 = vsel %vm582_vm2, %v8730_v10, -inf }
 0x35b   : > { %2814 = vmax.xlane.f32.xlu1 %v2813_v11 }
 0x35c   : > { %v8738_v22 = vpop.f32.mrb[88].mxu1 }
 0x35d   : > { %10686 = vst [vmem:[#allocation79_spill] sm:$0xff] %v8738_v22  ;;  %v8740_v2 = vpop.f32.mrb[89].mxu1 }
 0x35e   : > { %10687 = vst [vmem:[#allocation81_spill] sm:$0xff] %v8740_v2  ;;  %2811 = vmax.xlane.f32.xlu0 %v2810_v36  ;;  %v2819_v44 = vsel %vm582_vm2, %v8740_v2, -inf  ;;  %v2822_v36 = vsel %vm582_vm2, %v8738_v22, -inf }
 0x35f   : > { %2820 = vmax.xlane.f32.xlu1 %v2819_v44 }
 0x360   : > { %v8746_v52 = vpop.f32.mrb[90].mxu1 }
 0x361   : > { %10688 = vst [vmem:[#allocation82_spill] sm:$0xff] %v8746_v52  ;;  %v8748_v17 = vpop.f32.mrb[91].mxu1 }
 0x362   : > { %10689 = vst [vmem:[#allocation83_spill] sm:$0xff] %v8748_v17  ;;  %2817 = vmax.xlane.f32.xlu0 %v2816_v28  ;;  %v2825_v11 = vsel %vm582_vm2, %v8748_v17, -inf  ;;  %v2828_v28 = vsel %vm582_vm2, %v8746_v52, -inf }
 0x363   : > { %2826 = vmax.xlane.f32.xlu1 %v2825_v11 }
 0x364   : > { %v8754_v27 = vpop.f32.mrb[92].mxu1 }
 0x365   : > { %10690 = vst [vmem:[#allocation84_spill] sm:$0xff] %v8754_v27  ;;  %v8756_v61 = vpop.f32.mrb[93].mxu1 }
 0x366   : > { %10691 = vst [vmem:[#allocation85_spill] sm:$0xff] %v8756_v61  ;;  %2823 = vmax.xlane.f32.xlu0 %v2822_v36  ;;  %v2831_v44 = vsel %vm582_vm2, %v8756_v61, -inf  ;;  %v2834_v36 = vsel %vm582_vm2, %v8754_v27, -inf }
 0x367   : > { %2832 = vmax.xlane.f32.xlu1 %v2831_v44 }
 0x368   : > { %v8762_v2 = vpop.f32.mrb[94].mxu1 }
 0x369   : > { %10692 = vst [vmem:[#allocation86_spill] sm:$0xff] %v8762_v2  ;;  %v8764_v10 = vpop.f32.mrb[95].mxu1 }
 0x36a   : > { %10693 = vst [vmem:[#allocation87_spill] sm:$0xff] %v8764_v10  ;;  %2829 = vmax.xlane.f32.xlu0 %v2828_v28  ;;  %v2837_v11 = vsel %vm582_vm2, %v8764_v10, -inf  ;;  %v2840_v28 = vsel %vm582_vm2, %v8762_v2, -inf }
 0x36b   : > { %2838 = vmax.xlane.f32.xlu1 %v2837_v11 }
 0x36c   : > { %v8770_v17 = vpop.f32.mrb[96].mxu1 }
 0x36d   : > { %10694 = vst [vmem:[#allocation88_spill] sm:$0xff] %v8770_v17  ;;  %v8772_v22 = vpop.f32.mrb[97].mxu1 }
 0x36e   : > { %10695 = vst [vmem:[#allocation89_spill] sm:$0xff] %v8772_v22  ;;  %2835 = vmax.xlane.f32.xlu0 %v2834_v36  ;;  %v3829_v44 = vsel %vm582_vm2, %v8772_v22, -inf  ;;  %v3832_v36 = vsel %vm582_vm2, %v8770_v17, -inf }
 0x36f   : > { %3830 = vmax.xlane.f32.xlu1 %v3829_v44 }
 0x370   : > { %v8778_v61 = vpop.f32.mrb[98].mxu1 }
 0x371   : > { %10696 = vst [vmem:[#allocation90_spill] sm:$0xff] %v8778_v61  ;;  %v8780_v52 = vpop.f32.mrb[99].mxu1 }
 0x372   : > { %10697 = vst [vmem:[#allocation91_spill] sm:$0xff] %v8780_v52  ;;  %2841 = vmax.xlane.f32.xlu0 %v2840_v28  ;;  %v3835_v11 = vsel %vm582_vm2, %v8780_v52, -inf  ;;  %v3838_v28 = vsel %vm582_vm2, %v8778_v61, -inf }
 0x373   : > { %3836 = vmax.xlane.f32.xlu1 %v3835_v11 }
 0x374   : > { %v8786_v10 = vpop.f32.mrb[100].mxu1 }
 0x375   : > { %10698 = vst [vmem:[#allocation92_spill] sm:$0xff] %v8786_v10  ;;  %v8788_v27 = vpop.f32.mrb[101].mxu1  ;;  %v3844_v55 = vsel %vm582_vm2, %v8786_v10, -inf }
 0x376   : > { %10699 = vst [vmem:[#allocation93_spill] sm:$0xff] %v8788_v27  ;;  %3833 = vmax.xlane.f32.xlu0 %v3832_v36  ;;  %v3841_v44 = vsel %vm582_vm2, %v8788_v27, -inf }
 0x377   : > { %3842 = vmax.xlane.f32.xlu1 %v3841_v44 }
 0x378   : > { %v8794_v22 = vpop.f32.mrb[102].mxu1 }
 0x379   : > { %10700 = vst [vmem:[#allocation94_spill] sm:$0xff] %v8794_v22  ;;  %v8796_v2 = vpop.f32.mrb[103].mxu1  ;;  %v3850_v11 = vsel %vm582_vm2, %v8794_v22, -inf }
 0x37a   : > { %10701 = vst [vmem:[#allocation95_spill] sm:$0xff] %v8796_v2  ;;  %3839 = vmax.xlane.f32.xlu0 %v3838_v28  ;;  %v3847_v22 = vsel %vm582_vm2, %v8796_v2, -inf }
 0x37b   : > { %v1670_v52 = vpop.xlane.xlu1 %1669  ;;  %3851 = vmax.xlane.f32.xlu1 %v3850_v11 }
 0x37c   : > { %v1762_v17 = vsub.f32 %v8518_v20, %v1670_v52  ;;  %v8803_v36 = vpop.f32.mrb[104].mxu1  ;;  %v1667_v42 = vpop.xlane.xlu0 %1666 }
 0x37d   : > { %10702 = vst [vmem:[#allocation96_spill] sm:$0xff] %v8803_v36  ;;  %v1761_v44 = vsub.f32 %v8520_v14, %v1667_v42  ;;  %v8806_v27 = vpop.f32.mrb[105].mxu1  ;;  %v3856_v14 = vsel %vm582_vm2, %v8803_v36, -inf }
 0x37e   : > { %10703 = vst [vmem:[#allocation97_spill] sm:$0xff] %v8806_v27  ;;  %v1795_v4 = vmul.f32 1.442695, %v1762_v17  ;;  %3845 = vmax.xlane.f32.xlu0 %v3844_v55  ;;  %v3853_v17 = vsel %vm582_vm2, %v8806_v27, -inf  ;;  %v6544_v27 = vunpack.i.h.bf16 %v8242_v48 }
 0x37f   : > { %v1793_v28 = vmul.f32 1.442695, %v1761_v44  ;;  %3848 = vmax.xlane.f32.xlu1 %v3847_v22 }
 0x380   : > { %6634 = vpow2.f32 %v1795_v4  ;;  %v8812_v11 = vpop.f32.mrb[106].mxu1  ;;  %v1676_v52 = vpop.xlane.xlu0 %1675 }
 0x381   : > { %10704 = vst [vmem:[#allocation98_spill] sm:$0xff] %v8812_v11  ;;  %6636 = vpow2.f32 %v1793_v28  ;;  %v1764_v20 = vsub.f32 %v8526_v19, %v1676_v52  ;;  %v8815_v42 = vpop.f32.mrb[107].mxu1 }
 0x382   : > { %10705 = vst [vmem:[#allocation99_spill] sm:$0xff] %v8815_v42  ;;  %3857 = vmax.xlane.f32.xlu0 %v3856_v14  ;;  %v3862_v14 = vsel %vm582_vm2, %v8812_v11, -inf }
 0x383   : > { %v1799_v55 = vmul.f32 1.442695, %v1764_v20  ;;  %v1682_v2 = vpop.xlane.xlu1 %1681  ;;  %3854 = vmax.xlane.f32.xlu1 %v3853_v17 }
 0x384   : > { %v1766_v22 = vsub.f32 %v8532_v56, %v1682_v2  ;;  %v8822_v4 = vpop.f32.mrb[108].mxu1  ;;  %v1673_v44 = vpop.xlane.xlu0 %1672  ;;  %v6539_v56 = vunpack.i.h.bf16 %v8213_v43 }
 0x385   : > { %6638 = vpow2.f32 %v1799_v55  ;;  %v1763_v19 = vsub.f32 %v8528_v26, %v1673_v44  ;;  %v8825_v28 = vpop.f32.mrb[109].mxu1  ;;  %v6538_v55 = vunpack.i.l.bf16 %v8213_v43 }
 0x386   : > { %10706 = vst [vmem:[#allocation100_spill] sm:$0xff] %v8825_v28  ;;  %v1803_v52 = vmul.f32 1.442695, %v1766_v22 }
 0x387   : > { %v1797_v36 = vmul.f32 1.442695, %v1763_v19  ;;  %v1688_v10 = vpop.xlane.xlu1 %1687  ;;  %3863 = vmax.xlane.f32.xlu1 %v3862_v14  ;;  %v3859_v19 = vsel %vm582_vm2, %v8815_v42, -inf }
 0x388   : > { %6640 = vpow2.f32 %v1803_v52  ;;  %v1768_v20 = vsub.f32 %v8540_v0, %v1688_v10  ;;  %v8830_v17 = vpop.f32.mrb[110].mxu1  ;;  %v1679_v2 = vpop.xlane.xlu0 %1678 }
 0x389   : > { %6642 = vpow2.f32 %v1797_v36  ;;  %v1765_v26 = vsub.f32 %v8534_v54, %v1679_v2  ;;  %v8835_v22 = vpop.f32.mrb[111].mxu1 }
 0x38a   : > { %v6635_v44 = vpop.eup %6634  ;;  %v1807_v11 = vmul.f32 1.442695, %v1768_v20  ;;  %v6543_v20 = vunpack.i.l.bf16 %v8242_v48  ;;  %v6549_v48 = vunpack.i.h.bf16 %v8223_v8 }
 0x38b   : > { %v6637_v52 = vpop.eup %6636  ;;  %v1801_v14 = vmul.f32 1.442695, %v1765_v26  ;;  %v1694_v10 = vpop.xlane.xlu1 %1693  ;;  %3860 = vmax.xlane.f32.xlu1 %v3859_v19  ;;  %v1860_v0 = vsel %vm582_vm2, %v6635_v44, 0.0  ;;  %v6352_v19 = vpack.c.bf16 %v6539_v56, %v6538_v55 }
 0x38c   : > { %6644 = vpow2.f32 %v1807_v11  ;;  %v1770_v43 = vsub.f32 %v8548_v60, %v1694_v10  ;;  %v8842_v36 = vpop.f32.mrb[112].mxu1  ;;  %1861 = vadd.xlane.f32.xlu0 %v1860_v0  ;;  %5940 = vmatprep.mubr.msk.f32.mxu0 %vm582_vm2, %v6637_v52  ;;  %v1685_v54 = vpop.xlane.xlu0 %1684  ;;  %v3865_v60 = vsel %vm582_vm2, %v8825_v28, -inf }
 0x38d   : > { %6646 = vpow2.f32 %v1801_v14  ;;  %v1767_v2 = vsub.f32 %v8542_v49, %v1685_v54  ;;  %5941 = vmatmul.mubr.msk.f32.vlgmr.msra.gmra.mrb[32].mxu0 %vm582_vm2, %v6635_v44  ;;  %v8848_v26 = vpop.f32.mrb[113].mxu1  ;;  %v6356_v54 = vpack.c.bf16 %v6544_v27, %v6543_v20 }
 0x38e   : > { %v1811_v42 = vmul.f32 1.442695, %v1770_v43  ;;  %6351 = vmatpush3.bf16.msra.mxu0 %v8208_v41  ;;  %v6548_v41 = vunpack.i.l.bf16 %v8223_v8 }
 0x38f   : > { %v6639_v11 = vpop.eup %6638  ;;  %v1805_v10 = vmul.f32 1.442695, %v1767_v2  ;;  %6353 = vmatprep.subr.bf16.mxu0 %v6352_v19  ;;  %v1700_v0 = vpop.xlane.xlu1 %1699  ;;  %3866 = vmax.xlane.f32.xlu1 %v3865_v60 }
 0x390   : > { %6648 = vpow2.f32 %v1811_v42  ;;  %v1772_v49 = vsub.f32 %v8556_v47, %v1700_v0  ;;  %v8855_v44 = vpop.f32.mrb[114].mxu1  ;;  %v1691_v14 = vpop.xlane.xlu0 %1690  ;;  %v1866_v56 = vsel %vm582_vm2, %v6639_v11, 0.0  ;;  %v1857_v42 = vsel %vm582_vm2, %v6637_v52, 0.0 }
 0x391   : > { %6650 = vpow2.f32 %v1805_v10  ;;  %v1769_v55 = vsub.f32 %v8550_v53, %v1691_v14  ;;  %v8860_v43 = vpop.f32.mrb[115].mxu1  ;;  %1867 = vadd.xlane.f32.xlu0 %v1866_v56  ;;  %v6360_v52 = vpack.c.bf16 %v6549_v48, %v6548_v41 }
 0x392   : > { %v6641_v2 = vpop.eup %6640  ;;  %v1815_v60 = vmul.f32 1.442695, %v1772_v49  ;;  %6355 = vmatpush3.bf16.msra.mxu0 %v6352_v19 }
 0x393   : > { %v6643_v47 = vpop.eup %6642  ;;  %v1809_v0 = vmul.f32 1.442695, %v1769_v55  ;;  %6357 = vmatprep.subr.bf16.mxu0 %v6356_v54  ;;  %v1706_v28 = vpop.xlane.xlu1 %1705  ;;  %1858 = vadd.xlane.f32.xlu1 %v1857_v42  ;;  %v1872_v61 = vsel %vm582_vm2, %v6641_v2, 0.0 }
 0x394   : > { %6652 = vpow2.f32 %v1815_v60  ;;  %v1774_v8 = vsub.f32 %v8564_v39, %v1706_v28  ;;  %v8865_v53 = vpop.f32.mrb[116].mxu1  ;;  %v1697_v10 = vpop.xlane.xlu0 %1696  ;;  %5943 = vmatprep.mubr.msk.f32.mxu0 %vm582_vm2, %v6643_v47  ;;  %v1863_v14 = vsel %vm582_vm2, %v6643_v47, 0.0 }
 0x395   : > { %6654 = vpow2.f32 %v1809_v0  ;;  %v1771_v27 = vsub.f32 %v8558_v9, %v1697_v10  ;;  %v8869_v20 = vpop.f32.mrb[117].mxu1  ;;  %1873 = vadd.xlane.f32.xlu0 %v1872_v61  ;;  %5944 = vmatmul.mubr.msk.f32.gmra.mrb[34].mxu0 %vm582_vm2, %v6639_v11 }
 0x396   : > { %v6645_v19 = vpop.eup %6644  ;;  %v1819_v49 = vmul.f32 1.442695, %v1774_v8  ;;  %6359 = vmatpush3.bf16.msra.mxu0 %v6356_v54 }
 0x397   : > { %v6647_v39 = vpop.eup %6646  ;;  %v1813_v28 = vmul.f32 1.442695, %v1771_v27  ;;  %6361 = vmatprep.subr.bf16.mxu0 %v6360_v52  ;;  %v1712_v56 = vpop.xlane.xlu1 %1711  ;;  %1864 = vadd.xlane.f32.xlu1 %v1863_v14  ;;  %v1878_v55 = vsel %vm582_vm2, %v6645_v19, 0.0 }
 0x398   : > { %6656 = vpow2.f32 %v1819_v49  ;;  %v1776_v9 = vsub.f32 %v8572_v31, %v1712_v56  ;;  %v8875_v60 = vpop.f32.mrb[118].mxu1  ;;  %v1703_v61 = vpop.xlane.xlu0 %1702  ;;  %5946 = vmatprep.mubr.msk.f32.mxu0 %vm582_vm2, %v6647_v39  ;;  %v1869_v42 = vsel %vm582_vm2, %v6647_v39, 0.0 }
 0x399   : > { %6658 = vpow2.f32 %v1813_v28  ;;  %v1773_v11 = vsub.f32 %v8566_v7, %v1703_v61  ;;  %v8879_v48 = vpop.f32.mrb[119].mxu1  ;;  %1879 = vadd.xlane.f32.xlu0 %v1878_v55  ;;  %5947 = vmatmul.mubr.msk.f32.gmra.mrb[36].mxu0 %vm582_vm2, %v6641_v2 }
 0x39a   : > { %v6649_v41 = vpop.eup %6648  ;;  %v1823_v54 = vmul.f32 1.442695, %v1776_v9  ;;  %6363 = vmatpush3.bf16.msra.mxu0 %v6360_v52 }
 0x39b   : > { %v6651_v47 = vpop.eup %6650  ;;  %v1817_v31 = vmul.f32 1.442695, %v1773_v11  ;;  %6389 = vmatprep.subr.bf16.mxu0 %v8422_v63  ;;  %v1718_v0 = vpop.xlane.xlu1 %1717  ;;  %1870 = vadd.xlane.f32.xlu1 %v1869_v42  ;;  %v1884_v8 = vsel %vm582_vm2, %v6649_v41, 0.0 }
 0x39c   : > { %6660 = vpow2.f32 %v1823_v54  ;;  %v1778_v7 = vsub.f32 %v8580_v15, %v1718_v0  ;;  %v8886_v10 = vpop.f32.mrb[120].mxu1  ;;  %v1709_v27 = vpop.xlane.xlu0 %1708  ;;  %5949 = vmatprep.mubr.msk.f32.mxu0 %vm582_vm2, %v6651_v47  ;;  %v1875_v39 = vsel %vm582_vm2, %v6651_v47, 0.0 }
 0x39d   : > { %6662 = vpow2.f32 %v1817_v31  ;;  %v1775_v2 = vsub.f32 %v8574_v25, %v1709_v27  ;;  %v8890_v52 = vpop.f32.mrb[121].mxu1  ;;  %1885 = vadd.xlane.f32.xlu0 %v1884_v8  ;;  %5950 = vmatmul.mubr.msk.f32.gmra.mrb[38].mxu0 %vm582_vm2, %v6645_v19 }
 0x39e   : > { %v6653_v49 = vpop.eup %6652  ;;  %v1827_v14 = vmul.f32 1.442695, %v1778_v7 }
 0x39f   : > { %v6655_v28 = vpop.eup %6654  ;;  %v1821_v56 = vmul.f32 1.442695, %v1775_v2  ;;  %v1724_v15 = vpop.xlane.xlu1 %1723  ;;  %1876 = vadd.xlane.f32.xlu1 %v1875_v39  ;;  %v1890_v55 = vsel %vm582_vm2, %v6653_v49, 0.0 }
 0x3a0   : > { %6664 = vpow2.f32 %v1827_v14  ;;  %v1780_v9 = vsub.f32 %v8588_v62, %v1724_v15  ;;  %v8896_v61 = vpop.f32.mrb[122].mxu1  ;;  %v1715_v25 = vpop.xlane.xlu0 %1714  ;;  %5952 = vmatprep.mubr.msk.f32.mxu0 %vm582_vm2, %v6655_v28  ;;  %v1881_v47 = vsel %vm582_vm2, %v6655_v28, 0.0 }
 0x3a1   : > { %6666 = vpow2.f32 %v1821_v56  ;;  %v1777_v19 = vsub.f32 %v8582_v46, %v1715_v25  ;;  %v8900_v11 = vpop.f32.mrb[123].mxu1  ;;  %1891 = vadd.xlane.f32.xlu0 %v1890_v55  ;;  %5953 = vmatmul.mubr.msk.f32.gmra.mrb[40].mxu0 %vm582_vm2, %v6649_v41 }
 0x3a2   : > { %v6657_v54 = vpop.eup %6656  ;;  %v1831_v42 = vmul.f32 1.442695, %v1780_v9 }
 0x3a3   : > { %v6659_v31 = vpop.eup %6658  ;;  %v1825_v0 = vmul.f32 1.442695, %v1777_v19  ;;  %v1730_v62 = vpop.xlane.xlu1 %1729  ;;  %1882 = vadd.xlane.f32.xlu1 %v1881_v47  ;;  %v1896_v8 = vsel %vm582_vm2, %v6657_v54, 0.0 }
 0x3a4   : > { %6668 = vpow2.f32 %v1831_v42  ;;  %v1782_v7 = vsub.f32 %v8596_v24, %v1730_v62  ;;  %v8906_v27 = vpop.f32.mrb[124].mxu1  ;;  %v1721_v46 = vpop.xlane.xlu0 %1720  ;;  %5955 = vmatprep.mubr.msk.f32.mxu0 %vm582_vm2, %v6659_v31  ;;  %v1887_v39 = vsel %vm582_vm2, %v6659_v31, 0.0 }
 0x3a5   : > { %6670 = vpow2.f32 %v1825_v0  ;;  %v1779_v41 = vsub.f32 %v8590_v58, %v1721_v46  ;;  %v8910_v2 = vpop.f32.mrb[125].mxu1  ;;  %1897 = vadd.xlane.f32.xlu0 %v1896_v8  ;;  %5956 = vmatmul.mubr.msk.f32.gmra.mrb[42].mxu0 %vm582_vm2, %v6653_v49 }
 0x3a6   : > { %v6661_v14 = vpop.eup %6660  ;;  %v1835_v55 = vmul.f32 1.442695, %v1782_v7 }
 0x3a7   : > { %v6663_v28 = vpop.eup %6662  ;;  %v1829_v56 = vmul.f32 1.442695, %v1779_v41  ;;  %v1736_v15 = vpop.xlane.xlu1 %1735  ;;  %1888 = vadd.xlane.f32.xlu1 %v1887_v39  ;;  %v1902_v24 = vsel %vm582_vm2, %v6661_v14, 0.0 }
 0x3a8   : > { %v1784_v9 = vsub.f32 %v8604_v21, %v1736_v15  ;;  %v8916_v25 = vpop.f32.mrb[126].mxu1  ;;  %v1727_v58 = vpop.xlane.xlu0 %1726  ;;  %5958 = vmatprep.mubr.msk.f32.mxu0 %vm582_vm2, %v6663_v28  ;;  %v1893_v47 = vsel %vm582_vm2, %v6663_v28, 0.0 }
 0x3a9   : > { %6672 = vpow2.f32 %v1829_v56  ;;  %v1781_v49 = vsub.f32 %v8598_v57, %v1727_v58  ;;  %v8920_v19 = vpop.f32.mrb[127].mxu1  ;;  %1903 = vadd.xlane.f32.xlu0 %v1902_v24  ;;  %5959 = vmatmul.mubr.msk.f32.gmra.mrb[44].mxu0 %vm582_vm2, %v6657_v54 }
 0x3aa   : > { %v6665_v42 = vpop.eup %6664  ;;  %v1839_v0 = vmul.f32 1.442695, %v1784_v9  ;;  %6674 = vpow2.f32 %v1835_v55 }
 0x3ab   : > { %v6667_v31 = vpop.eup %6666  ;;  %v1833_v62 = vmul.f32 1.442695, %v1781_v49  ;;  %v1742_v21 = vpop.xlane.xlu1 %1741  ;;  %1894 = vadd.xlane.f32.xlu1 %v1893_v47  ;;  %v1908_v8 = vsel %vm582_vm2, %v6665_v42, 0.0 }
 0x3ac   : > { %v1733_v7 = vpop.xlane.xlu0 %1732  ;;  %5961 = vmatprep.mubr.msk.f32.mxu0 %vm582_vm2, %v6667_v31  ;;  %v1786_v46 = vsub.f32 %v8612_v40, %v1742_v21  ;;  %v1899_v41 = vsel %vm582_vm2, %v6667_v31, 0.0 }
 0x3ad   : > { %6676 = vpow2.f32 %v1833_v62  ;;  %v1783_v57 = vsub.f32 %v8606_v32, %v1733_v7  ;;  %1909 = vadd.xlane.f32.xlu0 %v1908_v8  ;;  %5962 = vmatmul.mubr.msk.f32.gmra.mrb[46].mxu0 %vm582_vm2, %v6661_v14 }
 0x3ae   : > { %v6669_v54 = vpop.eup %6668  ;;  %6678 = vpow2.f32 %v1839_v0  ;;  %v1843_v32 = vmul.f32 1.442695, %v1786_v46 }
 0x3af   : > { %v6671_v39 = vpop.eup %6670  ;;  %v1837_v28 = vmul.f32 1.442695, %v1783_v57  ;;  %v1739_v56 = vpop.xlane.xlu1 %1738  ;;  %1900 = vadd.xlane.f32.xlu1 %v1899_v41  ;;  %v1914_v15 = vsel %vm582_vm2, %v6669_v54, 0.0 }
 0x3b0   : > { %v1785_v24 = vsub.f32 %v8614_v5, %v1739_v56  ;;  %v1748_v55 = vpop.xlane.xlu0 %1747  ;;  %5964 = vmatprep.mubr.msk.f32.mxu0 %vm582_vm2, %v6671_v39  ;;  %v1905_v14 = vsel %vm582_vm2, %v6671_v39, 0.0 }
 0x3b1   : > { %6680 = vpow2.f32 %v1837_v28  ;;  %1915 = vadd.xlane.f32.xlu0 %v1914_v15  ;;  %5965 = vmatmul.mubr.msk.f32.gmra.mrb[48].mxu0 %vm582_vm2, %v6665_v42  ;;  %v1788_v58 = vsub.f32 %v8620_v38, %v1748_v55 }
 0x3b2   : > { %v1841_v40 = vmul.f32 1.442695, %v1785_v24 }
 0x3b3   : > { %v6673_v9 = vpop.eup %6672  ;;  %1906 = vadd.xlane.f32.xlu1 %v1905_v14  ;;  %v1847_v21 = vmul.f32 1.442695, %v1788_v58 }
 0x3b4   : > { %6682 = vpow2.f32 %v1841_v40  ;;  %v1751_v49 = vpop.xlane.xlu1 %1750  ;;  %v1745_v47 = vpop.xlane.xlu0 %1744  ;;  %5967 = vmatprep.mubr.msk.f32.mxu0 %vm582_vm2, %v6673_v9  ;;  %v1911_v0 = vsel %vm582_vm2, %v6673_v9, 0.0 }
 0x3b5   : > { %v1789_v5 = vsub.f32 %v8630_v30, %v1751_v49  ;;  %v1787_v31 = vsub.f32 %v8622_v18, %v1745_v47  ;;  %5968 = vmatmul.mubr.msk.f32.gmra.mrb[50].mxu0 %vm582_vm2, %v6669_v54  ;;  %v6675_v42 = vpop.eup %6674  ;;  %6684 = vpow2.f32 %v1843_v32 }
 0x3b6   : > { %v1920_v41 = vsel %vm582_vm2, %v6675_v42, 0.0 }
 0x3b7   : > { %v6677_v62 = vpop.eup %6676  ;;  %v1845_v8 = vmul.f32 1.442695, %v1787_v31  ;;  %1912 = vadd.xlane.f32.xlu1 %v1911_v0  ;;  %v1849_v38 = vmul.f32 1.442695, %v1789_v5 }
 0x3b8   : > { %v1757_v7 = vpop.xlane.xlu1 %1756  ;;  %v1754_v57 = vpop.xlane.xlu0 %1753  ;;  %5970 = vmatprep.mubr.msk.f32.mxu0 %vm582_vm2, %v6677_v62  ;;  %v1917_v46 = vsel %vm582_vm2, %v6677_v62, 0.0 }
 0x3b9   : > { %v6679_v30 = vpop.eup %6678  ;;  %v1791_v18 = vsub.f32 %v8638_v37, %v1757_v7  ;;  %v1790_v54 = vsub.f32 %v8628_v59, %v1754_v57  ;;  %1918 = vadd.xlane.f32.xlu0 %v1917_v46  ;;  %5971 = vmatmul.mubr.msk.f32.gmra.mrb[52].mxu0 %vm582_vm2, %v6675_v42  ;;  %6686 = vpow2.f32 %v1845_v8  ;;  %v3871_v42 = vsel %vm582_vm2, %v8835_v22, -inf }
 0x3ba   : > { %6688 = vpow2.f32 %v1847_v21  ;;  %v1926_v37 = vsel %vm582_vm2, %v6679_v30, 0.0 }
 0x3bb   : > { %v6681_v39 = vpop.eup %6680  ;;  %v1851_v28 = vmul.f32 1.442695, %v1790_v54  ;;  %1921 = vadd.xlane.f32.xlu1 %v1920_v41  ;;  %6690 = vpow2.f32 %v1849_v38  ;;  %v1853_v56 = vmul.f32 1.442695, %v1791_v18  ;;  %v3868_v41 = vsel %vm582_vm2, %v8822_v4, -inf }
 0x3bc   : > { %v2749_v15 = vpop.xlane.xlu1 %2748  ;;  %v1760_v24 = vpop.xlane.xlu0 %1759  ;;  %5973 = vmatprep.mubr.msk.f32.mxu0 %vm582_vm2, %v6681_v39 }
 0x3bd   : > { %v2843_v59 = vsub.f32 %v8646_v6, %v2749_v15  ;;  %v1792_v55 = vsub.f32 %v8636_v1, %v1760_v24  ;;  %1927 = vadd.xlane.f32.xlu0 %v1926_v37  ;;  %5974 = vmatmul.mubr.msk.f32.gmra.mrb[54].mxu0 %vm582_vm2, %v6679_v30  ;;  %6692 = vpow2.f32 %v1851_v28  ;;  %v1923_v6 = vsel %vm582_vm2, %v6681_v39, 0.0 }
 0x3be   : > { %v6683_v32 = vpop.eup %6682  ;;  %6694 = vpow2.f32 %v1853_v56  ;;  %v3889_v30 = vsel %vm582_vm2, %v8869_v20, -inf  ;;  %v3895_v24 = vsel %vm582_vm2, %v8879_v48, -inf }
 0x3bf   : > { %v1855_v40 = vmul.f32 1.442695, %v1792_v55  ;;  %5976 = vmatprep.mubr.msk.f32.mxu0 %vm582_vm2, %v6683_v32  ;;  %v1929_v14 = vsel %vm582_vm2, %v6683_v32, 0.0  ;;  %v6685_v9 = vpop.eup %6684  ;;  %v2875_v58 = vmul.f32 1.442695, %v2843_v59  ;;  %v3874_v55 = vsel %vm582_vm2, %v8830_v17, -inf }
 0x3c0   : > { %v2755_v49 = vpop.xlane.xlu1 %2754  ;;  %1930 = vadd.xlane.f32.xlu1 %v1929_v14  ;;  %v2752_v47 = vpop.xlane.xlu0 %2751  ;;  %v1932_v38 = vsel %vm582_vm2, %v6685_v9, 0.0 }
 0x3c1   : > { %v2845_v1 = vsub.f32 %v8654_v34, %v2755_v49  ;;  %v2844_v5 = vsub.f32 %v8644_v29, %v2752_v47  ;;  %1924 = vadd.xlane.f32.xlu0 %v1923_v6  ;;  %5977 = vmatmul.mubr.msk.f32.gmra.mrb[56].mxu0 %vm582_vm2, %v6685_v9  ;;  %6696 = vpow2.f32 %v1855_v40  ;;  %v3877_v47 = vsel %vm582_vm2, %v8848_v26, -inf }
 0x3c2   : > { %6698 = vpow2.f32 %v2875_v58  ;;  %v3901_v58 = vsel %vm582_vm2, %v8890_v52, -inf }
 0x3c3   : > { %v2877_v31 = vmul.f32 1.442695, %v2844_v5  ;;  %v8960_v0 = vpop.eup %6686  ;;  %v2879_v62 = vmul.f32 1.442695, %v2845_v1 }
 0x3c4   : > { %v2761_v21 = vpop.xlane.xlu1 %2760  ;;  %3872 = vmax.xlane.f32.xlu1 %v3871_v42  ;;  %v2758_v8 = vpop.xlane.xlu0 %2757  ;;  %5979 = vmatprep.mubr.msk.f32.mxu0 %vm582_vm2, %v8960_v0  ;;  %v3904_v42 = vsel %vm582_vm2, %v8886_v10, -inf }
 0x3c5   : > { %v8963_v34 = vpop.eup %6688  ;;  %v2847_v29 = vsub.f32 %v8662_v23, %v2761_v21  ;;  %v2846_v7 = vsub.f32 %v8652_v13, %v2758_v8  ;;  %1933 = vadd.xlane.f32.xlu0 %v1932_v38  ;;  %6700 = vpow2.f32 %v2877_v31  ;;  %v3880_v21 = vsel %vm582_vm2, %v8842_v36, -inf }
 0x3c6   : > { %v8969_v57 = vpop.eup %6690  ;;  %5980 = vmatmul.mubr.msk.f32.gmra.mrb[58].mxu0 %vm582_vm2, %v8963_v34  ;;  %6702 = vpow2.f32 %v2879_v62 }
 0x3c7   : > { %v2881_v46 = vmul.f32 1.442695, %v2846_v7  ;;  %5982 = vmatprep.mubr.msk.f32.mxu0 %vm582_vm2, %v8969_v57  ;;  %v8977_v23 = vpop.eup %6692  ;;  %v2883_v13 = vmul.f32 1.442695, %v2847_v29  ;;  %v3907_v29 = vsel %vm582_vm2, %v8900_v11, -inf }
 0x3c8   : > { %v2770_v18 = vpop.xlane.xlu1 %2769  ;;  %3890 = vmax.xlane.f32.xlu1 %v3889_v30  ;;  %v2764_v54 = vpop.xlane.xlu0 %2763  ;;  %v10707_v30 = vld [vmem:[#allocation67_spill] sm:$0xff] }
 0x3c9   : > { %v2848_v39 = vsub.f32 %v8660_v33, %v2764_v54  ;;  %3869 = vmax.xlane.f32.xlu0 %v3868_v41  ;;  %v8982_v28 = vpop.eup %6694  ;;  %6704 = vpow2.f32 %v2881_v46  ;;  %v2850_v56 = vsub.f32 %v8668_v45, %v2770_v18 }
 0x3ca   : > { %5983 = vmatmul.mubr.msk.f32.gmra.mrb[60].mxu0 %vm582_vm2, %v8977_v23  ;;  %6706 = vpow2.f32 %v2883_v13 }
 0x3cb   : > { %v2885_v15 = vmul.f32 1.442695, %v2848_v39  ;;  %5985 = vmatprep.mubr.msk.f32.mxu0 %vm582_vm2, %v8982_v28  ;;  %v8991_v37 = vpop.eup %6696  ;;  %v2889_v40 = vmul.f32 1.442695, %v2850_v56 }
 0x3cc   : > { %v2767_v33 = vpop.xlane.xlu1 %2766  ;;  %3896 = vmax.xlane.f32.xlu1 %v3895_v24  ;;  %v2776_v59 = vpop.xlane.xlu0 %2775  ;;  %v10709_v24 = vld [vmem:[#allocation41_spill] sm:$0xff] }
 0x3cd   : > { %v2849_v32 = vsub.f32 %v8670_v51, %v2767_v33  ;;  %3875 = vmax.xlane.f32.xlu0 %v3874_v55  ;;  %v8996_v45 = vpop.eup %6698  ;;  %6708 = vpow2.f32 %v2885_v15  ;;  %v2852_v9 = vsub.f32 %v8676_v12, %v2776_v59  ;;  %v3910_v15 = vsel %vm582_vm2, %v8896_v61, -inf }
 0x3ce   : > { %5986 = vmatmul.mubr.msk.f32.gmra.mrb[62].mxu0 %vm582_vm2, %v8991_v37  ;;  %v3886_v59 = vsel %vm582_vm2, %v8855_v44, -inf }
 0x3cf   : > { %v2887_v14 = vmul.f32 1.442695, %v2849_v32  ;;  %6068 = vmatprep.mubr.msk.f32.mxu0 %vm582_vm2, %v8996_v45  ;;  %v9005_v49 = vpop.eup %6700  ;;  %v2893_v12 = vmul.f32 1.442695, %v2852_v9  ;;  %v10710_v32 = vld [vmem:[#allocation70_spill] sm:$0xff] }
 0x3d0   : > { %v2773_v51 = vpop.xlane.xlu1 %2772  ;;  %3902 = vmax.xlane.f32.xlu1 %v3901_v58  ;;  %v9010_v1 = vpop.eup %6702 }
 0x3d1   : > { %6710 = vpow2.f32 %v2887_v14  ;;  %v2851_v6 = vsub.f32 %v8678_v16, %v2773_v51  ;;  %3878 = vmax.xlane.f32.xlu0 %v3877_v47  ;;  %v10711_v14 = vld [vmem:[#allocation69_spill] sm:$0xff] }
 0x3d2   : > { %6069 = vmatmul.mubr.msk.f32.vlgmr.msra.gmra.mrb[64].mxu0 %vm582_vm2, %v9005_v49  ;;  %6712 = vpow2.f32 %v2889_v40 }
 0x3d3   : > { %v2891_v5 = vmul.f32 1.442695, %v2851_v6  ;;  %6391 = vmatpush3.bf16.msra.mxu0 %v8422_v63  ;;  %6071 = vmatprep.mubr.msk.f32.mxu0 %vm582_vm2, %v9010_v1  ;;  %v2788_v31 = vpop.xlane.xlu0 %2787  ;;  %v9019_v62 = vpop.eup %6704  ;;  %v1935_v6 = vsel %vm582_vm2, %v8960_v0, 0.0 }
 0x3d4   : > { %6393 = vmatprep.subr.bf16.mxu0 %v8434_v35  ;;  %v2782_v16 = vpop.xlane.xlu1 %2781  ;;  %3905 = vmax.xlane.f32.xlu1 %v3904_v42  ;;  %v9024_v8 = vpop.eup %6706  ;;  %v3892_v42 = vsel %vm582_vm2, %v8865_v53, -inf }
 0x3d5   : > { %6714 = vpow2.f32 %v2891_v5  ;;  %3881 = vmax.xlane.f32.xlu0 %v3880_v21  ;;  %v2854_v63 = vsub.f32 %v8684_v3, %v2782_v16  ;;  %v3883_v3 = vsel %vm582_vm2, %v8860_v43, -inf  ;;  %v10713_v21 = vld [vmem:[#allocation72_spill] sm:$0xff] }
 0x3d6   : > { %6072 = vmatmul.mubr.msk.f32.gmra.mrb[66].mxu0 %vm582_vm2, %v9019_v62  ;;  %6716 = vpow2.f32 %v2893_v12  ;;  %v10712_v12 = vld [vmem:[#allocation74_spill] sm:$0xff] }
 0x3d7   : > { %6395 = vmatpush3.bf16.msra.mxu0 %v8434_v35  ;;  %6074 = vmatprep.mubr.msk.f32.mxu0 %vm582_vm2, %v9024_v8  ;;  %v2794_v38 = vpop.xlane.xlu0 %2793  ;;  %v9034_v7 = vpop.eup %6708  ;;  %v10708_v35 = vld [vmem:[#allocation68_spill] sm:$0xff]  ;;  %v2897_v54 = vmul.f32 1.442695, %v2854_v63 }
 0x3d8   : > { %6397 = vmatprep.subr.bf16.mxu0 %v8446_v50  ;;  %v2779_v46 = vpop.xlane.xlu1 %2778  ;;  %3908 = vmax.xlane.f32.xlu1 %v3907_v29  ;;  %v2856_v18 = vsub.f32 %v10708_v35, %v2788_v31  ;;  %v2858_v9 = vsub.f32 %v10711_v14, %v2794_v38  ;;  %v10714_v29 = vld [vmem:[#allocation71_spill] sm:$0xff] }
 0x3d9   : > { %v2853_v13 = vsub.f32 %v10707_v30, %v2779_v46  ;;  %3884 = vmax.xlane.f32.xlu0 %v3883_v3 }
 0x3da   : > { %6075 = vmatmul.mubr.msk.f32.gmra.mrb[68].mxu0 %vm582_vm2, %v9034_v7  ;;  %v2905_v38 = vmul.f32 1.442695, %v2858_v9  ;;  %v3913_v9 = vsel %vm582_vm2, %v8910_v2, -inf }
 0x3db   : > { %v9043_v41 = vpop.eup %6710  ;;  %v2895_v39 = vmul.f32 1.442695, %v2853_v13  ;;  %6399 = vmatpush3.bf16.msra.mxu0 %v8446_v50  ;;  %v2800_v56 = vpop.xlane.xlu0 %2799  ;;  %v2901_v50 = vmul.f32 1.442695, %v2856_v18  ;;  %v1941_v13 = vsel %vm582_vm2, %v8969_v57, 0.0  ;;  %v3898_v18 = vsel %vm582_vm2, %v8875_v60, -inf }
 0x3dc   : > { %6401 = vmatprep.subr.bf16.mxu0 %v10709_v24  ;;  %v2785_v33 = vpop.xlane.xlu1 %2784  ;;  %3911 = vmax.xlane.f32.xlu1 %v3910_v15  ;;  %v9051_v55 = vpop.eup %6712  ;;  %v2860_v0 = vsub.f32 %v10714_v29, %v2800_v56  ;;  %v1947_v57 = vsel %vm582_vm2, %v8982_v28, 0.0 }
 0x3dd   : > { %6718 = vpow2.f32 %v2895_v39  ;;  %v2855_v40 = vsub.f32 %v10710_v32, %v2785_v33  ;;  %6077 = vmatprep.mubr.msk.f32.mxu0 %vm582_vm2, %v9043_v41  ;;  %3887 = vmax.xlane.f32.xlu0 %v3886_v59  ;;  %v10715_v39 = vld [vmem:[#allocation73_spill] sm:$0xff] }
 0x3de   : > { %6720 = vpow2.f32 %v2897_v54  ;;  %6078 = vmatmul.mubr.msk.f32.gmra.mrb[70].mxu0 %vm582_vm2, %v9051_v55  ;;  %v2909_v54 = vmul.f32 1.442695, %v2860_v0  ;;  %v3916_v0 = vsel %vm582_vm2, %v8906_v27, -inf }
 0x3df   : > { %v9059_v58 = vpop.eup %6714  ;;  %v2899_v51 = vmul.f32 1.442695, %v2855_v40  ;;  %6403 = vmatpush3.bf16.msra.mxu0 %v10709_v24  ;;  %v2797_v47 = vpop.xlane.xlu0 %2796  ;;  %v10716_v24 = vld [vmem:[#allocation78_spill] sm:$0xff]  ;;  %v10717_v40 = vld [vmem:[#allocation76_spill] sm:$0xff] }
 0x3e0   : > { %v2859_v5 = vsub.f32 %v10712_v12, %v2797_v47  ;;  %v2791_v31 = vpop.xlane.xlu1 %2790  ;;  %1936 = vadd.xlane.f32.xlu1 %v1935_v6  ;;  %6080 = vmatprep.mubr.msk.f32.mxu0 %vm582_vm2, %v9059_v58  ;;  %v9069_v16 = vpop.eup %6716  ;;  %v10718_v12 = vld [vmem:[#allocation80_spill] sm:$0xff] }
 0x3e1   : > { %6722 = vpow2.f32 %v2899_v51  ;;  %v2857_v63 = vsub.f32 %v10713_v21, %v2791_v31  ;;  %3893 = vmax.xlane.f32.xlu0 %v3892_v42  ;;  %v2939_v42 = vsel %vm582_vm2, %v8996_v45, 0.0 }
 0x3e2   : > { %6724 = vpow2.f32 %v2901_v50  ;;  %6081 = vmatmul.mubr.msk.f32.gmra.mrb[72].mxu0 %vm582_vm2, %v9069_v16  ;;  %v2907_v46 = vmul.f32 1.442695, %v2859_v5 }
 0x3e3   : > { %v2903_v3 = vmul.f32 1.442695, %v2857_v63  ;;  %v2806_v30 = vpop.xlane.xlu0 %2805  ;;  %v10719_v63 = vld [vmem:[#allocation75_spill] sm:$0xff] }
 0x3e4   : > { %v2809_v35 = vpop.xlane.xlu1 %2808  ;;  %1942 = vadd.xlane.f32.xlu1 %v1941_v13  ;;  %v2862_v56 = vsub.f32 %v10715_v39, %v2806_v30  ;;  %v10720_v30 = vld [vmem:[#allocation81_spill] sm:$0xff] }
 0x3e5   : > { %6726 = vpow2.f32 %v2903_v3  ;;  %3899 = vmax.xlane.f32.xlu0 %v3898_v18  ;;  %v2863_v33 = vsub.f32 %v10716_v24, %v2809_v35  ;;  %v2945_v18 = vsel %vm582_vm2, %v9010_v1, 0.0  ;;  %v10721_v39 = vld [vmem:[#allocation77_spill] sm:$0xff] }
 0x3e6   : > { %6728 = vpow2.f32 %v2905_v38  ;;  %v2913_v51 = vmul.f32 1.442695, %v2862_v56 }
 0x3e7   : > { %v9080_v15 = vpop.eup %6718  ;;  %6730 = vpow2.f32 %v2907_v46  ;;  %v2803_v59 = vpop.xlane.xlu0 %2802  ;;  %v2915_v6 = vmul.f32 1.442695, %v2863_v33  ;;  %v3919_v33 = vsel %vm582_vm2, %v8920_v19, -inf }
 0x3e8   : > { %v9085_v32 = vpop.eup %6720  ;;  %v2861_v50 = vsub.f32 %v10717_v40, %v2803_v59  ;;  %v2815_v14 = vpop.xlane.xlu1 %2814  ;;  %1948 = vadd.xlane.f32.xlu1 %v1947_v57  ;;  %6083 = vmatprep.mubr.msk.f32.mxu0 %vm582_vm2, %v9080_v15  ;;  %6732 = vpow2.f32 %v2909_v54  ;;  %v10722_v40 = vld [vmem:[#allocation83_spill] sm:$0xff] }
 0x3e9   : > { %3914 = vmax.xlane.f32.xlu0 %v3913_v9  ;;  %6084 = vmatmul.mubr.msk.f32.gmra.mrb[74].mxu0 %vm582_vm2, %v9085_v32  ;;  %v2865_v5 = vsub.f32 %v10718_v12, %v2815_v14  ;;  %v2951_v9 = vsel %vm582_vm2, %v9024_v8, 0.0  ;;  %v10724_v8 = vld [vmem:[#allocation85_spill] sm:$0xff] }
 0x3ea   : > { %v2911_v47 = vmul.f32 1.442695, %v2861_v50 }
 0x3eb   : > { %v9094_v28 = vpop.eup %6722  ;;  %v2812_v31 = vpop.xlane.xlu0 %2811  ;;  %v2919_v3 = vmul.f32 1.442695, %v2865_v5  ;;  %v3922_v5 = vsel %vm582_vm2, %v8916_v25, -inf }
 0x3ec   : > { %v9099_v21 = vpop.eup %6724  ;;  %6734 = vpow2.f32 %v2911_v47  ;;  %v2864_v38 = vsub.f32 %v10719_v63, %v2812_v31  ;;  %v2821_v29 = vpop.xlane.xlu1 %2820  ;;  %2940 = vadd.xlane.f32.xlu1 %v2939_v42  ;;  %6086 = vmatprep.mubr.msk.f32.mxu0 %vm582_vm2, %v9094_v28  ;;  %v10723_v47 = vld [vmem:[#allocation79_spill] sm:$0xff] }
 0x3ed   : > { %3917 = vmax.xlane.f32.xlu0 %v3916_v0  ;;  %6087 = vmatmul.mubr.msk.f32.gmra.mrb[76].mxu0 %vm582_vm2, %v9099_v21  ;;  %6736 = vpow2.f32 %v2913_v51  ;;  %v2867_v13 = vsub.f32 %v10720_v30, %v2821_v29  ;;  %v2957_v0 = vsel %vm582_vm2, %v9043_v41, 0.0 }
 0x3ee   : > { %v2917_v46 = vmul.f32 1.442695, %v2864_v38  ;;  %6738 = vpow2.f32 %v2915_v6 }
 0x3ef   : > { %v9108_v45 = vpop.eup %6726  ;;  %v2818_v35 = vpop.xlane.xlu0 %2817  ;;  %v2923_v57 = vmul.f32 1.442695, %v2867_v13 }
 0x3f0   : > { %v9113_v54 = vpop.eup %6728  ;;  %v2866_v56 = vsub.f32 %v10721_v39, %v2818_v35  ;;  %v2827_v24 = vpop.xlane.xlu1 %2826  ;;  %2946 = vadd.xlane.f32.xlu1 %v2945_v18  ;;  %6089 = vmatprep.mubr.msk.f32.mxu0 %vm582_vm2, %v9108_v45  ;;  %6740 = vpow2.f32 %v2917_v46  ;;  %v1938_v35 = vsel %vm582_vm2, %v8963_v34, 0.0 }
 0x3f1   : > { %v9120_v59 = vpop.eup %6730  ;;  %3920 = vmax.xlane.f32.xlu0 %v3919_v33  ;;  %6090 = vmatmul.mubr.msk.f32.gmra.mrb[78].mxu0 %vm582_vm2, %v9113_v54  ;;  %6742 = vpow2.f32 %v2919_v3  ;;  %v2869_v50 = vsub.f32 %v10722_v40, %v2827_v24  ;;  %v10725_v3 = vld [vmem:[#allocation82_spill] sm:$0xff] }
 0x3f2   : > { %v2921_v1 = vmul.f32 1.442695, %v2866_v56  ;;  %6092 = vmatprep.mubr.msk.f32.mxu0 %vm582_vm2, %v9120_v59  ;;  %v9129_v51 = vpop.eup %6732  ;;  %v10726_v56 = vld [vmem:[#allocation87_spill] sm:$0xff] }
 0x3f3   : > { %v2824_v14 = vpop.xlane.xlu0 %2823  ;;  %v2927_v63 = vmul.f32 1.442695, %v2869_v50 }
 0x3f4   : > { %v2868_v6 = vsub.f32 %v10723_v47, %v2824_v14  ;;  %v2833_v12 = vpop.xlane.xlu1 %2832  ;;  %2952 = vadd.xlane.f32.xlu1 %v2951_v9  ;;  %6744 = vpow2.f32 %v2921_v1  ;;  %v2963_v1 = vsel %vm582_vm2, %v9059_v58, 0.0  ;;  %v1944_v14 = vsel %vm582_vm2, %v8977_v23, 0.0 }
 0x3f5   : > { %3923 = vmax.xlane.f32.xlu0 %v3922_v5  ;;  %6093 = vmatmul.mubr.msk.f32.gmra.mrb[80].mxu0 %vm582_vm2, %v9129_v51  ;;  %6746 = vpow2.f32 %v2923_v57  ;;  %v2871_v38 = vsub.f32 %v10724_v8, %v2833_v12  ;;  %v10727_v57 = vld [vmem:[#allocation84_spill] sm:$0xff] }
 0x3f6   : > { %v9136_v31 = vpop.eup %6734  ;;  %v2925_v42 = vmul.f32 1.442695, %v2868_v6  ;;  %v10728_v6 = vld [vmem:[#allocation89_spill] sm:$0xff] }
 0x3f7   : > { %v2830_v29 = vpop.xlane.xlu0 %2829  ;;  %6095 = vmatprep.mubr.msk.f32.mxu0 %vm582_vm2, %v9136_v31  ;;  %v9143_v46 = vpop.eup %6736  ;;  %v2931_v41 = vmul.f32 1.442695, %v2871_v38 }
 0x3f8   : > { %v2870_v30 = vsub.f32 %v10725_v3, %v2830_v29  ;;  %v2839_v13 = vpop.xlane.xlu1 %2838  ;;  %2958 = vadd.xlane.f32.xlu1 %v2957_v0  ;;  %v9148_v18 = vpop.eup %6738  ;;  %6748 = vpow2.f32 %v2925_v42  ;;  %v2969_v42 = vsel %vm582_vm2, %v9080_v15, 0.0  ;;  %v1950_v29 = vsel %vm582_vm2, %v8991_v37, 0.0 }
 0x3f9   : > { %1939 = vadd.xlane.f32.xlu0 %v1938_v35  ;;  %6096 = vmatmul.mubr.msk.f32.gmra.mrb[82].mxu0 %vm582_vm2, %v9143_v46  ;;  %6750 = vpow2.f32 %v2927_v63  ;;  %v2873_v24 = vsub.f32 %v10726_v56, %v2839_v13  ;;  %v10729_v63 = vld [vmem:[#allocation86_spill] sm:$0xff] }
 0x3fa   : > { %v2929_v39 = vmul.f32 1.442695, %v2870_v30  ;;  %6098 = vmatprep.mubr.msk.f32.mxu0 %vm582_vm2, %v9148_v18  ;;  %v9157_v34 = vpop.eup %6740  ;;  %v10730_v30 = vld [vmem:[#allocation91_spill] sm:$0xff] }
 0x3fb   : > { %v2836_v33 = vpop.xlane.xlu0 %2835  ;;  %v9162_v9 = vpop.eup %6742  ;;  %v2935_v58 = vmul.f32 1.442695, %v2873_v24 }
 0x3fc   : > { %v2872_v40 = vsub.f32 %v10727_v57, %v2836_v33  ;;  %v3831_v50 = vpop.xlane.xlu1 %3830  ;;  %2964 = vadd.xlane.f32.xlu1 %v2963_v1  ;;  %6752 = vpow2.f32 %v2929_v39  ;;  %v2975_v39 = vsel %vm582_vm2, %v9094_v28, 0.0  ;;  %v2942_v33 = vsel %vm582_vm2, %v9005_v49, 0.0 }
 0x3fd   : > { %1945 = vadd.xlane.f32.xlu0 %v1944_v14  ;;  %6099 = vmatmul.mubr.msk.f32.gmra.mrb[84].mxu0 %vm582_vm2, %v9157_v34  ;;  %6754 = vpow2.f32 %v2931_v41  ;;  %v3925_v12 = vsub.f32 %v10728_v6, %v3831_v50  ;;  %v10731_v41 = vld [vmem:[#allocation88_spill] sm:$0xff] }
 0x3fe   : > { %v2933_v47 = vmul.f32 1.442695, %v2872_v40  ;;  %6101 = vmatprep.mubr.msk.f32.mxu0 %vm582_vm2, %v9162_v9  ;;  %v9171_v23 = vpop.eup %6744  ;;  %v10732_v40 = vld [vmem:[#allocation93_spill] sm:$0xff] }
 0x3ff   : > { %v2842_v5 = vpop.xlane.xlu0 %2841  ;;  %v9176_v0 = vpop.eup %6746  ;;  %v3957_v15 = vmul.f32 1.442695, %v3925_v12 }
 0x400   : > { %v2874_v8 = vsub.f32 %v10729_v63, %v2842_v5  ;;  %v3837_v38 = vpop.xlane.xlu1 %3836  ;;  %2970 = vadd.xlane.f32.xlu1 %v2969_v42  ;;  %6756 = vpow2.f32 %v2933_v47  ;;  %v2981_v47 = vsel %vm582_vm2, %v9108_v45, 0.0  ;;  %v2948_v5 = vsel %vm582_vm2, %v9019_v62, 0.0  ;;  %v10734_v62 = vld [vmem:[#allocation92_spill] sm:$0xff] }
 0x401   : > { %1951 = vadd.xlane.f32.xlu0 %v1950_v29  ;;  %6102 = vmatmul.mubr.msk.f32.gmra.mrb[86].mxu0 %vm582_vm2, %v9171_v23  ;;  %6758 = vpow2.f32 %v2935_v58  ;;  %v3927_v13 = vsub.f32 %v10730_v30, %v3837_v38  ;;  %v10733_v58 = vld [vmem:[#allocation90_spill] sm:$0xff]  ;;  %v2987_v38 = vsel %vm582_vm2, %v9120_v59, 0.0  ;;  %v2954_v30 = vsel %vm582_vm2, %v9034_v7, 0.0 }
 0x402   : > { %v2937_v3 = vmul.f32 1.442695, %v2874_v8  ;;  %6104 = vmatprep.mubr.msk.f32.mxu0 %vm582_vm2, %v9176_v0  ;;  %v9185_v37 = vpop.eup %6748  ;;  %v2993_v7 = vsel %vm582_vm2, %v9136_v31, 0.0 }
 0x403   : > { %v3834_v35 = vpop.xlane.xlu0 %3833  ;;  %v9190_v1 = vpop.eup %6750  ;;  %v3961_v28 = vmul.f32 1.442695, %v3927_v13 }
 0x404   : > { %v3926_v56 = vsub.f32 %v10731_v41, %v3834_v35  ;;  %v3843_v24 = vpop.xlane.xlu1 %3842  ;;  %2976 = vadd.xlane.f32.xlu1 %v2975_v39  ;;  %6760 = vpow2.f32 %v2937_v3  ;;  %v10735_v35 = vld [vmem:[#allocation95_spill] sm:$0xff]  ;;  %v10736_v41 = vld [vmem:[#allocation94_spill] sm:$0xff] }
 0x405   : > { %2943 = vadd.xlane.f32.xlu0 %v2942_v33  ;;  %6105 = vmatmul.mubr.msk.f32.gmra.mrb[88].mxu0 %vm582_vm2, %v9185_v37  ;;  %6762 = vpow2.f32 %v3957_v15  ;;  %v3929_v50 = vsub.f32 %v10732_v40, %v3843_v24  ;;  %v2960_v40 = vsel %vm582_vm2, %v9051_v55, 0.0  ;;  %v2999_v55 = vsel %vm582_vm2, %v9148_v18, 0.0 }
 0x406   : > { %v3959_v57 = vmul.f32 1.442695, %v3926_v56  ;;  %6107 = vmatprep.mubr.msk.f32.mxu0 %vm582_vm2, %v9190_v1  ;;  %v9199_v49 = vpop.eup %6752  ;;  %v3005_v18 = vsel %vm582_vm2, %v9162_v9, 0.0 }
 0x407   : > { %v3840_v14 = vpop.xlane.xlu0 %3839  ;;  %v9204_v42 = vpop.eup %6754  ;;  %v3965_v45 = vmul.f32 1.442695, %v3929_v50 }
 0x408   : > { %v3928_v6 = vsub.f32 %v10733_v58, %v3840_v14  ;;  %v3852_v12 = vpop.xlane.xlu1 %3851  ;;  %2982 = vadd.xlane.f32.xlu1 %v2981_v47  ;;  %6764 = vpow2.f32 %v3959_v57  ;;  %v10737_v14 = vld [vmem:[#allocation97_spill] sm:$0xff] }
 0x409   : > { %2949 = vadd.xlane.f32.xlu0 %v2948_v5  ;;  %6108 = vmatmul.mubr.msk.f32.gmra.mrb[90].mxu0 %vm582_vm2, %v9199_v49  ;;  %6766 = vpow2.f32 %v3961_v28  ;;  %v3932_v59 = vsub.f32 %v10736_v41, %v3852_v12 }
 0x40a   : > { %v3963_v63 = vmul.f32 1.442695, %v3928_v6  ;;  %6110 = vmatprep.mubr.msk.f32.mxu0 %vm582_vm2, %v9204_v42  ;;  %v9212_v29 = vpop.eup %6756  ;;  %v10738_v6 = vld [vmem:[#allocation96_spill] sm:$0xff] }
 0x40b   : > { %v3846_v8 = vpop.xlane.xlu0 %3845  ;;  %v9217_v13 = vpop.eup %6758  ;;  %v3971_v58 = vmul.f32 1.442695, %v3932_v59 }
 0x40c   : > { %v3930_v3 = vsub.f32 %v10734_v62, %v3846_v8  ;;  %v3849_v15 = vpop.xlane.xlu1 %3848  ;;  %2988 = vadd.xlane.f32.xlu1 %v2987_v38  ;;  %6768 = vpow2.f32 %v3963_v63  ;;  %v10739_v62 = vld [vmem:[#allocation98_spill] sm:$0xff] }
 0x40d   : > { %v3931_v39 = vsub.f32 %v10735_v35, %v3849_v15  ;;  %2955 = vadd.xlane.f32.xlu0 %v2954_v30  ;;  %6111 = vmatmul.mubr.msk.f32.gmra.mrb[92].mxu0 %vm582_vm2, %v9212_v29  ;;  %6770 = vpow2.f32 %v3965_v45  ;;  %v2966_v45 = vsel %vm582_vm2, %v9069_v16, 0.0  ;;  %v2972_v30 = vsel %vm582_vm2, %v9085_v32, 0.0 }
 0x40e   : > { %v3967_v56 = vmul.f32 1.442695, %v3930_v3  ;;  %6113 = vmatprep.mubr.msk.f32.mxu0 %vm582_vm2, %v9217_v13  ;;  %v9227_v57 = vpop.eup %6760 }
 0x40f   : > { %v3969_v24 = vmul.f32 1.442695, %v3931_v39  ;;  %v3858_v33 = vpop.xlane.xlu0 %3857  ;;  %v9231_v50 = vpop.eup %6762  ;;  %v10740_v39 = vld [vmem:[#allocation99_spill] sm:$0xff] }
 0x410   : > { %v3855_v28 = vpop.xlane.xlu1 %3854  ;;  %2994 = vadd.xlane.f32.xlu1 %v2993_v7  ;;  %6772 = vpow2.f32 %v3967_v56  ;;  %v3934_v12 = vsub.f32 %v10738_v6, %v3858_v33  ;;  %v2978_v7 = vsel %vm582_vm2, %v9099_v21, 0.0 }
 0x411   : > { %v3933_v47 = vsub.f32 %v10737_v14, %v3855_v28  ;;  %2961 = vadd.xlane.f32.xlu0 %v2960_v40  ;;  %6114 = vmatmul.mubr.msk.f32.gmra.mrb[94].mxu0 %vm582_vm2, %v9227_v57  ;;  %6774 = vpow2.f32 %v3969_v24  ;;  %v3011_v24 = vsel %vm582_vm2, %v9176_v0, 0.0  ;;  %v10741_v40 = vld [vmem:[#allocation100_spill] sm:$0xff] }
 0x412   : > { %6196 = vmatprep.mubr.msk.f32.mxu0 %vm582_vm2, %v9231_v50  ;;  %v9241_v5 = vpop.eup %6764  ;;  %6776 = vpow2.f32 %v3971_v58  ;;  %v3975_v38 = vmul.f32 1.442695, %v3934_v12  ;;  %v3017_v58 = vsel %vm582_vm2, %v9190_v1, 0.0  ;;  %v2984_v12 = vsel %vm582_vm2, %v9113_v54, 0.0 }
 0x413   : > { %v3973_v31 = vmul.f32 1.442695, %v3933_v47  ;;  %v9245_v8 = vpop.eup %6766  ;;  %v3023_v1 = vsel %vm582_vm2, %v9204_v42, 0.0  ;;  %v2990_v54 = vsel %vm582_vm2, %v9129_v51, 0.0  ;;  %v2996_v51 = vsel %vm582_vm2, %v9143_v46, 0.0 }
 0x414   : > { %v3864_v63 = vpop.xlane.xlu1 %3863  ;;  %3000 = vadd.xlane.f32.xlu1 %v2999_v55 }
 0x415   : > { %2967 = vadd.xlane.f32.xlu0 %v2966_v45  ;;  %6197 = vmatmul.mubr.msk.f32.vlgmr.msra.gmra.mrb[96].mxu0 %vm582_vm2, %v9241_v5  ;;  %v3936_v3 = vsub.f32 %v10739_v62, %v3864_v63  ;;  %6778 = vpow2.f32 %v3973_v31 }
 0x416   : > { %6199 = vmatprep.mubr.msk.f32.mxu0 %vm582_vm2, %v9245_v8  ;;  %v9254_v15 = vpop.eup %6768  ;;  %6780 = vpow2.f32 %v3975_v38 }
 0x417   : > { %v9258_v35 = vpop.eup %6770  ;;  %v3979_v56 = vmul.f32 1.442695, %v3936_v3  ;;  %v3029_v3 = vsel %vm582_vm2, %v9217_v13, 0.0  ;;  %v4021_v13 = vsel %vm582_vm2, %v9231_v50, 0.0  ;;  %v3008_v50 = vsel %vm582_vm2, %v9171_v23, 0.0 }
 0x418   : > { %v3861_v16 = vpop.xlane.xlu1 %3860  ;;  %3006 = vadd.xlane.f32.xlu1 %v3005_v18  ;;  %v3020_v23 = vsel %vm582_vm2, %v9199_v49, 0.0  ;;  %v3032_v49 = vsel %vm582_vm2, %v9227_v57, 0.0 }
 0x419   : > { %v3935_v41 = vsub.f32 %v10740_v39, %v3861_v16  ;;  %2973 = vadd.xlane.f32.xlu0 %v2972_v30  ;;  %v9261_v59 = vpop.xlane.xlu0 %1861  ;;  %6200 = vmatmul.mubr.msk.f32.gmra.mrb[98].mxu0 %vm582_vm2, %v9254_v15 }
 0x41a   : > { %6202 = vmatprep.mubr.msk.f32.mxu0 %vm582_vm2, %v9258_v35  ;;  %v9269_v32 = vpop.eup %6772 }
 0x41b   : > { %v3977_v9 = vmul.f32 1.442695, %v3935_v41  ;;  %v6775_v28 = vpop.eup %6774  ;;  %v3002_v41 = vsel %vm582_vm2, %v9157_v34, 0.0  ;;  %v3014_v34 = vsel %vm582_vm2, %v9185_v37, 0.0  ;;  %v3026_v37 = vsel %vm582_vm2, %v9212_v29, 0.0 }
 0x41c   : > { %v3867_v33 = vpop.xlane.xlu1 %3866  ;;  %3012 = vadd.xlane.f32.xlu1 %v3011_v24  ;;  %v9281_v6 = vpop.eup %6776  ;;  %v4024_v29 = vsel %vm582_vm2, %v9241_v5, 0.0 }
 0x41d   : > { %6782 = vpow2.f32 %v3977_v9  ;;  %v3937_v14 = vsub.f32 %v10741_v40, %v3867_v33  ;;  %2979 = vadd.xlane.f32.xlu0 %v2978_v7  ;;  %6203 = vmatmul.mubr.msk.f32.gmra.mrb[100].mxu0 %vm582_vm2, %v9269_v32  ;;  %v4033_v33 = vsel %vm582_vm2, %v9258_v35, 0.0  ;;  %v4039_v40 = vsel %vm582_vm2, %v6775_v28, 0.0 }
 0x41e   : > { %6784 = vpow2.f32 %v3979_v56  ;;  %v9276_v47 = vpop.xlane.xlu0 %1867  ;;  %6205 = vmatprep.mubr.msk.f32.mxu0 %vm582_vm2, %v6775_v28  ;;  %v4027_v56 = vsel %vm582_vm2, %v9245_v8, 0.0  ;;  %v4042_v5 = vsel %vm582_vm2, %v9281_v6, 0.0 }
 0x41f   : > { %v3981_v0 = vmul.f32 1.442695, %v3937_v14  ;;  %v6779_v31 = vpop.eup %6778 }
 0x420   : > { %v9283_v21 = vpop.xlane.xlu1 %1858  ;;  %3018 = vadd.xlane.f32.xlu1 %v3017_v58  ;;  %v9294_v63 = vpop.eup %6780  ;;  %v4045_v35 = vsel %vm582_vm2, %v6779_v31, 0.0 }
 0x421   : > { %6786 = vpow2.f32 %v3981_v0  ;;  %2985 = vadd.xlane.f32.xlu0 %v2984_v12  ;;  %6206 = vmatmul.mubr.msk.f32.gmra.mrb[102].mxu0 %vm582_vm2, %v9281_v6 }
 0x422   : > { %v9289_v55 = vpop.xlane.xlu0 %1873  ;;  %6208 = vmatprep.mubr.msk.f32.mxu0 %vm582_vm2, %v6779_v31  ;;  %6788 = vrcp.f32 %v9261_v59 }
 0x424   : > { %v9296_v45 = vpop.xlane.xlu1 %1864  ;;  %3024 = vadd.xlane.f32.xlu1 %v3023_v1 }
 0x425   : > { %2991 = vadd.xlane.f32.xlu0 %v2990_v54  ;;  %6209 = vmatmul.mubr.msk.f32.gmra.mrb[104].mxu0 %vm582_vm2, %v9294_v63 }
 0x426   : > { %v9302_v38 = vpop.xlane.xlu0 %1879 }
 0x427   : > { %v6783_v62 = vpop.eup %6782 }
 0x428   : > { %v9306_v18 = vpop.eup %6784  ;;  %v9308_v42 = vpop.xlane.xlu1 %1870  ;;  %3030 = vadd.xlane.f32.xlu1 %v3029_v3  ;;  %6211 = vmatprep.mubr.msk.f32.mxu0 %vm582_vm2, %v6783_v62  ;;  %v4051_v28 = vsel %vm582_vm2, %v6783_v62, 0.0 }
 0x429   : > { %2997 = vadd.xlane.f32.xlu0 %v2996_v51  ;;  %6212 = vmatmul.mubr.msk.f32.gmra.mrb[106].mxu0 %vm582_vm2, %v9306_v18  ;;  %v4030_v51 = vsel %vm582_vm2, %v9254_v15, 0.0  ;;  %v4054_v6 = vsel %vm582_vm2, %v9306_v18, 0.0 }
 0x42a   : > { %v9315_v16 = vpop.xlane.xlu0 %1885 }
 0x42b   : > { %v6787_v30 = vpop.eup %6786 }
 0x42c   : > { %v9319_v39 = vpop.xlane.xlu1 %1876  ;;  %4022 = vadd.xlane.f32.xlu1 %v4021_v13  ;;  %6214 = vmatprep.mubr.msk.f32.mxu0 %vm582_vm2, %v6787_v30  ;;  %v4057_v31 = vsel %vm582_vm2, %v6787_v30, 0.0  ;;  %v4036_v30 = vsel %vm582_vm2, %v9269_v32, 0.0 }
 0x42d   : > { %3003 = vadd.xlane.f32.xlu0 %v3002_v41 }
 0x42e   : > { %v9324_v46 = vpop.xlane.xlu0 %1891 }
 0x430   : > { %v9328_v9 = vpop.xlane.xlu1 %1882  ;;  %4028 = vadd.xlane.f32.xlu1 %v4027_v56 }
 0x431   : > { %3009 = vadd.xlane.f32.xlu0 %v3008_v50 }
 0x432   : > { %v9332_v24 = vpop.xlane.xlu0 %1897 }
 0x434   : > { %v9336_v7 = vpop.xlane.xlu1 %1888  ;;  %4034 = vadd.xlane.f32.xlu1 %v4033_v33 }
 0x435   : > { %3015 = vadd.xlane.f32.xlu0 %v3014_v34  ;;  %v4048_v34 = vsel %vm582_vm2, %v9294_v63, 0.0 }
 0x436   : > { %v9340_v8 = vpop.xlane.xlu0 %1903 }
 0x438   : > { %v9343_v14 = vpop.xlane.xlu1 %1894  ;;  %4040 = vadd.xlane.f32.xlu1 %v4039_v40 }
 0x439   : > { %3021 = vadd.xlane.f32.xlu0 %v3020_v23 }
 0x43a   : > { %v9348_v0 = vpop.xlane.xlu0 %1909 }
 0x43c   : > { %v9350_v58 = vpop.xlane.xlu1 %1900  ;;  %4046 = vadd.xlane.f32.xlu1 %v4045_v35 }
 0x43d   : > { %3027 = vadd.xlane.f32.xlu0 %v3026_v37 }
 0x43e   : > { %v9359_v1 = vpop.xlane.xlu0 %1915 }
 0x440   : > { %v9355_v12 = vpop.xlane.xlu1 %1906  ;;  %4052 = vadd.xlane.f32.xlu1 %v4051_v28 }
 0x441   : > { %3033 = vadd.xlane.f32.xlu0 %v3032_v49 }
 0x444   : > { %v9362_v54 = vpop.xlane.xlu1 %1912  ;;  %4058 = vadd.xlane.f32.xlu1 %v4057_v31  ;;  %v6789_v31 = vpop.eup %6788 }
 0x445   : > { %4025 = vadd.xlane.f32.xlu0 %v4024_v29 }
 0x446   : > { %v9366_v3 = vpop.xlane.xlu0 %1918 }
 0x448   : > { %v9368_v62 = vpop.xlane.xlu1 %1921 }
 0x449   : > { %4031 = vadd.xlane.f32.xlu0 %v4030_v51 }
 0x44a   : > { %v9372_v57 = vpop.xlane.xlu0 %1927 }
 0x44d   : > { %v9376_v13 = vpop.xlane.xlu1 %1930  ;;  %4037 = vadd.xlane.f32.xlu0 %v4036_v30 }
 0x44e   : > { %v9378_v41 = vpop.xlane.xlu0 %1924 }
 0x451   : > { %v3873_v56 = vpop.xlane.xlu1 %3872  ;;  %4043 = vadd.xlane.f32.xlu0 %v4042_v5 }
 0x452   : > { %v3939_v50 = vsub.f32 %v8835_v22, %v3873_v56  ;;  %v9383_v33 = vpop.xlane.xlu0 %1933 }
 0x454   : > { %v3985_v15 = vmul.f32 1.442695, %v3939_v50 }
 0x455   : > { %v3891_v32 = vpop.xlane.xlu1 %3890  ;;  %4049 = vadd.xlane.f32.xlu0 %v4048_v34 }
 0x456   : > { %6790 = vpow2.f32 %v3985_v15  ;;  %v3870_v40 = vpop.xlane.xlu0 %3869  ;;  %v3945_v34 = vsub.f32 %v8869_v20, %v3891_v32 }
 0x457   : > { %v3938_v23 = vsub.f32 %v8822_v4, %v3870_v40 }
 0x459   : > { %v3983_v35 = vmul.f32 1.442695, %v3938_v23  ;;  %v3897_v37 = vpop.xlane.xlu1 %3896  ;;  %4055 = vadd.xlane.f32.xlu0 %v4054_v6 }
 0x45a   : > { %v3876_v22 = vpop.xlane.xlu0 %3875 }
 0x45b   : > { %6792 = vpow2.f32 %v3983_v35  ;;  %v3940_v28 = vsub.f32 %v8830_v17, %v3876_v22 }
 0x45c   : > { %6794 = vrcp.f32 %v9276_v47 }
 0x45d   : > { %v3987_v49 = vmul.f32 1.442695, %v3940_v28  ;;  %v3903_v63 = vpop.xlane.xlu1 %3902 }
 0x45e   : > { %v3879_v59 = vpop.xlane.xlu0 %3878 }
 0x45f   : > { %6796 = vpow2.f32 %v3987_v49  ;;  %v3941_v29 = vsub.f32 %v8848_v26, %v3879_v59  ;;  %v3947_v59 = vsub.f32 %v8879_v48, %v3897_v37  ;;  %v3949_v37 = vsub.f32 %v8890_v52, %v3903_v63 }
 0x460   : > { %v6791_v4 = vpop.eup %6790  ;;  %v5942_v51 = vpop.f32.mrb[32].mxu0 }
 0x461   : > { %v3989_v30 = vmul.f32 1.442695, %v3941_v29  ;;  %v9394_v18 = vmul.f32 %v6789_v31, %v5942_v51  ;;  %v3906_v5 = vpop.xlane.xlu1 %3905  ;;  %v9396_v56 = vpop.f32.mrb[33].mxu0  ;;  %v4063_v50 = vsel %vm582_vm2, %v6791_v4, 0.0  ;;  %v4001_v48 = vmul.f32 1.442695, %v3947_v59 }
 0x462   : > { %4064 = vadd.xlane.f32.xlu1 %v4063_v50  ;;  %v3882_v17 = vpop.xlane.xlu0 %3881  ;;  %v4005_v52 = vmul.f32 1.442695, %v3949_v37 }
 0x463   : > { %6798 = vpow2.f32 %v3989_v30  ;;  %v3942_v47 = vsub.f32 %v8842_v36, %v3882_v17  ;;  %v3997_v36 = vmul.f32 1.442695, %v3945_v34 }
 0x465   : > { %v6793_v15 = vpop.eup %6792  ;;  %v3991_v40 = vmul.f32 1.442695, %v3942_v47  ;;  %v3909_v26 = vpop.xlane.xlu1 %3908 }
 0x466   : > { %v3885_v23 = vpop.xlane.xlu0 %3884  ;;  %6215 = vmatmul.mubr.msk.f32.gmra.mrb[108].mxu0 %vm582_vm2, %v6793_v15  ;;  %v4060_v6 = vsel %vm582_vm2, %v6793_v15, 0.0  ;;  %v6795_v22 = vpop.eup %6794  ;;  %v3951_v63 = vsub.f32 %v8900_v11, %v3909_v26 }
 0x467   : > { %6800 = vpow2.f32 %v3991_v40  ;;  %v3943_v35 = vsub.f32 %v8860_v43, %v3885_v23  ;;  %4061 = vadd.xlane.f32.xlu0 %v4060_v6  ;;  %6217 = vmatprep.mubr.msk.f32.mxu0 %vm582_vm2, %v6791_v4  ;;  %v3950_v23 = vsub.f32 %v8886_v10, %v3906_v5 }
 0x468   : > { %v5945_v28 = vpop.f32.mrb[34].mxu0  ;;  %v4009_v11 = vmul.f32 1.442695, %v3951_v63 }
 0x469   : > { %v6797_v49 = vpop.eup %6796  ;;  %v3993_v20 = vmul.f32 1.442695, %v3943_v35  ;;  %v9406_v32 = vmul.f32 %v6795_v22, %v5945_v28  ;;  %v3912_v31 = vpop.xlane.xlu1 %3911  ;;  %v4007_v5 = vmul.f32 1.442695, %v3950_v23 }
 0x46a   : > { %v9408_v29 = vpop.f32.mrb[35].mxu0  ;;  %v3888_v51 = vpop.xlane.xlu0 %3887  ;;  %6218 = vmatmul.mubr.msk.f32.gmra.mrb[110].mxu0 %vm582_vm2, %v6797_v49  ;;  %v4066_v43 = vsel %vm582_vm2, %v6797_v49, 0.0  ;;  %v3952_v26 = vsub.f32 %v8896_v61, %v3912_v31 }
 0x46b   : > { %6802 = vpow2.f32 %v3993_v20  ;;  %v3944_v4 = vsub.f32 %v8855_v44, %v3888_v51  ;;  %4067 = vadd.xlane.f32.xlu0 %v4066_v43 }
 0x46c   : > { %v9413_v30 = vpop.f32.mrb[36].mxu0  ;;  %6804 = vpow2.f32 %v3997_v36  ;;  %v4011_v61 = vmul.f32 1.442695, %v3952_v26 }
 0x46d   : > { %v6799_v50 = vpop.eup %6798  ;;  %v3995_v17 = vmul.f32 1.442695, %v3944_v4  ;;  %v9416_v47 = vpop.xlane.xlu1 %1936 }
 0x46e   : > { %v9418_v15 = vpop.f32.mrb[37].mxu0  ;;  %v3894_v34 = vpop.xlane.xlu0 %3893  ;;  %6220 = vmatprep.mubr.msk.f32.mxu0 %vm582_vm2, %v6799_v50  ;;  %v4069_v40 = vsel %vm582_vm2, %v6799_v50, 0.0 }
 0x46f   : > { %6806 = vpow2.f32 %v3995_v17  ;;  %v3946_v44 = vsub.f32 %v8865_v53, %v3894_v34  ;;  %4070 = vadd.xlane.f32.xlu1 %v4069_v40 }
 0x470   : > { %v9424_v6 = vpop.f32.mrb[38].mxu0  ;;  %6808 = vpow2.f32 %v4001_v48 }
 0x471   : > { %v6801_v35 = vpop.eup %6800  ;;  %v3999_v22 = vmul.f32 1.442695, %v3946_v44  ;;  %v9427_v28 = vpop.xlane.xlu1 %1942 }
 0x472   : > { %v9429_v49 = vpop.f32.mrb[39].mxu0  ;;  %v3900_v36 = vpop.xlane.xlu0 %3899  ;;  %6221 = vmatmul.mubr.msk.f32.gmra.mrb[112].mxu0 %vm582_vm2, %v6801_v35  ;;  %v4072_v53 = vsel %vm582_vm2, %v6801_v35, 0.0 }
 0x473   : > { %6810 = vpow2.f32 %v3999_v22  ;;  %v3948_v10 = vsub.f32 %v8875_v60, %v3900_v36  ;;  %4073 = vadd.xlane.f32.xlu0 %v4072_v53 }
 0x474   : > { %v9434_v59 = vpop.f32.mrb[40].mxu0  ;;  %6812 = vpow2.f32 %v4005_v52 }
 0x475   : > { %v6803_v20 = vpop.eup %6802  ;;  %v4003_v51 = vmul.f32 1.442695, %v3948_v10  ;;  %v9437_v43 = vpop.xlane.xlu1 %1948 }
 0x476   : > { %10742 = vst [vmem:[#allocation67_spill] sm:$0xff] %v9437_v43  ;;  %v9439_v4 = vpop.f32.mrb[41].mxu0  ;;  %v3915_v50 = vpop.xlane.xlu0 %3914  ;;  %6223 = vmatprep.mubr.msk.f32.mxu0 %vm582_vm2, %v6803_v20  ;;  %v4075_v48 = vsel %vm582_vm2, %v6803_v20, 0.0 }
 0x477   : > { %v6805_v60 = vpop.eup %6804  ;;  %6814 = vpow2.f32 %v4003_v51  ;;  %v3953_v37 = vsub.f32 %v8910_v2, %v3915_v50  ;;  %4076 = vadd.xlane.f32.xlu1 %v4075_v48 }
 0x478   : > { %6816 = vpow2.f32 %v4007_v5  ;;  %v9444_v17 = vpop.f32.mrb[42].mxu0  ;;  %v4081_v35 = vsel %vm582_vm2, %v6805_v60, 0.0 }
 0x479   : > { %v6807_v34 = vpop.eup %6806  ;;  %6818 = vpow2.f32 %v4009_v11  ;;  %v4013_v31 = vmul.f32 1.442695, %v3953_v37  ;;  %v9446_v40 = vpop.xlane.xlu1 %2940 }
 0x47a   : > { %10743 = vst [vmem:[#allocation68_spill] sm:$0xff] %v9446_v40  ;;  %v9448_v44 = vpop.f32.mrb[43].mxu0  ;;  %v3918_v23 = vpop.xlane.xlu0 %3917  ;;  %6224 = vmatmul.mubr.msk.f32.gmra.mrb[114].mxu0 %vm582_vm2, %v6807_v34  ;;  %v4078_v52 = vsel %vm582_vm2, %v6807_v34, 0.0 }
 0x47b   : > { %v6809_v2 = vpop.eup %6808  ;;  %6820 = vpow2.f32 %v4013_v31  ;;  %v3954_v63 = vsub.f32 %v8906_v27, %v3918_v23  ;;  %4082 = vadd.xlane.f32.xlu1 %v4081_v35  ;;  %4079 = vadd.xlane.f32.xlu0 %v4078_v52 }
 0x47c   : > { %6226 = vmatprep.mubr.msk.f32.mxu0 %vm582_vm2, %v6805_v60  ;;  %v9455_v22 = vpop.f32.mrb[44].mxu0  ;;  %6822 = vpow2.f32 %v4011_v61  ;;  %v4087_v11 = vsel %vm582_vm2, %v6809_v2, 0.0 }
 0x47d   : > { %v6811_v36 = vpop.eup %6810  ;;  %v4015_v53 = vmul.f32 1.442695, %v3954_v63  ;;  %v9457_v10 = vpop.xlane.xlu1 %2946 }
 0x47e   : > { %10744 = vst [vmem:[#allocation41_spill] sm:$0xff] %v9457_v10  ;;  %v9459_v5 = vpop.f32.mrb[45].mxu0  ;;  %v3921_v20 = vpop.xlane.xlu0 %3920  ;;  %6227 = vmatmul.mubr.msk.f32.gmra.mrb[116].mxu0 %vm582_vm2, %v6811_v36  ;;  %v4084_v27 = vsel %vm582_vm2, %v6811_v36, 0.0 }
 0x47f   : > { %v6813_v26 = vpop.eup %6812  ;;  %6824 = vpow2.f32 %v4015_v53  ;;  %v3955_v51 = vsub.f32 %v8920_v19, %v3921_v20  ;;  %4088 = vadd.xlane.f32.xlu1 %v4087_v11  ;;  %4085 = vadd.xlane.f32.xlu0 %v4084_v27 }
 0x480   : > { %6229 = vmatprep.mubr.msk.f32.mxu0 %vm582_vm2, %v6809_v2  ;;  %v9466_v50 = vpop.f32.mrb[46].mxu0  ;;  %v4093_v23 = vsel %vm582_vm2, %v6813_v26, 0.0 }
 0x481   : > { %v6815_v48 = vpop.eup %6814  ;;  %v4017_v60 = vmul.f32 1.442695, %v3955_v51  ;;  %v9468_v37 = vpop.xlane.xlu1 %2952 }
 0x482   : > { %10745 = vst [vmem:[#allocation70_spill] sm:$0xff] %v9468_v37  ;;  %v9470_v34 = vpop.f32.mrb[47].mxu0  ;;  %v6817_v61 = vpop.eup %6816  ;;  %6230 = vmatmul.mubr.msk.f32.gmra.mrb[118].mxu0 %vm582_vm2, %v6815_v48  ;;  %v4090_v19 = vsel %vm582_vm2, %v6815_v48, 0.0 }
 0x483   : > { %v3924_v31 = vpop.xlane.xlu0 %3923  ;;  %v6819_v35 = vpop.eup %6818  ;;  %6826 = vpow2.f32 %v4017_v60  ;;  %4094 = vadd.xlane.f32.xlu1 %v4093_v23  ;;  %4091 = vadd.xlane.f32.xlu0 %v4090_v19  ;;  %v4096_v27 = vsel %vm582_vm2, %v6817_v61, 0.0 }
 0x484   : > { %v3956_v52 = vsub.f32 %v8916_v25, %v3924_v31  ;;  %6232 = vmatprep.mubr.msk.f32.mxu0 %vm582_vm2, %v6813_v26  ;;  %v9477_v2 = vpop.f32.mrb[48].mxu0  ;;  %v4099_v25 = vsel %vm582_vm2, %v6819_v35, 0.0 }
 0x485   : > { %v6821_v63 = vpop.eup %6820  ;;  %v9479_v53 = vpop.xlane.xlu1 %2958 }
 0x486   : > { %v4019_v36 = vmul.f32 1.442695, %v3956_v52  ;;  %10746 = vst [vmem:[#allocation69_spill] sm:$0xff] %v9479_v53  ;;  %v9481_v20 = vpop.f32.mrb[49].mxu0  ;;  %6238 = vmatprep.mubr.msk.f32.mxu1 %vm582_vm2, %v6821_v63  ;;  %6233 = vmatmul.mubr.msk.f32.gmra.mrb[120].mxu0 %vm582_vm2, %v6817_v61  ;;  %v6823_v51 = vpop.eup %6822  ;;  %v4105_v61 = vsel %vm582_vm2, %v6821_v63, 0.0 }
 0x487   : > { %v9484_v11 = vpop.xlane.xlu0 %1939  ;;  %4100 = vadd.xlane.f32.xlu1 %v4099_v25  ;;  %4097 = vadd.xlane.f32.xlu0 %v4096_v27  ;;  %v4102_v23 = vsel %vm582_vm2, %v6823_v51, 0.0 }
 0x488   : > { %6828 = vpow2.f32 %v4019_v36  ;;  %6235 = vmatprep.mubr.msk.f32.mxu0 %vm582_vm2, %v6819_v35  ;;  %v9490_v26 = vpop.f32.mrb[50].mxu0 }
 0x489   : > { %v6825_v48 = vpop.eup %6824  ;;  %v9492_v60 = vpop.f32.mrb[51].mxu0  ;;  %6830 = vrcp.f32 %v9283_v21 }
 0x48a   : > { %6236 = vmatmul.mubr.msk.f32.gmra.mrb[122].mxu0 %vm582_vm2, %v6823_v51  ;;  %6239 = vmatmul.mubr.msk.f32.vlgmr.msra.gmra.mrb[128].mxu1 %vm582_vm2, %v6825_v48  ;;  %v9500_v19 = vpop.xlane.xlu1 %2964  ;;  %v4108_v27 = vsel %vm582_vm2, %v6825_v48, 0.0  ;;  %6832 = vrcp.f32 %v9296_v45 }
 0x48b   : > { %v9494_v31 = vpop.xlane.xlu0 %1945  ;;  %10747 = vst [vmem:[#allocation74_spill] sm:$0xff] %v9500_v19  ;;  %4103 = vadd.xlane.f32.xlu0 %v4102_v23  ;;  %4106 = vadd.xlane.f32.xlu1 %v4105_v61  ;;  %6834 = vrcp.f32 %v9289_v55 }
 0x48c   : > { %v9502_v35 = vpop.f32.mrb[52].mxu0  ;;  %6836 = vrcp.f32 %v9308_v42 }
 0x48d   : > { %v6827_v52 = vpop.eup %6826  ;;  %v9504_v36 = vpop.f32.mrb[53].mxu0  ;;  %6838 = vrcp.f32 %v9302_v38 }
 0x48e   : > { %6241 = vmatprep.mubr.msk.f32.mxu1 %vm582_vm2, %v6827_v52  ;;  %v4111_v53 = vsel %vm582_vm2, %v6827_v52, 0.0  ;;  %v9513_v23 = vpop.xlane.xlu1 %2970  ;;  %6840 = vrcp.f32 %v9319_v39 }
 0x48f   : > { %v9506_v25 = vpop.xlane.xlu0 %1951  ;;  %4109 = vadd.xlane.f32.xlu0 %v4108_v27  ;;  %4112 = vadd.xlane.f32.xlu1 %v4111_v53  ;;  %10748 = vst [vmem:[#allocation72_spill] sm:$0xff] %v9513_v23  ;;  %6842 = vrcp.f32 %v9315_v16 }
 0x490   : > { %v9511_v63 = vpop.f32.mrb[54].mxu0  ;;  %6844 = vrcp.f32 %v9328_v9 }
 0x491   : > { %v9515_v61 = vpop.f32.mrb[55].mxu0  ;;  %6846 = vrcp.f32 %v9324_v46 }
 0x492   : > { %v6829_v51 = vpop.eup %6828  ;;  %v9529_v27 = vpop.xlane.xlu1 %2976  ;;  %6848 = vrcp.f32 %v9336_v7 }
 0x493   : > { %v9517_v19 = vpop.xlane.xlu0 %2943  ;;  %6242 = vmatmul.mubr.msk.f32.gmra.mrb[130].mxu1 %vm582_vm2, %v6829_v51  ;;  %v4114_v37 = vsel %vm582_vm2, %v6829_v51, 0.0  ;;  %10751 = vst [vmem:[#allocation78_spill] sm:$0xff] %v9529_v27  ;;  %v6831_v51 = vpop.eup %6830  ;;  %6850 = vrcp.f32 %v9332_v24 }
 0x494   : > { %10749 = vst [vmem:[#allocation71_spill] sm:$0xff] %v9517_v19  ;;  %4115 = vadd.xlane.f32.xlu0 %v4114_v37  ;;  %v9522_v48 = vpop.f32.mrb[56].mxu0  ;;  %v2299_v37 = vmul.f32 %v6831_v51, %v9396_v56  ;;  %v6833_v45 = vpop.eup %6832  ;;  %6852 = vrcp.f32 %v9343_v14 }
 0x495   : > { %v9524_v52 = vpop.f32.mrb[57].mxu0  ;;  %v6835_v38 = vpop.eup %6834  ;;  %6854 = vrcp.f32 %v9340_v8 }
 0x496   : > { %v9537_v19 = vpop.xlane.xlu1 %2982  ;;  %v6837_v39 = vpop.eup %6836  ;;  %6856 = vrcp.f32 %v9350_v58 }
 0x497   : > { %v9526_v53 = vpop.xlane.xlu0 %2949  ;;  %10753 = vst [vmem:[#allocation80_spill] sm:$0xff] %v9537_v19  ;;  %v2303_v19 = vmul.f32 %v6833_v45, %v9408_v29  ;;  %v2307_v16 = vmul.f32 %v6837_v39, %v9418_v15  ;;  %v6839_v9 = vpop.eup %6838  ;;  %6858 = vrcp.f32 %v9348_v0 }
 0x498   : > { %10750 = vst [vmem:[#allocation73_spill] sm:$0xff] %v9526_v53  ;;  %6860 = vrcp.f32 %v9355_v12 }
 0x499   : > { %v9531_v23 = vpop.f32.mrb[58].mxu0  ;;  %6862 = vrcp.f32 %v9359_v1 }
 0x49a   : > { %v9533_v10 = vpop.f32.mrb[59].mxu0  ;;  %v9557_v56 = vpop.xlane.xlu1 %2988  ;;  %6864 = vrcp.f32 %v9362_v54 }
 0x49b   : > { %v9535_v40 = vpop.xlane.xlu0 %2955  ;;  %10755 = vst [vmem:[#allocation81_spill] sm:$0xff] %v9557_v56  ;;  %6866 = vrcp.f32 %v9368_v62 }
 0x49c   : > { %10752 = vst [vmem:[#allocation76_spill] sm:$0xff] %v9535_v40  ;;  %6868 = vrcp.f32 %v9366_v3 }
 0x49d   : > { %v9539_v21 = vpop.f32.mrb[60].mxu0  ;;  %6870 = vrcp.f32 %v9372_v57 }
 0x49e   : > { %10754 = vst [vmem:[#allocation75_spill] sm:$0xff] %v9539_v21  ;;  %v9542_v43 = vpop.f32.mrb[61].mxu0  ;;  %v9571_v29 = vpop.xlane.xlu1 %2994 }
 0x49f   : > { %v9544_v53 = vpop.xlane.xlu0 %2961  ;;  %10756 = vst [vmem:[#allocation77_spill] sm:$0xff] %v9571_v29 }
 0x4a0   : > { %4558 = vrot.lane.b32.xlu1 %v2299_v37, %s7105_s26 }
 0x4a1   : > { %v9549_v27 = vpop.f32.mrb[62].mxu0 }
 0x4a2   : > { %v9552_v40 = vpop.f32.mrb[63].mxu0  ;;  %v9596_v15 = vpop.xlane.xlu1 %3000 }
 0x4a3   : > { %v9554_v21 = vpop.xlane.xlu0 %2967 }
 0x4a4   : > { %4562 = vrot.lane.b32.xlu1 %v2303_v19, %s7105_s26  ;;  %v2309_v19 = vmul.f32 %v6835_v38, %v9413_v30  ;;  %v2313_v30 = vmul.f32 %v6839_v9, %v9424_v6 }
 0x4a5   : > { %v9561_v55 = vpop.f32.mrb[64].mxu0 }
 0x4a6   : > { %v9563_v42 = vpop.f32.mrb[65].mxu0 }
 0x4a7   : > { %v9565_v51 = vpop.xlane.xlu0 %2973 }
 0x4a8   : > { %4564 = vrot.lane.b32.xlu1 %v9406_v32, %s7105_s26 }
 0x4a9   : > { %v9573_v37 = vpop.f32.mrb[66].mxu0 }
 0x4aa   : > { %4560 = vrot.lane.b32.xlu0 %v9394_v18, %s7105_s26  ;;  %v9578_v45 = vpop.f32.mrb[67].mxu0  ;;  %v6841_v18 = vpop.eup %6840  ;;  %6872 = vrcp.f32 %v9378_v41 }
 0x4ab   : > { %v9580_v56 = vpop.xlane.xlu0 %2979  ;;  %v2311_v46 = vmul.f32 %v6841_v18, %v9429_v49  ;;  %v6843_v7 = vpop.eup %6842  ;;  %6874 = vrcp.f32 %v9383_v33 }
 0x4ac   : > { %4568 = vrot.lane.b32.xlu1 %v2309_v19, %s7105_s26  ;;  %v6845_v6 = vpop.eup %6844  ;;  %v2317_v19 = vmul.f32 %v6843_v7, %v9434_v59  ;;  %v9612_v49 = vpop.xlane.xlu1 %3006  ;;  %6876 = vrcp.f32 %v9376_v13 }
 0x4ad   : > { %v9586_v32 = vpop.f32.mrb[68].mxu0  ;;  %v2315_v24 = vmul.f32 %v6845_v6, %v9439_v4  ;;  %v6847_v14 = vpop.eup %6846  ;;  %6878 = vrcp.f32 %v9484_v11 }
 0x4ae   : > { %4566 = vrot.lane.b32.xlu0 %v2307_v16, %s7105_s26  ;;  %v9590_v38 = vpop.f32.mrb[69].mxu0  ;;  %v6849_v59 = vpop.eup %6848  ;;  %6880 = vrcp.f32 %v9416_v47 }
 0x4af   : > { %v9592_v29 = vpop.xlane.xlu0 %2985  ;;  %v2319_v8 = vmul.f32 %v6849_v59, %v9448_v44  ;;  %v6851_v58 = vpop.eup %6850  ;;  %6882 = vrcp.f32 %v9494_v31 }
 0x4b0   : > { %4572 = vrot.lane.b32.xlu1 %v2313_v30, %s7105_s26  ;;  %v2321_v30 = vmul.f32 %v6847_v14, %v9444_v17  ;;  %v6853_v4 = vpop.eup %6852  ;;  %v2325_v6 = vmul.f32 %v6851_v58, %v9455_v22  ;;  %v9633_v0 = vpop.xlane.xlu1 %3012  ;;  %6884 = vrcp.f32 %v9427_v28 }
 0x4b1   : > { %v9600_v39 = vpop.f32.mrb[70].mxu0  ;;  %v2323_v17 = vmul.f32 %v6853_v4, %v9459_v5  ;;  %v6855_v44 = vpop.eup %6854  ;;  %6886 = vrcp.f32 %v9506_v25 }
 0x4b2   : > { %4570 = vrot.lane.b32.xlu0 %v2311_v46, %s7105_s26  ;;  %v9604_v16 = vpop.f32.mrb[71].mxu0  ;;  %v6857_v22 = vpop.eup %6856  ;;  %v2329_v14 = vmul.f32 %v6855_v44, %v9466_v50 }
 0x4b3   : > { %v9606_v9 = vpop.xlane.xlu0 %2991  ;;  %v2327_v1 = vmul.f32 %v6857_v22, %v9470_v34  ;;  %v6859_v5 = vpop.eup %6858 }
 0x4b4   : > { %4576 = vrot.lane.b32.xlu1 %v2317_v19, %s7105_s26  ;;  %v2333_v50 = vmul.f32 %v6859_v5, %v9477_v2  ;;  %v9654_v58 = vpop.xlane.xlu1 %3018 }
 0x4b5   : > { %v9614_v18 = vpop.f32.mrb[72].mxu0 }
 0x4b6   : > { %4574 = vrot.lane.b32.xlu0 %v2315_v24, %s7105_s26  ;;  %v9618_v46 = vpop.f32.mrb[73].mxu0 }
 0x4b7   : > { %v9620_v7 = vpop.xlane.xlu0 %2997 }
 0x4b8   : > { %4580 = vrot.lane.b32.xlu1 %v2321_v30, %s7105_s26  ;;  %v9673_v41 = vpop.xlane.xlu1 %3024 }
 0x4ba   : > { %4578 = vrot.lane.b32.xlu0 %v2319_v8, %s7105_s26  ;;  %v6861_v8 = vpop.eup %6860 }
 0x4bb   : > { %v9628_v19 = vpop.xlane.xlu0 %3003  ;;  %v2331_v3 = vmul.f32 %v6861_v8, %v9481_v20  ;;  %v6863_v34 = vpop.eup %6862 }
 0x4bc   : > { %4584 = vrot.lane.b32.xlu1 %v2325_v6, %s7105_s26  ;;  %v9636_v12 = vpop.f32.mrb[74].mxu0  ;;  %v6865_v2 = vpop.eup %6864 }
 0x4bd   : > { %v9639_v24 = vpop.f32.mrb[75].mxu0  ;;  %v2335_v57 = vmul.f32 %v6865_v2, %v9492_v60  ;;  %v6867_v22 = vpop.eup %6866 }
 0x4be   : > { %4582 = vrot.lane.b32.xlu0 %v2323_v17, %s7105_s26  ;;  %v2337_v17 = vmul.f32 %v6863_v34, %v9490_v26  ;;  %v6869_v26 = vpop.eup %6868 }
 0x4bf   : > { %v9642_v59 = vpop.xlane.xlu0 %3009  ;;  %v2339_v33 = vmul.f32 %v6869_v26, %v9504_v36  ;;  %v6871_v5 = vpop.eup %6870 }
 0x4c0   : > { %4588 = vrot.lane.b32.xlu1 %v2329_v14, %s7105_s26  ;;  %v9648_v54 = vpop.f32.mrb[76].mxu0 }
 0x4c1   : > { %v9651_v30 = vpop.f32.mrb[77].mxu0 }
 0x4c2   : > { %4586 = vrot.lane.b32.xlu0 %v2327_v1, %s7105_s26  ;;  %v2341_v1 = vmul.f32 %v6867_v22, %v9502_v35  ;;  %v2345_v35 = vmul.f32 %v6871_v5, %v9511_v63 }
 0x4c3   : > { %v9656_v4 = vpop.xlane.xlu0 %3015 }
 0x4c4   : > { %4592 = vrot.lane.b32.xlu1 %v2333_v50, %s7105_s26  ;;  %v9662_v62 = vpop.f32.mrb[78].mxu0  ;;  %v6873_v50 = vpop.eup %6872 }
 0x4c5   : > { %v9665_v6 = vpop.f32.mrb[79].mxu0  ;;  %v2343_v47 = vmul.f32 %v6873_v50, %v9515_v61  ;;  %v6875_v36 = vpop.eup %6874  ;;  %v10757_v61 = vld [vmem:[#allocation67_spill] sm:$0xff] }
 0x4c6   : > { %4590 = vrot.lane.b32.xlu0 %v2331_v3, %s7105_s26  ;;  %v9694_v3 = vpop.xlane.xlu1 %3030  ;;  %v6877_v2 = vpop.eup %6876  ;;  %v2349_v63 = vmul.f32 %v6875_v36, %v9522_v48  ;;  %6888 = vrcp.f32 %v10757_v61  ;;  %v10762_v61 = vld [vmem:[#allocation41_spill] sm:$0xff] }
 0x4c7   : > { %v9668_v44 = vpop.xlane.xlu0 %3021  ;;  %v2347_v31 = vmul.f32 %v6877_v2, %v9524_v52  ;;  %v6879_v22 = vpop.eup %6878  ;;  %v10759_v52 = vld [vmem:[#allocation68_spill] sm:$0xff]  ;;  %v10760_v2 = vld [vmem:[#allocation75_spill] sm:$0xff] }
 0x4c8   : > { %4596 = vrot.lane.b32.xlu1 %v2337_v17, %s7105_s26  ;;  %v9676_v20 = vpop.f32.mrb[80].mxu0  ;;  %v6881_v48 = vpop.eup %6880 }
 0x4c9   : > { %v9679_v14 = vpop.f32.mrb[81].mxu0  ;;  %v2351_v25 = vmul.f32 %v6881_v48, %v9533_v10 }
 0x4ca   : > { %4594 = vrot.lane.b32.xlu0 %v2335_v57, %s7105_s26  ;;  %v9711_v28 = vpop.xlane.xlu1 %4022 }
 0x4cb   : > { %v9685_v13 = vpop.xlane.xlu0 %3027 }
 0x4cc   : > { %4600 = vrot.lane.b32.xlu1 %v2341_v1, %s7105_s26  ;;  %v9688_v60 = vpop.f32.mrb[82].mxu0  ;;  %v2353_v1 = vmul.f32 %v6879_v22, %v9531_v23 }
 0x4cd   : > { %v9691_v8 = vpop.f32.mrb[83].mxu0 }
 0x4ce   : > { %4598 = vrot.lane.b32.xlu0 %v2339_v33, %s7105_s26  ;;  %v10758_v33 = vld [vmem:[#allocation71_spill] sm:$0xff] }
 0x4cf   : > { %v9706_v17 = vpop.xlane.xlu0 %3033  ;;  %6890 = vrcp.f32 %v10758_v33 }
 0x4d0   : > { %4604 = vrot.lane.b32.xlu1 %v2345_v35, %s7105_s26  ;;  %v9700_v11 = vpop.f32.mrb[84].mxu0  ;;  %6892 = vrcp.f32 %v10759_v52  ;;  %v6883_v35 = vpop.eup %6882 }
 0x4d1   : > { %v9703_v34 = vpop.f32.mrb[85].mxu0  ;;  %v6885_v36 = vpop.eup %6884  ;;  %v2357_v23 = vmul.f32 %v6883_v35, %v10760_v2  ;;  %v10763_v35 = vld [vmem:[#allocation76_spill] sm:$0xff] }
 0x4d2   : > { %4602 = vrot.lane.b32.xlu0 %v2343_v47, %s7105_s26  ;;  %v2355_v10 = vmul.f32 %v6885_v36, %v9542_v43  ;;  %v6887_v48 = vpop.eup %6886  ;;  %v10764_v36 = vld [vmem:[#allocation70_spill] sm:$0xff] }
 0x4d3   : > { %v9723_v5 = vpop.xlane.xlu0 %4025  ;;  %v6889_v33 = vpop.eup %6888 }
 0x4d4   : > { %4608 = vrot.lane.b32.xlu1 %v2349_v63, %s7105_s26  ;;  %v9714_v57 = vpop.f32.mrb[86].mxu0  ;;  %v9732_v63 = vpop.xlane.xlu1 %4028  ;;  %v2359_v43 = vmul.f32 %v6889_v33, %v9552_v40 }
 0x4d5   : > { %v9717_v26 = vpop.f32.mrb[87].mxu0 }
 0x4d6   : > { %4606 = vrot.lane.b32.xlu0 %v2347_v31, %s7105_s26  ;;  %v10761_v31 = vld [vmem:[#allocation73_spill] sm:$0xff] }
 0x4d7   : > { %6894 = vrcp.f32 %v10761_v31  ;;  %v9744_v52 = vpop.xlane.xlu0 %4031 }
 0x4d8   : > { %4612 = vrot.lane.b32.xlu1 %v2353_v1, %s7105_s26  ;;  %v9726_v50 = vpop.f32.mrb[88].mxu0  ;;  %6896 = vrcp.f32 %v10762_v61  ;;  %v9749_v2 = vpop.xlane.xlu1 %4034 }
 0x4d9   : > { %v9729_v47 = vpop.f32.mrb[89].mxu0  ;;  %6898 = vrcp.f32 %v10763_v35  ;;  %v6891_v31 = vpop.eup %6890 }
 0x4da   : > { %4610 = vrot.lane.b32.xlu0 %v2351_v25, %s7105_s26  ;;  %v2361_v25 = vmul.f32 %v6887_v48, %v9549_v27  ;;  %6900 = vrcp.f32 %v10764_v36  ;;  %v6893_v27 = vpop.eup %6892  ;;  %v3383_v61 = vmul.f32 %v6891_v31, %v9561_v55  ;;  %v10765_v48 = vld [vmem:[#allocation69_spill] sm:$0xff]  ;;  %v10767_v31 = vld [vmem:[#allocation74_spill] sm:$0xff] }
 0x4db   : > { %6902 = vrcp.f32 %v9544_v53  ;;  %v3381_v40 = vmul.f32 %v6893_v27, %v9563_v42  ;;  %v9761_v33 = vpop.xlane.xlu0 %4037 }
 0x4dc   : > { %4616 = vrot.lane.b32.xlu1 %v2357_v23, %s7105_s26  ;;  %v9738_v22 = vpop.f32.mrb[90].mxu0  ;;  %6904 = vrcp.f32 %v10765_v48  ;;  %v9770_v53 = vpop.xlane.xlu1 %4040 }
 0x4dd   : > { %v9741_v1 = vpop.f32.mrb[91].mxu0  ;;  %10766 = vst [vmem:[#allocation83_spill] sm:$0xff] %v9770_v53  ;;  %6906 = vrcp.f32 %v9554_v21 }
 0x4de   : > { %4614 = vrot.lane.b32.xlu0 %v2355_v10, %s7105_s26  ;;  %6908 = vrcp.f32 %v10767_v31 }
 0x4df   : > { %6910 = vrcp.f32 %v9565_v51 }
 0x4e0   : > { %4620 = vrot.lane.b32.xlu1 %v2361_v25, %s7105_s26  ;;  %v9752_v23 = vpop.f32.mrb[92].mxu0 }
 0x4e1   : > { %v9754_v10 = vpop.f32.mrb[93].mxu0  ;;  %v6895_v35 = vpop.eup %6894 }
 0x4e2   : > { %4618 = vrot.lane.b32.xlu0 %v2359_v43, %s7105_s26  ;;  %v6897_v43 = vpop.eup %6896  ;;  %v3387_v55 = vmul.f32 %v6895_v35, %v9573_v37  ;;  %v9782_v35 = vpop.xlane.xlu0 %4043 }
 0x4e3   : > { %v3385_v42 = vmul.f32 %v6897_v43, %v9578_v45  ;;  %v10768_v45 = vld [vmem:[#allocation72_spill] sm:$0xff]  ;;  %v9787_v43 = vpop.xlane.xlu1 %4046 }
 0x4e4   : > { %4688 = vrot.lane.b32.xlu1 %v3383_v61, %s7106_s27  ;;  %v9764_v25 = vpop.f32.mrb[94].mxu0  ;;  %v6899_v61 = vpop.eup %6898  ;;  %6912 = vrcp.f32 %v10768_v45 }
 0x4e5   : > { %v9766_v36 = vpop.f32.mrb[95].mxu0  ;;  %v3391_v37 = vmul.f32 %v6899_v61, %v9586_v32  ;;  %6914 = vrcp.f32 %v9580_v56 }
 0x4e6   : > { %4686 = vrot.lane.b32.xlu0 %v3381_v40, %s7106_s27  ;;  %v6901_v40 = vpop.eup %6900  ;;  %v9799_v61 = vpop.xlane.xlu0 %4049 }
 0x4e7   : > { %v3389_v21 = vmul.f32 %v6901_v40, %v9590_v38  ;;  %v6903_v31 = vpop.eup %6902  ;;  %v10769_v38 = vld [vmem:[#allocation78_spill] sm:$0xff] }
 0x4e8   : > { %4692 = vrot.lane.b32.xlu1 %v3387_v55, %s7106_s27  ;;  %v9776_v27 = vpop.f32.mrb[96].mxu0  ;;  %v6905_v32 = vpop.eup %6904  ;;  %6916 = vrcp.f32 %v10769_v38 }
 0x4e9   : > { %v9778_v48 = vpop.f32.mrb[97].mxu0  ;;  %v3393_v51 = vmul.f32 %v6905_v32, %v9604_v16  ;;  %6918 = vrcp.f32 %v9592_v29  ;;  %v10770_v16 = vld [vmem:[#allocation80_spill] sm:$0xff] }
 0x4ea   : > { %4690 = vrot.lane.b32.xlu0 %v3385_v42, %s7106_s27  ;;  %v3395_v42 = vmul.f32 %v6903_v31, %v9600_v39  ;;  %v9808_v31 = vpop.xlane.xlu1 %4052  ;;  %6920 = vrcp.f32 %v10770_v16 }
 0x4eb   : > { %6922 = vrcp.f32 %v9606_v9 }
 0x4ec   : > { %4696 = vrot.lane.b32.xlu1 %v3391_v37, %s7106_s27  ;;  %v9790_v55 = vpop.f32.mrb[98].mxu0  ;;  %v6907_v37 = vpop.eup %6906 }
 0x4ed   : > { %v9792_v53 = vpop.f32.mrb[99].mxu0  ;;  %v3399_v39 = vmul.f32 %v6907_v37, %v9614_v18  ;;  %v9820_v37 = vpop.xlane.xlu0 %4055 }
 0x4ee   : > { %4694 = vrot.lane.b32.xlu0 %v3389_v21, %s7106_s27  ;;  %v6909_v21 = vpop.eup %6908 }
 0x4ef   : > { %v3397_v56 = vmul.f32 %v6909_v21, %v9618_v46  ;;  %v10772_v46 = vld [vmem:[#allocation81_spill] sm:$0xff]  ;;  %v9825_v21 = vpop.xlane.xlu1 %4058 }
 0x4f0   : > { %4700 = vrot.lane.b32.xlu1 %v3395_v42, %s7106_s27  ;;  %v9802_v40 = vpop.f32.mrb[100].mxu0  ;;  %v6911_v42 = vpop.eup %6910  ;;  %6924 = vrcp.f32 %v10772_v46 }
 0x4f1   : > { %v9804_v45 = vpop.f32.mrb[101].mxu0  ;;  %v3403_v18 = vmul.f32 %v6911_v42, %v9636_v12  ;;  %6926 = vrcp.f32 %v9620_v7 }
 0x4f2   : > { %4698 = vrot.lane.b32.xlu0 %v3393_v51, %s7106_s27  ;;  %v6913_v51 = vpop.eup %6912 }
 0x4f3   : > { %v3401_v29 = vmul.f32 %v6913_v51, %v9639_v24  ;;  %v6915_v16 = vpop.eup %6914  ;;  %v10774_v24 = vld [vmem:[#allocation77_spill] sm:$0xff]  ;;  %v9839_v51 = vpop.xlane.xlu1 %4064 }
 0x4f4   : > { %4704 = vrot.lane.b32.xlu1 %v3399_v39, %s7106_s27  ;;  %v9814_v32 = vpop.f32.mrb[102].mxu0  ;;  %v6917_v12 = vpop.eup %6916  ;;  %6928 = vrcp.f32 %v10774_v24 }
 0x4f5   : > { %v9816_v38 = vpop.f32.mrb[103].mxu0  ;;  %v9834_v42 = vpop.xlane.xlu0 %4061  ;;  %v3405_v9 = vmul.f32 %v6917_v12, %v9651_v30  ;;  %6930 = vrcp.f32 %v9628_v19 }
 0x4f6   : > { %10771 = vst [vmem:[#allocation79_spill] sm:$0xff] %v9816_v38  ;;  %4702 = vrot.lane.b32.xlu0 %v3397_v56, %s7106_s27  ;;  %v3407_v56 = vmul.f32 %v6915_v16, %v9648_v54  ;;  %v6919_v46 = vpop.eup %6918  ;;  %6932 = vrcp.f32 %v9596_v15 }
 0x4f7   : > { %v6921_v54 = vpop.eup %6920  ;;  %6934 = vrcp.f32 %v9642_v59 }
 0x4f8   : > { %4708 = vrot.lane.b32.xlu1 %v3403_v18, %s7106_s27  ;;  %v9828_v39 = vpop.f32.mrb[104].mxu0  ;;  %v3409_v7 = vmul.f32 %v6921_v54, %v9665_v6  ;;  %v6923_v12 = vpop.eup %6922  ;;  %6936 = vrcp.f32 %v9612_v49 }
 0x4f9   : > { %v9830_v38 = vpop.f32.mrb[105].mxu0  ;;  %v9851_v30 = vpop.xlane.xlu0 %4067  ;;  %6938 = vrcp.f32 %v9656_v4 }
 0x4fa   : > { %10773 = vst [vmem:[#allocation85_spill] sm:$0xff] %v9830_v38  ;;  %4706 = vrot.lane.b32.xlu0 %v3401_v29, %s7106_s27  ;;  %v3411_v29 = vmul.f32 %v6919_v46, %v9662_v62  ;;  %6940 = vrcp.f32 %v9633_v0 }
 0x4fb   : > { %6942 = vrcp.f32 %v9668_v44 }
 0x4fc   : > { %4712 = vrot.lane.b32.xlu1 %v3407_v56, %s7106_s27  ;;  %v9842_v18 = vpop.f32.mrb[106].mxu0  ;;  %v9853_v16 = vpop.xlane.xlu1 %4070  ;;  %6944 = vrcp.f32 %v9654_v58 }
 0x4fd   : > { %v9844_v38 = vpop.f32.mrb[107].mxu0  ;;  %v6925_v56 = vpop.eup %6924  ;;  %6946 = vrcp.f32 %v9685_v13 }
 0x4fe   : > { %4710 = vrot.lane.b32.xlu0 %v3405_v9, %s7106_s27  ;;  %v3415_v9 = vmul.f32 %v6923_v12, %v9676_v20  ;;  %v3413_v19 = vmul.f32 %v6925_v56, %v9679_v14  ;;  %v6927_v6 = vpop.eup %6926  ;;  %6948 = vrcp.f32 %v9673_v41 }
 0x4ff   : > { %v6929_v24 = vpop.eup %6928  ;;  %v3419_v46 = vmul.f32 %v6927_v6, %v9688_v60  ;;  %v10776_v6 = vld [vmem:[#allocation44_spill] sm:$0xff] }
 0x500   : > { %4716 = vrot.lane.b32.xlu1 %v3411_v29, %s7106_s27  ;;  %v9861_v62 = vpop.xlane.xlu0 %4073  ;;  %v3417_v59 = vmul.f32 %v6929_v24, %v9691_v8  ;;  %v6931_v14 = vpop.eup %6930 }
 0x501   : > { %v6933_v54 = vpop.eup %6932  ;;  %v3423_v29 = vmul.f32 %v6931_v14, %v9700_v11  ;;  %v10778_v14 = vld [vmem:[#allocation2_spill] sm:$0xff] }
 0x502   : > { %4714 = vrot.lane.b32.xlu0 %v3409_v7, %s7106_s27  ;;  %v3421_v4 = vmul.f32 %v6933_v54, %v9703_v34  ;;  %v6935_v8 = vpop.eup %6934 }
 0x503   : > { %v6937_v7 = vpop.eup %6936  ;;  %v3427_v12 = vmul.f32 %v6935_v8, %v9714_v57 }
 0x504   : > { %v9863_v15 = vpop.xlane.xlu1 %4076  ;;  %4720 = vrot.lane.b32.xlu1 %v3415_v9, %s7106_s27  ;;  %v3425_v44 = vmul.f32 %v6937_v7, %v9717_v26  ;;  %v6939_v34 = vpop.eup %6938  ;;  %v10775_v9 = vld [vmem:[#allocation8_spill] sm:$0xff]  ;;  %v10780_v7 = vld [vmem:[#allocation3_spill] sm:$0xff] }
 0x505   : > { %v6941_v56 = vpop.eup %6940  ;;  %6950 = vrcp.f32 %v10775_v9  ;;  %v3431_v57 = vmul.f32 %v6939_v34, %v9726_v50 }
 0x506   : > { %4718 = vrot.lane.b32.xlu0 %v3413_v19, %s7106_s27  ;;  %6952 = vrcp.f32 %v9706_v17  ;;  %v3429_v13 = vmul.f32 %v6941_v56, %v9729_v47  ;;  %v6943_v19 = vpop.eup %6942 }
 0x507   : > { %6954 = vrcp.f32 %v9694_v3  ;;  %v6945_v24 = vpop.eup %6944  ;;  %v3435_v17 = vmul.f32 %v6943_v19, %v9738_v22  ;;  %v10783_v19 = vld [vmem:[#allocation11_spill] sm:$0xff] }
 0x508   : > { %v9871_v20 = vpop.xlane.xlu1 %4082  ;;  %v9873_v49 = vpop.xlane.xlu0 %4079  ;;  %4724 = vrot.lane.b32.xlu1 %v3419_v46, %s7106_s27  ;;  %6956 = vrcp.f32 %v10776_v6  ;;  %v10777_v46 = vld [vmem:[#allocation46_spill] sm:$0xff]  ;;  %v3433_v3 = vmul.f32 %v6945_v24, %v9741_v1 }
 0x509   : > { %6958 = vrcp.f32 %v10777_v46 }
 0x50a   : > { %4722 = vrot.lane.b32.xlu0 %v3417_v59, %s7106_s27  ;;  %6960 = vrcp.f32 %v9723_v5  ;;  %v6947_v59 = vpop.eup %6946 }
 0x50b   : > { %6962 = vrcp.f32 %v9711_v28  ;;  %v6949_v54 = vpop.eup %6948  ;;  %v3439_v5 = vmul.f32 %v6947_v59, %v9752_v23  ;;  %v10781_v23 = vld [vmem:[#allocation5_spill] sm:$0xff] }
 0x50c   : > { %v9881_v60 = vpop.xlane.xlu1 %4088  ;;  %v9883_v0 = vpop.xlane.xlu0 %4085  ;;  %4728 = vrot.lane.b32.xlu1 %v3423_v29, %s7106_s27  ;;  %6964 = vrcp.f32 %v10778_v14  ;;  %v10779_v29 = vld [vmem:[#allocation4_spill] sm:$0xff]  ;;  %v3437_v28 = vmul.f32 %v6949_v54, %v9754_v10  ;;  %v10787_v54 = vld [vmem:[#allocation83_spill] sm:$0xff] }
 0x50d   : > { %6966 = vrcp.f32 %v10779_v29 }
 0x50e   : > { %4726 = vrot.lane.b32.xlu0 %v3421_v4, %s7106_s27  ;;  %6968 = vrcp.f32 %v9744_v52 }
 0x50f   : > { %v6951_v22 = vpop.eup %6950  ;;  %6970 = vrcp.f32 %v9732_v63 }
 0x510   : > { %v9891_v11 = vpop.xlane.xlu1 %4094  ;;  %v9893_v58 = vpop.xlane.xlu0 %4091  ;;  %4732 = vrot.lane.b32.xlu1 %v3427_v12, %s7106_s27  ;;  %6972 = vrcp.f32 %v10780_v7 }
 0x511   : > { %v6953_v8 = vpop.eup %6952  ;;  %6974 = vrcp.f32 %v10781_v23  ;;  %v10790_v23 = vld [vmem:[#allocation23_spill] sm:$0xff] }
 0x512   : > { %4730 = vrot.lane.b32.xlu0 %v3425_v44, %s7106_s27  ;;  %v6955_v12 = vpop.eup %6954  ;;  %v3443_v52 = vmul.f32 %v6953_v8, %v9764_v25  ;;  %v10782_v44 = vld [vmem:[#allocation21_spill] sm:$0xff]  ;;  %6976 = vrcp.f32 %v9761_v33  ;;  %v10784_v33 = vld [vmem:[#allocation27_spill] sm:$0xff] }
 0x513   : > { %v6957_v10 = vpop.eup %6956  ;;  %v1217_v34 = vmul.f32 %v6951_v22, %v10782_v44  ;;  %v3441_v63 = vmul.f32 %v6955_v12, %v9766_v36  ;;  %6978 = vrcp.f32 %v9749_v2  ;;  %v10785_v2 = vld [vmem:[#allocation52_spill] sm:$0xff]  ;;  %v10788_v22 = vld [vmem:[#allocation13_spill] sm:$0xff] }
 0x514   : > { %v9902_v41 = vpop.xlane.xlu1 %4100  ;;  %v9904_v26 = vpop.xlane.xlu0 %4097  ;;  %4736 = vrot.lane.b32.xlu1 %v3431_v57, %s7106_s27  ;;  %6980 = vrcp.f32 %v10783_v19  ;;  %v1219_v46 = vmul.f32 %v6957_v10, %v10785_v2  ;;  %v10791_v10 = vld [vmem:[#allocation29_spill] sm:$0xff]  ;;  %v10792_v19 = vld [vmem:[#allocation16_spill] sm:$0xff] }
 0x515   : > { %v6959_v56 = vpop.eup %6958  ;;  %6982 = vrcp.f32 %v10784_v33  ;;  %v10795_v2 = vld [vmem:[#allocation33_spill] sm:$0xff] }
 0x516   : > { %4734 = vrot.lane.b32.xlu0 %v3429_v13, %s7106_s27  ;;  %v6961_v13 = vpop.eup %6960  ;;  %6984 = vrcp.f32 %v9782_v35  ;;  %v10789_v35 = vld [vmem:[#allocation6_spill] sm:$0xff] }
 0x517   : > { %v6963_v6 = vpop.eup %6962  ;;  %v4465_v36 = vmul.f32 %v6961_v13, %v9776_v27  ;;  %6986 = vrcp.f32 %v10787_v54 }
 0x518   : > { %v9914_v50 = vpop.xlane.xlu1 %4106  ;;  %v9916_v47 = vpop.xlane.xlu0 %4103  ;;  %4740 = vrot.lane.b32.xlu1 %v3435_v17, %s7106_s27  ;;  %v10786_v17 = vld [vmem:[#allocation25_spill] sm:$0xff]  ;;  %v4463_v59 = vmul.f32 %v6963_v6, %v9778_v48  ;;  %6988 = vrcp.f32 %v10788_v22  ;;  %v10798_v22 = vld [vmem:[#allocation31_spill] sm:$0xff] }
 0x519   : > { %v6965_v24 = vpop.eup %6964  ;;  %6990 = vrcp.f32 %v10789_v35  ;;  %v10799_v35 = vld [vmem:[#allocation35_spill] sm:$0xff] }
 0x51a   : > { %4738 = vrot.lane.b32.xlu0 %v3433_v3, %s7106_s27  ;;  %v1221_v3 = vmul.f32 %v6959_v56, %v10786_v17  ;;  %v6967_v14 = vpop.eup %6966  ;;  %6992 = vrcp.f32 %v9799_v61 }
 0x51b   : > { %v1225_v44 = vmul.f32 %v6967_v14, %v10791_v10  ;;  %6994 = vrcp.f32 %v9787_v43 }
 0x51c   : > { %v9926_v1 = vpop.xlane.xlu1 %4112  ;;  %v9928_v4 = vpop.xlane.xlu0 %4109  ;;  %4744 = vrot.lane.b32.xlu1 %v3439_v5, %s7106_s27  ;;  %6996 = vrcp.f32 %v10792_v19  ;;  %v10803_v19 = vld [vmem:[#allocation62_spill] sm:$0xff] }
 0x51e   : > { %4742 = vrot.lane.b32.xlu0 %v3437_v28, %s7106_s27  ;;  %v6969_v28 = vpop.eup %6968 }
 0x51f   : > { %v6971_v48 = vpop.eup %6970  ;;  %v4469_v7 = vmul.f32 %v6969_v28, %v9790_v55 }
 0x520   : > { %v4559_v57 = vpop.permute.xlu1 %4558  ;;  %4748 = vrot.lane.b32.xlu1 %v3443_v52, %s7106_s27  ;;  %v6973_v12 = vpop.eup %6972  ;;  %v1223_v52 = vmul.f32 %v6965_v24, %v10790_v23 }
 0x521   : > { %v9939_v9 = vpop.xlane.xlu0 %4115  ;;  %v9944_v25 = vsel %vm236_vm0, %v1217_v34, %v4559_v57  ;;  %v4467_v34 = vmul.f32 %v6971_v48, %v9792_v53  ;;  %v10793_v53 = vld [vmem:[#allocation7_spill] sm:$0xff] }
 0x522   : > { %4746 = vrot.lane.b32.xlu0 %v3441_v63, %s7106_s27  ;;  %v6975_v63 = vpop.eup %6974  ;;  %6998 = vrcp.f32 %v10793_v53  ;;  %v10804_v53 = vld [vmem:[#allocation39_spill] sm:$0xff] }
 0x523   : > { %v6977_v13 = vpop.eup %6976  ;;  %7000 = vrcp.f32 %v9820_v37 }
 0x524   : > { %v4563_v5 = vpop.permute.xlu1 %4562  ;;  %4816 = vrot.lane.b32.xlu1 %v4465_v36, %s7107_s28  ;;  %v6979_v61 = vpop.eup %6978  ;;  %v4473_v43 = vmul.f32 %v6977_v13, %v9802_v40  ;;  %v10794_v36 = vld [vmem:[#allocation40_spill] sm:$0xff]  ;;  %7002 = vrcp.f32 %v9808_v31 }
 0x525   : > { %v4561_v29 = vpop.permute.xlu0 %4560  ;;  %v9960_v8 = vsel %vm236_vm0, %v1221_v3, %v4563_v5  ;;  %v6981_v33 = vpop.eup %6980  ;;  %v1227_v24 = vmul.f32 %v6973_v12, %v10794_v36  ;;  %v4471_v17 = vmul.f32 %v6979_v61, %v9804_v45  ;;  %v10797_v45 = vld [vmem:[#allocation9_spill] sm:$0xff]  ;;  %v10800_v12 = vld [vmem:[#allocation79_spill] sm:$0xff] }
 0x526   : > { %v9957_v27 = vsel %vm236_vm0, %v1219_v46, %v4561_v29  ;;  %4814 = vrot.lane.b32.xlu0 %v4463_v59, %s7107_s28  ;;  %v1229_v46 = vmul.f32 %v6975_v63, %v10795_v2  ;;  %v6983_v3 = vpop.eup %6982  ;;  %v10796_v29 = vld [vmem:[#allocation18_spill] sm:$0xff]  ;;  %v1231_v48 = vmul.f32 %v6981_v33, %v10798_v22  ;;  %v10805_v33 = vld [vmem:[#allocation85_spill] sm:$0xff] }
 0x527   : > { %v6985_v54 = vpop.eup %6984  ;;  %7004 = vrcp.f32 %v10796_v29  ;;  %v10801_v63 = vld [vmem:[#allocation10_spill] sm:$0xff] }
 0x528   : > { %v4565_v56 = vpop.permute.xlu1 %4564  ;;  %4820 = vrot.lane.b32.xlu1 %v4469_v7, %s7107_s28  ;;  %v6987_v37 = vpop.eup %6986  ;;  %7006 = vrcp.f32 %v10797_v45  ;;  %v4477_v31 = vmul.f32 %v6985_v54, %v9814_v32  ;;  %v1233_v7 = vmul.f32 %v6983_v3, %v10799_v35  ;;  %v10806_v54 = vld [vmem:[#allocation26_spill] sm:$0xff] }
 0x529   : > { %v4567_v57 = vpop.permute.xlu0 %4566  ;;  %v9973_v55 = vsel %vm236_vm0, %v1223_v52, %v4565_v56  ;;  %v6989_v28 = vpop.eup %6988  ;;  %7008 = vrcp.f32 %v9834_v42  ;;  %v4475_v23 = vmul.f32 %v6987_v37, %v10800_v12  ;;  %v10808_v37 = vld [vmem:[#allocation48_spill] sm:$0xff]  ;;  %v10809_v22 = vld [vmem:[#allocation14_spill] sm:$0xff] }
 0x52a   : > { %v9976_v6 = vsel %vm236_vm0, %v1225_v44, %v4567_v57  ;;  %4818 = vrot.lane.b32.xlu0 %v4467_v34, %s7107_s28  ;;  %v6991_v52 = vpop.eup %6990  ;;  %7010 = vrcp.f32 %v9825_v21  ;;  %v10802_v57 = vld [vmem:[#allocation12_spill] sm:$0xff]  ;;  %v1235_v61 = vmul.f32 %v6989_v28, %v10803_v19 }
 0x52b   : > { %v6993_v34 = vpop.eup %6992  ;;  %7012 = vrcp.f32 %v10801_v63  ;;  %v10810_v12 = vld [vmem:[#allocation28_spill] sm:$0xff] }
 0x52c   : > { %v4569_v59 = vpop.permute.xlu1 %4568  ;;  %4824 = vrot.lane.b32.xlu1 %v4473_v43, %s7107_s28  ;;  %v6995_v42 = vpop.eup %6994  ;;  %7014 = vrcp.f32 %v10802_v57  ;;  %v4481_v21 = vmul.f32 %v6993_v34, %v9828_v39  ;;  %v1237_v43 = vmul.f32 %v6991_v52, %v10804_v53 }
 0x52d   : > { %v4571_v14 = vpop.permute.xlu0 %4570  ;;  %v9989_v40 = vsel %vm236_vm0, %v1227_v24, %v4569_v59  ;;  %v6997_v13 = vpop.eup %6996  ;;  %7016 = vrcp.f32 %v9851_v30  ;;  %v4479_v36 = vmul.f32 %v6995_v42, %v10805_v33  ;;  %v10812_v42 = vld [vmem:[#allocation42_spill] sm:$0xff] }
 0x52e   : > { %v9992_v5 = vsel %vm236_vm0, %v1229_v46, %v4571_v14  ;;  %4822 = vrot.lane.b32.xlu0 %v4471_v17, %s7107_s28  ;;  %v6999_v24 = vpop.eup %6998  ;;  %7018 = vrcp.f32 %v9839_v51  ;;  %v10807_v51 = vld [vmem:[#allocation37_spill] sm:$0xff] }
 0x52f   : > { %v7001_v17 = vpop.eup %7000  ;;  %7020 = vrcp.f32 %v10806_v54  ;;  %v1239_v29 = vmul.f32 %v6997_v13, %v10807_v51  ;;  %v1241_v45 = vmul.f32 %v6999_v24, %v10808_v37 }
 0x530   : > { %v4573_v10 = vpop.permute.xlu1 %4572  ;;  %4828 = vrot.lane.b32.xlu1 %v4477_v31, %s7107_s28  ;;  %v7003_v59 = vpop.eup %7002  ;;  %v4485_v30 = vmul.f32 %v7001_v17, %v9842_v18  ;;  %7022 = vrcp.f32 %v10809_v22 }
 0x531   : > { %v4575_v44 = vpop.permute.xlu0 %4574  ;;  %v10005_v32 = vsel %vm236_vm0, %v1231_v48, %v4573_v10  ;;  %v7005_v14 = vpop.eup %7004  ;;  %v4483_v31 = vmul.f32 %v7003_v59, %v9844_v38  ;;  %7024 = vrcp.f32 %v10810_v12  ;;  %v10811_v10 = vld [vmem:[#allocation15_spill] sm:$0xff]  ;;  %v10814_v59 = vld [vmem:[#allocation30_spill] sm:$0xff] }
 0x532   : > { %v10008_v56 = vsel %vm236_vm0, %v1233_v7, %v4575_v44  ;;  %4826 = vrot.lane.b32.xlu0 %v4475_v23, %s7107_s28  ;;  %v7007_v28 = vpop.eup %7006  ;;  %7026 = vrcp.f32 %v10811_v10  ;;  %v1243_v57 = vmul.f32 %v7005_v14, %v10812_v42  ;;  %v10816_v14 = vld [vmem:[#allocation49_spill] sm:$0xff]  ;;  %v10821_v10 = vld [vmem:[#allocation50_spill] sm:$0xff] }
 0x533   : > { %v7009_v7 = vpop.eup %7008  ;;  %7028 = vrcp.f32 %v9861_v62 }
 0x534   : > { %v4577_v2 = vpop.permute.xlu1 %4576  ;;  %4832 = vrot.lane.b32.xlu1 %v4481_v21, %s7107_s28  ;;  %v7011_v38 = vpop.eup %7010  ;;  %v10813_v21 = vld [vmem:[#allocation45_spill] sm:$0xff]  ;;  %7030 = vrcp.f32 %v9853_v16  ;;  %v10815_v16 = vld [vmem:[#allocation43_spill] sm:$0xff] }
 0x535   : > { %v4579_v46 = vpop.permute.xlu0 %4578  ;;  %v10020_v3 = vsel %vm236_vm0, %v1235_v61, %v4577_v2  ;;  %v7013_v63 = vpop.eup %7012  ;;  %v1245_v13 = vmul.f32 %v7007_v28, %v10813_v21  ;;  %7032 = vrcp.f32 %v10814_v59  ;;  %v10818_v28 = vld [vmem:[#allocation32_spill] sm:$0xff]  ;;  %v10822_v21 = vld [vmem:[#allocation34_spill] sm:$0xff] }
 0x536   : > { %v10023_v39 = vsel %vm236_vm0, %v1237_v43, %v4579_v46  ;;  %4830 = vrot.lane.b32.xlu0 %v4479_v36, %s7107_s28  ;;  %v7015_v61 = vpop.eup %7014 }
 0x537   : > { %v7017_v33 = vpop.eup %7016  ;;  %v1249_v54 = vmul.f32 %v7015_v61, %v10816_v14  ;;  %v10826_v14 = vld [vmem:[#allocation36_spill] sm:$0xff] }
 0x538   : > { %v4581_v48 = vpop.permute.xlu1 %4580  ;;  %4836 = vrot.lane.b32.xlu1 %v4485_v30, %s7107_s28  ;;  %v7019_v46 = vpop.eup %7018  ;;  %v1247_v30 = vmul.f32 %v7013_v63, %v10815_v16 }
 0x539   : > { %v4583_v35 = vpop.permute.xlu0 %4582  ;;  %v10035_v18 = vsel %vm236_vm0, %v1239_v29, %v4581_v48  ;;  %v6216_v52 = vpop.f32.mrb[108].mxu0  ;;  %v10817_v29 = vld [vmem:[#allocation17_spill] sm:$0xff] }
 0x53a   : > { %v10038_v23 = vsel %vm236_vm0, %v1241_v45, %v4583_v35  ;;  %4834 = vrot.lane.b32.xlu0 %v4483_v31, %s7107_s28  ;;  %v4489_v44 = vmul.f32 %v7009_v7, %v6216_v52  ;;  %v4363_v34 = vpop.f32.mrb[109].mxu0  ;;  %7034 = vrcp.f32 %v10817_v29  ;;  %v7021_v31 = vpop.eup %7020  ;;  %v10819_v7 = vld [vmem:[#allocation19_spill] sm:$0xff] }
 0x53b   : > { %v4487_v19 = vmul.f32 %v7011_v38, %v4363_v34  ;;  %7036 = vrcp.f32 %v10818_v28  ;;  %v7023_v35 = vpop.eup %7022  ;;  %v10820_v52 = vld [vmem:[#allocation47_spill] sm:$0xff] }
 0x53c   : > { %v4585_v53 = vpop.permute.xlu1 %4584  ;;  %4840 = vrot.lane.b32.xlu1 %v4489_v44, %s7107_s28  ;;  %7038 = vrcp.f32 %v10819_v7  ;;  %v7025_v12 = vpop.eup %7024  ;;  %v1251_v38 = vmul.f32 %v7021_v31, %v10820_v52  ;;  %v1253_v44 = vmul.f32 %v7023_v35, %v10821_v10  ;;  %v10829_v31 = vld [vmem:[#allocation57_spill] sm:$0xff] }
 0x53d   : > { %v4587_v43 = vpop.permute.xlu0 %4586  ;;  %v10048_v36 = vsel %vm236_vm0, %v1243_v57, %v4585_v53  ;;  %v6219_v2 = vpop.f32.mrb[110].mxu0  ;;  %7040 = vrcp.f32 %v9873_v49 }
 0x53e   : > { %v10051_v24 = vsel %vm236_vm0, %v1245_v13, %v4587_v43  ;;  %4838 = vrot.lane.b32.xlu0 %v4487_v19, %s7107_s28  ;;  %v4493_v62 = vmul.f32 %v7017_v33, %v6219_v2  ;;  %v4373_v17 = vpop.f32.mrb[111].mxu0  ;;  %v7027_v34 = vpop.eup %7026  ;;  %7042 = vrcp.f32 %v9863_v15  ;;  %v10823_v43 = vld [vmem:[#allocation20_spill] sm:$0xff]  ;;  %v10824_v2 = vld [vmem:[#allocation51_spill] sm:$0xff] }
 0x53f   : > { %v4491_v51 = vmul.f32 %v7019_v46, %v4373_v17  ;;  %v7029_v57 = vpop.eup %7028  ;;  %7044 = vrcp.f32 %v10822_v21  ;;  %v1255_v46 = vmul.f32 %v7025_v12, %v10824_v2  ;;  %v10825_v15 = vld [vmem:[#allocation55_spill] sm:$0xff] }
 0x540   : > { %v4589_v37 = vpop.permute.xlu1 %4588  ;;  %4844 = vrot.lane.b32.xlu1 %v4493_v62, %s7107_s28  ;;  %v7031_v53 = vpop.eup %7030  ;;  %7046 = vrcp.f32 %v10823_v43  ;;  %v1257_v62 = vmul.f32 %v7027_v34, %v10825_v15 }
 0x541   : > { %v4591_v45 = vpop.permute.xlu0 %4590  ;;  %v10061_v22 = vsel %vm236_vm0, %v1247_v30, %v4589_v37  ;;  %7048 = vrcp.f32 %v9883_v0  ;;  %v7033_v30 = vpop.eup %7032  ;;  %v10827_v0 = vld [vmem:[#allocation22_spill] sm:$0xff] }
 0x542   : > { %v10064_v48 = vsel %vm236_vm0, %v1249_v54, %v4591_v45  ;;  %4842 = vrot.lane.b32.xlu0 %v4491_v51, %s7107_s28  ;;  %7050 = vrcp.f32 %v9871_v20  ;;  %v10828_v20 = vld [vmem:[#allocation53_spill] sm:$0xff] }
 0x543   : > { %7052 = vrcp.f32 %v10826_v14  ;;  %v1259_v45 = vmul.f32 %v7033_v30, %v10828_v20 }
 0x544   : > { %v4593_v63 = vpop.permute.xlu1 %4592  ;;  %v7035_v29 = vpop.eup %7034  ;;  %7054 = vrcp.f32 %v10827_v0 }
 0x545   : > { %v4595_v42 = vpop.permute.xlu0 %4594  ;;  %v10074_v13 = vsel %vm236_vm0, %v1251_v38, %v4593_v63  ;;  %v6222_v61 = vpop.f32.mrb[112].mxu0  ;;  %v1261_v28 = vmul.f32 %v7035_v29, %v10829_v31  ;;  %7056 = vrcp.f32 %v9893_v58  ;;  %v10830_v38 = vld [vmem:[#allocation38_spill] sm:$0xff]  ;;  %v10835_v29 = vld [vmem:[#allocation56_spill] sm:$0xff] }
 0x546   : > { %v10077_v19 = vsel %vm236_vm0, %v1253_v44, %v4595_v42  ;;  %v4497_v33 = vmul.f32 %v7029_v57, %v6222_v61  ;;  %v4383_v49 = vpop.f32.mrb[113].mxu0  ;;  %v7037_v37 = vpop.eup %7036  ;;  %7058 = vrcp.f32 %v9881_v60  ;;  %v10831_v42 = vld [vmem:[#allocation24_spill] sm:$0xff]  ;;  %v10832_v61 = vld [vmem:[#allocation54_spill] sm:$0xff] }
 0x547   : > { %v4495_v17 = vmul.f32 %v7031_v53, %v4383_v49  ;;  %v7039_v35 = vpop.eup %7038  ;;  %7060 = vrcp.f32 %v10830_v38  ;;  %v1263_v60 = vmul.f32 %v7037_v37, %v10832_v61  ;;  %v10833_v53 = vld [vmem:[#allocation58_spill] sm:$0xff]  ;;  %v10836_v37 = vld [vmem:[#allocation60_spill] sm:$0xff] }
 0x548   : > { %v4597_v59 = vpop.permute.xlu1 %4596  ;;  %4848 = vrot.lane.b32.xlu1 %v4497_v33, %s7107_s28  ;;  %v7041_v52 = vpop.eup %7040  ;;  %7062 = vrcp.f32 %v10831_v42  ;;  %v1265_v43 = vmul.f32 %v7039_v35, %v10833_v53 }
 0x549   : > { %v4599_v16 = vpop.permute.xlu0 %4598  ;;  %v10087_v54 = vsel %vm236_vm0, %v1255_v46, %v4597_v59  ;;  %4846 = vrot.lane.b32.xlu0 %v4495_v17, %s7107_s28  ;;  %v7043_v63 = vpop.eup %7042  ;;  %7064 = vrcp.f32 %v9904_v26  ;;  %v10834_v26 = vld [vmem:[#allocation59_spill] sm:$0xff] }
 0x54a   : > { %v10090_v51 = vsel %vm236_vm0, %v1257_v62, %v4599_v16  ;;  %v7045_v21 = vpop.eup %7044  ;;  %7066 = vrcp.f32 %v9891_v11 }
 0x54b   : > { %v7047_v49 = vpop.eup %7046  ;;  %7068 = vrcp.f32 %v10834_v26  ;;  %v1267_v0 = vmul.f32 %v7045_v21, %v10835_v29 }
 0x54c   : > { %v4601_v7 = vpop.permute.xlu1 %4600  ;;  %v7049_v15 = vpop.eup %7048  ;;  %v1269_v20 = vmul.f32 %v7047_v49, %v10836_v37  ;;  %7070 = vrcp.f32 %v9916_v47 }
 0x54d   : > { %v4603_v12 = vpop.permute.xlu0 %4602  ;;  %v10100_v10 = vsel %vm236_vm0, %v1259_v45, %v4601_v7  ;;  %v6225_v34 = vpop.f32.mrb[114].mxu0  ;;  %7072 = vrcp.f32 %v9902_v41 }
 0x54e   : > { %v10103_v44 = vsel %vm236_vm0, %v1261_v28, %v4603_v12  ;;  %v4501_v57 = vmul.f32 %v7041_v52, %v6225_v34  ;;  %v4393_v58 = vpop.f32.mrb[115].mxu0  ;;  %v7051_v16 = vpop.eup %7050  ;;  %7074 = vrcp.f32 %v9928_v4 }
 0x54f   : > { %v4499_v33 = vmul.f32 %v7043_v63, %v4393_v58  ;;  %v7053_v11 = vpop.eup %7052  ;;  %v10838_v58 = vld [vmem:[#allocation64_spill] sm:$0xff]  ;;  %7076 = vrcp.f32 %v9914_v50  ;;  %v10842_v50 = vld [vmem:[#allocation66_spill] sm:$0xff] }
 0x550   : > { %v4605_v2 = vpop.permute.xlu1 %4604  ;;  %4852 = vrot.lane.b32.xlu1 %v4501_v57, %s7107_s28  ;;  %v7055_v31 = vpop.eup %7054  ;;  %v10837_v57 = vld [vmem:[#allocation61_spill] sm:$0xff]  ;;  %7078 = vrcp.f32 %v9939_v9 }
 0x551   : > { %v4607_v46 = vpop.permute.xlu0 %4606  ;;  %v10112_v62 = vsel %vm236_vm0, %v1263_v60, %v4605_v2  ;;  %v6228_v59 = vpop.f32.mrb[116].mxu0  ;;  %4850 = vrot.lane.b32.xlu0 %v4499_v33, %s7107_s28  ;;  %v1271_v41 = vmul.f32 %v7053_v11, %v10837_v57  ;;  %v1273_v21 = vmul.f32 %v7055_v31, %v10838_v58  ;;  %7080 = vrcp.f32 %v9926_v1  ;;  %v10845_v1 = vld [vmem:[#allocation65_spill] sm:$0xff] }
 0x552   : > { %v10115_v17 = vsel %vm236_vm0, %v1265_v43, %v4607_v46  ;;  %v4505_v30 = vmul.f32 %v7049_v15, %v6228_v59  ;;  %v4403_v14 = vpop.f32.mrb[117].mxu0  ;;  %v7057_v7 = vpop.eup %7056 }
 0x553   : > { %v4503_v45 = vmul.f32 %v7051_v16, %v4403_v14  ;;  %v7059_v34 = vpop.eup %7058  ;;  %v10841_v16 = vld [vmem:[#allocation63_spill] sm:$0xff] }
 0x554   : > { %v4609_v28 = vpop.permute.xlu1 %4608  ;;  %4856 = vrot.lane.b32.xlu1 %v4505_v30, %s7107_s28  ;;  %v7061_v42 = vpop.eup %7060 }
 0x555   : > { %v4611_v35 = vpop.permute.xlu0 %4610  ;;  %v10125_v12 = vsel %vm236_vm0, %v1267_v0, %v4609_v28  ;;  %v6231_v38 = vpop.f32.mrb[118].mxu0  ;;  %4854 = vrot.lane.b32.xlu0 %v4503_v45, %s7107_s28  ;;  %v1275_v26 = vmul.f32 %v7061_v42, %v10841_v16 }
 0x556   : > { %v10128_v52 = vsel %vm236_vm0, %v1269_v20, %v4611_v35  ;;  %v4509_v47 = vmul.f32 %v7057_v7, %v6231_v38  ;;  %v4413_v63 = vpop.f32.mrb[119].mxu0  ;;  %v7063_v60 = vpop.eup %7062 }
 0x557   : > { %v4507_v61 = vmul.f32 %v7059_v34, %v4413_v63  ;;  %v7065_v33 = vpop.eup %7064  ;;  %v1277_v30 = vmul.f32 %v7063_v60, %v10842_v50 }
 0x558   : > { %v4613_v53 = vpop.permute.xlu1 %4612  ;;  %4860 = vrot.lane.b32.xlu1 %v4509_v47, %s7107_s28  ;;  %v7067_v15 = vpop.eup %7066 }
 0x559   : > { %v4615_v43 = vpop.permute.xlu0 %4614  ;;  %v10137_v49 = vsel %vm236_vm0, %v1271_v41, %v4613_v53  ;;  %v6234_v46 = vpop.f32.mrb[120].mxu0  ;;  %4858 = vrot.lane.b32.xlu0 %v4507_v61, %s7107_s28 }
 0x55a   : > { %10839 = vst [vmem:[#allocation82_spill] sm:$0xff] %v10137_v49  ;;  %v10140_v2 = vsel %vm236_vm0, %v1273_v21, %v4615_v43  ;;  %v4513_v4 = vmul.f32 %v7065_v33, %v6234_v46  ;;  %v4423_v59 = vpop.f32.mrb[121].mxu0  ;;  %v7069_v11 = vpop.eup %7068 }
 0x55b   : > { %10840 = vst [vmem:[#allocation87_spill] sm:$0xff] %v10140_v2  ;;  %v4511_v14 = vmul.f32 %v7067_v15, %v4423_v59  ;;  %v7071_v37 = vpop.eup %7070  ;;  %v1279_v34 = vmul.f32 %v7069_v11, %v10845_v1 }
 0x55c   : > { %v4617_v29 = vpop.permute.xlu1 %4616  ;;  %4864 = vrot.lane.b32.xlu1 %v4513_v4, %s7107_s28  ;;  %v7073_v9 = vpop.eup %7072 }
 0x55d   : > { %v4619_v0 = vpop.permute.xlu0 %4618  ;;  %v10149_v20 = vsel %vm236_vm0, %v1275_v26, %v4617_v29  ;;  %v6237_v31 = vpop.f32.mrb[122].mxu0  ;;  %4862 = vrot.lane.b32.xlu0 %v4511_v14, %s7107_s28 }
 0x55e   : > { %10843 = vst [vmem:[#allocation84_spill] sm:$0xff] %v10149_v20  ;;  %v10152_v45 = vsel %vm236_vm0, %v1277_v30, %v4619_v0  ;;  %v6240_v28 = vpop.f32.mrb[128].mxu1  ;;  %v4517_v35 = vmul.f32 %v7071_v37, %v6237_v31  ;;  %v4433_v7 = vpop.f32.mrb[123].mxu0 }
 0x55f   : > { %10844 = vst [vmem:[#allocation89_spill] sm:$0xff] %v10152_v45  ;;  %v4443_v38 = vpop.f32.mrb[129].mxu1  ;;  %v4515_v47 = vmul.f32 %v7073_v9, %v4433_v7  ;;  %v7075_v57 = vpop.eup %7074 }
 0x560   : > { %v4621_v63 = vpop.permute.xlu1 %4620  ;;  %4868 = vrot.lane.b32.xlu1 %v4517_v35, %s7107_s28  ;;  %v7077_v58 = vpop.eup %7076  ;;  %v4521_v21 = vmul.f32 %v7075_v57, %v6240_v28 }
 0x561   : > { %v4687_v42 = vpop.permute.xlu0 %4686  ;;  %v4941_v41 = vsel %vm236_vm0, %v1279_v34, %v4621_v63  ;;  %4866 = vrot.lane.b32.xlu0 %v4515_v47, %s7107_s28  ;;  %v4519_v61 = vmul.f32 %v7077_v58, %v4443_v38  ;;  %v7079_v43 = vpop.eup %7078 }
 0x562   : > { %v7081_v46 = vpop.eup %7080 }
 0x564   : > { %v4689_v60 = vpop.permute.xlu1 %4688  ;;  %4872 = vrot.lane.b32.xlu1 %v4521_v21, %s7107_s28 }
 0x565   : > { %v4691_v53 = vpop.permute.xlu0 %4690  ;;  %4870 = vrot.lane.b32.xlu0 %v4519_v61, %s7107_s28  ;;  %v4944_v2 = vsel %vm4942_vm3, %v9957_v27, %v4689_v60 }
 0x566   : > { %v6243_v33 = vpop.f32.mrb[130].mxu1 }
 0x567   : > { %v4525_v15 = vmul.f32 %v7079_v43, %v6243_v33  ;;  %v4453_v4 = vpop.f32.mrb[131].mxu1 }
 0x568   : > { %v4523_v59 = vmul.f32 %v7081_v46, %v4453_v4  ;;  %v4693_v16 = vpop.permute.xlu1 %4692 }
 0x569   : > { %4876 = vrot.lane.b32.xlu1 %v4525_v15, %s7107_s28  ;;  %v4695_v26 = vpop.permute.xlu0 %4694 }
 0x56a   : > { %4874 = vrot.lane.b32.xlu0 %v4523_v59, %s7107_s28  ;;  %v4943_v59 = vsel %vm4942_vm3, %v9944_v25, %v4687_v42  ;;  %v4947_v27 = vsel %vm4942_vm3, %v9976_v6, %v4695_v26 }
 0x56c   : > { %v4697_v50 = vpop.permute.xlu1 %4696 }
 0x56d   : > { %v4699_v30 = vpop.permute.xlu0 %4698 }
 0x570   : > { %v4701_v14 = vpop.permute.xlu1 %4700 }
 0x571   : > { %v4703_v11 = vpop.permute.xlu0 %4702  ;;  %v4950_v26 = vsel %vm4942_vm3, %v10005_v32, %v4701_v14 }
 0x574   : > { %v10163_v29 = vpop.permute.xlu1 %4704 }
 0x575   : > { %v10165_v0 = vpop.permute.xlu0 %4706 }
 0x576   : > { %v4953_v32 = vsel %vm4942_vm3, %v10023_v39, %v10165_v0 }
 0x578   : > { %v10167_v37 = vpop.permute.xlu1 %4708 }
 0x579   : > { %v10169_v31 = vpop.permute.xlu0 %4710 }
 0x57a   : > { %v4955_v39 = vsel %vm4942_vm3, %v10038_v23, %v10169_v31 }
 0x57c   : > { %v10171_v28 = vpop.permute.xlu1 %4712 }
 0x57d   : > { %v10173_v9 = vpop.permute.xlu0 %4714 }
 0x57e   : > { %v4957_v23 = vsel %vm4942_vm3, %v10051_v24, %v10173_v9 }
 0x580   : > { %v10175_v35 = vpop.permute.xlu1 %4716 }
 0x581   : > { %v10177_v7 = vpop.permute.xlu0 %4718 }
 0x582   : > { %v4959_v24 = vsel %vm4942_vm3, %v10064_v48, %v10177_v7 }
 0x584   : > { %v10179_v38 = vpop.permute.xlu1 %4720 }
 0x585   : > { %v10181_v1 = vpop.permute.xlu0 %4722 }
 0x586   : > { %v4961_v48 = vsel %vm4942_vm3, %v10077_v19, %v10181_v1 }
 0x588   : > { %v10183_v34 = vpop.permute.xlu1 %4724 }
 0x589   : > { %v10185_v47 = vpop.permute.xlu0 %4726 }
 0x58a   : > { %v4963_v19 = vsel %vm4942_vm3, %v10090_v51, %v10185_v47 }
 0x58c   : > { %v10187_v63 = vpop.permute.xlu1 %4728 }
 0x58d   : > { %v10189_v57 = vpop.permute.xlu0 %4730 }
 0x58e   : > { %v4965_v51 = vsel %vm4942_vm3, %v10103_v44, %v10189_v57 }
 0x590   : > { %v10191_v58 = vpop.permute.xlu1 %4732 }
 0x591   : > { %v10193_v21 = vpop.permute.xlu0 %4734 }
 0x592   : > { %v4967_v44 = vsel %vm4942_vm3, %v10115_v17, %v10193_v21 }
 0x594   : > { %v10195_v61 = vpop.permute.xlu1 %4736 }
 0x595   : > { %v10197_v43 = vpop.permute.xlu0 %4738 }
 0x596   : > { %v4969_v17 = vsel %vm4942_vm3, %v10128_v52, %v10197_v43 }
 0x598   : > { %v10199_v33 = vpop.permute.xlu1 %4740 }
 0x599   : > { %10846 = vst [vmem:[#allocation86_spill] sm:$0xff] %v10199_v33  ;;  %v10201_v46 = vpop.permute.xlu0 %4742 }
 0x59a   : > { %10847 = vst [vmem:[#allocation91_spill] sm:$0xff] %v10201_v46  ;;  %v4945_v46 = vsel %vm4942_vm3, %v9960_v8, %v4691_v53 }
 0x59c   : > { %v10203_v15 = vpop.permute.xlu1 %4744 }
 0x59d   : > { %10848 = vst [vmem:[#allocation88_spill] sm:$0xff] %v10203_v15  ;;  %v10205_v4 = vpop.permute.xlu0 %4746 }
 0x59e   : > { %10849 = vst [vmem:[#allocation93_spill] sm:$0xff] %v10205_v4 }
 0x5a0   : > { %v4749_v45 = vpop.permute.xlu1 %4748 }
 0x5a1   : > { %v4815_v20 = vpop.permute.xlu0 %4814  ;;  %v10217_v15 = vsel %vm4942_vm3, %v4941_v41, %v4749_v45 }
 0x5a2   : > { %v4976_v4 = vsel %vm4975_vm4, %v4943_v59, %v4815_v20  ;;  %v4946_v20 = vsel %vm4942_vm3, %v9973_v55, %v4693_v16  ;;  %v4949_v55 = vsel %vm4942_vm3, %v9992_v5, %v4699_v30 }
 0x5a3   : > { %5009 = vst.msk [vmem:[%s10212_s3] sm:$0xff] %vm5008_vm5, %v4976_v4 }
 0x5a4   : > { %v4817_v49 = vpop.permute.xlu1 %4816 }
 0x5a5   : > { %v4819_v33 = vpop.permute.xlu0 %4818  ;;  %v4977_v25 = vsel %vm4975_vm4, %v4944_v2, %v4817_v49  ;;  %v4948_v2 = vsel %vm4942_vm3, %v9989_v40, %v4697_v50  ;;  %v4951_v40 = vsel %vm4942_vm3, %v10008_v56, %v4703_v11 }
 0x5a6   : > { %v4978_v42 = vsel %vm4975_vm4, %v4945_v46, %v4819_v33  ;;  %5010 = vst.msk [vmem:[%s10212_s3 + $0x8] sm:$0xff] %vm5008_vm5, %v4977_v25  ;;  %v4952_v46 = vsel %vm4942_vm3, %v10020_v3, %v10163_v29  ;;  %v4954_v3 = vsel %vm4942_vm3, %v10035_v18, %v10167_v37  ;;  %v4956_v18 = vsel %vm4942_vm3, %v10048_v36, %v10171_v28 }
 0x5a7   : > { %5011 = vst.msk [vmem:[%s10212_s3 + $0x10] sm:$0xff] %vm5008_vm5, %v4978_v42  ;;  %v4958_v36 = vsel %vm4942_vm3, %v10061_v22, %v10175_v35  ;;  %v4960_v22 = vsel %vm4942_vm3, %v10074_v13, %v10179_v38  ;;  %v4962_v13 = vsel %vm4942_vm3, %v10087_v54, %v10183_v34  ;;  %v4964_v54 = vsel %vm4942_vm3, %v10100_v10, %v10187_v63 }
 0x5a8   : > { %v4821_v45 = vpop.permute.xlu1 %4820  ;;  %v4966_v10 = vsel %vm4942_vm3, %v10112_v62, %v10191_v58  ;;  %v4968_v62 = vsel %vm4942_vm3, %v10125_v12, %v10195_v61  ;;  %v10852_v61 = vld [vmem:[#allocation91_spill] sm:$0xff] }
 0x5a9   : > { %v4823_v8 = vpop.permute.xlu0 %4822  ;;  %v4979_v41 = vsel %vm4975_vm4, %v4946_v20, %v4821_v45 }
 0x5aa   : > { %v4980_v49 = vsel %vm4975_vm4, %v4947_v27, %v4823_v8  ;;  %5012 = vst.msk [vmem:[%s10212_s3 + $0x18] sm:$0xff] %vm5008_vm5, %v4979_v41 }
 0x5ab   : > { %5013 = vst.msk [vmem:[%s10212_s3 + $0x20] sm:$0xff] %vm5008_vm5, %v4980_v49 }
 0x5ac   : > { %v4825_v60 = vpop.permute.xlu1 %4824 }
 0x5ad   : > { %v4827_v6 = vpop.permute.xlu0 %4826  ;;  %v4981_v53 = vsel %vm4975_vm4, %v4948_v2, %v4825_v60 }
 0x5ae   : > { %v4982_v16 = vsel %vm4975_vm4, %v4949_v55, %v4827_v6  ;;  %5014 = vst.msk [vmem:[%s10212_s3 + $0x28] sm:$0xff] %vm5008_vm5, %v4981_v53 }
 0x5af   : > { %5015 = vst.msk [vmem:[%s10212_s3 + $0x30] sm:$0xff] %vm5008_vm5, %v4982_v16 }
 0x5b0   : > { %v4829_v50 = vpop.permute.xlu1 %4828 }
 0x5b1   : > { %v4831_v5 = vpop.permute.xlu0 %4830  ;;  %v4983_v30 = vsel %vm4975_vm4, %v4950_v26, %v4829_v50  ;;  %v10851_v50 = vld [vmem:[#allocation82_spill] sm:$0xff] }
 0x5b2   : > { %v4984_v33 = vsel %vm4975_vm4, %v4951_v40, %v4831_v5  ;;  %5016 = vst.msk [vmem:[%s10212_s3 + $0x38] sm:$0xff] %vm5008_vm5, %v4983_v30  ;;  %v10850_v40 = vld [vmem:[#allocation86_spill] sm:$0xff]  ;;  %v10853_v5 = vld [vmem:[#allocation87_spill] sm:$0xff] }
 0x5b3   : > { %5017 = vst.msk [vmem:[%s10212_s3 + $0x40] sm:$0xff] %vm5008_vm5, %v4984_v33  ;;  %v4970_v12 = vsel %vm4942_vm3, %v10851_v50, %v10850_v40  ;;  %v4971_v52 = vsel %vm4942_vm3, %v10853_v5, %v10852_v61 }
 0x5b4   : > { %v4833_v56 = vpop.permute.xlu1 %4832 }
 0x5b5   : > { %v4835_v14 = vpop.permute.xlu0 %4834  ;;  %v4985_v11 = vsel %vm4975_vm4, %v4952_v46, %v4833_v56  ;;  %v10855_v56 = vld [vmem:[#allocation84_spill] sm:$0xff] }
 0x5b6   : > { %v4986_v4 = vsel %vm4975_vm4, %v4953_v32, %v4835_v14  ;;  %5018 = vst.msk [vmem:[%s10212_s3 + $0x48] sm:$0xff] %vm5008_vm5, %v4985_v11  ;;  %v10854_v32 = vld [vmem:[#allocation88_spill] sm:$0xff]  ;;  %v10856_v11 = vld [vmem:[#allocation93_spill] sm:$0xff] }
 0x5b7   : > { %5019 = vst.msk [vmem:[%s10212_s3 + $0x50] sm:$0xff] %vm5008_vm5, %v4986_v4  ;;  %v4972_v14 = vsel %vm4942_vm3, %v10855_v56, %v10854_v32  ;;  %v10857_v4 = vld [vmem:[#allocation89_spill] sm:$0xff] }
 0x5b8   : > { %v4837_v29 = vpop.permute.xlu1 %4836 }
 0x5b9   : > { %v4839_v0 = vpop.permute.xlu0 %4838  ;;  %v4987_v59 = vsel %vm4975_vm4, %v4954_v3, %v4837_v29  ;;  %v4973_v3 = vsel %vm4942_vm3, %v10857_v4, %v10856_v11 }
 0x5ba   : > { %v4988_v25 = vsel %vm4975_vm4, %v4955_v39, %v4839_v0  ;;  %5020 = vst.msk [vmem:[%s10212_s3 + $0x58] sm:$0xff] %vm5008_vm5, %v4987_v59 }
 0x5bb   : > { %5021 = vst.msk [vmem:[%s10212_s3 + $0x60] sm:$0xff] %vm5008_vm5, %v4988_v25 }
 0x5bc   : > { %v4841_v37 = vpop.permute.xlu1 %4840 }
 0x5bd   : > { %v4843_v31 = vpop.permute.xlu0 %4842  ;;  %v4989_v42 = vsel %vm4975_vm4, %v4956_v18, %v4841_v37 }
 0x5be   : > { %v4990_v20 = vsel %vm4975_vm4, %v4957_v23, %v4843_v31  ;;  %5022 = vst.msk [vmem:[%s10212_s3 + $0x68] sm:$0xff] %vm5008_vm5, %v4989_v42 }
 0x5bf   : > { %5023 = vst.msk [vmem:[%s10212_s3 + $0x70] sm:$0xff] %vm5008_vm5, %v4990_v20 }
 0x5c0   : > { %v4845_v28 = vpop.permute.xlu1 %4844 }
 0x5c1   : > { %v4847_v9 = vpop.permute.xlu0 %4846  ;;  %v4991_v27 = vsel %vm4975_vm4, %v4958_v36, %v4845_v28 }
 0x5c2   : > { %v4992_v45 = vsel %vm4975_vm4, %v4959_v24, %v4847_v9  ;;  %5024 = vst.msk [vmem:[%s10212_s3 + $0x78] sm:$0xff] %vm5008_vm5, %v4991_v27 }
 0x5c3   : > { %5025 = vst.msk [vmem:[%s10212_s3 + $0x80] sm:$0xff] %vm5008_vm5, %v4992_v45 }
 0x5c4   : > { %v4849_v35 = vpop.permute.xlu1 %4848 }
 0x5c5   : > { %v4851_v7 = vpop.permute.xlu0 %4850  ;;  %v4993_v8 = vsel %vm4975_vm4, %v4960_v22, %v4849_v35 }
 0x5c6   : > { %v4994_v41 = vsel %vm4975_vm4, %v4961_v48, %v4851_v7  ;;  %5026 = vst.msk [vmem:[%s10212_s3 + $0x88] sm:$0xff] %vm5008_vm5, %v4993_v8 }
 0x5c7   : > { %5027 = vst.msk [vmem:[%s10212_s3 + $0x90] sm:$0xff] %vm5008_vm5, %v4994_v41 }
 0x5c8   : > { %v4853_v38 = vpop.permute.xlu1 %4852 }
 0x5c9   : > { %v4855_v1 = vpop.permute.xlu0 %4854  ;;  %v4995_v49 = vsel %vm4975_vm4, %v4962_v13, %v4853_v38 }
 0x5ca   : > { %v4996_v2 = vsel %vm4975_vm4, %v4963_v19, %v4855_v1  ;;  %5028 = vst.msk [vmem:[%s10212_s3 + $0x98] sm:$0xff] %vm5008_vm5, %v4995_v49 }
 0x5cb   : > { %5029 = vst.msk [vmem:[%s10212_s3 + $0xa0] sm:$0xff] %vm5008_vm5, %v4996_v2 }
 0x5cc   : > { %v4857_v34 = vpop.permute.xlu1 %4856 }
 0x5cd   : > { %v4859_v47 = vpop.permute.xlu0 %4858  ;;  %v4997_v55 = vsel %vm4975_vm4, %v4964_v54, %v4857_v34 }
 0x5ce   : > { %v4998_v60 = vsel %vm4975_vm4, %v4965_v51, %v4859_v47  ;;  %5030 = vst.msk [vmem:[%s10212_s3 + $0xa8] sm:$0xff] %vm5008_vm5, %v4997_v55 }
 0x5cf   : > { %5031 = vst.msk [vmem:[%s10212_s3 + $0xb0] sm:$0xff] %vm5008_vm5, %v4998_v60 }
 0x5d0   : > { %v4861_v63 = vpop.permute.xlu1 %4860 }
 0x5d1   : > { %v4863_v57 = vpop.permute.xlu0 %4862  ;;  %v4999_v6 = vsel %vm4975_vm4, %v4966_v10, %v4861_v63 }
 0x5d2   : > { %v5000_v53 = vsel %vm4975_vm4, %v4967_v44, %v4863_v57  ;;  %5032 = vst.msk [vmem:[%s10212_s3 + $0xb8] sm:$0xff] %vm5008_vm5, %v4999_v6 }
 0x5d3   : > { %5033 = vst.msk [vmem:[%s10212_s3 + $0xc0] sm:$0xff] %vm5008_vm5, %v5000_v53 }
 0x5d4   : > { %v4865_v58 = vpop.permute.xlu1 %4864 }
 0x5d5   : > { %v4867_v21 = vpop.permute.xlu0 %4866  ;;  %v5001_v16 = vsel %vm4975_vm4, %v4968_v62, %v4865_v58 }
 0x5d6   : > { %v5002_v26 = vsel %vm4975_vm4, %v4969_v17, %v4867_v21  ;;  %5034 = vst.msk [vmem:[%s10212_s3 + $0xc8] sm:$0xff] %vm5008_vm5, %v5001_v16 }
 0x5d7   : > { %5035 = vst.msk [vmem:[%s10212_s3 + $0xd0] sm:$0xff] %vm5008_vm5, %v5002_v26 }
 0x5d8   : > { %v4869_v43 = vpop.permute.xlu1 %4868 }
 0x5d9   : > { %v4871_v30 = vpop.permute.xlu0 %4870  ;;  %v5003_v33 = vsel %vm4975_vm4, %v4970_v12, %v4869_v43 }
 0x5da   : > { %v5004_v46 = vsel %vm4975_vm4, %v4971_v52, %v4871_v30  ;;  %5036 = vst.msk [vmem:[%s10212_s3 + $0xd8] sm:$0xff] %vm5008_vm5, %v5003_v33 }
 0x5db   : > { %5037 = vst.msk [vmem:[%s10212_s3 + $0xe0] sm:$0xff] %vm5008_vm5, %v5004_v46 }
 0x5dc   : > { %v4873_v39 = vpop.permute.xlu1 %4872 }
 0x5dd   : > { %v4875_v29 = vpop.permute.xlu0 %4874  ;;  %v5005_v0 = vsel %vm4975_vm4, %v4972_v14, %v4873_v39 }
 0x5de   : > { %v5006_v59 = vsel %vm4975_vm4, %v4973_v3, %v4875_v29  ;;  %5038 = vst.msk [vmem:[%s10212_s3 + $0xe8] sm:$0xff] %vm5008_vm5, %v5005_v0 }
 0x5df   : > { %5039 = vst.msk [vmem:[%s10212_s3 + $0xf0] sm:$0xff] %vm5008_vm5, %v5006_v59 }
 0x5e0   : > { %v4877_v25 = vpop.permute.xlu1 %4876 }
 0x5e1   : > { %v5007_v18 = vsel %vm4975_vm4, %v10217_v15, %v4877_v25 }
 0x5e2   : > { %5040 = vst.msk [vmem:[%s10212_s3 + $0xf8] sm:$0xff] %vm5008_vm5, %v5007_v18 }
 0x5e3 PF: > { %s12_s9 = sadd.s32 1, %s7096_s9  }
 0x5e4   : > { %p9_p4 = scmp.ge.s32.totalorder %s12_s9, 4  }
 0x5e6   :  { %11 = sbr.rel (!%p9_p4) target bundleno = 1 (0x1), region = 61 }

</bundles_post_ra>
